<compile_context>
chip_gen: v5e
topology: v5e:2x2
jax: 0.10.0
libtpu: 0.0.40
codegen_flags: <defaults>
</compile_context>

<pallas_src>
import functools

import jax
import jax.numpy as jnp
from jax.experimental import pallas as pl
from jax.experimental.pallas import tpu as pltpu

NEG_SLOPE = 0.2
BN_EPS = 1e-5


# ---------------------------------------------------------------------------
# Kernel 1: Conv3d(k=4, s=2, p=1, bias=False) + folded BN affine + LeakyReLU
# ---------------------------------------------------------------------------
def _conv_s2_kernel(x_ref, w_ref, b_ref, o_ref, *, wp, apply_act):
    """One (batch, d_out) grid step of the space-to-depth conv.

    x_ref : (Dp, Hp*Wp + 1, 8*Cin)  bf16  s2d planes for this batch element
    w_ref : (8, 8*Cin, Cout)        bf16  per-tap weights (BN scale folded in)
    b_ref : (1, Cout)               f32   folded BN bias
    o_ref : (Ho*Wp, Cout)                 one output D-plane (padded width Wp)
    """
    d0 = pl.program_id(1)
    n_rows = o_ref.shape[0]
    cout = w_ref.shape[-1]

    acc = jnp.zeros((n_rows, cout), jnp.float32)
    for a in range(2):
        xa = x_ref[d0 + a]                       # (Hp*Wp + 1, 8*Cin)
        for c in range(2):
            for e in range(2):
                tap = 4 * a + 2 * c + e
                z = jnp.dot(xa, w_ref[tap], preferred_element_type=jnp.float32)
                s = c * wp + e                   # shifted-window accumulation
                acc = acc + z[s:s + n_rows, :]

    y = acc + b_ref[...]
    if apply_act:
        y = jnp.where(y >= 0.0, y, y * NEG_SLOPE)
    o_ref[...] = y.astype(o_ref.dtype)


def _pack_conv_weight(w, scale):
    """(Cout, Cin, 4, 4, 4) torch-layout weight -> (8, 8*Cin, Cout) bf16.

    Tap index = 4a+2c+e, K index = ((b*2+d)*2+f)*Cin + cin, where the kernel
    offsets decompose as (2a+b, 2c+d, 2e+f).  Per-Cout BN scale is folded in."""
    cout, cin = w.shape[0], w.shape[1]
    wr = w.reshape(cout, cin, 2, 2, 2, 2, 2, 2)            # (co, ci, a, b, c, d, e, f)
    wr = wr.transpose(2, 4, 6, 3, 5, 7, 1, 0)              # (a, c, e, b, d, f, ci, co)
    wr = wr.reshape(8, 8 * cin, cout) * scale.reshape(1, 1, cout)
    return wr.astype(jnp.bfloat16)


def conv4s2_bn_lrelu(x, w, scale, bias, *, apply_act=True, out_dtype=jnp.bfloat16):
    """Channels-last Conv3d(k=4, s=2, p=1) + folded BN + LeakyReLU.

    x: (N, D, H, W, Cin), w: (Cout, Cin, 4, 4, 4) -> (N, D//2, H//2, W//2, Cout)
    """
    n, d, h, wdt, cin = x.shape
    cout = w.shape[0]
    do, ho, wo = d // 2, h // 2, wdt // 2
    dp, hp, wp = do + 1, ho + 1, wo + 1
    c8 = 8 * cin

    # zero-pad (p=1) + space-to-depth: ~1x input-sized XLA glue, no im2col blowup.
    xp = jnp.pad(x.astype(jnp.bfloat16),
                 ((0, 0), (1, 1), (1, 1), (1, 1), (0, 0)))
    xp = xp.reshape(n, dp, 2, hp, 2, wp, 2, cin)
    xp = xp.transpose(0, 1, 3, 5, 2, 4, 6, 7)              # (n, dp, hp, wp, 2,2,2,cin)
    xp = xp.reshape(n, dp, hp * wp, c8)
    xp = jnp.pad(xp, ((0, 0), (0, 0), (0, 1), (0, 0)))     # +1 slack row for shifts

    w2 = _pack_conv_weight(w, scale)                       # (8, c8, cout) bf16
    b2 = bias.reshape(1, cout).astype(jnp.float32)

    rows_in = hp * wp + 1
    rows_out = ho * wp

    out = pl.pallas_call(
        functools.partial(_conv_s2_kernel, wp=wp, apply_act=apply_act),
        out_shape=jax.ShapeDtypeStruct((n, do, rows_out, cout), out_dtype),
        grid=(n, do),
        in_specs=[
            pl.BlockSpec((None, dp, rows_in, c8), lambda i, j: (i, 0, 0, 0)),
            pl.BlockSpec((8, c8, cout), lambda i, j: (0, 0, 0)),
            pl.BlockSpec((1, cout), lambda i, j: (0, 0)),
        ],
        out_specs=pl.BlockSpec((None, None, rows_out, cout),
                               lambda i, j: (i, j, 0, 0)),
        compiler_params=pltpu.CompilerParams(
            dimension_semantics=("parallel", "parallel")),
    )(xp, w2, b2)

    # drop the padded width column -> channels-last (N, Do, Ho, Wo, Cout)
    out = out.reshape(n, do, ho, wp, cout)[:, :, :, :wo, :]
    return out


# ---------------------------------------------------------------------------
# Kernel 2: fused tail -- cond_map + broadcast/concat + pred1 + pred2 + mean
# ---------------------------------------------------------------------------
def _tail_kernel(h_ref, cond_ref, lw_ref, lb_ref, w1h_ref, w1c_ref, b1_ref,
                 w2_ref, o_ref, *, n_batch):
    """h_ref: (N, P, C4) bf16 features from conv4 (P = 3*3 spatial positions).

    concat([h, cond]) @ W1 is split as h @ W1h + cond @ W1c, so the spatial
    broadcast/concat never materializes.  The final (1,3,3) valid conv has a
    single output position, so it reduces to sum(p1 * w2) per batch element;
    the module's out.mean() is the mean of those N scalars."""
    c = jnp.dot(cond_ref[...], lw_ref[...],
                preferred_element_type=jnp.float32) + lb_ref[...]
    c = jnp.where(c >= 0.0, c, c * NEG_SLOPE)              # (N, cond_dim)

    w1h = w1h_ref[...]
    w1c = w1c_ref[...]
    b1 = b1_ref[...]
    w2 = w2_ref[...]

    tot = jnp.zeros((1, 1), jnp.float32)
    for i in range(n_batch):
        hi = h_ref[i].astype(jnp.float32)                  # (P, C4)
        t = jnp.dot(hi, w1h, preferred_element_type=jnp.float32)
        t = t + jnp.dot(c[i:i + 1, :], w1c,
                        preferred_element_type=jnp.float32) + b1
        t = jnp.where(t >= 0.0, t, t * NEG_SLOPE)          # (P, pred_mid)
        tot = tot + jnp.sum(t * w2, axis=(0, 1), keepdims=True)
    o_ref[...] = tot / float(n_batch)


# ---------------------------------------------------------------------------
# Deterministic synthetic parameters (no checkpoint)
# ---------------------------------------------------------------------------
def _conv_w(key, cout, cin, ksize):
    fan_in = cin * ksize[0] * ksize[1] * ksize[2]
    return jax.random.normal(key, (cout, cin) + ksize, jnp.float32) / jnp.sqrt(fan_in)


def _bn_params(key, ch):
    k1, k2, k3, k4 = jax.random.split(key, 4)
    return dict(
        gamma=jax.random.uniform(k1, (ch,), jnp.float32, 0.5, 1.5),
        beta=jax.random.normal(k2, (ch,), jnp.float32) * 0.1,
        mean=jax.random.normal(k3, (ch,), jnp.float32) * 0.1,
        var=jax.random.uniform(k4, (ch,), jnp.float32, 0.5, 1.5),
    )


def init_params(key, num_channels=3, mid_ch=8, cond_dim=16):
    keys = jax.random.split(key, 13)
    p = {}
    # x_map
    p['conv1_w'] = _conv_w(keys[0], mid_ch, num_channels, (4, 4, 4))
    p['conv2_w'] = _conv_w(keys[1], mid_ch * 2, mid_ch, (4, 4, 4))
    p['bn2'] = _bn_params(keys[2], mid_ch * 2)
    p['conv3_w'] = _conv_w(keys[3], mid_ch * 4, mid_ch * 2, (4, 4, 4))
    p['bn3'] = _bn_params(keys[4], mid_ch * 4)
    p['conv4_w'] = _conv_w(keys[5], mid_ch * 8, mid_ch * 4, (4, 4, 4))
    p['bn4'] = _bn_params(keys[6], mid_ch * 8)
    # cond_map: Linear(cond_dim, cond_dim) (torch layout (out, in)) + BN1d
    p['lin_w'] = jax.random.normal(keys[7], (cond_dim, cond_dim), jnp.float32) / jnp.sqrt(cond_dim)
    p['lin_b'] = jax.random.normal(keys[8], (cond_dim,), jnp.float32) * 0.1
    p['bn_cond'] = _bn_params(keys[9], cond_dim)
    # pred (intermediate width = mid_ch*8, mirroring original where 512 == mid_ch*8)
    pred_mid = mid_ch * 8
    p['pred1_w'] = _conv_w(keys[10], pred_mid, mid_ch * 8 + cond_dim, (1, 1, 1))
    p['bn5'] = _bn_params(keys[11], pred_mid)
    p['pred2_w'] = _conv_w(keys[12], 1, pred_mid, (1, 3, 3))
    return p


def _bn_scale_bias(bn):
    s = bn['gamma'] * jax.lax.rsqrt(bn['var'] + BN_EPS)
    b = bn['beta'] - bn['mean'] * s
    return s, b


# ---------------------------------------------------------------------------
# Forward pass (mirrors VideoDiscrim.forward with cond provided; inference BN)
# ---------------------------------------------------------------------------
def video_discrim_forward(params, x, cond):
    """x: (N, D, H, W, C) channels-last, cond: (N, cond_dim) -> scalar mean."""
    c1 = params['conv1_w'].shape[0]
    one = jnp.ones((c1,), jnp.float32)
    zero = jnp.zeros((c1,), jnp.float32)

    # --- x_map: conv -> (BN) -> LeakyReLU, fused per layer ---
    h = conv4s2_bn_lrelu(x, params['conv1_w'], one, zero)
    s, b = _bn_scale_bias(params['bn2'])
    h = conv4s2_bn_lrelu(h, params['conv2_w'], s, b)
    s, b = _bn_scale_bias(params['bn3'])
    h = conv4s2_bn_lrelu(h, params['conv3_w'], s, b)
    s, b = _bn_scale_bias(params['bn4'])
    h = conv4s2_bn_lrelu(h, params['conv4_w'], s, b)        # (N, 1, 3, 3, mid_ch*8)

    n = h.shape[0]
    c4 = h.shape[-1]
    p_sp = h.shape[1] * h.shape[2] * h.shape[3]             # 1*3*3 = 9 positions
    h9 = h.reshape(n, p_sp, c4)

    # --- tail parameter folding (inference-mode BN, scales folded into weights) ---
    bnc = params['bn_cond']
    s_c = bnc['gamma'] * jax.lax.rsqrt(bnc['var'] + BN_EPS)
    lw = params['lin_w'].T * s_c[None, :]                                   # (in, out)
    lb = (params['lin_b'] * s_c + bnc['beta'] - bnc['mean'] * s_c).reshape(1, -1)

    s5, b5 = _bn_scale_bias(params['bn5'])
    pm = params['pred1_w'].shape[0]
    w1 = params['pred1_w'].reshape(pm, -1)                                  # (pm, c4+cd)
    w1h = w1[:, :c4].T * s5[None, :]                                        # (c4, pm)
    w1c = w1[:, c4:].T * s5[None, :]                                        # (cd, pm)
    b1 = b5.reshape(1, -1)

    w2 = params['pred2_w']                                                  # (1, pm, 1, 3, 3)
    w2r = jnp.transpose(w2[0, :, 0, :, :], (1, 2, 0)).reshape(p_sp, pm)     # (9, pm)

    out = pl.pallas_call(
        functools.partial(_tail_kernel, n_batch=n),
        out_shape=jax.ShapeDtypeStruct((1, 1), jnp.float32),
    )(h9, cond.astype(jnp.float32), lw.astype(jnp.float32), lb,
      w1h.astype(jnp.float32), w1c.astype(jnp.float32), b1,
      w2r.astype(jnp.float32))
    return out[0, 0]


if __name__ == "__main__":
    key = jax.random.PRNGKey(0)
    k_params, k_x, k_cond = jax.random.split(key, 3)

    # 4 stride-2 convs + final (1,3,3) valid conv require D >= 16, H = W >= 48.
    num_channels, mid_ch, cond_dim = 3, 8, 16
    params = init_params(k_params, num_channels, mid_ch, cond_dim)

    # channels-last video input: (N, D, H, W, C)
    x = jax.random.normal(k_x, (2, 16, 48, 48, num_channels), jnp.float32)
    cond = jax.random.normal(k_cond, (2, cond_dim), jnp.float32)

    fwd = jax.jit(video_discrim_forward)
    out = jax.block_until_ready(fwd(params, x, cond))
    assert out.shape == () and bool(jnp.isfinite(out))
    print("KERNEL_OK")
</pallas_src>

<mosaic_0001>
module attributes {stable_mosaic.version = 11 : i64} {
  func.func @_conv_s2_kernel(%arg0: i32, %arg1: i32, %arg2: memref<1x9x626x24xbf16, #tpu.memory_space<vmem>>, %arg3: memref<8x24x8xbf16, #tpu.memory_space<vmem>>, %arg4: memref<1x8xf32, #tpu.memory_space<vmem>>, %arg5: memref<1x1x600x8xbf16, #tpu.memory_space<vmem>>) attributes {dimension_semantics = [#tpu.dimension_semantics<parallel>, #tpu.dimension_semantics<parallel>], iteration_bounds = array<i64: 2, 8>, scalar_prefetch = 0 : i64, scratch_operands = 0 : i64, tpu.core_type = #tpu.core_type<tc>, window_params = [{transform_indices = @transform_0, window_bounds = array<i64: 1, 9, 626, 24>}, {pipeline_mode = #tpu.pipeline_mode<synchronous>, transform_indices = @transform_1, window_bounds = array<i64: 8, 24, 8>}, {pipeline_mode = #tpu.pipeline_mode<synchronous>, transform_indices = @transform_2, window_bounds = array<i64: 1, 8>}, {transform_indices = @transform_3, window_bounds = array<i64: 1, 1, 600, 8>}]} {
    %cst = arith.constant 0.000000e+00 : f32
    %0 = vector.broadcast %cst : f32 to vector<600x8xf32>
    %c0_i32 = arith.constant 0 : i32
    %1 = arith.addi %arg1, %c0_i32 : i32
    %c0 = arith.constant 0 : index
    %2 = arith.index_cast %1 : i32 to index
    %c0_0 = arith.constant 0 : index
    %c0_1 = arith.constant 0 : index
    %3 = vector.load %arg2[%c0, %2, %c0_0, %c0_1] : memref<1x9x626x24xbf16, #tpu.memory_space<vmem>>, vector<1x1x626x24xbf16>
    %4 = vector.shape_cast %3 : vector<1x1x626x24xbf16> to vector<626x24xbf16>
    %c0_2 = arith.constant 0 : index
    %c0_3 = arith.constant 0 : index
    %c0_4 = arith.constant 0 : index
    %5 = vector.load %arg3[%c0_2, %c0_3, %c0_4] : memref<8x24x8xbf16, #tpu.memory_space<vmem>>, vector<1x24x8xbf16>
    %6 = vector.shape_cast %5 : vector<1x24x8xbf16> to vector<24x8xbf16>
    %cst_5 = arith.constant dense<0.000000e+00> : vector<626x8xf32>
    %7 = tpu.matmul %4, %6, %cst_5 {dimension_numbers = #tpu.dot_dimension_numbers<[1], [0], [0], [1], [0, 0, 1, 1], [], []>} : vector<626x24xbf16>, vector<24x8xbf16>, vector<626x8xf32> -> vector<626x8xf32>
    %8 = vector.extract_strided_slice %7 {offsets = [0, 0], sizes = [600, 8], strides = [1, 1]} : vector<626x8xf32> to vector<600x8xf32>
    %9 = arith.addf %0, %8 : vector<600x8xf32>
    %c1 = arith.constant 1 : index
    %c0_6 = arith.constant 0 : index
    %c0_7 = arith.constant 0 : index
    %10 = vector.load %arg3[%c1, %c0_6, %c0_7] : memref<8x24x8xbf16, #tpu.memory_space<vmem>>, vector<1x24x8xbf16>
    %11 = vector.shape_cast %10 : vector<1x24x8xbf16> to vector<24x8xbf16>
    %cst_8 = arith.constant dense<0.000000e+00> : vector<626x8xf32>
    %12 = tpu.matmul %4, %11, %cst_8 {dimension_numbers = #tpu.dot_dimension_numbers<[1], [0], [0], [1], [0, 0, 1, 1], [], []>} : vector<626x24xbf16>, vector<24x8xbf16>, vector<626x8xf32> -> vector<626x8xf32>
    %13 = vector.extract_strided_slice %12 {offsets = [1, 0], sizes = [600, 8], strides = [1, 1]} : vector<626x8xf32> to vector<600x8xf32>
    %14 = arith.addf %9, %13 : vector<600x8xf32>
    %c2 = arith.constant 2 : index
    %c0_9 = arith.constant 0 : index
    %c0_10 = arith.constant 0 : index
    %15 = vector.load %arg3[%c2, %c0_9, %c0_10] : memref<8x24x8xbf16, #tpu.memory_space<vmem>>, vector<1x24x8xbf16>
    %16 = vector.shape_cast %15 : vector<1x24x8xbf16> to vector<24x8xbf16>
    %cst_11 = arith.constant dense<0.000000e+00> : vector<626x8xf32>
    %17 = tpu.matmul %4, %16, %cst_11 {dimension_numbers = #tpu.dot_dimension_numbers<[1], [0], [0], [1], [0, 0, 1, 1], [], []>} : vector<626x24xbf16>, vector<24x8xbf16>, vector<626x8xf32> -> vector<626x8xf32>
    %18 = vector.extract_strided_slice %17 {offsets = [25, 0], sizes = [600, 8], strides = [1, 1]} : vector<626x8xf32> to vector<600x8xf32>
    %19 = arith.addf %14, %18 : vector<600x8xf32>
    %c3 = arith.constant 3 : index
    %c0_12 = arith.constant 0 : index
    %c0_13 = arith.constant 0 : index
    %20 = vector.load %arg3[%c3, %c0_12, %c0_13] : memref<8x24x8xbf16, #tpu.memory_space<vmem>>, vector<1x24x8xbf16>
    %21 = vector.shape_cast %20 : vector<1x24x8xbf16> to vector<24x8xbf16>
    %cst_14 = arith.constant dense<0.000000e+00> : vector<626x8xf32>
    %22 = tpu.matmul %4, %21, %cst_14 {dimension_numbers = #tpu.dot_dimension_numbers<[1], [0], [0], [1], [0, 0, 1, 1], [], []>} : vector<626x24xbf16>, vector<24x8xbf16>, vector<626x8xf32> -> vector<626x8xf32>
    %23 = vector.extract_strided_slice %22 {offsets = [26, 0], sizes = [600, 8], strides = [1, 1]} : vector<626x8xf32> to vector<600x8xf32>
    %24 = arith.addf %19, %23 : vector<600x8xf32>
    %c1_i32 = arith.constant 1 : i32
    %25 = arith.addi %arg1, %c1_i32 : i32
    %c0_15 = arith.constant 0 : index
    %26 = arith.index_cast %25 : i32 to index
    %c0_16 = arith.constant 0 : index
    %c0_17 = arith.constant 0 : index
    %27 = vector.load %arg2[%c0_15, %26, %c0_16, %c0_17] : memref<1x9x626x24xbf16, #tpu.memory_space<vmem>>, vector<1x1x626x24xbf16>
    %28 = vector.shape_cast %27 : vector<1x1x626x24xbf16> to vector<626x24xbf16>
    %c4 = arith.constant 4 : index
    %c0_18 = arith.constant 0 : index
    %c0_19 = arith.constant 0 : index
    %29 = vector.load %arg3[%c4, %c0_18, %c0_19] : memref<8x24x8xbf16, #tpu.memory_space<vmem>>, vector<1x24x8xbf16>
    %30 = vector.shape_cast %29 : vector<1x24x8xbf16> to vector<24x8xbf16>
    %cst_20 = arith.constant dense<0.000000e+00> : vector<626x8xf32>
    %31 = tpu.matmul %28, %30, %cst_20 {dimension_numbers = #tpu.dot_dimension_numbers<[1], [0], [0], [1], [0, 0, 1, 1], [], []>} : vector<626x24xbf16>, vector<24x8xbf16>, vector<626x8xf32> -> vector<626x8xf32>
    %32 = vector.extract_strided_slice %31 {offsets = [0, 0], sizes = [600, 8], strides = [1, 1]} : vector<626x8xf32> to vector<600x8xf32>
    %33 = arith.addf %24, %32 : vector<600x8xf32>
    %c5 = arith.constant 5 : index
    %c0_21 = arith.constant 0 : index
    %c0_22 = arith.constant 0 : index
    %34 = vector.load %arg3[%c5, %c0_21, %c0_22] : memref<8x24x8xbf16, #tpu.memory_space<vmem>>, vector<1x24x8xbf16>
    %35 = vector.shape_cast %34 : vector<1x24x8xbf16> to vector<24x8xbf16>
    %cst_23 = arith.constant dense<0.000000e+00> : vector<626x8xf32>
    %36 = tpu.matmul %28, %35, %cst_23 {dimension_numbers = #tpu.dot_dimension_numbers<[1], [0], [0], [1], [0, 0, 1, 1], [], []>} : vector<626x24xbf16>, vector<24x8xbf16>, vector<626x8xf32> -> vector<626x8xf32>
    %37 = vector.extract_strided_slice %36 {offsets = [1, 0], sizes = [600, 8], strides = [1, 1]} : vector<626x8xf32> to vector<600x8xf32>
    %38 = arith.addf %33, %37 : vector<600x8xf32>
    %c6 = arith.constant 6 : index
    %c0_24 = arith.constant 0 : index
    %c0_25 = arith.constant 0 : index
    %39 = vector.load %arg3[%c6, %c0_24, %c0_25] : memref<8x24x8xbf16, #tpu.memory_space<vmem>>, vector<1x24x8xbf16>
    %40 = vector.shape_cast %39 : vector<1x24x8xbf16> to vector<24x8xbf16>
    %cst_26 = arith.constant dense<0.000000e+00> : vector<626x8xf32>
    %41 = tpu.matmul %28, %40, %cst_26 {dimension_numbers = #tpu.dot_dimension_numbers<[1], [0], [0], [1], [0, 0, 1, 1], [], []>} : vector<626x24xbf16>, vector<24x8xbf16>, vector<626x8xf32> -> vector<626x8xf32>
    %42 = vector.extract_strided_slice %41 {offsets = [25, 0], sizes = [600, 8], strides = [1, 1]} : vector<626x8xf32> to vector<600x8xf32>
    %43 = arith.addf %38, %42 : vector<600x8xf32>
    %c7 = arith.constant 7 : index
    %c0_27 = arith.constant 0 : index
    %c0_28 = arith.constant 0 : index
    %44 = vector.load %arg3[%c7, %c0_27, %c0_28] : memref<8x24x8xbf16, #tpu.memory_space<vmem>>, vector<1x24x8xbf16>
    %45 = vector.shape_cast %44 : vector<1x24x8xbf16> to vector<24x8xbf16>
    %cst_29 = arith.constant dense<0.000000e+00> : vector<626x8xf32>
    %46 = tpu.matmul %28, %45, %cst_29 {dimension_numbers = #tpu.dot_dimension_numbers<[1], [0], [0], [1], [0, 0, 1, 1], [], []>} : vector<626x24xbf16>, vector<24x8xbf16>, vector<626x8xf32> -> vector<626x8xf32>
    %47 = vector.extract_strided_slice %46 {offsets = [26, 0], sizes = [600, 8], strides = [1, 1]} : vector<626x8xf32> to vector<600x8xf32>
    %48 = arith.addf %43, %47 : vector<600x8xf32>
    %c0_30 = arith.constant 0 : index
    %c0_31 = arith.constant 0 : index
    %49 = vector.load %arg4[%c0_30, %c0_31] : memref<1x8xf32, #tpu.memory_space<vmem>>, vector<1x8xf32>
    %50 = vector.broadcast %49 : vector<1x8xf32> to vector<600x8xf32>
    %51 = arith.addf %48, %50 : vector<600x8xf32>
    %cst_32 = arith.constant 0.000000e+00 : f32
    %52 = vector.broadcast %cst_32 : f32 to vector<600x8xf32>
    %53 = arith.cmpf oge, %51, %52 : vector<600x8xf32>
    %cst_33 = arith.constant 2.000000e-01 : f32
    %54 = vector.broadcast %cst_33 : f32 to vector<600x8xf32>
    %55 = arith.mulf %51, %54 : vector<600x8xf32>
    %56 = arith.select %53, %51, %55 : vector<600x8xi1>, vector<600x8xf32>
    %57 = arith.truncf %56 : vector<600x8xf32> to vector<600x8xbf16>
    %c0_34 = arith.constant 0 : index
    %c0_35 = arith.constant 0 : index
    %c0_36 = arith.constant 0 : index
    %c0_37 = arith.constant 0 : index
    %58 = vector.load %arg5[%c0_34, %c0_35, %c0_36, %c0_37] : memref<1x1x600x8xbf16, #tpu.memory_space<vmem>>, vector<1x1x600x8xbf16>
    %59 = vector.shape_cast %58 : vector<1x1x600x8xbf16> to vector<600x8xbf16>
    %60 = vector.shape_cast %57 : vector<600x8xbf16> to vector<1x1x600x8xbf16>
    tpu.vector_store %arg5[%c0_34, %c0_35, %c0_36, %c0_37], %60 {strides = array<i32>} : memref<1x1x600x8xbf16, #tpu.memory_space<vmem>>, vector<1x1x600x8xbf16>,
    return
  }
  func.func @transform_0(%arg0: i32, %arg1: i32) -> (i32, i32, i32, i32) {
    %c0_i32 = arith.constant 0 : i32
    %c0_i32_0 = arith.constant 0 : i32
    %c0_i32_1 = arith.constant 0 : i32
    %c0_i32_2 = arith.constant 0 : i32
    return %arg0, %c0_i32, %c0_i32_0, %c0_i32_1 : i32, i32, i32, i32
  }
  func.func @transform_1(%arg0: i32, %arg1: i32) -> (i32, i32, i32) {
    %c0_i32 = arith.constant 0 : i32
    %c0_i32_0 = arith.constant 0 : i32
    %c0_i32_1 = arith.constant 0 : i32
    %c0_i32_2 = arith.constant 0 : i32
    return %c0_i32, %c0_i32_0, %c0_i32_1 : i32, i32, i32
  }
  func.func @transform_2(%arg0: i32, %arg1: i32) -> (i32, i32) {
    %c0_i32 = arith.constant 0 : i32
    %c0_i32_0 = arith.constant 0 : i32
    %c0_i32_1 = arith.constant 0 : i32
    return %c0_i32, %c0_i32_0 : i32, i32
  }
  func.func @transform_3(%arg0: i32, %arg1: i32) -> (i32, i32, i32, i32) {
    %c0_i32 = arith.constant 0 : i32
    %c0_i32_0 = arith.constant 0 : i32
    %c0_i32_1 = arith.constant 0 : i32
    return %arg0, %arg1, %c0_i32, %c0_i32_0 : i32, i32, i32, i32
  }
}

module attributes {stable_mosaic.version = 11 : i64} {
  func.func @_conv_s2_kernel(%arg0: i32, %arg1: i32, %arg2: memref<1x5x170x64xbf16, #tpu.memory_space<vmem>>, %arg3: memref<8x64x16xbf16, #tpu.memory_space<vmem>>, %arg4: memref<1x16xf32, #tpu.memory_space<vmem>>, %arg5: memref<1x1x156x16xbf16, #tpu.memory_space<vmem>>) attributes {dimension_semantics = [#tpu.dimension_semantics<parallel>, #tpu.dimension_semantics<parallel>], iteration_bounds = array<i64: 2, 4>, scalar_prefetch = 0 : i64, scratch_operands = 0 : i64, tpu.core_type = #tpu.core_type<tc>, window_params = [{transform_indices = @transform_0, window_bounds = array<i64: 1, 5, 170, 64>}, {pipeline_mode = #tpu.pipeline_mode<synchronous>, transform_indices = @transform_1, window_bounds = array<i64: 8, 64, 16>}, {pipeline_mode = #tpu.pipeline_mode<synchronous>, transform_indices = @transform_2, window_bounds = array<i64: 1, 16>}, {transform_indices = @transform_3, window_bounds = array<i64: 1, 1, 156, 16>}]} {
    %cst = arith.constant 0.000000e+00 : f32
    %0 = vector.broadcast %cst : f32 to vector<156x16xf32>
    %c0_i32 = arith.constant 0 : i32
    %1 = arith.addi %arg1, %c0_i32 : i32
    %c0 = arith.constant 0 : index
    %2 = arith.index_cast %1 : i32 to index
    %c0_0 = arith.constant 0 : index
    %c0_1 = arith.constant 0 : index
    %3 = vector.load %arg2[%c0, %2, %c0_0, %c0_1] : memref<1x5x170x64xbf16, #tpu.memory_space<vmem>>, vector<1x1x170x64xbf16>
    %4 = vector.shape_cast %3 : vector<1x1x170x64xbf16> to vector<170x64xbf16>
    %c0_2 = arith.constant 0 : index
    %c0_3 = arith.constant 0 : index
    %c0_4 = arith.constant 0 : index
    %5 = vector.load %arg3[%c0_2, %c0_3, %c0_4] : memref<8x64x16xbf16, #tpu.memory_space<vmem>>, vector<1x64x16xbf16>
    %6 = vector.shape_cast %5 : vector<1x64x16xbf16> to vector<64x16xbf16>
    %cst_5 = arith.constant dense<0.000000e+00> : vector<170x16xf32>
    %7 = tpu.matmul %4, %6, %cst_5 {dimension_numbers = #tpu.dot_dimension_numbers<[1], [0], [0], [1], [0, 0, 1, 1], [], []>} : vector<170x64xbf16>, vector<64x16xbf16>, vector<170x16xf32> -> vector<170x16xf32>
    %8 = vector.extract_strided_slice %7 {offsets = [0, 0], sizes = [156, 16], strides = [1, 1]} : vector<170x16xf32> to vector<156x16xf32>
    %9 = arith.addf %0, %8 : vector<156x16xf32>
    %c1 = arith.constant 1 : index
    %c0_6 = arith.constant 0 : index
    %c0_7 = arith.constant 0 : index
    %10 = vector.load %arg3[%c1, %c0_6, %c0_7] : memref<8x64x16xbf16, #tpu.memory_space<vmem>>, vector<1x64x16xbf16>
    %11 = vector.shape_cast %10 : vector<1x64x16xbf16> to vector<64x16xbf16>
    %cst_8 = arith.constant dense<0.000000e+00> : vector<170x16xf32>
    %12 = tpu.matmul %4, %11, %cst_8 {dimension_numbers = #tpu.dot_dimension_numbers<[1], [0], [0], [1], [0, 0, 1, 1], [], []>} : vector<170x64xbf16>, vector<64x16xbf16>, vector<170x16xf32> -> vector<170x16xf32>
    %13 = vector.extract_strided_slice %12 {offsets = [1, 0], sizes = [156, 16], strides = [1, 1]} : vector<170x16xf32> to vector<156x16xf32>
    %14 = arith.addf %9, %13 : vector<156x16xf32>
    %c2 = arith.constant 2 : index
    %c0_9 = arith.constant 0 : index
    %c0_10 = arith.constant 0 : index
    %15 = vector.load %arg3[%c2, %c0_9, %c0_10] : memref<8x64x16xbf16, #tpu.memory_space<vmem>>, vector<1x64x16xbf16>
    %16 = vector.shape_cast %15 : vector<1x64x16xbf16> to vector<64x16xbf16>
    %cst_11 = arith.constant dense<0.000000e+00> : vector<170x16xf32>
    %17 = tpu.matmul %4, %16, %cst_11 {dimension_numbers = #tpu.dot_dimension_numbers<[1], [0], [0], [1], [0, 0, 1, 1], [], []>} : vector<170x64xbf16>, vector<64x16xbf16>, vector<170x16xf32> -> vector<170x16xf32>
    %18 = vector.extract_strided_slice %17 {offsets = [13, 0], sizes = [156, 16], strides = [1, 1]} : vector<170x16xf32> to vector<156x16xf32>
    %19 = arith.addf %14, %18 : vector<156x16xf32>
    %c3 = arith.constant 3 : index
    %c0_12 = arith.constant 0 : index
    %c0_13 = arith.constant 0 : index
    %20 = vector.load %arg3[%c3, %c0_12, %c0_13] : memref<8x64x16xbf16, #tpu.memory_space<vmem>>, vector<1x64x16xbf16>
    %21 = vector.shape_cast %20 : vector<1x64x16xbf16> to vector<64x16xbf16>
    %cst_14 = arith.constant dense<0.000000e+00> : vector<170x16xf32>
    %22 = tpu.matmul %4, %21, %cst_14 {dimension_numbers = #tpu.dot_dimension_numbers<[1], [0], [0], [1], [0, 0, 1, 1], [], []>} : vector<170x64xbf16>, vector<64x16xbf16>, vector<170x16xf32> -> vector<170x16xf32>
    %23 = vector.extract_strided_slice %22 {offsets = [14, 0], sizes = [156, 16], strides = [1, 1]} : vector<170x16xf32> to vector<156x16xf32>
    %24 = arith.addf %19, %23 : vector<156x16xf32>
    %c1_i32 = arith.constant 1 : i32
    %25 = arith.addi %arg1, %c1_i32 : i32
    %c0_15 = arith.constant 0 : index
    %26 = arith.index_cast %25 : i32 to index
    %c0_16 = arith.constant 0 : index
    %c0_17 = arith.constant 0 : index
    %27 = vector.load %arg2[%c0_15, %26, %c0_16, %c0_17] : memref<1x5x170x64xbf16, #tpu.memory_space<vmem>>, vector<1x1x170x64xbf16>
    %28 = vector.shape_cast %27 : vector<1x1x170x64xbf16> to vector<170x64xbf16>
    %c4 = arith.constant 4 : index
    %c0_18 = arith.constant 0 : index
    %c0_19 = arith.constant 0 : index
    %29 = vector.load %arg3[%c4, %c0_18, %c0_19] : memref<8x64x16xbf16, #tpu.memory_space<vmem>>, vector<1x64x16xbf16>
    %30 = vector.shape_cast %29 : vector<1x64x16xbf16> to vector<64x16xbf16>
    %cst_20 = arith.constant dense<0.000000e+00> : vector<170x16xf32>
    %31 = tpu.matmul %28, %30, %cst_20 {dimension_numbers = #tpu.dot_dimension_numbers<[1], [0], [0], [1], [0, 0, 1, 1], [], []>} : vector<170x64xbf16>, vector<64x16xbf16>, vector<170x16xf32> -> vector<170x16xf32>
    %32 = vector.extract_strided_slice %31 {offsets = [0, 0], sizes = [156, 16], strides = [1, 1]} : vector<170x16xf32> to vector<156x16xf32>
    %33 = arith.addf %24, %32 : vector<156x16xf32>
    %c5 = arith.constant 5 : index
    %c0_21 = arith.constant 0 : index
    %c0_22 = arith.constant 0 : index
    %34 = vector.load %arg3[%c5, %c0_21, %c0_22] : memref<8x64x16xbf16, #tpu.memory_space<vmem>>, vector<1x64x16xbf16>
    %35 = vector.shape_cast %34 : vector<1x64x16xbf16> to vector<64x16xbf16>
    %cst_23 = arith.constant dense<0.000000e+00> : vector<170x16xf32>
    %36 = tpu.matmul %28, %35, %cst_23 {dimension_numbers = #tpu.dot_dimension_numbers<[1], [0], [0], [1], [0, 0, 1, 1], [], []>} : vector<170x64xbf16>, vector<64x16xbf16>, vector<170x16xf32> -> vector<170x16xf32>
    %37 = vector.extract_strided_slice %36 {offsets = [1, 0], sizes = [156, 16], strides = [1, 1]} : vector<170x16xf32> to vector<156x16xf32>
    %38 = arith.addf %33, %37 : vector<156x16xf32>
    %c6 = arith.constant 6 : index
    %c0_24 = arith.constant 0 : index
    %c0_25 = arith.constant 0 : index
    %39 = vector.load %arg3[%c6, %c0_24, %c0_25] : memref<8x64x16xbf16, #tpu.memory_space<vmem>>, vector<1x64x16xbf16>
    %40 = vector.shape_cast %39 : vector<1x64x16xbf16> to vector<64x16xbf16>
    %cst_26 = arith.constant dense<0.000000e+00> : vector<170x16xf32>
    %41 = tpu.matmul %28, %40, %cst_26 {dimension_numbers = #tpu.dot_dimension_numbers<[1], [0], [0], [1], [0, 0, 1, 1], [], []>} : vector<170x64xbf16>, vector<64x16xbf16>, vector<170x16xf32> -> vector<170x16xf32>
    %42 = vector.extract_strided_slice %41 {offsets = [13, 0], sizes = [156, 16], strides = [1, 1]} : vector<170x16xf32> to vector<156x16xf32>
    %43 = arith.addf %38, %42 : vector<156x16xf32>
    %c7 = arith.constant 7 : index
    %c0_27 = arith.constant 0 : index
    %c0_28 = arith.constant 0 : index
    %44 = vector.load %arg3[%c7, %c0_27, %c0_28] : memref<8x64x16xbf16, #tpu.memory_space<vmem>>, vector<1x64x16xbf16>
    %45 = vector.shape_cast %44 : vector<1x64x16xbf16> to vector<64x16xbf16>
    %cst_29 = arith.constant dense<0.000000e+00> : vector<170x16xf32>
    %46 = tpu.matmul %28, %45, %cst_29 {dimension_numbers = #tpu.dot_dimension_numbers<[1], [0], [0], [1], [0, 0, 1, 1], [], []>} : vector<170x64xbf16>, vector<64x16xbf16>, vector<170x16xf32> -> vector<170x16xf32>
    %47 = vector.extract_strided_slice %46 {offsets = [14, 0], sizes = [156, 16], strides = [1, 1]} : vector<170x16xf32> to vector<156x16xf32>
    %48 = arith.addf %43, %47 : vector<156x16xf32>
    %c0_30 = arith.constant 0 : index
    %c0_31 = arith.constant 0 : index
    %49 = vector.load %arg4[%c0_30, %c0_31] : memref<1x16xf32, #tpu.memory_space<vmem>>, vector<1x16xf32>
    %50 = vector.broadcast %49 : vector<1x16xf32> to vector<156x16xf32>
    %51 = arith.addf %48, %50 : vector<156x16xf32>
    %cst_32 = arith.constant 0.000000e+00 : f32
    %52 = vector.broadcast %cst_32 : f32 to vector<156x16xf32>
    %53 = arith.cmpf oge, %51, %52 : vector<156x16xf32>
    %cst_33 = arith.constant 2.000000e-01 : f32
    %54 = vector.broadcast %cst_33 : f32 to vector<156x16xf32>
    %55 = arith.mulf %51, %54 : vector<156x16xf32>
    %56 = arith.select %53, %51, %55 : vector<156x16xi1>, vector<156x16xf32>
    %57 = arith.truncf %56 : vector<156x16xf32> to vector<156x16xbf16>
    %c0_34 = arith.constant 0 : index
    %c0_35 = arith.constant 0 : index
    %c0_36 = arith.constant 0 : index
    %c0_37 = arith.constant 0 : index
    %58 = vector.load %arg5[%c0_34, %c0_35, %c0_36, %c0_37] : memref<1x1x156x16xbf16, #tpu.memory_space<vmem>>, vector<1x1x156x16xbf16>
    %59 = vector.shape_cast %58 : vector<1x1x156x16xbf16> to vector<156x16xbf16>
    %60 = vector.shape_cast %57 : vector<156x16xbf16> to vector<1x1x156x16xbf16>
    tpu.vector_store %arg5[%c0_34, %c0_35, %c0_36, %c0_37], %60 {strides = array<i32>} : memref<1x1x156x16xbf16, #tpu.memory_space<vmem>>, vector<1x1x156x16xbf16>,
    return
  }
  func.func @transform_0(%arg0: i32, %arg1: i32) -> (i32, i32, i32, i32) {
    %c0_i32 = arith.constant 0 : i32
    %c0_i32_0 = arith.constant 0 : i32
    %c0_i32_1 = arith.constant 0 : i32
    %c0_i32_2 = arith.constant 0 : i32
    return %arg0, %c0_i32, %c0_i32_0, %c0_i32_1 : i32, i32, i32, i32
  }
  func.func @transform_1(%arg0: i32, %arg1: i32) -> (i32, i32, i32) {
    %c0_i32 = arith.constant 0 : i32
    %c0_i32_0 = arith.constant 0 : i32
    %c0_i32_1 = arith.constant 0 : i32
    %c0_i32_2 = arith.constant 0 : i32
    return %c0_i32, %c0_i32_0, %c0_i32_1 : i32, i32, i32
  }
  func.func @transform_2(%arg0: i32, %arg1: i32) -> (i32, i32) {
    %c0_i32 = arith.constant 0 : i32
    %c0_i32_0 = arith.constant 0 : i32
    %c0_i32_1 = arith.constant 0 : i32
    return %c0_i32, %c0_i32_0 : i32, i32
  }
  func.func @transform_3(%arg0: i32, %arg1: i32) -> (i32, i32, i32, i32) {
    %c0_i32 = arith.constant 0 : i32
    %c0_i32_0 = arith.constant 0 : i32
    %c0_i32_1 = arith.constant 0 : i32
    return %arg0, %arg1, %c0_i32, %c0_i32_0 : i32, i32, i32, i32
  }
}

module attributes {stable_mosaic.version = 11 : i64} {
  func.func @_conv_s2_kernel(%arg0: i32, %arg1: i32, %arg2: memref<1x3x50x128xbf16, #tpu.memory_space<vmem>>, %arg3: memref<8x128x32xbf16, #tpu.memory_space<vmem>>, %arg4: memref<1x32xf32, #tpu.memory_space<vmem>>, %arg5: memref<1x1x42x32xbf16, #tpu.memory_space<vmem>>) attributes {dimension_semantics = [#tpu.dimension_semantics<parallel>, #tpu.dimension_semantics<parallel>], iteration_bounds = array<i64: 2, 2>, scalar_prefetch = 0 : i64, scratch_operands = 0 : i64, tpu.core_type = #tpu.core_type<tc>, window_params = [{transform_indices = @transform_0, window_bounds = array<i64: 1, 3, 50, 128>}, {pipeline_mode = #tpu.pipeline_mode<synchronous>, transform_indices = @transform_1, window_bounds = array<i64: 8, 128, 32>}, {pipeline_mode = #tpu.pipeline_mode<synchronous>, transform_indices = @transform_2, window_bounds = array<i64: 1, 32>}, {transform_indices = @transform_3, window_bounds = array<i64: 1, 1, 42, 32>}]} {
    %cst = arith.constant 0.000000e+00 : f32
    %0 = vector.broadcast %cst : f32 to vector<42x32xf32>
    %c0_i32 = arith.constant 0 : i32
    %1 = arith.addi %arg1, %c0_i32 : i32
    %c0 = arith.constant 0 : index
    %2 = arith.index_cast %1 : i32 to index
    %c0_0 = arith.constant 0 : index
    %c0_1 = arith.constant 0 : index
    %3 = vector.load %arg2[%c0, %2, %c0_0, %c0_1] : memref<1x3x50x128xbf16, #tpu.memory_space<vmem>>, vector<1x1x50x128xbf16>
    %4 = vector.shape_cast %3 : vector<1x1x50x128xbf16> to vector<50x128xbf16>
    %c0_2 = arith.constant 0 : index
    %c0_3 = arith.constant 0 : index
    %c0_4 = arith.constant 0 : index
    %5 = vector.load %arg3[%c0_2, %c0_3, %c0_4] : memref<8x128x32xbf16, #tpu.memory_space<vmem>>, vector<1x128x32xbf16>
    %6 = vector.shape_cast %5 : vector<1x128x32xbf16> to vector<128x32xbf16>
    %cst_5 = arith.constant dense<0.000000e+00> : vector<50x32xf32>
    %7 = tpu.matmul %4, %6, %cst_5 {dimension_numbers = #tpu.dot_dimension_numbers<[1], [0], [0], [1], [0, 0, 1, 1], [], []>} : vector<50x128xbf16>, vector<128x32xbf16>, vector<50x32xf32> -> vector<50x32xf32>
    %8 = vector.extract_strided_slice %7 {offsets = [0, 0], sizes = [42, 32], strides = [1, 1]} : vector<50x32xf32> to vector<42x32xf32>
    %9 = arith.addf %0, %8 : vector<42x32xf32>
    %c1 = arith.constant 1 : index
    %c0_6 = arith.constant 0 : index
    %c0_7 = arith.constant 0 : index
    %10 = vector.load %arg3[%c1, %c0_6, %c0_7] : memref<8x128x32xbf16, #tpu.memory_space<vmem>>, vector<1x128x32xbf16>
    %11 = vector.shape_cast %10 : vector<1x128x32xbf16> to vector<128x32xbf16>
    %cst_8 = arith.constant dense<0.000000e+00> : vector<50x32xf32>
    %12 = tpu.matmul %4, %11, %cst_8 {dimension_numbers = #tpu.dot_dimension_numbers<[1], [0], [0], [1], [0, 0, 1, 1], [], []>} : vector<50x128xbf16>, vector<128x32xbf16>, vector<50x32xf32> -> vector<50x32xf32>
    %13 = vector.extract_strided_slice %12 {offsets = [1, 0], sizes = [42, 32], strides = [1, 1]} : vector<50x32xf32> to vector<42x32xf32>
    %14 = arith.addf %9, %13 : vector<42x32xf32>
    %c2 = arith.constant 2 : index
    %c0_9 = arith.constant 0 : index
    %c0_10 = arith.constant 0 : index
    %15 = vector.load %arg3[%c2, %c0_9, %c0_10] : memref<8x128x32xbf16, #tpu.memory_space<vmem>>, vector<1x128x32xbf16>
    %16 = vector.shape_cast %15 : vector<1x128x32xbf16> to vector<128x32xbf16>
    %cst_11 = arith.constant dense<0.000000e+00> : vector<50x32xf32>
    %17 = tpu.matmul %4, %16, %cst_11 {dimension_numbers = #tpu.dot_dimension_numbers<[1], [0], [0], [1], [0, 0, 1, 1], [], []>} : vector<50x128xbf16>, vector<128x32xbf16>, vector<50x32xf32> -> vector<50x32xf32>
    %18 = vector.extract_strided_slice %17 {offsets = [7, 0], sizes = [42, 32], strides = [1, 1]} : vector<50x32xf32> to vector<42x32xf32>
    %19 = arith.addf %14, %18 : vector<42x32xf32>
    %c3 = arith.constant 3 : index
    %c0_12 = arith.constant 0 : index
    %c0_13 = arith.constant 0 : index
    %20 = vector.load %arg3[%c3, %c0_12, %c0_13] : memref<8x128x32xbf16, #tpu.memory_space<vmem>>, vector<1x128x32xbf16>
    %21 = vector.shape_cast %20 : vector<1x128x32xbf16> to vector<128x32xbf16>
    %cst_14 = arith.constant dense<0.000000e+00> : vector<50x32xf32>
    %22 = tpu.matmul %4, %21, %cst_14 {dimension_numbers = #tpu.dot_dimension_numbers<[1], [0], [0], [1], [0, 0, 1, 1], [], []>} : vector<50x128xbf16>, vector<128x32xbf16>, vector<50x32xf32> -> vector<50x32xf32>
    %23 = vector.extract_strided_slice %22 {offsets = [8, 0], sizes = [42, 32], strides = [1, 1]} : vector<50x32xf32> to vector<42x32xf32>
    %24 = arith.addf %19, %23 : vector<42x32xf32>
    %c1_i32 = arith.constant 1 : i32
    %25 = arith.addi %arg1, %c1_i32 : i32
    %c0_15 = arith.constant 0 : index
    %26 = arith.index_cast %25 : i32 to index
    %c0_16 = arith.constant 0 : index
    %c0_17 = arith.constant 0 : index
    %27 = vector.load %arg2[%c0_15, %26, %c0_16, %c0_17] : memref<1x3x50x128xbf16, #tpu.memory_space<vmem>>, vector<1x1x50x128xbf16>
    %28 = vector.shape_cast %27 : vector<1x1x50x128xbf16> to vector<50x128xbf16>
    %c4 = arith.constant 4 : index
    %c0_18 = arith.constant 0 : index
    %c0_19 = arith.constant 0 : index
    %29 = vector.load %arg3[%c4, %c0_18, %c0_19] : memref<8x128x32xbf16, #tpu.memory_space<vmem>>, vector<1x128x32xbf16>
    %30 = vector.shape_cast %29 : vector<1x128x32xbf16> to vector<128x32xbf16>
    %cst_20 = arith.constant dense<0.000000e+00> : vector<50x32xf32>
    %31 = tpu.matmul %28, %30, %cst_20 {dimension_numbers = #tpu.dot_dimension_numbers<[1], [0], [0], [1], [0, 0, 1, 1], [], []>} : vector<50x128xbf16>, vector<128x32xbf16>, vector<50x32xf32> -> vector<50x32xf32>
    %32 = vector.extract_strided_slice %31 {offsets = [0, 0], sizes = [42, 32], strides = [1, 1]} : vector<50x32xf32> to vector<42x32xf32>
    %33 = arith.addf %24, %32 : vector<42x32xf32>
    %c5 = arith.constant 5 : index
    %c0_21 = arith.constant 0 : index
    %c0_22 = arith.constant 0 : index
    %34 = vector.load %arg3[%c5, %c0_21, %c0_22] : memref<8x128x32xbf16, #tpu.memory_space<vmem>>, vector<1x128x32xbf16>
    %35 = vector.shape_cast %34 : vector<1x128x32xbf16> to vector<128x32xbf16>
    %cst_23 = arith.constant dense<0.000000e+00> : vector<50x32xf32>
    %36 = tpu.matmul %28, %35, %cst_23 {dimension_numbers = #tpu.dot_dimension_numbers<[1], [0], [0], [1], [0, 0, 1, 1], [], []>} : vector<50x128xbf16>, vector<128x32xbf16>, vector<50x32xf32> -> vector<50x32xf32>
    %37 = vector.extract_strided_slice %36 {offsets = [1, 0], sizes = [42, 32], strides = [1, 1]} : vector<50x32xf32> to vector<42x32xf32>
    %38 = arith.addf %33, %37 : vector<42x32xf32>
    %c6 = arith.constant 6 : index
    %c0_24 = arith.constant 0 : index
    %c0_25 = arith.constant 0 : index
    %39 = vector.load %arg3[%c6, %c0_24, %c0_25] : memref<8x128x32xbf16, #tpu.memory_space<vmem>>, vector<1x128x32xbf16>
    %40 = vector.shape_cast %39 : vector<1x128x32xbf16> to vector<128x32xbf16>
    %cst_26 = arith.constant dense<0.000000e+00> : vector<50x32xf32>
    %41 = tpu.matmul %28, %40, %cst_26 {dimension_numbers = #tpu.dot_dimension_numbers<[1], [0], [0], [1], [0, 0, 1, 1], [], []>} : vector<50x128xbf16>, vector<128x32xbf16>, vector<50x32xf32> -> vector<50x32xf32>
    %42 = vector.extract_strided_slice %41 {offsets = [7, 0], sizes = [42, 32], strides = [1, 1]} : vector<50x32xf32> to vector<42x32xf32>
    %43 = arith.addf %38, %42 : vector<42x32xf32>
    %c7 = arith.constant 7 : index
    %c0_27 = arith.constant 0 : index
    %c0_28 = arith.constant 0 : index
    %44 = vector.load %arg3[%c7, %c0_27, %c0_28] : memref<8x128x32xbf16, #tpu.memory_space<vmem>>, vector<1x128x32xbf16>
    %45 = vector.shape_cast %44 : vector<1x128x32xbf16> to vector<128x32xbf16>
    %cst_29 = arith.constant dense<0.000000e+00> : vector<50x32xf32>
    %46 = tpu.matmul %28, %45, %cst_29 {dimension_numbers = #tpu.dot_dimension_numbers<[1], [0], [0], [1], [0, 0, 1, 1], [], []>} : vector<50x128xbf16>, vector<128x32xbf16>, vector<50x32xf32> -> vector<50x32xf32>
    %47 = vector.extract_strided_slice %46 {offsets = [8, 0], sizes = [42, 32], strides = [1, 1]} : vector<50x32xf32> to vector<42x32xf32>
    %48 = arith.addf %43, %47 : vector<42x32xf32>
    %c0_30 = arith.constant 0 : index
    %c0_31 = arith.constant 0 : index
    %49 = vector.load %arg4[%c0_30, %c0_31] : memref<1x32xf32, #tpu.memory_space<vmem>>, vector<1x32xf32>
    %50 = vector.broadcast %49 : vector<1x32xf32> to vector<42x32xf32>
    %51 = arith.addf %48, %50 : vector<42x32xf32>
    %cst_32 = arith.constant 0.000000e+00 : f32
    %52 = vector.broadcast %cst_32 : f32 to vector<42x32xf32>
    %53 = arith.cmpf oge, %51, %52 : vector<42x32xf32>
    %cst_33 = arith.constant 2.000000e-01 : f32
    %54 = vector.broadcast %cst_33 : f32 to vector<42x32xf32>
    %55 = arith.mulf %51, %54 : vector<42x32xf32>
    %56 = arith.select %53, %51, %55 : vector<42x32xi1>, vector<42x32xf32>
    %57 = arith.truncf %56 : vector<42x32xf32> to vector<42x32xbf16>
    %c0_34 = arith.constant 0 : index
    %c0_35 = arith.constant 0 : index
    %c0_36 = arith.constant 0 : index
    %c0_37 = arith.constant 0 : index
    %58 = vector.load %arg5[%c0_34, %c0_35, %c0_36, %c0_37] : memref<1x1x42x32xbf16, #tpu.memory_space<vmem>>, vector<1x1x42x32xbf16>
    %59 = vector.shape_cast %58 : vector<1x1x42x32xbf16> to vector<42x32xbf16>
    %60 = vector.shape_cast %57 : vector<42x32xbf16> to vector<1x1x42x32xbf16>
    tpu.vector_store %arg5[%c0_34, %c0_35, %c0_36, %c0_37], %60 {strides = array<i32>} : memref<1x1x42x32xbf16, #tpu.memory_space<vmem>>, vector<1x1x42x32xbf16>,
    return
  }
  func.func @transform_0(%arg0: i32, %arg1: i32) -> (i32, i32, i32, i32) {
    %c0_i32 = arith.constant 0 : i32
    %c0_i32_0 = arith.constant 0 : i32
    %c0_i32_1 = arith.constant 0 : i32
    %c0_i32_2 = arith.constant 0 : i32
    return %arg0, %c0_i32, %c0_i32_0, %c0_i32_1 : i32, i32, i32, i32
  }
  func.func @transform_1(%arg0: i32, %arg1: i32) -> (i32, i32, i32) {
    %c0_i32 = arith.constant 0 : i32
    %c0_i32_0 = arith.constant 0 : i32
    %c0_i32_1 = arith.constant 0 : i32
    %c0_i32_2 = arith.constant 0 : i32
    return %c0_i32, %c0_i32_0, %c0_i32_1 : i32, i32, i32
  }
  func.func @transform_2(%arg0: i32, %arg1: i32) -> (i32, i32) {
    %c0_i32 = arith.constant 0 : i32
    %c0_i32_0 = arith.constant 0 : i32
    %c0_i32_1 = arith.constant 0 : i32
    return %c0_i32, %c0_i32_0 : i32, i32
  }
  func.func @transform_3(%arg0: i32, %arg1: i32) -> (i32, i32, i32, i32) {
    %c0_i32 = arith.constant 0 : i32
    %c0_i32_0 = arith.constant 0 : i32
    %c0_i32_1 = arith.constant 0 : i32
    return %arg0, %arg1, %c0_i32, %c0_i32_0 : i32, i32, i32, i32
  }
}

module attributes {stable_mosaic.version = 11 : i64} {
  func.func @_conv_s2_kernel(%arg0: i32, %arg1: i32, %arg2: memref<1x2x17x256xbf16, #tpu.memory_space<vmem>>, %arg3: memref<8x256x64xbf16, #tpu.memory_space<vmem>>, %arg4: memref<1x64xf32, #tpu.memory_space<vmem>>, %arg5: memref<1x1x12x64xbf16, #tpu.memory_space<vmem>>) attributes {dimension_semantics = [#tpu.dimension_semantics<parallel>, #tpu.dimension_semantics<parallel>], iteration_bounds = array<i64: 2, 1>, scalar_prefetch = 0 : i64, scratch_operands = 0 : i64, tpu.core_type = #tpu.core_type<tc>, window_params = [{transform_indices = @transform_0, window_bounds = array<i64: 1, 2, 17, 256>}, {pipeline_mode = #tpu.pipeline_mode<synchronous>, transform_indices = @transform_1, window_bounds = array<i64: 8, 256, 64>}, {pipeline_mode = #tpu.pipeline_mode<synchronous>, transform_indices = @transform_2, window_bounds = array<i64: 1, 64>}, {transform_indices = @transform_3, window_bounds = array<i64: 1, 1, 12, 64>}]} {
    %cst = arith.constant 0.000000e+00 : f32
    %0 = vector.broadcast %cst : f32 to vector<12x64xf32>
    %c0_i32 = arith.constant 0 : i32
    %1 = arith.addi %arg1, %c0_i32 : i32
    %c0 = arith.constant 0 : index
    %2 = arith.index_cast %1 : i32 to index
    %c0_0 = arith.constant 0 : index
    %c0_1 = arith.constant 0 : index
    %3 = vector.load %arg2[%c0, %2, %c0_0, %c0_1] : memref<1x2x17x256xbf16, #tpu.memory_space<vmem>>, vector<1x1x17x256xbf16>
    %4 = vector.shape_cast %3 : vector<1x1x17x256xbf16> to vector<17x256xbf16>
    %c0_2 = arith.constant 0 : index
    %c0_3 = arith.constant 0 : index
    %c0_4 = arith.constant 0 : index
    %5 = vector.load %arg3[%c0_2, %c0_3, %c0_4] : memref<8x256x64xbf16, #tpu.memory_space<vmem>>, vector<1x256x64xbf16>
    %6 = vector.shape_cast %5 : vector<1x256x64xbf16> to vector<256x64xbf16>
    %cst_5 = arith.constant dense<0.000000e+00> : vector<17x64xf32>
    %7 = tpu.matmul %4, %6, %cst_5 {dimension_numbers = #tpu.dot_dimension_numbers<[1], [0], [0], [1], [0, 0, 1, 1], [], []>} : vector<17x256xbf16>, vector<256x64xbf16>, vector<17x64xf32> -> vector<17x64xf32>
    %8 = vector.extract_strided_slice %7 {offsets = [0, 0], sizes = [12, 64], strides = [1, 1]} : vector<17x64xf32> to vector<12x64xf32>
    %9 = arith.addf %0, %8 : vector<12x64xf32>
    %c1 = arith.constant 1 : index
    %c0_6 = arith.constant 0 : index
    %c0_7 = arith.constant 0 : index
    %10 = vector.load %arg3[%c1, %c0_6, %c0_7] : memref<8x256x64xbf16, #tpu.memory_space<vmem>>, vector<1x256x64xbf16>
    %11 = vector.shape_cast %10 : vector<1x256x64xbf16> to vector<256x64xbf16>
    %cst_8 = arith.constant dense<0.000000e+00> : vector<17x64xf32>
    %12 = tpu.matmul %4, %11, %cst_8 {dimension_numbers = #tpu.dot_dimension_numbers<[1], [0], [0], [1], [0, 0, 1, 1], [], []>} : vector<17x256xbf16>, vector<256x64xbf16>, vector<17x64xf32> -> vector<17x64xf32>
    %13 = vector.extract_strided_slice %12 {offsets = [1, 0], sizes = [12, 64], strides = [1, 1]} : vector<17x64xf32> to vector<12x64xf32>
    %14 = arith.addf %9, %13 : vector<12x64xf32>
    %c2 = arith.constant 2 : index
    %c0_9 = arith.constant 0 : index
    %c0_10 = arith.constant 0 : index
    %15 = vector.load %arg3[%c2, %c0_9, %c0_10] : memref<8x256x64xbf16, #tpu.memory_space<vmem>>, vector<1x256x64xbf16>
    %16 = vector.shape_cast %15 : vector<1x256x64xbf16> to vector<256x64xbf16>
    %cst_11 = arith.constant dense<0.000000e+00> : vector<17x64xf32>
    %17 = tpu.matmul %4, %16, %cst_11 {dimension_numbers = #tpu.dot_dimension_numbers<[1], [0], [0], [1], [0, 0, 1, 1], [], []>} : vector<17x256xbf16>, vector<256x64xbf16>, vector<17x64xf32> -> vector<17x64xf32>
    %18 = vector.extract_strided_slice %17 {offsets = [4, 0], sizes = [12, 64], strides = [1, 1]} : vector<17x64xf32> to vector<12x64xf32>
    %19 = arith.addf %14, %18 : vector<12x64xf32>
    %c3 = arith.constant 3 : index
    %c0_12 = arith.constant 0 : index
    %c0_13 = arith.constant 0 : index
    %20 = vector.load %arg3[%c3, %c0_12, %c0_13] : memref<8x256x64xbf16, #tpu.memory_space<vmem>>, vector<1x256x64xbf16>
    %21 = vector.shape_cast %20 : vector<1x256x64xbf16> to vector<256x64xbf16>
    %cst_14 = arith.constant dense<0.000000e+00> : vector<17x64xf32>
    %22 = tpu.matmul %4, %21, %cst_14 {dimension_numbers = #tpu.dot_dimension_numbers<[1], [0], [0], [1], [0, 0, 1, 1], [], []>} : vector<17x256xbf16>, vector<256x64xbf16>, vector<17x64xf32> -> vector<17x64xf32>
    %23 = vector.extract_strided_slice %22 {offsets = [5, 0], sizes = [12, 64], strides = [1, 1]} : vector<17x64xf32> to vector<12x64xf32>
    %24 = arith.addf %19, %23 : vector<12x64xf32>
    %c1_i32 = arith.constant 1 : i32
    %25 = arith.addi %arg1, %c1_i32 : i32
    %c0_15 = arith.constant 0 : index
    %26 = arith.index_cast %25 : i32 to index
    %c0_16 = arith.constant 0 : index
    %c0_17 = arith.constant 0 : index
    %27 = vector.load %arg2[%c0_15, %26, %c0_16, %c0_17] : memref<1x2x17x256xbf16, #tpu.memory_space<vmem>>, vector<1x1x17x256xbf16>
    %28 = vector.shape_cast %27 : vector<1x1x17x256xbf16> to vector<17x256xbf16>
    %c4 = arith.constant 4 : index
    %c0_18 = arith.constant 0 : index
    %c0_19 = arith.constant 0 : index
    %29 = vector.load %arg3[%c4, %c0_18, %c0_19] : memref<8x256x64xbf16, #tpu.memory_space<vmem>>, vector<1x256x64xbf16>
    %30 = vector.shape_cast %29 : vector<1x256x64xbf16> to vector<256x64xbf16>
    %cst_20 = arith.constant dense<0.000000e+00> : vector<17x64xf32>
    %31 = tpu.matmul %28, %30, %cst_20 {dimension_numbers = #tpu.dot_dimension_numbers<[1], [0], [0], [1], [0, 0, 1, 1], [], []>} : vector<17x256xbf16>, vector<256x64xbf16>, vector<17x64xf32> -> vector<17x64xf32>
    %32 = vector.extract_strided_slice %31 {offsets = [0, 0], sizes = [12, 64], strides = [1, 1]} : vector<17x64xf32> to vector<12x64xf32>
    %33 = arith.addf %24, %32 : vector<12x64xf32>
    %c5 = arith.constant 5 : index
    %c0_21 = arith.constant 0 : index
    %c0_22 = arith.constant 0 : index
    %34 = vector.load %arg3[%c5, %c0_21, %c0_22] : memref<8x256x64xbf16, #tpu.memory_space<vmem>>, vector<1x256x64xbf16>
    %35 = vector.shape_cast %34 : vector<1x256x64xbf16> to vector<256x64xbf16>
    %cst_23 = arith.constant dense<0.000000e+00> : vector<17x64xf32>
    %36 = tpu.matmul %28, %35, %cst_23 {dimension_numbers = #tpu.dot_dimension_numbers<[1], [0], [0], [1], [0, 0, 1, 1], [], []>} : vector<17x256xbf16>, vector<256x64xbf16>, vector<17x64xf32> -> vector<17x64xf32>
    %37 = vector.extract_strided_slice %36 {offsets = [1, 0], sizes = [12, 64], strides = [1, 1]} : vector<17x64xf32> to vector<12x64xf32>
    %38 = arith.addf %33, %37 : vector<12x64xf32>
    %c6 = arith.constant 6 : index
    %c0_24 = arith.constant 0 : index
    %c0_25 = arith.constant 0 : index
    %39 = vector.load %arg3[%c6, %c0_24, %c0_25] : memref<8x256x64xbf16, #tpu.memory_space<vmem>>, vector<1x256x64xbf16>
    %40 = vector.shape_cast %39 : vector<1x256x64xbf16> to vector<256x64xbf16>
    %cst_26 = arith.constant dense<0.000000e+00> : vector<17x64xf32>
    %41 = tpu.matmul %28, %40, %cst_26 {dimension_numbers = #tpu.dot_dimension_numbers<[1], [0], [0], [1], [0, 0, 1, 1], [], []>} : vector<17x256xbf16>, vector<256x64xbf16>, vector<17x64xf32> -> vector<17x64xf32>
    %42 = vector.extract_strided_slice %41 {offsets = [4, 0], sizes = [12, 64], strides = [1, 1]} : vector<17x64xf32> to vector<12x64xf32>
    %43 = arith.addf %38, %42 : vector<12x64xf32>
    %c7 = arith.constant 7 : index
    %c0_27 = arith.constant 0 : index
    %c0_28 = arith.constant 0 : index
    %44 = vector.load %arg3[%c7, %c0_27, %c0_28] : memref<8x256x64xbf16, #tpu.memory_space<vmem>>, vector<1x256x64xbf16>
    %45 = vector.shape_cast %44 : vector<1x256x64xbf16> to vector<256x64xbf16>
    %cst_29 = arith.constant dense<0.000000e+00> : vector<17x64xf32>
    %46 = tpu.matmul %28, %45, %cst_29 {dimension_numbers = #tpu.dot_dimension_numbers<[1], [0], [0], [1], [0, 0, 1, 1], [], []>} : vector<17x256xbf16>, vector<256x64xbf16>, vector<17x64xf32> -> vector<17x64xf32>
    %47 = vector.extract_strided_slice %46 {offsets = [5, 0], sizes = [12, 64], strides = [1, 1]} : vector<17x64xf32> to vector<12x64xf32>
    %48 = arith.addf %43, %47 : vector<12x64xf32>
    %c0_30 = arith.constant 0 : index
    %c0_31 = arith.constant 0 : index
    %49 = vector.load %arg4[%c0_30, %c0_31] : memref<1x64xf32, #tpu.memory_space<vmem>>, vector<1x64xf32>
    %50 = vector.broadcast %49 : vector<1x64xf32> to vector<12x64xf32>
    %51 = arith.addf %48, %50 : vector<12x64xf32>
    %cst_32 = arith.constant 0.000000e+00 : f32
    %52 = vector.broadcast %cst_32 : f32 to vector<12x64xf32>
    %53 = arith.cmpf oge, %51, %52 : vector<12x64xf32>
    %cst_33 = arith.constant 2.000000e-01 : f32
    %54 = vector.broadcast %cst_33 : f32 to vector<12x64xf32>
    %55 = arith.mulf %51, %54 : vector<12x64xf32>
    %56 = arith.select %53, %51, %55 : vector<12x64xi1>, vector<12x64xf32>
    %57 = arith.truncf %56 : vector<12x64xf32> to vector<12x64xbf16>
    %c0_34 = arith.constant 0 : index
    %c0_35 = arith.constant 0 : index
    %c0_36 = arith.constant 0 : index
    %c0_37 = arith.constant 0 : index
    %58 = vector.load %arg5[%c0_34, %c0_35, %c0_36, %c0_37] : memref<1x1x12x64xbf16, #tpu.memory_space<vmem>>, vector<1x1x12x64xbf16>
    %59 = vector.shape_cast %58 : vector<1x1x12x64xbf16> to vector<12x64xbf16>
    %60 = vector.shape_cast %57 : vector<12x64xbf16> to vector<1x1x12x64xbf16>
    tpu.vector_store %arg5[%c0_34, %c0_35, %c0_36, %c0_37], %60 {strides = array<i32>} : memref<1x1x12x64xbf16, #tpu.memory_space<vmem>>, vector<1x1x12x64xbf16>,
    return
  }
  func.func @transform_0(%arg0: i32, %arg1: i32) -> (i32, i32, i32, i32) {
    %c0_i32 = arith.constant 0 : i32
    %c0_i32_0 = arith.constant 0 : i32
    %c0_i32_1 = arith.constant 0 : i32
    %c0_i32_2 = arith.constant 0 : i32
    return %arg0, %c0_i32, %c0_i32_0, %c0_i32_1 : i32, i32, i32, i32
  }
  func.func @transform_1(%arg0: i32, %arg1: i32) -> (i32, i32, i32) {
    %c0_i32 = arith.constant 0 : i32
    %c0_i32_0 = arith.constant 0 : i32
    %c0_i32_1 = arith.constant 0 : i32
    %c0_i32_2 = arith.constant 0 : i32
    return %c0_i32, %c0_i32_0, %c0_i32_1 : i32, i32, i32
  }
  func.func @transform_2(%arg0: i32, %arg1: i32) -> (i32, i32) {
    %c0_i32 = arith.constant 0 : i32
    %c0_i32_0 = arith.constant 0 : i32
    %c0_i32_1 = arith.constant 0 : i32
    return %c0_i32, %c0_i32_0 : i32, i32
  }
  func.func @transform_3(%arg0: i32, %arg1: i32) -> (i32, i32, i32, i32) {
    %c0_i32 = arith.constant 0 : i32
    %c0_i32_0 = arith.constant 0 : i32
    %c0_i32_1 = arith.constant 0 : i32
    return %arg0, %arg1, %c0_i32, %c0_i32_0 : i32, i32, i32, i32
  }
}

module attributes {stable_mosaic.version = 11 : i64} {
  func.func @_tail_kernel(%arg0: memref<2x9x64xbf16, #tpu.memory_space<vmem>>, %arg1: memref<2x16xf32, #tpu.memory_space<vmem>>, %arg2: memref<16x16xf32, #tpu.memory_space<vmem>>, %arg3: memref<1x16xf32, #tpu.memory_space<vmem>>, %arg4: memref<64x64xf32, #tpu.memory_space<vmem>>, %arg5: memref<16x64xf32, #tpu.memory_space<vmem>>, %arg6: memref<1x64xf32, #tpu.memory_space<vmem>>, %arg7: memref<9x64xf32, #tpu.memory_space<vmem>>, %arg8: memref<1x1xf32, #tpu.memory_space<vmem>>) attributes {dimension_semantics = [], scalar_prefetch = 0 : i64, scratch_operands = 0 : i64, tpu.core_type = #tpu.core_type<tc>} {
    %c0 = arith.constant 0 : index
    %c0_0 = arith.constant 0 : index
    %0 = vector.load %arg1[%c0, %c0_0] : memref<2x16xf32, #tpu.memory_space<vmem>>, vector<2x16xf32>
    %c0_1 = arith.constant 0 : index
    %c0_2 = arith.constant 0 : index
    %1 = vector.load %arg2[%c0_1, %c0_2] : memref<16x16xf32, #tpu.memory_space<vmem>>, vector<16x16xf32>
    %cst = arith.constant dense<0.000000e+00> : vector<2x16xf32>
    %2 = tpu.matmul %0, %1, %cst {dimension_numbers = #tpu.dot_dimension_numbers<[1], [0], [0], [1], [0, 0, 1, 1], [], []>} : vector<2x16xf32>, vector<16x16xf32>, vector<2x16xf32> -> vector<2x16xf32>
    %c0_3 = arith.constant 0 : index
    %c0_4 = arith.constant 0 : index
    %3 = vector.load %arg3[%c0_3, %c0_4] : memref<1x16xf32, #tpu.memory_space<vmem>>, vector<1x16xf32>
    %4 = vector.broadcast %3 : vector<1x16xf32> to vector<2x16xf32>
    %5 = arith.addf %2, %4 : vector<2x16xf32>
    %cst_5 = arith.constant 0.000000e+00 : f32
    %6 = vector.broadcast %cst_5 : f32 to vector<2x16xf32>
    %7 = arith.cmpf oge, %5, %6 : vector<2x16xf32>
    %cst_6 = arith.constant 2.000000e-01 : f32
    %8 = vector.broadcast %cst_6 : f32 to vector<2x16xf32>
    %9 = arith.mulf %5, %8 : vector<2x16xf32>
    %10 = arith.select %7, %5, %9 : vector<2x16xi1>, vector<2x16xf32>
    %c0_7 = arith.constant 0 : index
    %c0_8 = arith.constant 0 : index
    %11 = vector.load %arg4[%c0_7, %c0_8] : memref<64x64xf32, #tpu.memory_space<vmem>>, vector<64x64xf32>
    %c0_9 = arith.constant 0 : index
    %c0_10 = arith.constant 0 : index
    %12 = vector.load %arg5[%c0_9, %c0_10] : memref<16x64xf32, #tpu.memory_space<vmem>>, vector<16x64xf32>
    %c0_11 = arith.constant 0 : index
    %c0_12 = arith.constant 0 : index
    %13 = vector.load %arg6[%c0_11, %c0_12] : memref<1x64xf32, #tpu.memory_space<vmem>>, vector<1x64xf32>
    %c0_13 = arith.constant 0 : index
    %c0_14 = arith.constant 0 : index
    %14 = vector.load %arg7[%c0_13, %c0_14] : memref<9x64xf32, #tpu.memory_space<vmem>>, vector<9x64xf32>
    %cst_15 = arith.constant 0.000000e+00 : f32
    %15 = vector.broadcast %cst_15 : f32 to vector<1x1xf32>
    %c0_16 = arith.constant 0 : index
    %c0_17 = arith.constant 0 : index
    %c0_18 = arith.constant 0 : index
    %16 = vector.load %arg0[%c0_16, %c0_17, %c0_18] : memref<2x9x64xbf16, #tpu.memory_space<vmem>>, vector<1x9x64xbf16>
    %17 = vector.shape_cast %16 : vector<1x9x64xbf16> to vector<9x64xbf16>
    %18 = arith.extf %17 : vector<9x64xbf16> to vector<9x64xf32>
    %cst_19 = arith.constant dense<0.000000e+00> : vector<9x64xf32>
    %19 = tpu.matmul %18, %11, %cst_19 {dimension_numbers = #tpu.dot_dimension_numbers<[1], [0], [0], [1], [0, 0, 1, 1], [], []>} : vector<9x64xf32>, vector<64x64xf32>, vector<9x64xf32> -> vector<9x64xf32>
    %20 = vector.extract_strided_slice %10 {offsets = [0, 0], sizes = [1, 16], strides = [1, 1]} : vector<2x16xf32> to vector<1x16xf32>
    %cst_20 = arith.constant dense<0.000000e+00> : vector<1x64xf32>
    %21 = tpu.matmul %20, %12, %cst_20 {dimension_numbers = #tpu.dot_dimension_numbers<[1], [0], [0], [1], [0, 0, 1, 1], [], []>} : vector<1x16xf32>, vector<16x64xf32>, vector<1x64xf32> -> vector<1x64xf32>
    %22 = vector.broadcast %21 : vector<1x64xf32> to vector<9x64xf32>
    %23 = arith.addf %19, %22 : vector<9x64xf32>
    %24 = vector.broadcast %13 : vector<1x64xf32> to vector<9x64xf32>
    %25 = arith.addf %23, %24 : vector<9x64xf32>
    %cst_21 = arith.constant 0.000000e+00 : f32
    %26 = vector.broadcast %cst_21 : f32 to vector<9x64xf32>
    %27 = arith.cmpf oge, %25, %26 : vector<9x64xf32>
    %cst_22 = arith.constant 2.000000e-01 : f32
    %28 = vector.broadcast %cst_22 : f32 to vector<9x64xf32>
    %29 = arith.mulf %25, %28 : vector<9x64xf32>
    %30 = arith.select %27, %25, %29 : vector<9x64xi1>, vector<9x64xf32>
    %31 = arith.mulf %30, %14 : vector<9x64xf32>
    %32 = vector.shape_cast %31 : vector<9x64xf32> to vector<1x9x64xf32>
    %cst_23 = arith.constant dense<0.000000e+00> : vector<1xf32>
    %33 = vector.multi_reduction <add>, %32, %cst_23 [1, 2] : vector<1x9x64xf32> to vector<1xf32>
    %34 = vector.shape_cast %33 : vector<1xf32> to vector<1x1x1xf32>
    %35 = vector.extract %34[0, 0, 0] : f32 from vector<1x1x1xf32>
    %36 = vector.broadcast %35 : f32 to vector<1x1xf32>
    %37 = arith.addf %15, %36 : vector<1x1xf32>
    %c1 = arith.constant 1 : index
    %c0_24 = arith.constant 0 : index
    %c0_25 = arith.constant 0 : index
    %38 = vector.load %arg0[%c1, %c0_24, %c0_25] : memref<2x9x64xbf16, #tpu.memory_space<vmem>>, vector<1x9x64xbf16>
    %39 = vector.shape_cast %38 : vector<1x9x64xbf16> to vector<9x64xbf16>
    %40 = arith.extf %39 : vector<9x64xbf16> to vector<9x64xf32>
    %cst_26 = arith.constant dense<0.000000e+00> : vector<9x64xf32>
    %41 = tpu.matmul %40, %11, %cst_26 {dimension_numbers = #tpu.dot_dimension_numbers<[1], [0], [0], [1], [0, 0, 1, 1], [], []>} : vector<9x64xf32>, vector<64x64xf32>, vector<9x64xf32> -> vector<9x64xf32>
    %42 = vector.extract_strided_slice %10 {offsets = [1, 0], sizes = [1, 16], strides = [1, 1]} : vector<2x16xf32> to vector<1x16xf32>
    %cst_27 = arith.constant dense<0.000000e+00> : vector<1x64xf32>
    %43 = tpu.matmul %42, %12, %cst_27 {dimension_numbers = #tpu.dot_dimension_numbers<[1], [0], [0], [1], [0, 0, 1, 1], [], []>} : vector<1x16xf32>, vector<16x64xf32>, vector<1x64xf32> -> vector<1x64xf32>
    %44 = vector.broadcast %43 : vector<1x64xf32> to vector<9x64xf32>
    %45 = arith.addf %41, %44 : vector<9x64xf32>
    %46 = vector.broadcast %13 : vector<1x64xf32> to vector<9x64xf32>
    %47 = arith.addf %45, %46 : vector<9x64xf32>
    %cst_28 = arith.constant 0.000000e+00 : f32
    %48 = vector.broadcast %cst_28 : f32 to vector<9x64xf32>
    %49 = arith.cmpf oge, %47, %48 : vector<9x64xf32>
    %cst_29 = arith.constant 2.000000e-01 : f32
    %50 = vector.broadcast %cst_29 : f32 to vector<9x64xf32>
    %51 = arith.mulf %47, %50 : vector<9x64xf32>
    %52 = arith.select %49, %47, %51 : vector<9x64xi1>, vector<9x64xf32>
    %53 = arith.mulf %52, %14 : vector<9x64xf32>
    %54 = vector.shape_cast %53 : vector<9x64xf32> to vector<1x9x64xf32>
    %cst_30 = arith.constant dense<0.000000e+00> : vector<1xf32>
    %55 = vector.multi_reduction <add>, %54, %cst_30 [1, 2] : vector<1x9x64xf32> to vector<1xf32>
    %56 = vector.shape_cast %55 : vector<1xf32> to vector<1x1x1xf32>
    %57 = vector.extract %56[0, 0, 0] : f32 from vector<1x1x1xf32>
    %58 = vector.broadcast %57 : f32 to vector<1x1xf32>
    %59 = arith.addf %37, %58 : vector<1x1xf32>
    %cst_31 = arith.constant 2.000000e+00 : f32
    %60 = vector.broadcast %cst_31 : f32 to vector<1x1xf32>
    %61 = arith.divf %59, %60 : vector<1x1xf32>
    %c0_32 = arith.constant 0 : index
    %c0_33 = arith.constant 0 : index
    %62 = vector.load %arg8[%c0_32, %c0_33] : memref<1x1xf32, #tpu.memory_space<vmem>>, vector<1x1xf32>
    tpu.vector_store %arg8[%c0_32, %c0_33], %61 {strides = array<i32>} : memref<1x1xf32, #tpu.memory_space<vmem>>, vector<1x1xf32>,
    return
  }
}

</mosaic_0001>

<bundles_post_ra>
// kernel: video_discrim_forward.5
= control target key start
LH: loop header
LB: loop body
LE: loop exit
PB: predicated region body
PF: predicated region fallthrough
CT: control target
= control target key end

     0   :  { %s6690_s12 = smov 0   ;;  %s6692_s13 = smov 0   ;;  %s8604_s0 = inlined_call_operand.vmem [shape: bf16[2,9,626,24], index: 0, kind: input, shape index: {}]   ;;  %s8605_s1 = inlined_call_operand.vmem [shape: bf16[8,24,8], index: 1, kind: input, shape index: {}]   ;;  %s8606_s2 = inlined_call_operand.vmem [shape: f32[1,8], index: 2, kind: input, shape index: {}]   ;;  %s8607_s3 = inlined_call_operand.vmem [shape: bf16[2,8,600,8], index: 3, kind: output, shape index: {}]  }
   0x1   :  { %s6694_s14 = smov 0   ;;  %s6696_s15 = smov 0  }
   0x2   :  { %s6698_s16 = smov 0  }
   0x3 LB: > { %s22_s17 = sadd.s32 1, %s6660_s14  ;;  %s25_s18 = sadd.s32 1, %s6664_s15  ;;  %s6668_s16 = sphi %s6698_s16, %s13_s16   ;;  %s6664_s15 = sphi %s6696_s15, %s8689_s15   ;;  %s6660_s14 = sphi %s6694_s14, %s8688_s14   ;;  %s6656_s13 = sphi %s6692_s13, %s8687_s13   ;;  %s6652_s12 = sphi %s6690_s12, %s8686_s12  }
   0x4   : > { %p23_p0 = scmp.ge.s32.totalorder %s22_s17, 8  ;;  %p5726_p1 = scmp.ge.s32.totalorder %s6668_s16, 1 }
   0x5   : > { %p151_p2 = scmp.lt.s32.totalorder %s6668_s16, 17 }
   0x6   : > { %s8691_s17 = smov (%p23_p0, %s22_s17), 0  ;;  %s8693_s18 = smov (!%p23_p0, %s25_s18), %s6664_s15 }
   0x7   : > { %p152_p3 = pnand %p5726_p1, %p151_p2  ;;  %p27_p4 = scmp.ge.s32.totalorder %s8693_s18, 2 }
   0x9   : > { %s8695_s18 = smov (%p27_p4, %s8693_s18), 0  ;;  %155 = sbr.rel (%p152_p3) target bundleno = 1439 (0x59f), region = 32 }
   0xe   : > { %v278_v0 = vld [vmem:[%s8605_s1 + $0x8] sm:$0xf]  ;;  %v5932_v1 = vld [vmem:[%s8605_s1 + $0x14] sm:$0xf]  ;;  %v5979_v4 = vld [vmem:[%s8605_s1 + $0x20] sm:$0xf] }
   0xf   : > { %v482_v2 = vunpack.c.l.b16 %v278_v0  ;;  %v899_v3 = vunpack.c.l.b16 %v5932_v1  ;;  %v6026_v5 = vld [vmem:[%s8605_s1 + $0x2c] sm:$0xf]  ;;  %p179_p5 = scmp.lt.s32.totalorder %s6656_s13, 1  ;;  %vm607_vm0 = vcmask 1043456   ;;  %v1498_v6 = vunpack.c.l.b16 %v5979_v4  ;;  %v6402_v8 = vld [vmem:[%s8605_s1 + $0x50] sm:$0xf] }
  0x10   : > { %v2096_v7 = vunpack.c.l.b16 %v6026_v5  ;;  %v3989_v11 = vunpack.c.l.b16 %v6402_v8  ;;  %v6449_v12 = vld [vmem:[%s8605_s1 + $0x5c] sm:$0xf]  ;;  %v6152_v13 = vld [vmem:[%s8605_s1 + $0x38] sm:$0xf]  ;;  %s6496_s6 = smul.u32 316, %s6652_s12  ;;  %v6536_v25 = vld [vmem:[%s8605_s1] sm:$0xff] }
  0x11   : > { %v484_v9 = vpack.c.b16 %v482_v2, %v482_v2  ;;  %v901_v10 = vpack.c.b16 %v899_v3, %v899_v3  ;;  %s8697_s13 = smov (!%p179_p5, %s6656_s13), 1  ;;  %v1500_v14 = vpack.c.b16 %v1498_v6, %v1498_v6  ;;  %v4587_v16 = vunpack.c.l.b16 %v6449_v12  ;;  %v6355_v18 = vld [vmem:[%s8605_s1 + $0x44] sm:$0xf]  ;;  %v6537_v26 = vld [vmem:[%s8605_s1 + $0xc] sm:$0xff]  ;;  %v6538_v28 = vld [vmem:[%s8605_s1 + $0x18] sm:$0xff]  ;;  %p186_p6 = scmp.lt.s32.totalorder %s6652_s12, 7 }
  0x12   : > { %v2098_v15 = vpack.c.b16 %v2096_v7, %v2096_v7  ;;  %v2976_v17 = vunpack.c.l.b16 %v6152_v13  ;;  %s6583_s9 = smul.u32 2844, %s8697_s13  ;;  %v3991_v21 = vpack.c.b16 %v3989_v11, %v3989_v11  ;;  %v3391_v22 = vunpack.c.l.b16 %v6355_v18  ;;  %v6539_v29 = vld [vmem:[%s8605_s1 + $0x24] sm:$0xff] }
  0x13   : > { %v609_v19 = vsel %vm607_vm0, %v484_v9, 0  ;;  %v904_v20 = vsel %vm607_vm0, %v901_v10, 0  ;;  %v1503_v23 = vsel %vm607_vm0, %v1500_v14, 0  ;;  %v4589_v27 = vpack.c.b16 %v4587_v16, %v4587_v16  ;;  %s8699_s12 = smov (!%p186_p6, %s6652_s12), 7  ;;  %s6585_s10 = smul.u32 600, %s8697_s13 }
  0x14   : > { %617 = vmatpush.bf16.msra.mxu0 %v609_v19  ;;  %912 = vmatpush.bf16.msra.mxu1 %v904_v20  ;;  %v2101_v24 = vsel %vm607_vm0, %v2098_v15, 0  ;;  %s183_s27 = scalar_lea.vmem %s8604_s0, %s6583_s9  ;;  %v2978_v30 = vpack.c.b16 %v2976_v17, %v2976_v17  ;;  %v3393_v31 = vpack.c.b16 %v3391_v22, %v3391_v22  ;;  %v3994_v33 = vsel %vm607_vm0, %v3991_v21, 0  ;;  %s6584_s11 = smul.u32 75, %s8699_s12 }
  0x15   : > { %1511 = vmatpush.bf16.msra.mxu2 %v1503_v23  ;;  %2109 = vmatpush.bf16.msra.mxu3 %v2101_v24  ;;  %s6769_s28 = scalar_lea.vmem %s183_s27, %s6496_s6  ;;  %v4592_v34 = vsel %vm607_vm0, %v4589_v27, 0  ;;  %vm486_vm1 = vcmask 195584   ;;  %vm1187_vm2 = vcmask 1046528   ;;  %vm2384_vm3 = vcmask 1045504  }
  0x16   : > { %v6497_v32 = vld [vmem:[%s6769_s28] sm:$0xff]  ;;  %v3101_v35 = vsel %vm607_vm0, %v2978_v30, 0  ;;  %v3396_v36 = vsel %vm607_vm0, %v3393_v31, 0  ;;  %v6498_v37 = vld [vmem:[%s6769_s28 + $0x8] sm:$0xff]  ;;  %v6499_v38 = vld [vmem:[%s6769_s28 + $0x10] sm:$0xff]  ;;  %s190_s13 = sadd.s32 %s6585_s10, %s6584_s11  ;;  %vm5555_vm5 = vcmask 60416  }
  0x17   : > { %v6500_v39 = vld [vmem:[%s6769_s28 + $0x18] sm:$0xff]  ;;  %v6501_v40 = vld [vmem:[%s6769_s28 + $0x20] sm:$0xff]  ;;  %v6502_v41 = vld [vmem:[%s6769_s28 + $0x28] sm:$0xff]  ;;  %s5728_s12 = sshll.u32 %s190_s13, 2 }
  0x18   : > { %618 = vmatpush.bf16.msra.mxu0 %v6536_v25  ;;  %913 = vmatpush.bf16.msra.mxu1 %v6537_v26  ;;  %v6503_v42 = vld [vmem:[%s6769_s28 + $0x30] sm:$0xff]  ;;  %v6504_v43 = vld [vmem:[%s6769_s28 + $0x38] sm:$0xff]  ;;  %v6505_v44 = vld [vmem:[%s6769_s28 + $0x40] sm:$0xff]  ;;  %s7492_s23 = scalar_lea.vmem %s8607_s3, %s5728_s12 }
  0x19   : > { %1512 = vmatpush.bf16.msra.mxu2 %v6538_v28  ;;  %2110 = vmatpush.bf16.msra.mxu3 %v6539_v29  ;;  %v6506_v57 = vld [vmem:[%s6769_s28 + $0x48] sm:$0xff]  ;;  %v6507_v8 = vld [vmem:[%s6769_s28 + $0x50] sm:$0xff]  ;;  %v6508_v31 = vld [vmem:[%s6769_s28 + $0x58] sm:$0xff] }
  0x1b   : > { %5890 = vmatmul.msk.bf16.vlgmr.msra.gmra.mxu0 %vm486_vm1, %v6497_v32  ;;  %5937 = vmatmul.msk.bf16.vlgmr.msra.gmra.mxu1 %vm486_vm1, %v6497_v32 }
  0x1c   : > { %5984 = vmatmul.msk.bf16.vlgmr.msra.gmra.mxu2 %vm486_vm1, %v6497_v32  ;;  %6031 = vmatmul.msk.bf16.vlgmr.msra.gmra.mxu3 %vm486_vm1, %v6497_v32 }
  0x1d   : > { %4002 = vmatpush.bf16.msrb.mxu2 %v3994_v33  ;;  %4600 = vmatpush.bf16.msrb.mxu3 %v4592_v34 }
  0x1e   : > { %3109 = vmatpush.bf16.msrb.mxu0 %v3101_v35  ;;  %3404 = vmatpush.bf16.msrb.mxu1 %v3396_v36 }
  0x2b   : > { %5891 = vmatmul.msk.bf16.gmra.mxu0 %vm486_vm1, %v6498_v37  ;;  %5938 = vmatmul.msk.bf16.gmra.mxu1 %vm486_vm1, %v6498_v37 }
  0x2c   : > { %5985 = vmatmul.msk.bf16.gmra.mxu2 %vm486_vm1, %v6498_v37  ;;  %6032 = vmatmul.msk.bf16.gmra.mxu3 %vm486_vm1, %v6498_v37 }
  0x3b   : > { %5892 = vmatmul.msk.bf16.gmra.mxu0 %vm486_vm1, %v6499_v38  ;;  %5939 = vmatmul.msk.bf16.gmra.mxu1 %vm486_vm1, %v6499_v38 }
  0x3c   : > { %5986 = vmatmul.msk.bf16.gmra.mxu2 %vm486_vm1, %v6499_v38  ;;  %6033 = vmatmul.msk.bf16.gmra.mxu3 %vm486_vm1, %v6499_v38 }
  0x4b   : > { %5893 = vmatmul.msk.bf16.gmra.mxu0 %vm486_vm1, %v6500_v39  ;;  %5940 = vmatmul.msk.bf16.gmra.mxu1 %vm486_vm1, %v6500_v39 }
  0x4c   : > { %5987 = vmatmul.msk.bf16.gmra.mxu2 %vm486_vm1, %v6500_v39  ;;  %6034 = vmatmul.msk.bf16.gmra.mxu3 %vm486_vm1, %v6500_v39 }
  0x5b   : > { %5894 = vmatmul.msk.bf16.gmra.mxu0 %vm486_vm1, %v6501_v40  ;;  %5941 = vmatmul.msk.bf16.gmra.mxu1 %vm486_vm1, %v6501_v40 }
  0x5c   : > { %5988 = vmatmul.msk.bf16.gmra.mxu2 %vm486_vm1, %v6501_v40  ;;  %6035 = vmatmul.msk.bf16.gmra.mxu3 %vm486_vm1, %v6501_v40 }
  0x6b   : > { %5895 = vmatmul.msk.bf16.gmra.mxu0 %vm486_vm1, %v6502_v41  ;;  %5942 = vmatmul.msk.bf16.gmra.mxu1 %vm486_vm1, %v6502_v41 }
  0x6c   : > { %5989 = vmatmul.msk.bf16.gmra.mxu2 %vm486_vm1, %v6502_v41  ;;  %6036 = vmatmul.msk.bf16.gmra.mxu3 %vm486_vm1, %v6502_v41 }
  0x7b   : > { %5896 = vmatmul.msk.bf16.gmra.mxu0 %vm486_vm1, %v6503_v42  ;;  %5943 = vmatmul.msk.bf16.gmra.mxu1 %vm486_vm1, %v6503_v42 }
  0x7c   : > { %5990 = vmatmul.msk.bf16.gmra.mxu2 %vm486_vm1, %v6503_v42  ;;  %6037 = vmatmul.msk.bf16.gmra.mxu3 %vm486_vm1, %v6503_v42 }
  0x8b   : > { %5897 = vmatmul.msk.bf16.gmra.mxu0 %vm486_vm1, %v6504_v43  ;;  %5944 = vmatmul.msk.bf16.gmra.mxu1 %vm486_vm1, %v6504_v43 }
  0x8c   : > { %5991 = vmatmul.msk.bf16.gmra.mxu2 %vm486_vm1, %v6504_v43  ;;  %6038 = vmatmul.msk.bf16.gmra.mxu3 %vm486_vm1, %v6504_v43 }
  0x98   : > { %v620_v45 = vpop.f32.mrf.mxu0  ;;  %v915_v46 = vpop.f32.mrf.mxu1 }
  0x99   : > { %v1188_v47 = vrot.slane %v915_v46, 1 }
  0x9b   : > { %5898 = vmatmul.msk.bf16.gmra.mxu0 %vm486_vm1, %v6505_v44  ;;  %5945 = vmatmul.msk.bf16.gmra.mxu1 %vm486_vm1, %v6505_v44 }
  0x9c   : > { %5992 = vmatmul.msk.bf16.gmra.mxu2 %vm486_vm1, %v6505_v44  ;;  %6039 = vmatmul.msk.bf16.gmra.mxu3 %vm486_vm1, %v6505_v44 }
  0x9f   : > { %v1514_v48 = vpop.f32.mrf.mxu2  ;;  %v2112_v49 = vpop.f32.mrf.mxu3 }
  0xa0   : > { %v622_v50 = vpop.f32.mrf.mxu0  ;;  %v917_v51 = vpop.f32.mrf.mxu1 }
  0xa1   : > { %v1189_v52 = vrot.slane %v917_v51, 1 }
  0xa3   : > { %v1190_v53 = vsel %vm1187_vm2, %v1188_v47, %v1189_v52 }
  0xa4   : > { %v1414_v54 = vadd.f32 %v1190_v53, %v620_v45 }
  0xa7   : > { %v1515_v55 = vpop.f32.mrf.mxu2  ;;  %v2113_v56 = vpop.f32.mrf.mxu3 }
  0xa8   : > { %v625_v58 = vpop.f32.mrf.mxu0  ;;  %v920_v59 = vpop.f32.mrf.mxu1 }
  0xa9   : > { %v1191_v60 = vrot.slane %v920_v59, 1 }
  0xab   : > { %v1192_v61 = vsel %vm1187_vm2, %v1189_v52, %v1191_v60  ;;  %5899 = vmatmul.msk.bf16.gmra.mxu0 %vm486_vm1, %v6506_v57  ;;  %5946 = vmatmul.msk.bf16.gmra.mxu1 %vm486_vm1, %v6506_v57 }
  0xac   : > { %v1415_v62 = vadd.f32 %v1192_v61, %v622_v50  ;;  %5993 = vmatmul.msk.bf16.gmra.mxu2 %vm486_vm1, %v6506_v57  ;;  %6040 = vmatmul.msk.bf16.gmra.mxu3 %vm486_vm1, %v6506_v57 }
  0xaf   : > { %v1517_v63 = vpop.f32.mrf.mxu2  ;;  %v2115_v0 = vpop.f32.mrf.mxu3 }
  0xb0   : > { %v627_v1 = vpop.f32.mrf.mxu0  ;;  %v922_v2 = vpop.f32.mrf.mxu1 }
  0xb1   : > { %v1193_v3 = vrot.slane %v922_v2, 1 }
  0xb3   : > { %v1194_v4 = vsel %vm1187_vm2, %v1191_v60, %v1193_v3 }
  0xb4   : > { %v1416_v5 = vadd.f32 %v1194_v4, %v625_v58  ;;  %v6509_v58 = vld [vmem:[%s6769_s28 + $0x60] sm:$0xff] }
  0xb7   : > { %v1518_v6 = vpop.f32.mrf.mxu2  ;;  %v2116_v7 = vpop.f32.mrf.mxu3 }
  0xb8   : > { %v630_v9 = vpop.f32.mrf.mxu0  ;;  %v925_v10 = vpop.f32.mrf.mxu1  ;;  %v1786_v16 = vrot.slane %v1518_v6, 1  ;;  %v2385_v17 = vrot.slane %v2116_v7, 2 }
  0xb9   : > { %v1195_v11 = vrot.slane %v925_v10, 1 }
  0xbb   : > { %v1196_v12 = vsel %vm1187_vm2, %v1193_v3, %v1195_v11  ;;  %5900 = vmatmul.msk.bf16.gmra.mxu0 %vm486_vm1, %v6507_v8  ;;  %5947 = vmatmul.msk.bf16.gmra.mxu1 %vm486_vm1, %v6507_v8 }
  0xbc   : > { %v6832_v13 = vadd.f32 %v1196_v12, %v627_v1  ;;  %5994 = vmatmul.msk.bf16.gmra.mxu2 %vm486_vm1, %v6507_v8  ;;  %6041 = vmatmul.msk.bf16.gmra.mxu3 %vm486_vm1, %v6507_v8 }
  0xbf   : > { %v1521_v14 = vpop.f32.mrf.mxu2  ;;  %v2119_v15 = vpop.f32.mrf.mxu3 }
  0xc0   : > { %v1787_v18 = vrot.slane %v1521_v14, 1  ;;  %v2386_v19 = vrot.slane %v2119_v15, 2  ;;  %v632_v20 = vpop.f32.mrf.mxu0  ;;  %v927_v21 = vpop.f32.mrf.mxu1 }
  0xc1   : > { %v1197_v22 = vrot.slane %v927_v21, 1  ;;  %v6510_v21 = vld [vmem:[%s6769_s28 + $0x68] sm:$0xff] }
  0xc2   : > { %v1788_v23 = vsel %vm1187_vm2, %v1786_v16, %v1787_v18  ;;  %v2387_v24 = vsel %vm2384_vm3, %v2385_v17, %v2386_v19 }
  0xc3   : > { %v1198_v25 = vsel %vm1187_vm2, %v1195_v11, %v1197_v22  ;;  %v2012_v26 = vadd.f32 %v1788_v23, %v1414_v54 }
  0xc4   : > { %v1418_v27 = vadd.f32 %v1198_v25, %v630_v9 }
  0xc5   : > { %v6839_v28 = vadd.f32 %v2387_v24, %v2012_v26 }
  0xc7   : > { %v1523_v29 = vpop.f32.mrf.mxu2  ;;  %v2121_v30 = vpop.f32.mrf.mxu3 }
  0xc8   : > { %v1789_v32 = vrot.slane %v1523_v29, 1  ;;  %v2388_v33 = vrot.slane %v2121_v30, 2  ;;  %v635_v34 = vpop.f32.mrf.mxu0  ;;  %v930_v35 = vpop.f32.mrf.mxu1 }
  0xc9   : > { %v1199_v36 = vrot.slane %v930_v35, 1 }
  0xca   : > { %v1790_v37 = vsel %vm1187_vm2, %v1787_v18, %v1789_v32  ;;  %v2389_v38 = vsel %vm2384_vm3, %v2386_v19, %v2388_v33 }
  0xcb   : > { %v1200_v39 = vsel %vm1187_vm2, %v1197_v22, %v1199_v36  ;;  %5901 = vmatmul.msk.bf16.gmra.mxu0 %vm486_vm1, %v6508_v31  ;;  %5948 = vmatmul.msk.bf16.gmra.mxu1 %vm486_vm1, %v6508_v31  ;;  %v2013_v40 = vadd.f32 %v1790_v37, %v1415_v62 }
  0xcc   : > { %v1419_v41 = vadd.f32 %v1200_v39, %v632_v20  ;;  %5995 = vmatmul.msk.bf16.gmra.mxu2 %vm486_vm1, %v6508_v31  ;;  %6042 = vmatmul.msk.bf16.gmra.mxu3 %vm486_vm1, %v6508_v31 }
  0xcd   : > { %v6849_v42 = vadd.f32 %v2389_v38, %v2013_v40 }
  0xcf   : > { %v1526_v43 = vpop.f32.mrf.mxu2  ;;  %v2124_v44 = vpop.f32.mrf.mxu3 }
  0xd0   : > { %v1791_v45 = vrot.slane %v1526_v43, 1  ;;  %v2390_v46 = vrot.slane %v2124_v44, 2  ;;  %v637_v47 = vpop.f32.mrf.mxu0  ;;  %v932_v48 = vpop.f32.mrf.mxu1 }
  0xd1   : > { %v1201_v49 = vrot.slane %v932_v48, 1 }
  0xd2   : > { %v1792_v50 = vsel %vm1187_vm2, %v1789_v32, %v1791_v45  ;;  %v2391_v51 = vsel %vm2384_vm3, %v2388_v33, %v2390_v46 }
  0xd3   : > { %v1202_v52 = vsel %vm1187_vm2, %v1199_v36, %v1201_v49  ;;  %v2014_v53 = vadd.f32 %v1792_v50, %v1416_v5  ;;  %v6511_v50 = vld [vmem:[%s6769_s28 + $0x70] sm:$0xff] }
  0xd4   : > { %v1420_v54 = vadd.f32 %v1202_v52, %v635_v34 }
  0xd5   : > { %v6854_v55 = vadd.f32 %v2391_v51, %v2014_v53 }
  0xd7   : > { %v1528_v56 = vpop.f32.mrf.mxu2  ;;  %v2126_v57 = vpop.f32.mrf.mxu3 }
  0xd8   : > { %v1793_v59 = vrot.slane %v1528_v56, 1  ;;  %v2392_v60 = vrot.slane %v2126_v57, 2  ;;  %v640_v61 = vpop.f32.mrf.mxu0  ;;  %v935_v62 = vpop.f32.mrf.mxu1 }
  0xd9   : > { %v1203_v63 = vrot.slane %v935_v62, 1 }
  0xda   : > { %v1794_v0 = vsel %vm1187_vm2, %v1791_v45, %v1793_v59  ;;  %v2393_v1 = vsel %vm2384_vm3, %v2390_v46, %v2392_v60 }
  0xdb   : > { %v1204_v2 = vsel %vm1187_vm2, %v1201_v49, %v1203_v63  ;;  %5902 = vmatmul.msk.bf16.gmra.mxu0 %vm486_vm1, %v6509_v58  ;;  %5949 = vmatmul.msk.bf16.gmra.mxu1 %vm486_vm1, %v6509_v58  ;;  %v2015_v3 = vadd.f32 %v1794_v0, %v6832_v13 }
  0xdc   : > { %v1421_v4 = vadd.f32 %v1204_v2, %v637_v47  ;;  %5996 = vmatmul.msk.bf16.gmra.mxu2 %vm486_vm1, %v6509_v58  ;;  %6043 = vmatmul.msk.bf16.gmra.mxu3 %vm486_vm1, %v6509_v58 }
  0xdd   : > { %v6865_v5 = vadd.f32 %v2393_v1, %v2015_v3 }
  0xdf   : > { %v1531_v6 = vpop.f32.mrf.mxu2  ;;  %v2129_v7 = vpop.f32.mrf.mxu3 }
  0xe0   : > { %v1795_v8 = vrot.slane %v1531_v6, 1  ;;  %v2394_v9 = vrot.slane %v2129_v7, 2  ;;  %v642_v10 = vpop.f32.mrf.mxu0  ;;  %v937_v11 = vpop.f32.mrf.mxu1 }
  0xe1   : > { %v1205_v12 = vrot.slane %v937_v11, 1 }
  0xe2   : > { %v1796_v14 = vsel %vm1187_vm2, %v1793_v59, %v1795_v8  ;;  %v2395_v15 = vsel %vm2384_vm3, %v2392_v60, %v2394_v9 }
  0xe3   : > { %v1206_v13 = vsel %vm1187_vm2, %v1203_v63, %v1205_v12  ;;  %v2016_v16 = vadd.f32 %v1796_v14, %v1418_v27 }
  0xe4   : > { %v1422_v17 = vadd.f32 %v1206_v13, %v640_v61  ;;  %v6512_v13 = vld [vmem:[%s6769_s28 + $0x78] sm:$0xff] }
  0xe5   : > { %v6870_v18 = vadd.f32 %v2395_v15, %v2016_v16 }
  0xe7   : > { %v1533_v19 = vpop.f32.mrf.mxu2  ;;  %v2131_v20 = vpop.f32.mrf.mxu3 }
  0xe8   : > { %v1797_v22 = vrot.slane %v1533_v19, 1  ;;  %v2396_v23 = vrot.slane %v2131_v20, 2  ;;  %v645_v24 = vpop.f32.mrf.mxu0  ;;  %v940_v25 = vpop.f32.mrf.mxu1 }
  0xe9   : > { %v1207_v26 = vrot.slane %v940_v25, 1 }
  0xea   : > { %v1798_v29 = vsel %vm1187_vm2, %v1795_v8, %v1797_v22  ;;  %v2397_v30 = vsel %vm2384_vm3, %v2394_v9, %v2396_v23 }
  0xeb   : > { %v1208_v31 = vsel %vm1187_vm2, %v1205_v12, %v1207_v26  ;;  %5903 = vmatmul.msk.bf16.gmra.mxu0 %vm486_vm1, %v6510_v21  ;;  %5950 = vmatmul.msk.bf16.gmra.mxu1 %vm486_vm1, %v6510_v21  ;;  %v2017_v27 = vadd.f32 %v1798_v29, %v1419_v41 }
  0xec   : > { %v1423_v32 = vadd.f32 %v1208_v31, %v642_v10  ;;  %5997 = vmatmul.msk.bf16.gmra.mxu2 %vm486_vm1, %v6510_v21  ;;  %6044 = vmatmul.msk.bf16.gmra.mxu3 %vm486_vm1, %v6510_v21 }
  0xed   : > { %v6880_v33 = vadd.f32 %v2397_v30, %v2017_v27 }
  0xef   : > { %v1536_v34 = vpop.f32.mrf.mxu2  ;;  %v2134_v35 = vpop.f32.mrf.mxu3 }
  0xf0   : > { %v1799_v36 = vrot.slane %v1536_v34, 1  ;;  %v2398_v37 = vrot.slane %v2134_v35, 2  ;;  %v647_v38 = vpop.f32.mrf.mxu0  ;;  %v942_v39 = vpop.f32.mrf.mxu1 }
  0xf1   : > { %v1209_v40 = vrot.slane %v942_v39, 1 }
  0xf2   : > { %v1800_v43 = vsel %vm1187_vm2, %v1797_v22, %v1799_v36  ;;  %v2399_v44 = vsel %vm2384_vm3, %v2396_v23, %v2398_v37 }
  0xf3   : > { %v1210_v41 = vsel %vm1187_vm2, %v1207_v26, %v1209_v40  ;;  %v2018_v45 = vadd.f32 %v1800_v43, %v1420_v54 }
  0xf4   : > { %v1424_v46 = vadd.f32 %v1210_v41, %v645_v24 }
  0xf5   : > { %v6885_v47 = vadd.f32 %v2399_v44, %v2018_v45 }
  0xf7   : > { %v1538_v48 = vpop.f32.mrf.mxu2  ;;  %v2136_v49 = vpop.f32.mrf.mxu3 }
  0xf8   : > { %v1801_v51 = vrot.slane %v1538_v48, 1  ;;  %v2400_v52 = vrot.slane %v2136_v49, 2  ;;  %v650_v53 = vpop.f32.mrf.mxu0  ;;  %v945_v56 = vpop.f32.mrf.mxu1  ;;  %v6513_v48 = vld [vmem:[%s6769_s28 + $0x80] sm:$0xff] }
  0xf9   : > { %v1211_v57 = vrot.slane %v945_v56, 1 }
  0xfa   : > { %v1802_v58 = vsel %vm1187_vm2, %v1799_v36, %v1801_v51  ;;  %v2401_v59 = vsel %vm2384_vm3, %v2398_v37, %v2400_v52 }
  0xfb   : > { %v1212_v60 = vsel %vm1187_vm2, %v1209_v40, %v1211_v57  ;;  %5904 = vmatmul.msk.bf16.gmra.mxu0 %vm486_vm1, %v6511_v50  ;;  %5951 = vmatmul.msk.bf16.gmra.mxu1 %vm486_vm1, %v6511_v50  ;;  %v2019_v54 = vadd.f32 %v1802_v58, %v1421_v4 }
  0xfc   : > { %v1425_v61 = vadd.f32 %v1212_v60, %v647_v38  ;;  %5998 = vmatmul.msk.bf16.gmra.mxu2 %vm486_vm1, %v6511_v50  ;;  %6045 = vmatmul.msk.bf16.gmra.mxu3 %vm486_vm1, %v6511_v50 }
  0xfd   : > { %v6895_v62 = vadd.f32 %v2401_v59, %v2019_v54 }
  0xff   : > { %v1541_v63 = vpop.f32.mrf.mxu2  ;;  %v2139_v0 = vpop.f32.mrf.mxu3 }
 0x100   : > { %v1803_v1 = vrot.slane %v1541_v63, 1  ;;  %v2402_v2 = vrot.slane %v2139_v0, 2  ;;  %v652_v3 = vpop.f32.mrf.mxu0  ;;  %v947_v6 = vpop.f32.mrf.mxu1 }
 0x101   : > { %v1213_v7 = vrot.slane %v947_v6, 1 }
 0x102   : > { %v1804_v8 = vsel %vm1187_vm2, %v1801_v51, %v1803_v1  ;;  %v2403_v9 = vsel %vm2384_vm3, %v2400_v52, %v2402_v2 }
 0x103   : > { %v1214_v4 = vsel %vm1187_vm2, %v1211_v57, %v1213_v7  ;;  %v2020_v10 = vadd.f32 %v1804_v8, %v1422_v17 }
 0x104   : > { %v1426_v11 = vadd.f32 %v1214_v4, %v650_v53 }
 0x105   : > { %v6900_v12 = vadd.f32 %v2403_v9, %v2020_v10 }
 0x107   : > { %v1543_v14 = vpop.f32.mrf.mxu2  ;;  %v2141_v15 = vpop.f32.mrf.mxu3 }
 0x108   : > { %v1805_v16 = vrot.slane %v1543_v14, 1  ;;  %v2404_v19 = vrot.slane %v2141_v15, 2  ;;  %v655_v20 = vpop.f32.mrf.mxu0  ;;  %v950_v21 = vpop.f32.mrf.mxu1 }
 0x109   : > { %v1215_v22 = vrot.slane %v950_v21, 1 }
 0x10a   : > { %v1806_v23 = vsel %vm1187_vm2, %v1803_v1, %v1805_v16  ;;  %v2405_v24 = vsel %vm2384_vm3, %v2402_v2, %v2404_v19 }
 0x10b   : > { %v1216_v25 = vsel %vm1187_vm2, %v1213_v7, %v1215_v22  ;;  %5905 = vmatmul.msk.bf16.gmra.mxu0 %vm486_vm1, %v6512_v13  ;;  %5952 = vmatmul.msk.bf16.gmra.mxu1 %vm486_vm1, %v6512_v13  ;;  %v2021_v17 = vadd.f32 %v1806_v23, %v1423_v32 }
 0x10c   : > { %v1427_v26 = vadd.f32 %v1216_v25, %v652_v3  ;;  %5999 = vmatmul.msk.bf16.gmra.mxu2 %vm486_vm1, %v6512_v13  ;;  %6046 = vmatmul.msk.bf16.gmra.mxu3 %vm486_vm1, %v6512_v13  ;;  %v6514_v13 = vld [vmem:[%s6769_s28 + $0x88] sm:$0xff] }
 0x10d   : > { %v6910_v29 = vadd.f32 %v2405_v24, %v2021_v17 }
 0x10f   : > { %v1546_v30 = vpop.f32.mrf.mxu2  ;;  %v2144_v31 = vpop.f32.mrf.mxu3 }
 0x110   : > { %v1807_v27 = vrot.slane %v1546_v30, 1  ;;  %v2406_v34 = vrot.slane %v2144_v31, 2  ;;  %v657_v35 = vpop.f32.mrf.mxu0  ;;  %v952_v36 = vpop.f32.mrf.mxu1 }
 0x111   : > { %v1217_v37 = vrot.slane %v952_v36, 1 }
 0x112   : > { %v1808_v38 = vsel %vm1187_vm2, %v1805_v16, %v1807_v27  ;;  %v2407_v39 = vsel %vm2384_vm3, %v2404_v19, %v2406_v34 }
 0x113   : > { %v1218_v32 = vsel %vm1187_vm2, %v1215_v22, %v1217_v37  ;;  %v2022_v40 = vadd.f32 %v1808_v38, %v1424_v46 }
 0x114   : > { %v1428_v43 = vadd.f32 %v1218_v32, %v655_v20 }
 0x115   : > { %v6915_v44 = vadd.f32 %v2407_v39, %v2022_v40 }
 0x117   : > { %v1548_v41 = vpop.f32.mrf.mxu2  ;;  %v2146_v45 = vpop.f32.mrf.mxu3 }
 0x118   : > { %v1809_v49 = vrot.slane %v1548_v41, 1  ;;  %v2408_v50 = vrot.slane %v2146_v45, 2  ;;  %v660_v51 = vpop.f32.mrf.mxu0  ;;  %v955_v52 = vpop.f32.mrf.mxu1 }
 0x119   : > { %v1219_v53 = vrot.slane %v955_v52, 1 }
 0x11a   : > { %v1810_v56 = vsel %vm1187_vm2, %v1807_v27, %v1809_v49  ;;  %v2409_v57 = vsel %vm2384_vm3, %v2406_v34, %v2408_v50 }
 0x11b   : > { %v1220_v58 = vsel %vm1187_vm2, %v1217_v37, %v1219_v53  ;;  %5906 = vmatmul.msk.bf16.gmra.mxu0 %vm486_vm1, %v6513_v48  ;;  %5953 = vmatmul.msk.bf16.gmra.mxu1 %vm486_vm1, %v6513_v48  ;;  %v2023_v46 = vadd.f32 %v1810_v56, %v1425_v61 }
 0x11c   : > { %v1429_v59 = vadd.f32 %v1220_v58, %v657_v35  ;;  %6000 = vmatmul.msk.bf16.gmra.mxu2 %vm486_vm1, %v6513_v48  ;;  %6047 = vmatmul.msk.bf16.gmra.mxu3 %vm486_vm1, %v6513_v48 }
 0x11d   : > { %v6925_v60 = vadd.f32 %v2409_v57, %v2023_v46 }
 0x11f   : > { %v1551_v54 = vpop.f32.mrf.mxu2  ;;  %v2149_v63 = vpop.f32.mrf.mxu3 }
 0x120   : > { %v1811_v0 = vrot.slane %v1551_v54, 1  ;;  %v2410_v1 = vrot.slane %v2149_v63, 2  ;;  %v662_v2 = vpop.f32.mrf.mxu0  ;;  %v957_v3 = vpop.f32.mrf.mxu1 }
 0x121   : > { %v1221_v6 = vrot.slane %v957_v3, 1 }
 0x122   : > { %v1812_v7 = vsel %vm1187_vm2, %v1809_v49, %v1811_v0  ;;  %v2411_v8 = vsel %vm2384_vm3, %v2408_v50, %v2410_v1  ;;  %v6515_v50 = vld [vmem:[%s6769_s28 + $0x90] sm:$0xff] }
 0x123   : > { %v1222_v61 = vsel %vm1187_vm2, %v1219_v53, %v1221_v6  ;;  %v2024_v9 = vadd.f32 %v1812_v7, %v1426_v11 }
 0x124   : > { %v6930_v4 = vadd.f32 %v1222_v61, %v660_v51 }
 0x125   : > { %v6932_v10 = vadd.f32 %v2411_v8, %v2024_v9 }
 0x127   : > { %v1553_v14 = vpop.f32.mrf.mxu2  ;;  %v2151_v15 = vpop.f32.mrf.mxu3 }
 0x128   : > { %v1813_v16 = vrot.slane %v1553_v14, 1  ;;  %v2412_v19 = vrot.slane %v2151_v15, 2  ;;  %v665_v20 = vpop.f32.mrf.mxu0  ;;  %v960_v21 = vpop.f32.mrf.mxu1 }
 0x129   : > { %v1223_v22 = vrot.slane %v960_v21, 1 }
 0x12a   : > { %v1814_v23 = vsel %vm1187_vm2, %v1811_v0, %v1813_v16  ;;  %v2413_v24 = vsel %vm2384_vm3, %v2410_v1, %v2412_v19  ;;  %v6581_v0 = vld [vmem:[%s8605_s1 + $0x48] sm:$0xff]  ;;  %v6582_v1 = vld [vmem:[%s8605_s1 + $0x54] sm:$0xff] }
 0x12b   : > { %v1224_v25 = vsel %vm1187_vm2, %v1221_v6, %v1223_v22  ;;  %5907 = vmatmul.msk.bf16.gmra.mxu0 %vm486_vm1, %v6514_v13  ;;  %5954 = vmatmul.msk.bf16.gmra.mxu1 %vm486_vm1, %v6514_v13  ;;  %v2025_v11 = vadd.f32 %v1814_v23, %v1427_v26  ;;  %v6516_v23 = vld [vmem:[%s6769_s28 + $0x98] sm:$0xff] }
 0x12c   : > { %v6940_v17 = vadd.f32 %v1224_v25, %v662_v2  ;;  %6001 = vmatmul.msk.bf16.gmra.mxu2 %vm486_vm1, %v6514_v13  ;;  %6048 = vmatmul.msk.bf16.gmra.mxu3 %vm486_vm1, %v6514_v13 }
 0x12d   : > { %v6944_v30 = vadd.f32 %v2413_v24, %v2025_v11  ;;  %4003 = vmatpush.bf16.msrb.mxu2 %v6581_v0  ;;  %4601 = vmatpush.bf16.msrb.mxu3 %v6582_v1  ;;  %v6517_v0 = vld [vmem:[%s6769_s28 + $0xa0] sm:$0xff] }
 0x12f   : > { %v1556_v31 = vpop.f32.mrf.mxu2  ;;  %v2154_v27 = vpop.f32.mrf.mxu3 }
 0x130   : > { %v1815_v34 = vrot.slane %v1556_v31, 1  ;;  %v2414_v35 = vrot.slane %v2154_v27, 2  ;;  %v667_v36 = vpop.f32.mrf.mxu0  ;;  %v962_v37 = vpop.f32.mrf.mxu1 }
 0x131   : > { %v1225_v38 = vrot.slane %v962_v37, 1 }
 0x132   : > { %v1816_v39 = vsel %vm1187_vm2, %v1813_v16, %v1815_v34  ;;  %v2415_v26 = vsel %vm2384_vm3, %v2412_v19, %v2414_v35 }
 0x133   : > { %v1226_v32 = vsel %vm1187_vm2, %v1223_v22, %v1225_v38  ;;  %v2026_v40 = vadd.f32 %v1816_v39, %v1428_v43  ;;  %v6580_v39 = vld [vmem:[%s8605_s1 + $0x3c] sm:$0xff] }
 0x134   : > { %v6949_v41 = vadd.f32 %v1226_v32, %v665_v20  ;;  %3405 = vmatpush.bf16.msrb.mxu1 %v6580_v39 }
 0x135   : > { %v6951_v45 = vadd.f32 %v2415_v26, %v2026_v40 }
 0x137   : > { %v1558_v48 = vpop.f32.mrf.mxu2  ;;  %v2156_v49 = vpop.f32.mrf.mxu3 }
 0x138   : > { %v1817_v51 = vrot.slane %v1558_v48, 1  ;;  %v2416_v52 = vrot.slane %v2156_v49, 2  ;;  %v670_v53 = vpop.f32.mrf.mxu0  ;;  %v965_v56 = vpop.f32.mrf.mxu1 }
 0x139   : > { %v1227_v57 = vrot.slane %v965_v56, 1 }
 0x13a   : > { %v1818_v58 = vsel %vm1187_vm2, %v1815_v34, %v1817_v51  ;;  %v2417_v46 = vsel %vm2384_vm3, %v2414_v35, %v2416_v52 }
 0x13b   : > { %v1228_v54 = vsel %vm1187_vm2, %v1225_v38, %v1227_v57  ;;  %5908 = vmatmul.msk.bf16.gmra.mxu0 %vm486_vm1, %v6515_v50  ;;  %5955 = vmatmul.msk.bf16.gmra.mxu1 %vm486_vm1, %v6515_v50  ;;  %v2027_v43 = vadd.f32 %v1818_v58, %v1429_v59  ;;  %v6579_v38 = vld [vmem:[%s8605_s1 + $0x30] sm:$0xff] }
 0x13c   : > { %v6959_v63 = vadd.f32 %v1228_v54, %v667_v36  ;;  %6002 = vmatmul.msk.bf16.gmra.mxu2 %vm486_vm1, %v6515_v50  ;;  %6049 = vmatmul.msk.bf16.gmra.mxu3 %vm486_vm1, %v6515_v50 }
 0x13d   : > { %v6969_v2 = vadd.f32 %v2417_v46, %v2027_v43  ;;  %3110 = vmatpush.bf16.msrb.mxu0 %v6579_v38  ;;  %v6518_v38 = vld [vmem:[%s6769_s28 + $0xa8] sm:$0xff] }
 0x13f   : > { %v1561_v59 = vpop.f32.mrf.mxu2  ;;  %v2159_v3 = vpop.f32.mrf.mxu3 }
 0x140   : > { %v1819_v6 = vrot.slane %v1561_v59, 1  ;;  %v2418_v7 = vrot.slane %v2159_v3, 2  ;;  %v672_v8 = vpop.f32.mrf.mxu0  ;;  %v967_v61 = vpop.f32.mrf.mxu1 }
 0x141   : > { %v1229_v9 = vrot.slane %v967_v61, 1 }
 0x142   : > { %v1820_v14 = vsel %vm1187_vm2, %v1817_v51, %v1819_v6  ;;  %v2419_v15 = vsel %vm2384_vm3, %v2416_v52, %v2418_v7 }
 0x143   : > { %v1230_v13 = vsel %vm1187_vm2, %v1227_v57, %v1229_v9  ;;  %v2028_v16 = vadd.f32 %v1820_v14, %v6930_v4 }
 0x144   : > { %v6975_v19 = vadd.f32 %v1230_v13, %v670_v53 }
 0x145   : > { %v6977_v20 = vadd.f32 %v2419_v15, %v2028_v16 }
 0x147   : > { %v1563_v21 = vpop.f32.mrf.mxu2  ;;  %v2161_v22 = vpop.f32.mrf.mxu3 }
 0x148   : > { %v1821_v24 = vrot.slane %v1563_v21, 1  ;;  %v2420_v25 = vrot.slane %v2161_v22, 2  ;;  %v675_v11 = vpop.f32.mrf.mxu0  ;;  %v970_v31 = vpop.f32.mrf.mxu1 }
 0x149   : > { %v1231_v27 = vrot.slane %v970_v31, 1 }
 0x14a   : > { %v1822_v34 = vsel %vm1187_vm2, %v1819_v6, %v1821_v24  ;;  %v2421_v35 = vsel %vm2384_vm3, %v2418_v7, %v2420_v25 }
 0x14b   : > { %v1232_v36 = vsel %vm1187_vm2, %v1229_v9, %v1231_v27  ;;  %5909 = vmatmul.msk.bf16.gmra.mxu0 %vm486_vm1, %v6516_v23  ;;  %5956 = vmatmul.msk.bf16.gmra.mxu1 %vm486_vm1, %v6516_v23  ;;  %v2029_v4 = vadd.f32 %v1822_v34, %v6940_v17 }
 0x14c   : > { %v6986_v37 = vadd.f32 %v1232_v36, %v672_v8  ;;  %6003 = vmatmul.msk.bf16.gmra.mxu2 %vm486_vm1, %v6516_v23  ;;  %6050 = vmatmul.msk.bf16.gmra.mxu3 %vm486_vm1, %v6516_v23 }
 0x14d   : > { %v6996_v26 = vadd.f32 %v2421_v35, %v2029_v4 }
 0x14f   : > { %v1566_v17 = vpop.f32.mrf.mxu2  ;;  %v2164_v32 = vpop.f32.mrf.mxu3 }
 0x150   : > { %v1823_v40 = vrot.slane %v1566_v17, 1  ;;  %v2422_v48 = vrot.slane %v2164_v32, 2  ;;  %v677_v49 = vpop.f32.mrf.mxu0  ;;  %v972_v50 = vpop.f32.mrf.mxu1 }
 0x151   : > { %v1233_v51 = vrot.slane %v972_v50, 1 }
 0x152   : > { %v1824_v52 = vsel %vm1187_vm2, %v1821_v24, %v1823_v40  ;;  %v2423_v53 = vsel %vm2384_vm3, %v2420_v25, %v2422_v48 }
 0x153   : > { %v1234_v56 = vsel %vm1187_vm2, %v1231_v27, %v1233_v51  ;;  %v2030_v57 = vadd.f32 %v1824_v52, %v6949_v41 }
 0x154   : > { %v1436_v58 = vadd.f32 %v1234_v56, %v675_v11 }
 0x155   : > { %v7002_v46 = vadd.f32 %v2423_v53, %v2030_v57 }
 0x157   : > { %v1568_v54 = vpop.f32.mrf.mxu2  ;;  %v2166_v43 = vpop.f32.mrf.mxu3 }
 0x158   : > { %v1825_v1 = vrot.slane %v1568_v54, 1  ;;  %v2424_v59 = vrot.slane %v2166_v43, 2  ;;  %v680_v3 = vpop.f32.mrf.mxu0  ;;  %v975_v6 = vpop.f32.mrf.mxu1 }
 0x159   : > { %v1235_v7 = vrot.slane %v975_v6, 1 }
 0x15a   : > { %v1826_v8 = vsel %vm1187_vm2, %v1823_v40, %v1825_v1  ;;  %v2425_v61 = vsel %vm2384_vm3, %v2422_v48, %v2424_v59 }
 0x15b   : > { %v1236_v9 = vsel %vm1187_vm2, %v1233_v51, %v1235_v7  ;;  %5910 = vmatmul.msk.bf16.gmra.mxu0 %vm486_vm1, %v6517_v0  ;;  %5957 = vmatmul.msk.bf16.gmra.mxu1 %vm486_vm1, %v6517_v0  ;;  %v2031_v41 = vadd.f32 %v1826_v8, %v6959_v63 }
 0x15c   : > { %v1437_v14 = vadd.f32 %v1236_v9, %v677_v49  ;;  %6004 = vmatmul.msk.bf16.gmra.mxu2 %vm486_vm1, %v6517_v0  ;;  %6051 = vmatmul.msk.bf16.gmra.mxu3 %vm486_vm1, %v6517_v0 }
 0x15d   : > { %v7013_v15 = vadd.f32 %v2425_v61, %v2031_v41 }
 0x15f   : > { %v1571_v13 = vpop.f32.mrf.mxu2  ;;  %v2169_v16 = vpop.f32.mrf.mxu3 }
 0x160   : > { %v1827_v21 = vrot.slane %v1571_v13, 1  ;;  %v2426_v22 = vrot.slane %v2169_v16, 2  ;;  %v682_v23 = vpop.f32.mrf.mxu0  ;;  %v977_v24 = vpop.f32.mrf.mxu1  ;;  %v6519_v13 = vld [vmem:[%s6769_s28 + $0xb0] sm:$0xff] }
 0x161   : > { %v1237_v25 = vrot.slane %v977_v24, 1 }
 0x162   : > { %v1828_v11 = vsel %vm1187_vm2, %v1825_v1, %v1827_v21  ;;  %v2427_v31 = vsel %vm2384_vm3, %v2424_v59, %v2426_v22 }
 0x163   : > { %v1238_v63 = vsel %vm1187_vm2, %v1235_v7, %v1237_v25  ;;  %v2032_v27 = vadd.f32 %v1828_v11, %v6975_v19 }
 0x164   : > { %v1438_v34 = vadd.f32 %v1238_v63, %v680_v3 }
 0x165   : > { %v7019_v35 = vadd.f32 %v2427_v31, %v2032_v27 }
 0x167   : > { %v1573_v36 = vpop.f32.mrf.mxu2  ;;  %v2171_v4 = vpop.f32.mrf.mxu3 }
 0x168   : > { %v1829_v39 = vrot.slane %v1573_v36, 1  ;;  %v2428_v17 = vrot.slane %v2171_v4, 2  ;;  %v685_v32 = vpop.f32.mrf.mxu0  ;;  %v980_v40 = vpop.f32.mrf.mxu1 }
 0x169   : > { %v1239_v48 = vrot.slane %v980_v40, 1 }
 0x16a   : > { %v1830_v49 = vsel %vm1187_vm2, %v1827_v21, %v1829_v39  ;;  %v2429_v50 = vsel %vm2384_vm3, %v2426_v22, %v2428_v17 }
 0x16b   : > { %v1240_v51 = vsel %vm1187_vm2, %v1237_v25, %v1239_v48  ;;  %5911 = vmatmul.msk.bf16.gmra.mxu0 %vm486_vm1, %v6518_v38  ;;  %5958 = vmatmul.msk.bf16.gmra.mxu1 %vm486_vm1, %v6518_v38  ;;  %v2033_v19 = vadd.f32 %v1830_v49, %v6986_v37 }
 0x16c   : > { %v1439_v52 = vadd.f32 %v1240_v51, %v682_v23  ;;  %6005 = vmatmul.msk.bf16.gmra.mxu2 %vm486_vm1, %v6518_v38  ;;  %6052 = vmatmul.msk.bf16.gmra.mxu3 %vm486_vm1, %v6518_v38 }
 0x16d   : > { %v7030_v53 = vadd.f32 %v2429_v50, %v2033_v19 }
 0x16f   : > { %v1576_v56 = vpop.f32.mrf.mxu2  ;;  %v2174_v57 = vpop.f32.mrf.mxu3 }
 0x170   : > { %v1831_v54 = vrot.slane %v1576_v56, 1  ;;  %v2430_v43 = vrot.slane %v2174_v57, 2  ;;  %v687_v0 = vpop.f32.mrf.mxu0  ;;  %v982_v1 = vpop.f32.mrf.mxu1 }
 0x171   : > { %v1241_v59 = vrot.slane %v982_v1, 1 }
 0x172   : > { %v1832_v3 = vsel %vm1187_vm2, %v1829_v39, %v1831_v54  ;;  %v2431_v6 = vsel %vm2384_vm3, %v2428_v17, %v2430_v43 }
 0x173   : > { %v1242_v37 = vsel %vm1187_vm2, %v1239_v48, %v1241_v59  ;;  %v2034_v7 = vadd.f32 %v1832_v3, %v1436_v58 }
 0x174   : > { %v1440_v8 = vadd.f32 %v1242_v37, %v685_v32 }
 0x175   : > { %v7035_v61 = vadd.f32 %v2431_v6, %v2034_v7 }
 0x177   : > { %v1578_v9 = vpop.f32.mrf.mxu2  ;;  %v2176_v41 = vpop.f32.mrf.mxu3 }
 0x178   : > { %v1833_v16 = vrot.slane %v1578_v9, 1  ;;  %v2432_v21 = vrot.slane %v2176_v41, 2  ;;  %v690_v22 = vpop.f32.mrf.mxu0  ;;  %v985_v23 = vpop.f32.mrf.mxu1 }
 0x179   : > { %v1243_v24 = vrot.slane %v985_v23, 1 }
 0x17a   : > { %v1834_v25 = vsel %vm1187_vm2, %v1831_v54, %v1833_v16  ;;  %v2433_v11 = vsel %vm2384_vm3, %v2430_v43, %v2432_v21  ;;  %v6520_v54 = vld [vmem:[%s6769_s28 + $0xb8] sm:$0xff] }
 0x17b   : > { %v1244_v31 = vsel %vm1187_vm2, %v1241_v59, %v1243_v24  ;;  %5912 = vmatmul.msk.bf16.gmra.mxu0 %vm486_vm1, %v6519_v13  ;;  %5959 = vmatmul.msk.bf16.gmra.mxu1 %vm486_vm1, %v6519_v13  ;;  %v2035_v58 = vadd.f32 %v1834_v25, %v1437_v14 }
 0x17c   : > { %v1441_v63 = vadd.f32 %v1244_v31, %v687_v0  ;;  %6006 = vmatmul.msk.bf16.gmra.mxu2 %vm486_vm1, %v6519_v13  ;;  %6053 = vmatmul.msk.bf16.gmra.mxu3 %vm486_vm1, %v6519_v13 }
 0x17d   : > { %v7045_v27 = vadd.f32 %v2433_v11, %v2035_v58 }
 0x17f   : > { %v1581_v36 = vpop.f32.mrf.mxu2  ;;  %v2179_v4 = vpop.f32.mrf.mxu3 }
 0x180   : > { %v1835_v38 = vrot.slane %v1581_v36, 1  ;;  %v2434_v39 = vrot.slane %v2179_v4, 2  ;;  %v692_v17 = vpop.f32.mrf.mxu0  ;;  %v987_v32 = vpop.f32.mrf.mxu1 }
 0x181   : > { %v1245_v40 = vrot.slane %v987_v32, 1 }
 0x182   : > { %v1836_v48 = vsel %vm1187_vm2, %v1833_v16, %v1835_v38  ;;  %v2435_v49 = vsel %vm2384_vm3, %v2432_v21, %v2434_v39 }
 0x183   : > { %v1246_v14 = vsel %vm1187_vm2, %v1243_v24, %v1245_v40  ;;  %v2036_v50 = vadd.f32 %v1836_v48, %v1438_v34 }
 0x184   : > { %v1442_v51 = vadd.f32 %v1246_v14, %v690_v22 }
 0x185   : > { %v7050_v19 = vadd.f32 %v2435_v49, %v2036_v50 }
 0x187   : > { %v1583_v56 = vpop.f32.mrf.mxu2  ;;  %v2181_v57 = vpop.f32.mrf.mxu3 }
 0x188   : > { %v1837_v43 = vrot.slane %v1583_v56, 1  ;;  %v2436_v0 = vrot.slane %v2181_v57, 2  ;;  %v695_v1 = vpop.f32.mrf.mxu0  ;;  %v990_v59 = vpop.f32.mrf.mxu1 }
 0x189   : > { %v1247_v3 = vrot.slane %v990_v59, 1 }
 0x18a   : > { %v1838_v6 = vsel %vm1187_vm2, %v1835_v38, %v1837_v43  ;;  %v2437_v37 = vsel %vm2384_vm3, %v2434_v39, %v2436_v0 }
 0x18b   : > { %v1248_v7 = vsel %vm1187_vm2, %v1245_v40, %v1247_v3  ;;  %5913 = vmatmul.msk.bf16.gmra.mxu0 %vm486_vm1, %v6520_v54  ;;  %5960 = vmatmul.msk.bf16.gmra.mxu1 %vm486_vm1, %v6520_v54  ;;  %v2037_v34 = vadd.f32 %v1838_v6, %v1439_v52 }
 0x18c   : > { %v1443_v9 = vadd.f32 %v1248_v7, %v692_v17  ;;  %6007 = vmatmul.msk.bf16.gmra.mxu2 %vm486_vm1, %v6520_v54  ;;  %6054 = vmatmul.msk.bf16.gmra.mxu3 %vm486_vm1, %v6520_v54  ;;  %v6521_v17 = vld [vmem:[%s6769_s28 + $0xc0] sm:$0xff] }
 0x18d   : > { %v7060_v41 = vadd.f32 %v2437_v37, %v2037_v34 }
 0x18f   : > { %v1586_v13 = vpop.f32.mrf.mxu2  ;;  %v2184_v16 = vpop.f32.mrf.mxu3 }
 0x190   : > { %v1839_v21 = vrot.slane %v1586_v13, 1  ;;  %v2438_v22 = vrot.slane %v2184_v16, 2  ;;  %v697_v23 = vpop.f32.mrf.mxu0  ;;  %v992_v24 = vpop.f32.mrf.mxu1 }
 0x191   : > { %v1249_v25 = vrot.slane %v992_v24, 1 }
 0x192   : > { %v1840_v11 = vsel %vm1187_vm2, %v1837_v43, %v1839_v21  ;;  %v2439_v31 = vsel %vm2384_vm3, %v2436_v0, %v2438_v22 }
 0x193   : > { %v1250_v52 = vsel %vm1187_vm2, %v1247_v3, %v1249_v25  ;;  %v2038_v58 = vadd.f32 %v1840_v11, %v1440_v8 }
 0x194   : > { %v1444_v36 = vadd.f32 %v1250_v52, %v695_v1 }
 0x195   : > { %v7065_v4 = vadd.f32 %v2439_v31, %v2038_v58 }
 0x197   : > { %v1588_v38 = vpop.f32.mrf.mxu2  ;;  %v2186_v39 = vpop.f32.mrf.mxu3 }
 0x198   : > { %v1841_v32 = vrot.slane %v1588_v38, 1  ;;  %v2440_v40 = vrot.slane %v2186_v39, 2  ;;  %v700_v48 = vpop.f32.mrf.mxu0  ;;  %v995_v49 = vpop.f32.mrf.mxu1 }
 0x199   : > { %v1251_v14 = vrot.slane %v995_v49, 1 }
 0x19a   : > { %v1842_v50 = vsel %vm1187_vm2, %v1839_v21, %v1841_v32  ;;  %v2441_v56 = vsel %vm2384_vm3, %v2438_v22, %v2440_v40 }
 0x19b   : > { %v1252_v57 = vsel %vm1187_vm2, %v1249_v25, %v1251_v14  ;;  %5914 = vmatmul.msk.bf16.gmra.mxu0 %vm486_vm1, %v6521_v17  ;;  %5961 = vmatmul.msk.bf16.gmra.mxu1 %vm486_vm1, %v6521_v17  ;;  %v2039_v8 = vadd.f32 %v1842_v50, %v1441_v63  ;;  %v6522_v25 = vld [vmem:[%s6769_s28 + $0xc8] sm:$0xff] }
 0x19c   : > { %v1445_v54 = vadd.f32 %v1252_v57, %v697_v23  ;;  %6008 = vmatmul.msk.bf16.gmra.mxu2 %vm486_vm1, %v6521_v17  ;;  %6055 = vmatmul.msk.bf16.gmra.mxu3 %vm486_vm1, %v6521_v17 }
 0x19d   : > { %v7075_v43 = vadd.f32 %v2441_v56, %v2039_v8 }
 0x19f   : > { %v1591_v0 = vpop.f32.mrf.mxu2  ;;  %v2189_v1 = vpop.f32.mrf.mxu3 }
 0x1a0   : > { %v1843_v59 = vrot.slane %v1591_v0, 1  ;;  %v2442_v3 = vrot.slane %v2189_v1, 2  ;;  %v702_v6 = vpop.f32.mrf.mxu0  ;;  %v997_v37 = vpop.f32.mrf.mxu1 }
 0x1a1   : > { %v1253_v7 = vrot.slane %v997_v37, 1 }
 0x1a2   : > { %v1844_v34 = vsel %vm1187_vm2, %v1841_v32, %v1843_v59  ;;  %v2443_v13 = vsel %vm2384_vm3, %v2440_v40, %v2442_v3 }
 0x1a3   : > { %v1254_v63 = vsel %vm1187_vm2, %v1251_v14, %v1253_v7  ;;  %v2040_v16 = vadd.f32 %v1844_v34, %v1442_v51 }
 0x1a4   : > { %v1446_v21 = vadd.f32 %v1254_v63, %v700_v48 }
 0x1a5   : > { %v7080_v22 = vadd.f32 %v2443_v13, %v2040_v16  ;;  %v6523_v13 = vld [vmem:[%s6769_s28 + $0xd0] sm:$0xff] }
 0x1a7   : > { %v1593_v23 = vpop.f32.mrf.mxu2  ;;  %v2191_v24 = vpop.f32.mrf.mxu3 }
 0x1a8   : > { %v1845_v11 = vrot.slane %v1593_v23, 1  ;;  %v2444_v31 = vrot.slane %v2191_v24, 2  ;;  %v705_v52 = vpop.f32.mrf.mxu0  ;;  %v1000_v58 = vpop.f32.mrf.mxu1 }
 0x1a9   : > { %v1255_v38 = vrot.slane %v1000_v58, 1 }
 0x1aa   : > { %v1846_v39 = vsel %vm1187_vm2, %v1843_v59, %v1845_v11  ;;  %v2445_v17 = vsel %vm2384_vm3, %v2442_v3, %v2444_v31 }
 0x1ab   : > { %v1256_v32 = vsel %vm1187_vm2, %v1253_v7, %v1255_v38  ;;  %5915 = vmatmul.msk.bf16.gmra.mxu0 %vm486_vm1, %v6522_v25  ;;  %5962 = vmatmul.msk.bf16.gmra.mxu1 %vm486_vm1, %v6522_v25  ;;  %v2041_v51 = vadd.f32 %v1846_v39, %v1443_v9 }
 0x1ac   : > { %v1447_v40 = vadd.f32 %v1256_v32, %v702_v6  ;;  %6009 = vmatmul.msk.bf16.gmra.mxu2 %vm486_vm1, %v6522_v25  ;;  %6056 = vmatmul.msk.bf16.gmra.mxu3 %vm486_vm1, %v6522_v25 }
 0x1ad   : > { %v7090_v48 = vadd.f32 %v2445_v17, %v2041_v51 }
 0x1af   : > { %v1596_v49 = vpop.f32.mrf.mxu2  ;;  %v2194_v14 = vpop.f32.mrf.mxu3 }
 0x1b0   : > { %v1847_v50 = vrot.slane %v1596_v49, 1  ;;  %v2446_v56 = vrot.slane %v2194_v14, 2  ;;  %v707_v57 = vpop.f32.mrf.mxu0  ;;  %v1002_v8 = vpop.f32.mrf.mxu1 }
 0x1b1   : > { %v1257_v0 = vrot.slane %v1002_v8, 1 }
 0x1b2   : > { %v1848_v1 = vsel %vm1187_vm2, %v1845_v11, %v1847_v50  ;;  %v2447_v59 = vsel %vm2384_vm3, %v2444_v31, %v2446_v56 }
 0x1b3   : > { %v1258_v9 = vsel %vm1187_vm2, %v1255_v38, %v1257_v0  ;;  %v2042_v3 = vadd.f32 %v1848_v1, %v1444_v36 }
 0x1b4   : > { %v1448_v6 = vadd.f32 %v1258_v9, %v705_v52 }
 0x1b5   : > { %v7095_v37 = vadd.f32 %v2447_v59, %v2042_v3  ;;  %v6524_v3 = vld [vmem:[%s6769_s28 + $0xd8] sm:$0xff] }
 0x1b7   : > { %v1598_v7 = vpop.f32.mrf.mxu2  ;;  %v2196_v34 = vpop.f32.mrf.mxu3 }
 0x1b8   : > { %v1849_v63 = vrot.slane %v1598_v7, 1  ;;  %v2448_v16 = vrot.slane %v2196_v34, 2  ;;  %v710_v23 = vpop.f32.mrf.mxu0  ;;  %v1005_v24 = vpop.f32.mrf.mxu1 }
 0x1b9   : > { %v1259_v25 = vrot.slane %v1005_v24, 1 }
 0x1ba   : > { %v1850_v58 = vsel %vm1187_vm2, %v1847_v50, %v1849_v63  ;;  %v2449_v11 = vsel %vm2384_vm3, %v2446_v56, %v2448_v16 }
 0x1bb   : > { %v1260_v31 = vsel %vm1187_vm2, %v1257_v0, %v1259_v25  ;;  %5916 = vmatmul.msk.bf16.gmra.mxu0 %vm486_vm1, %v6523_v13  ;;  %5963 = vmatmul.msk.bf16.gmra.mxu1 %vm486_vm1, %v6523_v13  ;;  %v2043_v36 = vadd.f32 %v1850_v58, %v1445_v54 }
 0x1bc   : > { %v1449_v52 = vadd.f32 %v1260_v31, %v707_v57  ;;  %6010 = vmatmul.msk.bf16.gmra.mxu2 %vm486_vm1, %v6523_v13  ;;  %6057 = vmatmul.msk.bf16.gmra.mxu3 %vm486_vm1, %v6523_v13 }
 0x1bd   : > { %v7105_v38 = vadd.f32 %v2449_v11, %v2043_v36 }
 0x1bf   : > { %v1601_v39 = vpop.f32.mrf.mxu2  ;;  %v2199_v17 = vpop.f32.mrf.mxu3 }
 0x1c0   : > { %v1851_v32 = vrot.slane %v1601_v39, 1  ;;  %v2450_v51 = vrot.slane %v2199_v17, 2  ;;  %v712_v49 = vpop.f32.mrf.mxu0  ;;  %v1007_v14 = vpop.f32.mrf.mxu1 }
 0x1c1   : > { %v1261_v50 = vrot.slane %v1007_v14, 1 }
 0x1c2   : > { %v1852_v56 = vsel %vm1187_vm2, %v1849_v63, %v1851_v32  ;;  %v2451_v8 = vsel %vm2384_vm3, %v2448_v16, %v2450_v51 }
 0x1c3   : > { %v1262_v54 = vsel %vm1187_vm2, %v1259_v25, %v1261_v50  ;;  %v2044_v57 = vadd.f32 %v1852_v56, %v1446_v21 }
 0x1c4   : > { %v1450_v0 = vadd.f32 %v1262_v54, %v710_v23 }
 0x1c5   : > { %v7110_v1 = vadd.f32 %v2451_v8, %v2044_v57 }
 0x1c7   : > { %v1603_v59 = vpop.f32.mrf.mxu2  ;;  %v2201_v9 = vpop.f32.mrf.mxu3 }
 0x1c8   : > { %v1853_v7 = vrot.slane %v1603_v59, 1  ;;  %v2452_v34 = vrot.slane %v2201_v9, 2  ;;  %v715_v13 = vpop.f32.mrf.mxu0  ;;  %v1010_v24 = vpop.f32.mrf.mxu1  ;;  %v6525_v9 = vld [vmem:[%s6769_s28 + $0xe0] sm:$0xff] }
 0x1c9   : > { %v1263_v58 = vrot.slane %v1010_v24, 1 }
 0x1ca   : > { %v1854_v11 = vsel %vm1187_vm2, %v1851_v32, %v1853_v7  ;;  %v2453_v63 = vsel %vm2384_vm3, %v2450_v51, %v2452_v34 }
 0x1cb   : > { %v1264_v16 = vsel %vm1187_vm2, %v1261_v50, %v1263_v58  ;;  %5917 = vmatmul.msk.bf16.gmra.mxu0 %vm486_vm1, %v6524_v3  ;;  %5964 = vmatmul.msk.bf16.gmra.mxu1 %vm486_vm1, %v6524_v3  ;;  %v2045_v21 = vadd.f32 %v1854_v11, %v1447_v40 }
 0x1cc   : > { %v1451_v23 = vadd.f32 %v1264_v16, %v712_v49  ;;  %6011 = vmatmul.msk.bf16.gmra.mxu2 %vm486_vm1, %v6524_v3  ;;  %6058 = vmatmul.msk.bf16.gmra.mxu3 %vm486_vm1, %v6524_v3 }
 0x1cd   : > { %v7120_v25 = vadd.f32 %v2453_v63, %v2045_v21 }
 0x1cf   : > { %v1606_v31 = vpop.f32.mrf.mxu2  ;;  %v2204_v36 = vpop.f32.mrf.mxu3 }
 0x1d0   : > { %v1855_v39 = vrot.slane %v1606_v31, 1  ;;  %v2454_v17 = vrot.slane %v2204_v36, 2  ;;  %v717_v32 = vpop.f32.mrf.mxu0  ;;  %v1012_v51 = vpop.f32.mrf.mxu1 }
 0x1d1   : > { %v1265_v14 = vrot.slane %v1012_v51, 1 }
 0x1d2   : > { %v1856_v50 = vsel %vm1187_vm2, %v1853_v7, %v1855_v39  ;;  %v2455_v56 = vsel %vm2384_vm3, %v2452_v34, %v2454_v17 }
 0x1d3   : > { %v1266_v40 = vsel %vm1187_vm2, %v1263_v58, %v1265_v14  ;;  %v2046_v49 = vadd.f32 %v1856_v50, %v1448_v6 }
 0x1d4   : > { %v1452_v8 = vadd.f32 %v1266_v40, %v715_v13 }
 0x1d5   : > { %v7125_v54 = vadd.f32 %v2455_v56, %v2046_v49 }
 0x1d7   : > { %v1608_v57 = vpop.f32.mrf.mxu2  ;;  %v2206_v59 = vpop.f32.mrf.mxu3 }
 0x1d8   : > { %v1857_v3 = vrot.slane %v1608_v57, 1  ;;  %v2456_v24 = vrot.slane %v2206_v59, 2  ;;  %v720_v11 = vpop.f32.mrf.mxu0  ;;  %v1015_v63 = vpop.f32.mrf.mxu1 }
 0x1d9   : > { %v1267_v16 = vrot.slane %v1015_v63, 1  ;;  %v6526_v63 = vld [vmem:[%s6769_s28 + $0xe8] sm:$0xff] }
 0x1da   : > { %v1858_v21 = vsel %vm1187_vm2, %v1855_v39, %v1857_v3  ;;  %v2457_v7 = vsel %vm2384_vm3, %v2454_v17, %v2456_v24 }
 0x1db   : > { %v1268_v34 = vsel %vm1187_vm2, %v1265_v14, %v1267_v16  ;;  %5918 = vmatmul.msk.bf16.gmra.mxu0 %vm486_vm1, %v6525_v9  ;;  %5965 = vmatmul.msk.bf16.gmra.mxu1 %vm486_vm1, %v6525_v9  ;;  %v2047_v6 = vadd.f32 %v1858_v21, %v1449_v52 }
 0x1dc   : > { %v1453_v13 = vadd.f32 %v1268_v34, %v717_v32  ;;  %6012 = vmatmul.msk.bf16.gmra.mxu2 %vm486_vm1, %v6525_v9  ;;  %6059 = vmatmul.msk.bf16.gmra.mxu3 %vm486_vm1, %v6525_v9 }
 0x1dd   : > { %v7135_v58 = vadd.f32 %v2457_v7, %v2047_v6 }
 0x1df   : > { %v1611_v31 = vpop.f32.mrf.mxu2  ;;  %v2209_v36 = vpop.f32.mrf.mxu3 }
 0x1e0   : > { %v1859_v39 = vrot.slane %v1611_v31, 1  ;;  %v2458_v51 = vrot.slane %v2209_v36, 2  ;;  %v722_v17 = vpop.f32.mrf.mxu0  ;;  %v1017_v50 = vpop.f32.mrf.mxu1 }
 0x1e1   : > { %v1269_v14 = vrot.slane %v1017_v50, 1 }
 0x1e2   : > { %v1860_v56 = vsel %vm1187_vm2, %v1857_v3, %v1859_v39  ;;  %v2459_v40 = vsel %vm2384_vm3, %v2456_v24, %v2458_v51 }
 0x1e3   : > { %v1270_v52 = vsel %vm1187_vm2, %v1267_v16, %v1269_v14  ;;  %v2048_v32 = vadd.f32 %v1860_v56, %v1450_v0 }
 0x1e4   : > { %v1454_v49 = vadd.f32 %v1270_v52, %v720_v11 }
 0x1e5   : > { %v7140_v57 = vadd.f32 %v2459_v40, %v2048_v32 }
 0x1e7   : > { %8608 = vst [vmem:[#allocation2_spill] sm:$0xff] %v7140_v57  ;;  %v1613_v59 = vpop.f32.mrf.mxu2  ;;  %v2211_v9 = vpop.f32.mrf.mxu3 }
 0x1e8   : > { %v1861_v21 = vrot.slane %v1613_v59, 1  ;;  %v2460_v7 = vrot.slane %v2211_v9, 2  ;;  %v725_v34 = vpop.f32.mrf.mxu0  ;;  %v1020_v6 = vpop.f32.mrf.mxu1 }
 0x1e9   : > { %v1271_v31 = vrot.slane %v1020_v6, 1 }
 0x1ea   : > { %v1862_v36 = vsel %vm1187_vm2, %v1859_v39, %v1861_v21  ;;  %v2461_v3 = vsel %vm2384_vm3, %v2458_v51, %v2460_v7 }
 0x1eb   : > { %v1272_v24 = vsel %vm1187_vm2, %v1269_v14, %v1271_v31  ;;  %5919 = vmatmul.msk.bf16.gmra.mxu0 %vm486_vm1, %v6526_v63  ;;  %5966 = vmatmul.msk.bf16.gmra.mxu1 %vm486_vm1, %v6526_v63  ;;  %v2049_v0 = vadd.f32 %v1862_v36, %v1451_v23 }
 0x1ec   : > { %v1455_v11 = vadd.f32 %v1272_v24, %v722_v17  ;;  %6013 = vmatmul.msk.bf16.gmra.mxu2 %vm486_vm1, %v6526_v63  ;;  %6060 = vmatmul.msk.bf16.gmra.mxu3 %vm486_vm1, %v6526_v63 }
 0x1ed   : > { %v7150_v16 = vadd.f32 %v2461_v3, %v2049_v0  ;;  %v6527_v3 = vld [vmem:[%s6769_s28 + $0xf0] sm:$0xff] }
 0x1ef   : > { %8609 = vst [vmem:[#allocation3_spill] sm:$0xff] %v7150_v16  ;;  %v1616_v50 = vpop.f32.mrf.mxu2  ;;  %v2214_v56 = vpop.f32.mrf.mxu3 }
 0x1f0   : > { %v1863_v39 = vrot.slane %v1616_v50, 1  ;;  %v2462_v40 = vrot.slane %v2214_v56, 2  ;;  %v727_v51 = vpop.f32.mrf.mxu0  ;;  %v1022_v52 = vpop.f32.mrf.mxu1 }
 0x1f1   : > { %v1273_v14 = vrot.slane %v1022_v52, 1 }
 0x1f2   : > { %v1864_v32 = vsel %vm1187_vm2, %v1861_v21, %v1863_v39  ;;  %v2463_v59 = vsel %vm2384_vm3, %v2460_v7, %v2462_v40 }
 0x1f3   : > { %v1274_v23 = vsel %vm1187_vm2, %v1271_v31, %v1273_v14  ;;  %v2050_v17 = vadd.f32 %v1864_v32, %v1452_v8 }
 0x1f4   : > { %v1456_v9 = vadd.f32 %v1274_v23, %v725_v34 }
 0x1f5   : > { %v7155_v6 = vadd.f32 %v2463_v59, %v2050_v17 }
 0x1f7   : > { %8610 = vst [vmem:[#allocation4_spill] sm:$0xff] %v7155_v6  ;;  %v1618_v63 = vpop.f32.mrf.mxu2  ;;  %v2216_v36 = vpop.f32.mrf.mxu3 }
 0x1f8   : > { %v1865_v24 = vrot.slane %v1618_v63, 1  ;;  %v2464_v0 = vrot.slane %v2216_v36, 2  ;;  %v730_v50 = vpop.f32.mrf.mxu0  ;;  %v1025_v56 = vpop.f32.mrf.mxu1 }
 0x1f9   : > { %v1275_v16 = vrot.slane %v1025_v56, 1 }
 0x1fa   : > { %v1866_v52 = vsel %vm1187_vm2, %v1863_v39, %v1865_v24  ;;  %v2465_v21 = vsel %vm2384_vm3, %v2462_v40, %v2464_v0 }
 0x1fb   : > { %v1276_v7 = vsel %vm1187_vm2, %v1273_v14, %v1275_v16  ;;  %5920 = vmatmul.msk.bf16.gmra.mxu0 %vm486_vm1, %v6527_v3  ;;  %5967 = vmatmul.msk.bf16.gmra.mxu1 %vm486_vm1, %v6527_v3  ;;  %v2051_v8 = vadd.f32 %v1866_v52, %v1453_v13 }
 0x1fc   : > { %v1457_v34 = vadd.f32 %v1276_v7, %v727_v51  ;;  %6014 = vmatmul.msk.bf16.gmra.mxu2 %vm486_vm1, %v6527_v3  ;;  %6061 = vmatmul.msk.bf16.gmra.mxu3 %vm486_vm1, %v6527_v3  ;;  %v6528_v7 = vld [vmem:[%s6769_s28 + $0xf8] sm:$0xff] }
 0x1fd   : > { %v7165_v31 = vadd.f32 %v2465_v21, %v2051_v8 }
 0x1ff   : > { %8611 = vst [vmem:[#allocation5_spill] sm:$0xff] %v7165_v31  ;;  %v1621_v32 = vpop.f32.mrf.mxu2  ;;  %v2219_v59 = vpop.f32.mrf.mxu3 }
 0x200   : > { %v1867_v39 = vrot.slane %v1621_v32, 1  ;;  %v2466_v23 = vrot.slane %v2219_v59, 2  ;;  %v732_v40 = vpop.f32.mrf.mxu0  ;;  %v1027_v17 = vpop.f32.mrf.mxu1 }
 0x201   : > { %v1277_v14 = vrot.slane %v1027_v17, 1 }
 0x202   : > { %v1868_v63 = vsel %vm1187_vm2, %v1865_v24, %v1867_v39  ;;  %v2467_v36 = vsel %vm2384_vm3, %v2464_v0, %v2466_v23 }
 0x203   : > { %v1278_v13 = vsel %vm1187_vm2, %v1275_v16, %v1277_v14  ;;  %v2052_v51 = vadd.f32 %v1868_v63, %v1454_v49 }
 0x204   : > { %v1458_v56 = vadd.f32 %v1278_v13, %v730_v50 }
 0x205   : > { %v7170_v52 = vadd.f32 %v2467_v36, %v2052_v51 }
 0x207   : > { %8612 = vst [vmem:[#allocation6_spill] sm:$0xff] %v7170_v52  ;;  %v1623_v3 = vpop.f32.mrf.mxu2  ;;  %v2221_v21 = vpop.f32.mrf.mxu3 }
 0x208   : > { %v1869_v8 = vrot.slane %v1623_v3, 1  ;;  %v2468_v31 = vrot.slane %v2221_v21, 2  ;;  %v735_v32 = vpop.f32.mrf.mxu0  ;;  %v1030_v59 = vpop.f32.mrf.mxu1 }
 0x209   : > { %v1279_v6 = vrot.slane %v1030_v59, 1 }
 0x20a   : > { %v1870_v17 = vsel %vm1187_vm2, %v1867_v39, %v1869_v8  ;;  %v2469_v24 = vsel %vm2384_vm3, %v2466_v23, %v2468_v31 }
 0x20b   : > { %v1280_v0 = vsel %vm1187_vm2, %v1277_v14, %v1279_v6  ;;  %5921 = vmatmul.msk.bf16.gmra.mxu0 %vm486_vm1, %v6528_v7  ;;  %5968 = vmatmul.msk.bf16.gmra.mxu1 %vm486_vm1, %v6528_v7  ;;  %v2053_v49 = vadd.f32 %v1870_v17, %v1455_v11 }
 0x20c   : > { %v1459_v16 = vadd.f32 %v1280_v0, %v732_v40  ;;  %6015 = vmatmul.msk.bf16.gmra.mxu2 %vm486_vm1, %v6528_v7  ;;  %6062 = vmatmul.msk.bf16.gmra.mxu3 %vm486_vm1, %v6528_v7  ;;  %v6529_v0 = vld [vmem:[%s6769_s28 + $0x100] sm:$0xff] }
 0x20d   : > { %v7180_v50 = vadd.f32 %v2469_v24, %v2053_v49 }
 0x20f   : > { %8613 = vst [vmem:[#allocation7_spill] sm:$0xff] %v7180_v50  ;;  %v1626_v63 = vpop.f32.mrf.mxu2  ;;  %v2224_v36 = vpop.f32.mrf.mxu3 }
 0x210   : > { %v1871_v39 = vrot.slane %v1626_v63, 1  ;;  %v2470_v13 = vrot.slane %v2224_v36, 2  ;;  %v737_v23 = vpop.f32.mrf.mxu0  ;;  %v1032_v51 = vpop.f32.mrf.mxu1 }
 0x211   : > { %v1281_v14 = vrot.slane %v1032_v51, 1 }
 0x212   : > { %v1872_v3 = vsel %vm1187_vm2, %v1869_v8, %v1871_v39  ;;  %v2471_v21 = vsel %vm2384_vm3, %v2468_v31, %v2470_v13 }
 0x213   : > { %v1282_v11 = vsel %vm1187_vm2, %v1279_v6, %v1281_v14  ;;  %v2054_v40 = vadd.f32 %v1872_v3, %v1456_v9 }
 0x214   : > { %v1460_v59 = vadd.f32 %v1282_v11, %v735_v32 }
 0x215   : > { %v7185_v17 = vadd.f32 %v2471_v21, %v2054_v40 }
 0x217   : > { %8614 = vst [vmem:[#allocation8_spill] sm:$0xff] %v7185_v17  ;;  %v1628_v7 = vpop.f32.mrf.mxu2  ;;  %v2226_v24 = vpop.f32.mrf.mxu3 }
 0x218   : > { %v1873_v49 = vrot.slane %v1628_v7, 1  ;;  %v2472_v50 = vrot.slane %v2226_v24, 2  ;;  %v740_v63 = vpop.f32.mrf.mxu0  ;;  %v1035_v36 = vpop.f32.mrf.mxu1 }
 0x219   : > { %v1283_v52 = vrot.slane %v1035_v36, 1 }
 0x21a   : > { %v1874_v51 = vsel %vm1187_vm2, %v1871_v39, %v1873_v49  ;;  %v2473_v8 = vsel %vm2384_vm3, %v2470_v13, %v2472_v50 }
 0x21b   : > { %v1284_v31 = vsel %vm1187_vm2, %v1281_v14, %v1283_v52  ;;  %5922 = vmatmul.msk.bf16.gmra.mxu0 %vm486_vm1, %v6529_v0  ;;  %5969 = vmatmul.msk.bf16.gmra.mxu1 %vm486_vm1, %v6529_v0  ;;  %v2055_v9 = vadd.f32 %v1874_v51, %v1457_v34 }
 0x21c   : > { %v1461_v6 = vadd.f32 %v1284_v31, %v737_v23  ;;  %6016 = vmatmul.msk.bf16.gmra.mxu2 %vm486_vm1, %v6529_v0  ;;  %6063 = vmatmul.msk.bf16.gmra.mxu3 %vm486_vm1, %v6529_v0  ;;  %v6530_v31 = vld [vmem:[%s6769_s28 + $0x108] sm:$0xff] }
 0x21d   : > { %v7195_v32 = vadd.f32 %v2473_v8, %v2055_v9 }
 0x21f   : > { %8615 = vst [vmem:[#allocation9_spill] sm:$0xff] %v7195_v32  ;;  %v1631_v3 = vpop.f32.mrf.mxu2  ;;  %v2229_v21 = vpop.f32.mrf.mxu3 }
 0x220   : > { %v1875_v39 = vrot.slane %v1631_v3, 1  ;;  %v2474_v11 = vrot.slane %v2229_v21, 2  ;;  %v742_v13 = vpop.f32.mrf.mxu0  ;;  %v1037_v40 = vpop.f32.mrf.mxu1 }
 0x221   : > { %v1285_v14 = vrot.slane %v1037_v40, 1 }
 0x222   : > { %v1876_v7 = vsel %vm1187_vm2, %v1873_v49, %v1875_v39  ;;  %v2475_v24 = vsel %vm2384_vm3, %v2472_v50, %v2474_v11 }
 0x223   : > { %v1286_v34 = vsel %vm1187_vm2, %v1283_v52, %v1285_v14  ;;  %v2056_v23 = vadd.f32 %v1876_v7, %v1458_v56 }
 0x224   : > { %v1462_v36 = vadd.f32 %v1286_v34, %v740_v63 }
 0x225   : > { %v7200_v51 = vadd.f32 %v2475_v24, %v2056_v23 }
 0x227   : > { %8616 = vst [vmem:[#allocation10_spill] sm:$0xff] %v7200_v51  ;;  %v1633_v0 = vpop.f32.mrf.mxu2  ;;  %v2231_v8 = vpop.f32.mrf.mxu3 }
 0x228   : > { %v1877_v9 = vrot.slane %v1633_v0, 1  ;;  %v2476_v32 = vrot.slane %v2231_v8, 2  ;;  %v745_v3 = vpop.f32.mrf.mxu0  ;;  %v1040_v21 = vpop.f32.mrf.mxu1 }
 0x229   : > { %v1287_v17 = vrot.slane %v1040_v21, 1 }
 0x22a   : > { %v1878_v40 = vsel %vm1187_vm2, %v1875_v39, %v1877_v9  ;;  %v2477_v49 = vsel %vm2384_vm3, %v2474_v11, %v2476_v32 }
 0x22b   : > { %v1288_v50 = vsel %vm1187_vm2, %v1285_v14, %v1287_v17  ;;  %5923 = vmatmul.msk.bf16.gmra.mxu0 %vm486_vm1, %v6530_v31  ;;  %5970 = vmatmul.msk.bf16.gmra.mxu1 %vm486_vm1, %v6530_v31  ;;  %v2057_v56 = vadd.f32 %v1878_v40, %v1459_v16 }
 0x22c   : > { %v1463_v52 = vadd.f32 %v1288_v50, %v742_v13  ;;  %6017 = vmatmul.msk.bf16.gmra.mxu2 %vm486_vm1, %v6530_v31  ;;  %6064 = vmatmul.msk.bf16.gmra.mxu3 %vm486_vm1, %v6530_v31  ;;  %v6531_v50 = vld [vmem:[%s6769_s28 + $0x110] sm:$0xff] }
 0x22d   : > { %v7210_v63 = vadd.f32 %v2477_v49, %v2057_v56 }
 0x22f   : > { %8617 = vst [vmem:[#allocation11_spill] sm:$0xff] %v7210_v63  ;;  %v1636_v7 = vpop.f32.mrf.mxu2  ;;  %v2234_v24 = vpop.f32.mrf.mxu3 }
 0x230   : > { %v1879_v39 = vrot.slane %v1636_v7, 1  ;;  %v2478_v34 = vrot.slane %v2234_v24, 2  ;;  %v747_v11 = vpop.f32.mrf.mxu0  ;;  %v1042_v23 = vpop.f32.mrf.mxu1 }
 0x231   : > { %v1289_v14 = vrot.slane %v1042_v23, 1 }
 0x232   : > { %v1880_v0 = vsel %vm1187_vm2, %v1877_v9, %v1879_v39  ;;  %v2479_v8 = vsel %vm2384_vm3, %v2476_v32, %v2478_v34 }
 0x233   : > { %v1290_v16 = vsel %vm1187_vm2, %v1287_v17, %v1289_v14  ;;  %v2058_v13 = vadd.f32 %v1880_v0, %v1460_v59 }
 0x234   : > { %v1464_v21 = vadd.f32 %v1290_v16, %v745_v3 }
 0x235   : > { %v7215_v40 = vadd.f32 %v2479_v8, %v2058_v13 }
 0x237   : > { %8618 = vst [vmem:[#allocation12_spill] sm:$0xff] %v7215_v40  ;;  %v1638_v31 = vpop.f32.mrf.mxu2  ;;  %v2236_v49 = vpop.f32.mrf.mxu3 }
 0x238   : > { %v1881_v56 = vrot.slane %v1638_v31, 1  ;;  %v2480_v63 = vrot.slane %v2236_v49, 2  ;;  %v750_v7 = vpop.f32.mrf.mxu0  ;;  %v1045_v24 = vpop.f32.mrf.mxu1 }
 0x239   : > { %v1291_v51 = vrot.slane %v1045_v24, 1 }
 0x23a   : > { %v1882_v23 = vsel %vm1187_vm2, %v1879_v39, %v1881_v56  ;;  %v2481_v9 = vsel %vm2384_vm3, %v2478_v34, %v2480_v63 }
 0x23b   : > { %v1292_v32 = vsel %vm1187_vm2, %v1289_v14, %v1291_v51  ;;  %5924 = vmatmul.msk.bf16.gmra.mxu0 %vm486_vm1, %v6531_v50  ;;  %5971 = vmatmul.msk.bf16.gmra.mxu1 %vm486_vm1, %v6531_v50  ;;  %v2059_v59 = vadd.f32 %v1882_v23, %v1461_v6 }
 0x23c   : > { %v1465_v17 = vadd.f32 %v1292_v32, %v747_v11  ;;  %6018 = vmatmul.msk.bf16.gmra.mxu2 %vm486_vm1, %v6531_v50  ;;  %6065 = vmatmul.msk.bf16.gmra.mxu3 %vm486_vm1, %v6531_v50  ;;  %v6532_v32 = vld [vmem:[%s6769_s28 + $0x118] sm:$0xff] }
 0x23d   : > { %v7225_v3 = vadd.f32 %v2481_v9, %v2059_v59 }
 0x23f   : > { %8619 = vst [vmem:[#allocation13_spill] sm:$0xff] %v7225_v3  ;;  %v1641_v0 = vpop.f32.mrf.mxu2  ;;  %v2239_v8 = vpop.f32.mrf.mxu3 }
 0x240   : > { %v1883_v39 = vrot.slane %v1641_v0, 1  ;;  %v2482_v16 = vrot.slane %v2239_v8, 2  ;;  %v752_v34 = vpop.f32.mrf.mxu0  ;;  %v1047_v13 = vpop.f32.mrf.mxu1 }
 0x241   : > { %v1293_v14 = vrot.slane %v1047_v13, 1 }
 0x242   : > { %v1884_v31 = vsel %vm1187_vm2, %v1881_v56, %v1883_v39  ;;  %v2483_v49 = vsel %vm2384_vm3, %v2480_v63, %v2482_v16 }
 0x243   : > { %v1294_v6 = vsel %vm1187_vm2, %v1291_v51, %v1293_v14  ;;  %v2060_v11 = vadd.f32 %v1884_v31, %v1462_v36 }
 0x244   : > { %v1466_v24 = vadd.f32 %v1294_v6, %v750_v7 }
 0x245   : > { %v7230_v23 = vadd.f32 %v2483_v49, %v2060_v11 }
 0x247   : > { %8620 = vst [vmem:[#allocation14_spill] sm:$0xff] %v7230_v23  ;;  %v1643_v50 = vpop.f32.mrf.mxu2  ;;  %v2241_v9 = vpop.f32.mrf.mxu3 }
 0x248   : > { %v1885_v59 = vrot.slane %v1643_v50, 1  ;;  %v2484_v3 = vrot.slane %v2241_v9, 2  ;;  %v755_v0 = vpop.f32.mrf.mxu0  ;;  %v1050_v8 = vpop.f32.mrf.mxu1 }
 0x249   : > { %v1295_v40 = vrot.slane %v1050_v8, 1 }
 0x24a   : > { %v1886_v13 = vsel %vm1187_vm2, %v1883_v39, %v1885_v59  ;;  %v2485_v56 = vsel %vm2384_vm3, %v2482_v16, %v2484_v3 }
 0x24b   : > { %v1296_v63 = vsel %vm1187_vm2, %v1293_v14, %v1295_v40  ;;  %5925 = vmatmul.msk.bf16.gmra.mxu0 %vm486_vm1, %v6532_v32  ;;  %5972 = vmatmul.msk.bf16.gmra.mxu1 %vm486_vm1, %v6532_v32  ;;  %v2061_v36 = vadd.f32 %v1886_v13, %v1463_v52 }
 0x24c   : > { %v1467_v51 = vadd.f32 %v1296_v63, %v752_v34  ;;  %6019 = vmatmul.msk.bf16.gmra.mxu2 %vm486_vm1, %v6532_v32  ;;  %6066 = vmatmul.msk.bf16.gmra.mxu3 %vm486_vm1, %v6532_v32  ;;  %v6533_v63 = vld [vmem:[%s6769_s28 + $0x120] sm:$0xff] }
 0x24d   : > { %v7240_v7 = vadd.f32 %v2485_v56, %v2061_v36 }
 0x24f   : > { %8621 = vst [vmem:[#allocation15_spill] sm:$0xff] %v7240_v7  ;;  %v1646_v31 = vpop.f32.mrf.mxu2  ;;  %v2244_v49 = vpop.f32.mrf.mxu3 }
 0x250   : > { %v1887_v39 = vrot.slane %v1646_v31, 1  ;;  %v2486_v6 = vrot.slane %v2244_v49, 2  ;;  %v757_v16 = vpop.f32.mrf.mxu0  ;;  %v1052_v11 = vpop.f32.mrf.mxu1 }
 0x251   : > { %v1297_v14 = vrot.slane %v1052_v11, 1 }
 0x252   : > { %v1888_v50 = vsel %vm1187_vm2, %v1885_v59, %v1887_v39  ;;  %v2487_v9 = vsel %vm2384_vm3, %v2484_v3, %v2486_v6 }
 0x253   : > { %v1298_v52 = vsel %vm1187_vm2, %v1295_v40, %v1297_v14  ;;  %v2062_v34 = vadd.f32 %v1888_v50, %v1464_v21 }
 0x254   : > { %v1468_v8 = vadd.f32 %v1298_v52, %v755_v0 }
 0x255   : > { %v7245_v13 = vadd.f32 %v2487_v9, %v2062_v34 }
 0x257   : > { %8622 = vst [vmem:[#allocation16_spill] sm:$0xff] %v7245_v13  ;;  %v1648_v32 = vpop.f32.mrf.mxu2  ;;  %v2246_v56 = vpop.f32.mrf.mxu3 }
 0x258   : > { %v1889_v36 = vrot.slane %v1648_v32, 1  ;;  %v2488_v7 = vrot.slane %v2246_v56, 2  ;;  %v760_v31 = vpop.f32.mrf.mxu0  ;;  %v1055_v49 = vpop.f32.mrf.mxu1 }
 0x259   : > { %v1299_v23 = vrot.slane %v1055_v49, 1 }
 0x25a   : > { %v1890_v11 = vsel %vm1187_vm2, %v1887_v39, %v1889_v36  ;;  %v2489_v59 = vsel %vm2384_vm3, %v2486_v6, %v2488_v7 }
 0x25b   : > { %v1300_v3 = vsel %vm1187_vm2, %v1297_v14, %v1299_v23  ;;  %5926 = vmatmul.msk.bf16.gmra.mxu0 %vm486_vm1, %v6533_v63  ;;  %5973 = vmatmul.msk.bf16.gmra.mxu1 %vm486_vm1, %v6533_v63  ;;  %v2063_v21 = vadd.f32 %v1890_v11, %v1465_v17 }
 0x25c   : > { %v1469_v40 = vadd.f32 %v1300_v3, %v757_v16  ;;  %6020 = vmatmul.msk.bf16.gmra.mxu2 %vm486_vm1, %v6533_v63  ;;  %6067 = vmatmul.msk.bf16.gmra.mxu3 %vm486_vm1, %v6533_v63  ;;  %v6534_v3 = vld [vmem:[%s6769_s28 + $0x128] sm:$0xff] }
 0x25d   : > { %v7255_v0 = vadd.f32 %v2489_v59, %v2063_v21 }
 0x25f   : > { %8623 = vst [vmem:[#allocation17_spill] sm:$0xff] %v7255_v0  ;;  %v1651_v50 = vpop.f32.mrf.mxu2  ;;  %v2249_v9 = vpop.f32.mrf.mxu3 }
 0x260   : > { %v1891_v39 = vrot.slane %v1651_v50, 1  ;;  %v2490_v52 = vrot.slane %v2249_v9, 2  ;;  %v762_v6 = vpop.f32.mrf.mxu0  ;;  %v1057_v34 = vpop.f32.mrf.mxu1 }
 0x261   : > { %v1301_v14 = vrot.slane %v1057_v34, 1 }
 0x262   : > { %v1892_v32 = vsel %vm1187_vm2, %v1889_v36, %v1891_v39  ;;  %v2491_v56 = vsel %vm2384_vm3, %v2488_v7, %v2490_v52 }
 0x263   : > { %v1302_v17 = vsel %vm1187_vm2, %v1299_v23, %v1301_v14  ;;  %v2064_v16 = vadd.f32 %v1892_v32, %v1466_v24 }
 0x264   : > { %v7260_v49 = vadd.f32 %v1302_v17, %v760_v31 }
 0x265   : > { %v7262_v63 = vadd.f32 %v2491_v56, %v2064_v16 }
 0x267   : > { %8624 = vst [vmem:[#allocation18_spill] sm:$0xff] %v7262_v63  ;;  %v1653_v11 = vpop.f32.mrf.mxu2  ;;  %v2251_v59 = vpop.f32.mrf.mxu3 }
 0x268   : > { %v1893_v21 = vrot.slane %v1653_v11, 1  ;;  %v2492_v50 = vrot.slane %v2251_v59, 2  ;;  %v765_v9 = vpop.f32.mrf.mxu0  ;;  %v1060_v0 = vpop.f32.mrf.mxu1 }
 0x269   : > { %v1303_v13 = vrot.slane %v1060_v0, 1 }
 0x26a   : > { %v1894_v34 = vsel %vm1187_vm2, %v1891_v39, %v1893_v21  ;;  %v2493_v36 = vsel %vm2384_vm3, %v2490_v52, %v2492_v50 }
 0x26b   : > { %v1304_v7 = vsel %vm1187_vm2, %v1301_v14, %v1303_v13  ;;  %5927 = vmatmul.msk.bf16.gmra.mxu0 %vm486_vm1, %v6534_v3  ;;  %5974 = vmatmul.msk.bf16.gmra.mxu1 %vm486_vm1, %v6534_v3  ;;  %v2065_v24 = vadd.f32 %v1894_v34, %v1467_v51 }
 0x26c   : > { %v7270_v23 = vadd.f32 %v1304_v7, %v762_v6  ;;  %6021 = vmatmul.msk.bf16.gmra.mxu2 %vm486_vm1, %v6534_v3  ;;  %6068 = vmatmul.msk.bf16.gmra.mxu3 %vm486_vm1, %v6534_v3  ;;  %v6535_v7 = vld [vmem:[%s6769_s28 + $0x130] sm:$0xff] }
 0x26d   : > { %v7274_v31 = vadd.f32 %v2493_v36, %v2065_v24 }
 0x26f   : > { %8625 = vst [vmem:[#allocation19_spill] sm:$0xff] %v7274_v31  ;;  %v1656_v0 = vpop.f32.mrf.mxu2  ;;  %v2254_v39 = vpop.f32.mrf.mxu3 }
 0x270   : > { %v1895_v32 = vrot.slane %v1656_v0, 1  ;;  %v2494_v52 = vrot.slane %v2254_v39, 2  ;;  %v767_v56 = vpop.f32.mrf.mxu0  ;;  %v1062_v14 = vpop.f32.mrf.mxu1 }
 0x271   : > { %v1305_v17 = vrot.slane %v1062_v14, 1 }
 0x272   : > { %v1896_v16 = vsel %vm1187_vm2, %v1893_v21, %v1895_v32  ;;  %v2495_v51 = vsel %vm2384_vm3, %v2492_v50, %v2494_v52 }
 0x273   : > { %v1306_v6 = vsel %vm1187_vm2, %v1303_v13, %v1305_v17  ;;  %v2066_v11 = vadd.f32 %v1896_v16, %v1468_v8 }
 0x274   : > { %v7279_v59 = vadd.f32 %v1306_v6, %v765_v9 }
 0x275   : > { %v7281_v3 = vadd.f32 %v2495_v51, %v2066_v11 }
 0x277   : > { %8626 = vst [vmem:[#allocation20_spill] sm:$0xff] %v7281_v3  ;;  %v1658_v34 = vpop.f32.mrf.mxu2  ;;  %v2256_v36 = vpop.f32.mrf.mxu3 }
 0x278   : > { %v1897_v24 = vrot.slane %v1658_v34, 1  ;;  %v2496_v0 = vrot.slane %v2256_v36, 2  ;;  %v770_v39 = vpop.f32.mrf.mxu0  ;;  %v1065_v31 = vpop.f32.mrf.mxu1 }
 0x279   : > { %v1307_v63 = vrot.slane %v1065_v31, 1 }
 0x27a   : > { %v1898_v14 = vsel %vm1187_vm2, %v1895_v32, %v1897_v24  ;;  %v2497_v21 = vsel %vm2384_vm3, %v2494_v52, %v2496_v0 }
 0x27b   : > { %v1308_v13 = vsel %vm1187_vm2, %v1305_v17, %v1307_v63  ;;  %5928 = vmatmul.msk.bf16.gmra.mxu0 %vm486_vm1, %v6535_v7  ;;  %5975 = vmatmul.msk.bf16.gmra.mxu1 %vm486_vm1, %v6535_v7  ;;  %v2067_v8 = vadd.f32 %v1898_v14, %v1469_v40  ;;  %v275_v17 = vld [vmem:[%s6769_s28 + $0x138] sm:$0x1] }
 0x27c   : > { %v7289_v50 = vadd.f32 %v1308_v13, %v767_v56  ;;  %6022 = vmatmul.msk.bf16.gmra.mxu2 %vm486_vm1, %v6535_v7  ;;  %6069 = vmatmul.msk.bf16.gmra.mxu3 %vm486_vm1, %v6535_v7  ;;  %v436_v36 = vunpack.c.l.b16 %v275_v17 }
 0x27d   : > { %v7293_v9 = vadd.f32 %v2497_v21, %v2067_v8 }
 0x27f   : > { %8627 = vst [vmem:[#allocation21_spill] sm:$0xff] %v7293_v9  ;;  %v1661_v31 = vpop.f32.mrf.mxu2  ;;  %v2259_v32 = vpop.f32.mrf.mxu3 }
 0x280   : > { %v1899_v16 = vrot.slane %v1661_v31, 1  ;;  %v2498_v51 = vrot.slane %v2259_v32, 2  ;;  %v772_v52 = vpop.f32.mrf.mxu0  ;;  %v1067_v6 = vpop.f32.mrf.mxu1  ;;  %v476_v31 = vpack.c.b16 %v436_v36, %v436_v36 }
 0x281   : > { %v1309_v11 = vrot.slane %v1067_v6, 1 }
 0x282   : > { %v1900_v34 = vsel %vm1187_vm2, %v1897_v24, %v1899_v16  ;;  %v2499_v40 = vsel %vm2384_vm3, %v2496_v0, %v2498_v51 }
 0x283   : > { %v1310_v56 = vsel %vm1187_vm2, %v1307_v63, %v1309_v11  ;;  %v2068_v14 = vadd.f32 %v1900_v34, %v7260_v49 }
 0x284   : > { %v1474_v7 = vadd.f32 %v1310_v56, %v770_v39 }
 0x285   : > { %v7300_v21 = vadd.f32 %v2499_v40, %v2068_v14 }
 0x287   : > { %8628 = vst [vmem:[#allocation22_spill] sm:$0xff] %v7300_v21  ;;  %v1663_v13 = vpop.f32.mrf.mxu2  ;;  %v2261_v8 = vpop.f32.mrf.mxu3 }
 0x288   : > { %v1901_v32 = vrot.slane %v1663_v13, 1  ;;  %v2500_v9 = vrot.slane %v2261_v8, 2  ;;  %v775_v3 = vpop.f32.mrf.mxu0  ;;  %v1070_v57 = vpop.f32.mrf.mxu1 }
 0x289   : > { %v1311_v6 = vrot.slane %v1070_v57, 1 }
 0x28a   : > { %v1902_v24 = vsel %vm1187_vm2, %v1899_v16, %v1901_v32  ;;  %v2501_v0 = vsel %vm2384_vm3, %v2498_v51, %v2500_v9 }
 0x28b   : > { %v1312_v63 = vsel %vm1187_vm2, %v1309_v11, %v1311_v6  ;;  %5929 = vmatmul.msk.bf16.gmra.mxu0 %vm486_vm1, %v476_v31  ;;  %5976 = vmatmul.msk.bf16.gmra.mxu1 %vm486_vm1, %v476_v31  ;;  %v2069_v49 = vadd.f32 %v1902_v24, %v7270_v23 }
 0x28c   : > { %v1475_v39 = vadd.f32 %v1312_v63, %v772_v52  ;;  %6023 = vmatmul.msk.bf16.gmra.mxu2 %vm486_vm1, %v476_v31  ;;  %6070 = vmatmul.msk.bf16.gmra.mxu3 %vm486_vm1, %v476_v31 }
 0x28d   : > { %v7310_v17 = vadd.f32 %v2501_v0, %v2069_v49  ;;  %v6540_v0 = vld [vmem:[%s6769_s28 + $0x13c] sm:$0xff] }
 0x28f   : > { %8629 = vst [vmem:[#allocation23_spill] sm:$0xff] %v7310_v17  ;;  %v1666_v57 = vpop.f32.mrf.mxu2  ;;  %v2264_v16 = vpop.f32.mrf.mxu3 }
 0x290   : > { %v1903_v34 = vrot.slane %v1666_v57, 1  ;;  %v2502_v51 = vrot.slane %v2264_v16, 2  ;;  %v777_v40 = vpop.f32.mrf.mxu0  ;;  %v1072_v11 = vpop.f32.mrf.mxu1 }
 0x291   : > { %v1313_v56 = vrot.slane %v1072_v11, 1 }
 0x292   : > { %v1904_v36 = vsel %vm1187_vm2, %v1901_v32, %v1903_v34  ;;  %v2503_v14 = vsel %vm2384_vm3, %v2500_v9, %v2502_v51 }
 0x293   : > { %v1314_v23 = vsel %vm1187_vm2, %v1311_v6, %v1313_v56  ;;  %v2070_v52 = vadd.f32 %v1904_v36, %v7279_v59 }
 0x294   : > { %v1476_v13 = vadd.f32 %v1314_v23, %v775_v3 }
 0x295   : > { %v7316_v8 = vadd.f32 %v2503_v14, %v2070_v52 }
 0x297   : > { %8630 = vst [vmem:[#allocation24_spill] sm:$0xff] %v7316_v8  ;;  %v1668_v31 = vpop.f32.mrf.mxu2  ;;  %v2266_v24 = vpop.f32.mrf.mxu3 }
 0x298   : > { %v1905_v63 = vrot.slane %v1668_v31, 1  ;;  %v2504_v49 = vrot.slane %v2266_v24, 2  ;;  %v780_v57 = vpop.f32.mrf.mxu0  ;;  %v1075_v16 = vpop.f32.mrf.mxu1 }
 0x299   : > { %v1315_v17 = vrot.slane %v1075_v16, 1 }
 0x29a   : > { %v1906_v11 = vsel %vm1187_vm2, %v1903_v34, %v1905_v63  ;;  %v2505_v32 = vsel %vm2384_vm3, %v2502_v51, %v2504_v49 }
 0x29b   : > { %v1316_v9 = vsel %vm1187_vm2, %v1313_v56, %v1315_v17  ;;  %6313 = vmatmul.msk.bf16.vlgmr.msrb.gmra.mxu0 %vm486_vm1, %v6540_v0  ;;  %6360 = vmatmul.msk.bf16.vlgmr.msrb.gmra.mxu1 %vm486_vm1, %v6540_v0  ;;  %v2071_v59 = vadd.f32 %v1906_v11, %v7289_v50 }
 0x29c   : > { %v1477_v3 = vadd.f32 %v1316_v9, %v777_v40  ;;  %6407 = vmatmul.msk.bf16.vlgmr.msrb.gmra.mxu2 %vm486_vm1, %v6540_v0  ;;  %6454 = vmatmul.msk.bf16.vlgmr.msrb.gmra.mxu3 %vm486_vm1, %v6540_v0  ;;  %v6541_v9 = vld [vmem:[%s6769_s28 + $0x144] sm:$0xff] }
 0x29d   : > { %v7327_v6 = vadd.f32 %v2505_v32, %v2071_v59 }
 0x29f   : > { %8631 = vst [vmem:[#allocation25_spill] sm:$0xff] %v7327_v6  ;;  %v1671_v36 = vpop.f32.mrf.mxu2  ;;  %v2269_v34 = vpop.f32.mrf.mxu3 }
 0x2a0   : > { %v1907_v14 = vrot.slane %v1671_v36, 1  ;;  %v2506_v51 = vrot.slane %v2269_v34, 2  ;;  %v782_v23 = vpop.f32.mrf.mxu0  ;;  %v1077_v56 = vpop.f32.mrf.mxu1 }
 0x2a1   : > { %v1317_v52 = vrot.slane %v1077_v56, 1 }
 0x2a2   : > { %v1908_v31 = vsel %vm1187_vm2, %v1905_v63, %v1907_v14  ;;  %v2507_v24 = vsel %vm2384_vm3, %v2504_v49, %v2506_v51 }
 0x2a3   : > { %v1318_v50 = vsel %vm1187_vm2, %v1315_v17, %v1317_v52  ;;  %v2072_v40 = vadd.f32 %v1908_v31, %v1474_v7 }
 0x2a4   : > { %v1478_v16 = vadd.f32 %v1318_v50, %v780_v57 }
 0x2a5   : > { %v7332_v11 = vadd.f32 %v2507_v24, %v2072_v40 }
 0x2a7   : > { %8632 = vst [vmem:[#allocation26_spill] sm:$0xff] %v7332_v11  ;;  %v1673_v0 = vpop.f32.mrf.mxu2  ;;  %v2271_v32 = vpop.f32.mrf.mxu3 }
 0x2a8   : > { %v1909_v59 = vrot.slane %v1673_v0, 1  ;;  %v2508_v6 = vrot.slane %v2271_v32, 2  ;;  %v785_v36 = vpop.f32.mrf.mxu0  ;;  %v1080_v34 = vpop.f32.mrf.mxu1 }
 0x2a9   : > { %v1319_v8 = vrot.slane %v1080_v34, 1 }
 0x2aa   : > { %v1910_v56 = vsel %vm1187_vm2, %v1907_v14, %v1909_v59  ;;  %v2509_v63 = vsel %vm2384_vm3, %v2506_v51, %v2508_v6 }
 0x2ab   : > { %v1320_v49 = vsel %vm1187_vm2, %v1317_v52, %v1319_v8  ;;  %6314 = vmatmul.msk.bf16.gmra.mxu0 %vm486_vm1, %v6541_v9  ;;  %6361 = vmatmul.msk.bf16.gmra.mxu1 %vm486_vm1, %v6541_v9  ;;  %v2073_v7 = vadd.f32 %v1910_v56, %v1475_v39 }
 0x2ac   : > { %v1479_v17 = vadd.f32 %v1320_v49, %v782_v23  ;;  %6408 = vmatmul.msk.bf16.gmra.mxu2 %vm486_vm1, %v6541_v9  ;;  %6455 = vmatmul.msk.bf16.gmra.mxu3 %vm486_vm1, %v6541_v9  ;;  %v6542_v49 = vld [vmem:[%s6769_s28 + $0x14c] sm:$0xff] }
 0x2ad   : > { %v7342_v57 = vadd.f32 %v2509_v63, %v2073_v7 }
 0x2af   : > { %8633 = vst [vmem:[#allocation27_spill] sm:$0xff] %v7342_v57  ;;  %v1676_v31 = vpop.f32.mrf.mxu2  ;;  %v2274_v24 = vpop.f32.mrf.mxu3 }
 0x2b0   : > { %v1911_v14 = vrot.slane %v1676_v31, 1  ;;  %v2510_v50 = vrot.slane %v2274_v24, 2  ;;  %v787_v51 = vpop.f32.mrf.mxu0  ;;  %v1082_v40 = vpop.f32.mrf.mxu1 }
 0x2b1   : > { %v1321_v52 = vrot.slane %v1082_v40, 1 }
 0x2b2   : > { %v1912_v0 = vsel %vm1187_vm2, %v1909_v59, %v1911_v14  ;;  %v2511_v32 = vsel %vm2384_vm3, %v2508_v6, %v2510_v50 }
 0x2b3   : > { %v1322_v39 = vsel %vm1187_vm2, %v1319_v8, %v1321_v52  ;;  %v2074_v23 = vadd.f32 %v1912_v0, %v1476_v13 }
 0x2b4   : > { %v1480_v34 = vadd.f32 %v1322_v39, %v785_v36 }
 0x2b5   : > { %v7347_v56 = vadd.f32 %v2511_v32, %v2074_v23 }
 0x2b7   : > { %8634 = vst [vmem:[#allocation28_spill] sm:$0xff] %v7347_v56  ;;  %v1678_v9 = vpop.f32.mrf.mxu2  ;;  %v2276_v63 = vpop.f32.mrf.mxu3 }
 0x2b8   : > { %v1913_v7 = vrot.slane %v1678_v9, 1  ;;  %v2512_v57 = vrot.slane %v2276_v63, 2  ;;  %v790_v31 = vpop.f32.mrf.mxu0  ;;  %v1085_v24 = vpop.f32.mrf.mxu1 }
 0x2b9   : > { %v1323_v11 = vrot.slane %v1085_v24, 1 }
 0x2ba   : > { %v1914_v40 = vsel %vm1187_vm2, %v1911_v14, %v1913_v7  ;;  %v2513_v59 = vsel %vm2384_vm3, %v2510_v50, %v2512_v57 }
 0x2bb   : > { %v1324_v6 = vsel %vm1187_vm2, %v1321_v52, %v1323_v11  ;;  %6315 = vmatmul.msk.bf16.gmra.mxu0 %vm486_vm1, %v6542_v49  ;;  %6362 = vmatmul.msk.bf16.gmra.mxu1 %vm486_vm1, %v6542_v49  ;;  %v2075_v13 = vadd.f32 %v1914_v40, %v1477_v3 }
 0x2bc   : > { %v1481_v8 = vadd.f32 %v1324_v6, %v787_v51  ;;  %6409 = vmatmul.msk.bf16.gmra.mxu2 %vm486_vm1, %v6542_v49  ;;  %6456 = vmatmul.msk.bf16.gmra.mxu3 %vm486_vm1, %v6542_v49  ;;  %v6543_v6 = vld [vmem:[%s6769_s28 + $0x154] sm:$0xff] }
 0x2bd   : > { %v7357_v36 = vadd.f32 %v2513_v59, %v2075_v13 }
 0x2bf   : > { %8635 = vst [vmem:[#allocation29_spill] sm:$0xff] %v7357_v36  ;;  %v1681_v0 = vpop.f32.mrf.mxu2  ;;  %v2279_v32 = vpop.f32.mrf.mxu3 }
 0x2c0   : > { %v1915_v14 = vrot.slane %v1681_v0, 1  ;;  %v2514_v39 = vrot.slane %v2279_v32, 2  ;;  %v792_v50 = vpop.f32.mrf.mxu0  ;;  %v1087_v23 = vpop.f32.mrf.mxu1 }
 0x2c1   : > { %v1325_v52 = vrot.slane %v1087_v23, 1 }
 0x2c2   : > { %v1916_v9 = vsel %vm1187_vm2, %v1913_v7, %v1915_v14  ;;  %v2515_v63 = vsel %vm2384_vm3, %v2512_v57, %v2514_v39 }
 0x2c3   : > { %v1326_v3 = vsel %vm1187_vm2, %v1323_v11, %v1325_v52  ;;  %v2076_v51 = vadd.f32 %v1916_v9, %v1478_v16 }
 0x2c4   : > { %v1482_v24 = vadd.f32 %v1326_v3, %v790_v31 }
 0x2c5   : > { %v7362_v40 = vadd.f32 %v2515_v63, %v2076_v51 }
 0x2c7   : > { %8636 = vst [vmem:[#allocation30_spill] sm:$0xff] %v7362_v40  ;;  %v1683_v49 = vpop.f32.mrf.mxu2  ;;  %v2281_v59 = vpop.f32.mrf.mxu3 }
 0x2c8   : > { %v1917_v13 = vrot.slane %v1683_v49, 1  ;;  %v2516_v36 = vrot.slane %v2281_v59, 2  ;;  %v795_v0 = vpop.f32.mrf.mxu0  ;;  %v1090_v32 = vpop.f32.mrf.mxu1 }
 0x2c9   : > { %v1327_v56 = vrot.slane %v1090_v32, 1 }
 0x2ca   : > { %v1918_v23 = vsel %vm1187_vm2, %v1915_v14, %v1917_v13  ;;  %v2517_v7 = vsel %vm2384_vm3, %v2514_v39, %v2516_v36 }
 0x2cb   : > { %v1328_v57 = vsel %vm1187_vm2, %v1325_v52, %v1327_v56  ;;  %6316 = vmatmul.msk.bf16.gmra.mxu0 %vm486_vm1, %v6543_v6  ;;  %6363 = vmatmul.msk.bf16.gmra.mxu1 %vm486_vm1, %v6543_v6  ;;  %v2077_v16 = vadd.f32 %v1918_v23, %v1479_v17 }
 0x2cc   : > { %v1483_v11 = vadd.f32 %v1328_v57, %v792_v50  ;;  %6410 = vmatmul.msk.bf16.gmra.mxu2 %vm486_vm1, %v6543_v6  ;;  %6457 = vmatmul.msk.bf16.gmra.mxu3 %vm486_vm1, %v6543_v6  ;;  %v6544_v57 = vld [vmem:[%s6769_s28 + $0x15c] sm:$0xff] }
 0x2cd   : > { %v7372_v31 = vadd.f32 %v2517_v7, %v2077_v16 }
 0x2cf   : > { %8637 = vst [vmem:[#allocation31_spill] sm:$0xff] %v7372_v31  ;;  %v1686_v9 = vpop.f32.mrf.mxu2  ;;  %v2284_v63 = vpop.f32.mrf.mxu3 }
 0x2d0   : > { %v1919_v14 = vrot.slane %v1686_v9, 1  ;;  %v2518_v3 = vrot.slane %v2284_v63, 2  ;;  %v797_v39 = vpop.f32.mrf.mxu0  ;;  %v1092_v51 = vpop.f32.mrf.mxu1 }
 0x2d1   : > { %v1329_v52 = vrot.slane %v1092_v51, 1 }
 0x2d2   : > { %v1920_v49 = vsel %vm1187_vm2, %v1917_v13, %v1919_v14  ;;  %v2519_v59 = vsel %vm2384_vm3, %v2516_v36, %v2518_v3 }
 0x2d3   : > { %v1330_v17 = vsel %vm1187_vm2, %v1327_v56, %v1329_v52  ;;  %v2078_v50 = vadd.f32 %v1920_v49, %v1480_v34 }
 0x2d4   : > { %v1484_v32 = vadd.f32 %v1330_v17, %v795_v0 }
 0x2d5   : > { %v7377_v23 = vadd.f32 %v2519_v59, %v2078_v50 }
 0x2d7   : > { %8638 = vst [vmem:[#allocation32_spill] sm:$0xff] %v7377_v23  ;;  %v1688_v6 = vpop.f32.mrf.mxu2  ;;  %v2286_v7 = vpop.f32.mrf.mxu3 }
 0x2d8   : > { %v1921_v16 = vrot.slane %v1688_v6, 1  ;;  %v2520_v31 = vrot.slane %v2286_v7, 2  ;;  %v800_v9 = vpop.f32.mrf.mxu0  ;;  %v1095_v63 = vpop.f32.mrf.mxu1 }
 0x2d9   : > { %v1331_v40 = vrot.slane %v1095_v63, 1 }
 0x2da   : > { %v1922_v51 = vsel %vm1187_vm2, %v1919_v14, %v1921_v16  ;;  %v2521_v13 = vsel %vm2384_vm3, %v2518_v3, %v2520_v31 }
 0x2db   : > { %v1332_v36 = vsel %vm1187_vm2, %v1329_v52, %v1331_v40  ;;  %6317 = vmatmul.msk.bf16.gmra.mxu0 %vm486_vm1, %v6544_v57  ;;  %6364 = vmatmul.msk.bf16.gmra.mxu1 %vm486_vm1, %v6544_v57  ;;  %v2079_v34 = vadd.f32 %v1922_v51, %v1481_v8 }
 0x2dc   : > { %v1485_v56 = vadd.f32 %v1332_v36, %v797_v39  ;;  %6411 = vmatmul.msk.bf16.gmra.mxu2 %vm486_vm1, %v6544_v57  ;;  %6458 = vmatmul.msk.bf16.gmra.mxu3 %vm486_vm1, %v6544_v57  ;;  %v6545_v36 = vld [vmem:[%s6769_s28 + $0x164] sm:$0xff] }
 0x2dd   : > { %v7387_v0 = vadd.f32 %v2521_v13, %v2079_v34 }
 0x2df   : > { %8639 = vst [vmem:[#allocation33_spill] sm:$0xff] %v7387_v0  ;;  %v1691_v49 = vpop.f32.mrf.mxu2  ;;  %v2289_v59 = vpop.f32.mrf.mxu3 }
 0x2e0   : > { %v1923_v14 = vrot.slane %v1691_v49, 1  ;;  %v2522_v17 = vrot.slane %v2289_v59, 2  ;;  %v802_v3 = vpop.f32.mrf.mxu0  ;;  %v1097_v50 = vpop.f32.mrf.mxu1 }
 0x2e1   : > { %v1333_v52 = vrot.slane %v1097_v50, 1 }
 0x2e2   : > { %v1924_v6 = vsel %vm1187_vm2, %v1921_v16, %v1923_v14  ;;  %v2523_v7 = vsel %vm2384_vm3, %v2520_v31, %v2522_v17 }
 0x2e3   : > { %v1334_v8 = vsel %vm1187_vm2, %v1331_v40, %v1333_v52  ;;  %v2080_v39 = vadd.f32 %v1924_v6, %v1482_v24 }
 0x2e4   : > { %v1486_v63 = vadd.f32 %v1334_v8, %v800_v9 }
 0x2e5   : > { %v7392_v51 = vadd.f32 %v2523_v7, %v2080_v39 }
 0x2e7   : > { %8640 = vst [vmem:[#allocation34_spill] sm:$0xff] %v7392_v51  ;;  %v1693_v57 = vpop.f32.mrf.mxu2  ;;  %v2291_v13 = vpop.f32.mrf.mxu3 }
 0x2e8   : > { %v1925_v34 = vrot.slane %v1693_v57, 1  ;;  %v2524_v0 = vrot.slane %v2291_v13, 2  ;;  %v805_v49 = vpop.f32.mrf.mxu0  ;;  %v1100_v59 = vpop.f32.mrf.mxu1 }
 0x2e9   : > { %v1335_v23 = vrot.slane %v1100_v59, 1 }
 0x2ea   : > { %v1926_v50 = vsel %vm1187_vm2, %v1923_v14, %v1925_v34  ;;  %v2525_v16 = vsel %vm2384_vm3, %v2522_v17, %v2524_v0 }
 0x2eb   : > { %v1336_v31 = vsel %vm1187_vm2, %v1333_v52, %v1335_v23  ;;  %6318 = vmatmul.msk.bf16.gmra.mxu0 %vm486_vm1, %v6545_v36  ;;  %6365 = vmatmul.msk.bf16.gmra.mxu1 %vm486_vm1, %v6545_v36  ;;  %v2081_v24 = vadd.f32 %v1926_v50, %v1483_v11 }
 0x2ec   : > { %v1487_v40 = vadd.f32 %v1336_v31, %v802_v3  ;;  %6412 = vmatmul.msk.bf16.gmra.mxu2 %vm486_vm1, %v6545_v36  ;;  %6459 = vmatmul.msk.bf16.gmra.mxu3 %vm486_vm1, %v6545_v36  ;;  %v6546_v31 = vld [vmem:[%s6769_s28 + $0x16c] sm:$0xff] }
 0x2ed   : > { %v7402_v9 = vadd.f32 %v2525_v16, %v2081_v24 }
 0x2ef   : > { %8641 = vst [vmem:[#allocation35_spill] sm:$0xff] %v7402_v9  ;;  %v1696_v6 = vpop.f32.mrf.mxu2  ;;  %v2294_v7 = vpop.f32.mrf.mxu3 }
 0x2f0   : > { %v1927_v14 = vrot.slane %v1696_v6, 1  ;;  %v2526_v8 = vrot.slane %v2294_v7, 2  ;;  %v807_v17 = vpop.f32.mrf.mxu0  ;;  %v1102_v39 = vpop.f32.mrf.mxu1 }
 0x2f1   : > { %v1337_v52 = vrot.slane %v1102_v39, 1 }
 0x2f2   : > { %v1928_v57 = vsel %vm1187_vm2, %v1925_v34, %v1927_v14  ;;  %v2527_v13 = vsel %vm2384_vm3, %v2524_v0, %v2526_v8 }
 0x2f3   : > { %v1338_v11 = vsel %vm1187_vm2, %v1335_v23, %v1337_v52  ;;  %v2082_v3 = vadd.f32 %v1928_v57, %v1484_v32 }
 0x2f4   : > { %v1488_v59 = vadd.f32 %v1338_v11, %v805_v49 }
 0x2f5   : > { %v7407_v50 = vadd.f32 %v2527_v13, %v2082_v3 }
 0x2f7   : > { %8642 = vst [vmem:[#allocation36_spill] sm:$0xff] %v7407_v50  ;;  %v1698_v36 = vpop.f32.mrf.mxu2  ;;  %v2296_v16 = vpop.f32.mrf.mxu3 }
 0x2f8   : > { %v1929_v24 = vrot.slane %v1698_v36, 1  ;;  %v2528_v9 = vrot.slane %v2296_v16, 2  ;;  %v809_v6 = vpop.f32.mrf.mxu0  ;;  %v1105_v7 = vpop.f32.mrf.mxu1  ;;  %v6547_v16 = vld [vmem:[%s6769_s28 + $0x174] sm:$0xff] }
 0x2fa   : > { %v1930_v17 = vsel %vm1187_vm2, %v1927_v14, %v1929_v24  ;;  %v2529_v39 = vsel %vm2384_vm3, %v2526_v8, %v2528_v9 }
 0x2fb   : > { %6319 = vmatmul.msk.bf16.gmra.mxu0 %vm486_vm1, %v6546_v31  ;;  %6366 = vmatmul.msk.bf16.gmra.mxu1 %vm486_vm1, %v6546_v31  ;;  %v2083_v23 = vadd.f32 %v1930_v17, %v1485_v56 }
 0x2fc   : > { %6413 = vmatmul.msk.bf16.gmra.mxu2 %vm486_vm1, %v6546_v31  ;;  %6460 = vmatmul.msk.bf16.gmra.mxu3 %vm486_vm1, %v6546_v31 }
 0x2fd   : > { %v7416_v32 = vadd.f32 %v2529_v39, %v2083_v23 }
 0x2ff   : > { %8643 = vst [vmem:[#allocation37_spill] sm:$0xff] %v7416_v32  ;;  %v1701_v0 = vpop.f32.mrf.mxu2  ;;  %v2299_v34 = vpop.f32.mrf.mxu3 }
 0x300   : > { %v1931_v49 = vrot.slane %v1701_v0, 1  ;;  %v2530_v52 = vrot.slane %v2299_v34, 2  ;;  %v810_v57 = vpop.f32.mrf.mxu0  ;;  %v1106_v14 = vpop.f32.mrf.mxu1 }
 0x302   : > { %v1932_v8 = vsel %vm1187_vm2, %v1929_v24, %v1931_v49  ;;  %v2531_v13 = vsel %vm2384_vm3, %v2528_v9, %v2530_v52 }
 0x303   : > { %v2084_v11 = vadd.f32 %v1932_v8, %v1486_v63 }
 0x305   : > { %v7420_v3 = vadd.f32 %v2531_v13, %v2084_v11 }
 0x307   : > { %8644 = vst [vmem:[#allocation38_spill] sm:$0xff] %v7420_v3  ;;  %v1703_v56 = vpop.f32.mrf.mxu2  ;;  %v2301_v36 = vpop.f32.mrf.mxu3 }
 0x308   : > { %v1933_v6 = vrot.slane %v1703_v56, 1  ;;  %v2532_v31 = vrot.slane %v2301_v36, 2  ;;  %v812_v7 = vpop.f32.mrf.mxu0  ;;  %v1108_v17 = vpop.f32.mrf.mxu1  ;;  %v6548_v36 = vld [vmem:[%s6769_s28 + $0x17c] sm:$0xff] }
 0x30a   : > { %v1934_v39 = vsel %vm1187_vm2, %v1931_v49, %v1933_v6  ;;  %v2533_v23 = vsel %vm2384_vm3, %v2530_v52, %v2532_v31 }
 0x30b   : > { %6320 = vmatmul.msk.bf16.gmra.mxu0 %vm486_vm1, %v6547_v16  ;;  %6367 = vmatmul.msk.bf16.gmra.mxu1 %vm486_vm1, %v6547_v16  ;;  %v2085_v24 = vadd.f32 %v1934_v39, %v1487_v40 }
 0x30c   : > { %6414 = vmatmul.msk.bf16.gmra.mxu2 %vm486_vm1, %v6547_v16  ;;  %6461 = vmatmul.msk.bf16.gmra.mxu3 %vm486_vm1, %v6547_v16 }
 0x30d   : > { %v7429_v63 = vadd.f32 %v2533_v23, %v2085_v24  ;;  %v6549_v24 = vld [vmem:[%s6769_s28 + $0x184] sm:$0xff] }
 0x30f   : > { %8645 = vst [vmem:[#allocation39_spill] sm:$0xff] %v7429_v63  ;;  %v1706_v9 = vpop.f32.mrf.mxu2  ;;  %v2304_v0 = vpop.f32.mrf.mxu3 }
 0x310   : > { %v1935_v34 = vrot.slane %v1706_v9, 1  ;;  %v2534_v57 = vrot.slane %v2304_v0, 2  ;;  %v813_v14 = vpop.f32.mrf.mxu0  ;;  %v1109_v49 = vpop.f32.mrf.mxu1 }
 0x312   : > { %v1936_v52 = vsel %vm1187_vm2, %v1933_v6, %v1935_v34  ;;  %v2535_v8 = vsel %vm2384_vm3, %v2532_v31, %v2534_v57 }
 0x313   : > { %v2086_v13 = vadd.f32 %v1936_v52, %v1488_v59 }
 0x315   : > { %v7433_v11 = vadd.f32 %v2535_v8, %v2086_v13  ;;  %v6550_v13 = vld [vmem:[%s6769_s28 + $0x18c] sm:$0xff] }
 0x317   : > { %8646 = vst [vmem:[#allocation40_spill] sm:$0xff] %v7433_v11  ;;  %v1708_v40 = vpop.f32.mrf.mxu2  ;;  %v2306_v56 = vpop.f32.mrf.mxu3 }
 0x318   : > { %v3112_v16 = vpop.f32.mrf.mxu0  ;;  %v3407_v7 = vpop.f32.mrf.mxu1 }
 0x31b   : > { %6321 = vmatmul.msk.bf16.gmra.mxu0 %vm486_vm1, %v6548_v36  ;;  %6368 = vmatmul.msk.bf16.gmra.mxu1 %vm486_vm1, %v6548_v36 }
 0x31c   : > { %6415 = vmatmul.msk.bf16.gmra.mxu2 %vm486_vm1, %v6548_v36  ;;  %6462 = vmatmul.msk.bf16.gmra.mxu3 %vm486_vm1, %v6548_v36  ;;  %v3679_v36 = vrot.slane %v3407_v7, 1 }
 0x31f   : > { %v4005_v6 = vpop.f32.mrf.mxu2  ;;  %v4603_v17 = vpop.f32.mrf.mxu3 }
 0x320   : > { %v3114_v31 = vpop.f32.mrf.mxu0  ;;  %v3409_v59 = vpop.f32.mrf.mxu1 }
 0x321   : > { %v3680_v6 = vrot.slane %v3409_v59, 1 }
 0x323   : > { %v3681_v17 = vsel %vm1187_vm2, %v3679_v36, %v3680_v6 }
 0x327   : > { %v4006_v39 = vpop.f32.mrf.mxu2  ;;  %v4604_v23 = vpop.f32.mrf.mxu3 }
 0x328   : > { %v7441_v9 = vpop.f32.mrf.mxu0  ;;  %v7443_v0 = vpop.f32.mrf.mxu1  ;;  %v3307_v39 = vadd.f32 %v3112_v16, %v6839_v28  ;;  %v7476_v28 = vld [vmem:[%s8606_s2] ss:$0 sm:$0xff] }
 0x32a   : > { %v3905_v63 = vadd.f32 %v3681_v17, %v3307_v39  ;;  %v3308_v17 = vadd.f32 %v3114_v31, %v6849_v42 }
 0x32b   : > { %6322 = vmatmul.msk.bf16.gmra.mxu0 %vm486_vm1, %v6549_v24  ;;  %6369 = vmatmul.msk.bf16.gmra.mxu1 %vm486_vm1, %v6549_v24 }
 0x32c   : > { %6416 = vmatmul.msk.bf16.gmra.mxu2 %vm486_vm1, %v6549_v24  ;;  %6463 = vmatmul.msk.bf16.gmra.mxu3 %vm486_vm1, %v6549_v24 }
 0x32f   : > { %v4008_v34 = vpop.f32.mrf.mxu2  ;;  %v4606_v57 = vpop.f32.mrf.mxu3 }
 0x330   : > { %v7449_v14 = vpop.f32.mrf.mxu0  ;;  %v7451_v49 = vpop.f32.mrf.mxu1 }
 0x337   : > { %v4009_v52 = vpop.f32.mrf.mxu2  ;;  %v4607_v8 = vpop.f32.mrf.mxu3 }
 0x338   : > { %v7454_v40 = vpop.f32.mrf.mxu0  ;;  %v7456_v56 = vpop.f32.mrf.mxu1  ;;  %v4277_v34 = vrot.slane %v4009_v52, 1  ;;  %v4875_v3 = vrot.slane %v4607_v8, 2 }
 0x33b   : > { %6323 = vmatmul.msk.bf16.gmra.mxu0 %vm486_vm1, %v6550_v13  ;;  %6370 = vmatmul.msk.bf16.gmra.mxu1 %vm486_vm1, %v6550_v13 }
 0x33c   : > { %6417 = vmatmul.msk.bf16.gmra.mxu2 %vm486_vm1, %v6550_v13  ;;  %6464 = vmatmul.msk.bf16.gmra.mxu3 %vm486_vm1, %v6550_v13  ;;  %v3682_v13 = vrot.slane %v7443_v0, 1 }
 0x33f   : > { %v4012_v23 = vpop.f32.mrf.mxu2  ;;  %v4610_v24 = vpop.f32.mrf.mxu3 }
 0x340   : > { %v4278_v57 = vrot.slane %v4012_v23, 1  ;;  %v4876_v7 = vrot.slane %v4610_v24, 2  ;;  %v7467_v59 = vpop.f32.mrf.mxu0  ;;  %v7469_v11 = vpop.f32.mrf.mxu1  ;;  %v3683_v23 = vsel %vm1187_vm2, %v3680_v6, %v3682_v13  ;;  %v6551_v24 = vld [vmem:[%s6769_s28 + $0x194] sm:$0xff] }
 0x341   : > { %v3906_v51 = vadd.f32 %v3683_v23, %v3308_v17  ;;  %v3309_v23 = vadd.f32 %v7441_v9, %v6854_v55 }
 0x342   : > { %v4279_v36 = vsel %vm1187_vm2, %v4277_v34, %v4278_v57  ;;  %v4877_v16 = vsel %vm2384_vm3, %v4875_v3, %v4876_v7 }
 0x343   : > { %v4503_v32 = vadd.f32 %v4279_v36, %v3905_v63 }
 0x345   : > { %v5101_v52 = vadd.f32 %v4877_v16, %v4503_v32  ;;  %v3684_v32 = vrot.slane %v7451_v49, 1 }
 0x347   : > { %v5180_v39 = vadd.f32 %v7476_v28, %v5101_v52  ;;  %v4014_v0 = vpop.f32.mrf.mxu2  ;;  %v4612_v8 = vpop.f32.mrf.mxu3 }
 0x348   : > { %v4280_v63 = vrot.slane %v4014_v0, 1  ;;  %v4878_v34 = vrot.slane %v4612_v8, 2  ;;  %v7483_v36 = vpop.f32.mrf.mxu0  ;;  %v7485_v50 = vpop.f32.mrf.mxu1 }
 0x349   : > { %vm5255_vm4 = vcmp.ge.f32.partialorder %v5180_v39, 0.0  ;;  %v5330_v3 = vmul.f32 0.2, %v5180_v39 }
 0x34a   : > { %v4281_v6 = vsel %vm1187_vm2, %v4278_v57, %v4280_v63  ;;  %v4879_v52 = vsel %vm2384_vm3, %v4876_v7, %v4878_v34  ;;  %v3685_v57 = vsel %vm1187_vm2, %v3682_v13, %v3684_v32 }
 0x34b   : > { %v5405_v42 = vsel %vm5255_vm4, %v5180_v39, %v5330_v3  ;;  %v4504_v31 = vadd.f32 %v4281_v6, %v3906_v51  ;;  %6324 = vmatmul.msk.bf16.gmra.mxu0 %vm486_vm1, %v6551_v24  ;;  %6371 = vmatmul.msk.bf16.gmra.mxu1 %vm486_vm1, %v6551_v24  ;;  %v3686_v6 = vrot.slane %v7456_v56, 1  ;;  %v6552_v56 = vld [vmem:[%s6769_s28 + $0x19c] sm:$0xff] }
 0x34c   : > { %v5480_v16 = vpack.c.bf16 %v5405_v42, %v5405_v42  ;;  %6418 = vmatmul.msk.bf16.gmra.mxu2 %vm486_vm1, %v6551_v24  ;;  %6465 = vmatmul.msk.bf16.gmra.mxu3 %vm486_vm1, %v6551_v24  ;;  %v3907_v24 = vadd.f32 %v3685_v57, %v3309_v23  ;;  %v3310_v57 = vadd.f32 %v7449_v14, %v6865_v5 }
 0x34d   : > { %v5102_v49 = vadd.f32 %v4879_v52, %v4504_v31 }
 0x34e   : > { %5556 = vst.msk [vmem:[%s7492_s23] sm:$0xf] %vm5555_vm5, %v5480_v16 }
 0x34f   : > { %v5181_v51 = vadd.f32 %v7476_v28, %v5102_v49  ;;  %v4017_v17 = vpop.f32.mrf.mxu2  ;;  %v4615_v39 = vpop.f32.mrf.mxu3  ;;  %v3687_v49 = vsel %vm1187_vm2, %v3684_v32, %v3686_v6 }
 0x350   : > { %v4282_v0 = vrot.slane %v4017_v17, 1  ;;  %v4880_v8 = vrot.slane %v4615_v39, 2  ;;  %v7505_v7 = vpop.f32.mrf.mxu0  ;;  %v7507_v3 = vpop.f32.mrf.mxu1 }
 0x351   : > { %vm5256_vm6 = vcmp.ge.f32.partialorder %v5181_v51, 0.0  ;;  %v5331_v13 = vmul.f32 0.2, %v5181_v51 }
 0x352   : > { %v4283_v42 = vsel %vm1187_vm2, %v4280_v63, %v4282_v0  ;;  %v4881_v16 = vsel %vm2384_vm3, %v4878_v34, %v4880_v8  ;;  %v3908_v34 = vadd.f32 %v3687_v49, %v3310_v57 }
 0x353   : > { %v5406_v55 = vsel %vm5256_vm6, %v5181_v51, %v5331_v13  ;;  %v4505_v9 = vadd.f32 %v4283_v42, %v3907_v24  ;;  %v3688_v13 = vrot.slane %v7469_v11, 1  ;;  %v3311_v11 = vadd.f32 %v7454_v40, %v6870_v18 }
 0x354   : > { %v5481_v31 = vpack.c.bf16 %v5406_v55, %v5406_v55 }
 0x355   : > { %v5103_v52 = vadd.f32 %v4881_v16, %v4505_v9  ;;  %v3689_v16 = vsel %vm1187_vm2, %v3686_v6, %v3688_v13 }
 0x356   : > { %5557 = vst.msk [vmem:[%s7492_s23 + $0x4] sm:$0xf] %vm5555_vm5, %v5481_v31 }
 0x357   : > { %v5182_v23 = vadd.f32 %v7476_v28, %v5103_v52  ;;  %v4019_v17 = vpop.f32.mrf.mxu2  ;;  %v4617_v39 = vpop.f32.mrf.mxu3 }
 0x358   : > { %v4284_v21 = vrot.slane %v4019_v17, 1  ;;  %v4882_v63 = vrot.slane %v4617_v39, 2  ;;  %v7519_v51 = vpop.f32.mrf.mxu0  ;;  %v7521_v24 = vpop.f32.mrf.mxu1  ;;  %v3909_v39 = vadd.f32 %v3689_v16, %v3311_v11 }
 0x359   : > { %vm5257_vm7 = vcmp.ge.f32.partialorder %v5182_v23, 0.0  ;;  %v5332_v32 = vmul.f32 0.2, %v5182_v23 }
 0x35a   : > { %v4285_v42 = vsel %vm1187_vm2, %v4282_v0, %v4284_v21  ;;  %v4883_v9 = vsel %vm2384_vm3, %v4880_v8, %v4882_v63 }
 0x35b   : > { %v5407_v5 = vsel %vm5257_vm7, %v5182_v23, %v5332_v32  ;;  %v4506_v14 = vadd.f32 %v4285_v42, %v3908_v34  ;;  %6325 = vmatmul.msk.bf16.gmra.mxu0 %vm486_vm1, %v6552_v56  ;;  %6372 = vmatmul.msk.bf16.gmra.mxu1 %vm486_vm1, %v6552_v56 }
 0x35c   : > { %v5482_v55 = vpack.c.bf16 %v5407_v5, %v5407_v5  ;;  %6419 = vmatmul.msk.bf16.gmra.mxu2 %vm486_vm1, %v6552_v56  ;;  %6466 = vmatmul.msk.bf16.gmra.mxu3 %vm486_vm1, %v6552_v56  ;;  %v3690_v56 = vrot.slane %v7485_v50, 1  ;;  %v6553_v50 = vld [vmem:[%s6769_s28 + $0x1a4] sm:$0xff] }
 0x35d   : > { %v5104_v31 = vadd.f32 %v4883_v9, %v4506_v14 }
 0x35e   : > { %5558 = vst.msk [vmem:[%s7492_s23 + $0x8] sm:$0xf] %vm5555_vm5, %v5482_v55  ;;  %v3691_v14 = vsel %vm1187_vm2, %v3688_v13, %v3690_v56  ;;  %v3312_v55 = vadd.f32 %v7467_v59, %v6880_v33 }
 0x35f   : > { %v5183_v0 = vadd.f32 %v7476_v28, %v5104_v31  ;;  %v4022_v52 = vpop.f32.mrf.mxu2  ;;  %v4620_v49 = vpop.f32.mrf.mxu3 }
 0x360   : > { %v4286_v57 = vrot.slane %v4022_v52, 1  ;;  %v4884_v23 = vrot.slane %v4620_v49, 2  ;;  %v7536_v8 = vpop.f32.mrf.mxu0  ;;  %v7538_v17 = vpop.f32.mrf.mxu1  ;;  %v3692_v49 = vrot.slane %v7507_v3, 1  ;;  %v3313_v3 = vadd.f32 %v7483_v36, %v6885_v47 }
 0x361   : > { %vm5258_vm8 = vcmp.ge.f32.partialorder %v5183_v0, 0.0  ;;  %v5333_v6 = vmul.f32 0.2, %v5183_v0 }
 0x362   : > { %v4287_v34 = vsel %vm1187_vm2, %v4284_v21, %v4286_v57  ;;  %v4885_v42 = vsel %vm2384_vm3, %v4882_v63, %v4884_v23  ;;  %v3910_v63 = vadd.f32 %v3691_v14, %v3312_v55 }
 0x363   : > { %v5408_v18 = vsel %vm5258_vm8, %v5183_v0, %v5333_v6  ;;  %v4507_v40 = vadd.f32 %v4287_v34, %v3909_v39 }
 0x364   : > { %v5483_v32 = vpack.c.bf16 %v5408_v18, %v5408_v18 }
 0x365   : > { %v5105_v5 = vadd.f32 %v4885_v42, %v4507_v40  ;;  %v3693_v40 = vsel %vm1187_vm2, %v3690_v56, %v3692_v49 }
 0x366   : > { %5559 = vst.msk [vmem:[%s7492_s23 + $0xc] sm:$0xf] %vm5555_vm5, %v5483_v32 }
 0x367   : > { %v5184_v9 = vadd.f32 %v7476_v28, %v5105_v5  ;;  %v4024_v31 = vpop.f32.mrf.mxu2  ;;  %v4622_v16 = vpop.f32.mrf.mxu3 }
 0x368   : > { %v4288_v11 = vrot.slane %v4024_v31, 1  ;;  %v4886_v21 = vrot.slane %v4622_v16, 2  ;;  %v7550_v0 = vpop.f32.mrf.mxu0  ;;  %v7552_v52 = vpop.f32.mrf.mxu1  ;;  %v3694_v31 = vrot.slane %v7521_v24, 1  ;;  %v6554_v24 = vld [vmem:[%s6769_s28 + $0x1ac] sm:$0xff] }
 0x369   : > { %vm5259_vm9 = vcmp.ge.f32.partialorder %v5184_v9, 0.0  ;;  %v5334_v13 = vmul.f32 0.2, %v5184_v9 }
 0x36a   : > { %v4289_v39 = vsel %vm1187_vm2, %v4286_v57, %v4288_v11  ;;  %v4887_v34 = vsel %vm2384_vm3, %v4884_v23, %v4886_v21 }
 0x36b   : > { %v5409_v33 = vsel %vm5259_vm9, %v5184_v9, %v5334_v13  ;;  %v4508_v59 = vadd.f32 %v4289_v39, %v3910_v63  ;;  %6326 = vmatmul.msk.bf16.gmra.mxu0 %vm486_vm1, %v6553_v50  ;;  %6373 = vmatmul.msk.bf16.gmra.mxu1 %vm486_vm1, %v6553_v50  ;;  %v3911_v9 = vadd.f32 %v3693_v40, %v3313_v3 }
 0x36c   : > { %v5484_v6 = vpack.c.bf16 %v5409_v33, %v5409_v33  ;;  %6420 = vmatmul.msk.bf16.gmra.mxu2 %vm486_vm1, %v6553_v50  ;;  %6467 = vmatmul.msk.bf16.gmra.mxu3 %vm486_vm1, %v6553_v50  ;;  %v3695_v39 = vsel %vm1187_vm2, %v3692_v49, %v3694_v31  ;;  %v3314_v33 = vadd.f32 %v7505_v7, %v6895_v62 }
 0x36d   : > { %v5106_v18 = vadd.f32 %v4887_v34, %v4508_v59 }
 0x36e   : > { %5560 = vst.msk [vmem:[%s7492_s23 + $0x10] sm:$0xf] %vm5555_vm5, %v5484_v6 }
 0x36f   : > { %v5185_v57 = vadd.f32 %v7476_v28, %v5106_v18  ;;  %v4027_v32 = vpop.f32.mrf.mxu2  ;;  %v4625_v42 = vpop.f32.mrf.mxu3 }
 0x370   : > { %v4290_v5 = vrot.slane %v4027_v32, 1  ;;  %v4888_v14 = vrot.slane %v4625_v42, 2  ;;  %v7567_v23 = vpop.f32.mrf.mxu0  ;;  %v7569_v55 = vpop.f32.mrf.mxu1 }
 0x371   : > { %vm5260_vm10 = vcmp.ge.f32.partialorder %v5185_v57, 0.0  ;;  %v5335_v56 = vmul.f32 0.2, %v5185_v57 }
 0x372   : > { %v4291_v16 = vsel %vm1187_vm2, %v4288_v11, %v4290_v5  ;;  %v4889_v63 = vsel %vm2384_vm3, %v4886_v21, %v4888_v14  ;;  %v3912_v21 = vadd.f32 %v3695_v39, %v3314_v33  ;;  %v3698_v33 = vrot.slane %v7552_v52, 1  ;;  %v6555_v52 = vld [vmem:[%s6769_s28 + $0x1b4] sm:$0xff] }
 0x373   : > { %v5410_v47 = vsel %vm5260_vm10, %v5185_v57, %v5335_v56  ;;  %v4509_v36 = vadd.f32 %v4291_v16, %v3911_v9  ;;  %v3696_v57 = vrot.slane %v7538_v17, 1  ;;  %v3315_v17 = vadd.f32 %v7519_v51, %v6900_v12 }
 0x374   : > { %v5485_v50 = vpack.c.bf16 %v5410_v47, %v5410_v47 }
 0x375   : > { %v5107_v13 = vadd.f32 %v4889_v63, %v4509_v36  ;;  %v3697_v16 = vsel %vm1187_vm2, %v3694_v31, %v3696_v57 }
 0x376   : > { %5561 = vst.msk [vmem:[%s7492_s23 + $0x14] sm:$0xf] %vm5555_vm5, %v5485_v50  ;;  %v3913_v39 = vadd.f32 %v3697_v16, %v3315_v17  ;;  %v3700_v16 = vrot.slane %v7569_v55, 1  ;;  %v3317_v55 = vadd.f32 %v7550_v0, %v6915_v44 }
 0x377   : > { %v5186_v59 = vadd.f32 %v7476_v28, %v5107_v13  ;;  %v4029_v6 = vpop.f32.mrf.mxu2  ;;  %v4627_v34 = vpop.f32.mrf.mxu3 }
 0x378   : > { %v4292_v18 = vrot.slane %v4029_v6, 1  ;;  %v4890_v11 = vrot.slane %v4627_v34, 2  ;;  %v7581_v40 = vpop.f32.mrf.mxu0  ;;  %v7583_v3 = vpop.f32.mrf.mxu1 }
 0x379   : > { %vm5261_vm11 = vcmp.ge.f32.partialorder %v5186_v59, 0.0  ;;  %v5336_v49 = vmul.f32 0.2, %v5186_v59 }
 0x37a   : > { %v4293_v32 = vsel %vm1187_vm2, %v4290_v5, %v4292_v18  ;;  %v4891_v9 = vsel %vm2384_vm3, %v4888_v14, %v4890_v11 }
 0x37b   : > { %v5411_v62 = vsel %vm5261_vm11, %v5186_v59, %v5336_v49  ;;  %v4510_v7 = vadd.f32 %v4293_v32, %v3912_v21  ;;  %6327 = vmatmul.msk.bf16.gmra.mxu0 %vm486_vm1, %v6554_v24  ;;  %6374 = vmatmul.msk.bf16.gmra.mxu1 %vm486_vm1, %v6554_v24  ;;  %v3699_v21 = vsel %vm1187_vm2, %v3696_v57, %v3698_v33 }
 0x37c   : > { %v5486_v42 = vpack.c.bf16 %v5411_v62, %v5411_v62  ;;  %6421 = vmatmul.msk.bf16.gmra.mxu2 %vm486_vm1, %v6554_v24  ;;  %6468 = vmatmul.msk.bf16.gmra.mxu3 %vm486_vm1, %v6554_v24  ;;  %v3316_v49 = vadd.f32 %v7536_v8, %v6910_v29 }
 0x37d   : > { %v5108_v56 = vadd.f32 %v4891_v9, %v4510_v7 }
 0x37e   : > { %5562 = vst.msk [vmem:[%s7492_s23 + $0x18] sm:$0xf] %vm5555_vm5, %v5486_v42 }
 0x37f   : > { %v5187_v5 = vadd.f32 %v7476_v28, %v5108_v56  ;;  %v4032_v47 = vpop.f32.mrf.mxu2  ;;  %v4630_v36 = vpop.f32.mrf.mxu3 }
 0x380   : > { %v4294_v50 = vrot.slane %v4032_v47, 1  ;;  %v4892_v63 = vrot.slane %v4630_v36, 2  ;;  %v7598_v14 = vpop.f32.mrf.mxu0  ;;  %v7600_v13 = vpop.f32.mrf.mxu1 }
 0x381   : > { %vm5262_vm12 = vcmp.ge.f32.partialorder %v5187_v5, 0.0  ;;  %v5337_v31 = vmul.f32 0.2, %v5187_v5 }
 0x382   : > { %v4295_v59 = vsel %vm1187_vm2, %v4292_v18, %v4294_v50  ;;  %v4893_v34 = vsel %vm2384_vm3, %v4890_v11, %v4892_v63  ;;  %v3914_v11 = vadd.f32 %v3699_v21, %v3316_v49 }
 0x383   : > { %v5412_v12 = vsel %vm5262_vm12, %v5187_v5, %v5337_v31  ;;  %v4511_v51 = vadd.f32 %v4295_v59, %v3913_v39  ;;  %v3701_v39 = vsel %vm1187_vm2, %v3698_v33, %v3700_v16 }
 0x384   : > { %v5487_v6 = vpack.c.bf16 %v5412_v12, %v5412_v12 }
 0x385   : > { %v5109_v24 = vadd.f32 %v4893_v34, %v4511_v51  ;;  %v3915_v34 = vadd.f32 %v3701_v39, %v3317_v55 }
 0x386   : > { %5563 = vst.msk [vmem:[%s7492_s23 + $0x1c] sm:$0xf] %vm5555_vm5, %v5487_v6 }
 0x387   : > { %v5188_v32 = vadd.f32 %v7476_v28, %v5109_v24  ;;  %v4034_v62 = vpop.f32.mrf.mxu2  ;;  %v4632_v7 = vpop.f32.mrf.mxu3  ;;  %v3702_v24 = vrot.slane %v7583_v3, 1  ;;  %v6556_v3 = vld [vmem:[%s6769_s28 + $0x1bc] sm:$0xff] }
 0x388   : > { %v4296_v42 = vrot.slane %v4034_v62, 1  ;;  %v4894_v18 = vrot.slane %v4632_v7, 2  ;;  %v7612_v9 = vpop.f32.mrf.mxu0  ;;  %v7614_v56 = vpop.f32.mrf.mxu1 }
 0x389   : > { %vm5263_vm13 = vcmp.ge.f32.partialorder %v5188_v32, 0.0  ;;  %v5338_v57 = vmul.f32 0.2, %v5188_v32  ;;  %v3703_v7 = vsel %vm1187_vm2, %v3700_v16, %v3702_v24 }
 0x38a   : > { %v4297_v17 = vsel %vm1187_vm2, %v4294_v50, %v4296_v42  ;;  %v4895_v47 = vsel %vm2384_vm3, %v4892_v63, %v4894_v18 }
 0x38b   : > { %v5413_v29 = vsel %vm5263_vm13, %v5188_v32, %v5338_v57  ;;  %v4512_v8 = vadd.f32 %v4297_v17, %v3914_v11  ;;  %6328 = vmatmul.msk.bf16.gmra.mxu0 %vm486_vm1, %v6555_v52  ;;  %6375 = vmatmul.msk.bf16.gmra.mxu1 %vm486_vm1, %v6555_v52 }
 0x38c   : > { %v5488_v5 = vpack.c.bf16 %v5413_v29, %v5413_v29  ;;  %6422 = vmatmul.msk.bf16.gmra.mxu2 %vm486_vm1, %v6555_v52  ;;  %6469 = vmatmul.msk.bf16.gmra.mxu3 %vm486_vm1, %v6555_v52  ;;  %v3318_v52 = vadd.f32 %v7567_v23, %v6925_v60 }
 0x38d   : > { %v5110_v36 = vadd.f32 %v4895_v47, %v4512_v8  ;;  %v3704_v47 = vrot.slane %v7600_v13, 1  ;;  %v3319_v13 = vadd.f32 %v7581_v40, %v6932_v10 }
 0x38e   : > { %5564 = vst.msk [vmem:[%s7492_s23 + $0x20] sm:$0xf] %vm5555_vm5, %v5488_v5 }
 0x38f   : > { %v5189_v50 = vadd.f32 %v7476_v28, %v5110_v36  ;;  %v4037_v31 = vpop.f32.mrf.mxu2  ;;  %v4635_v59 = vpop.f32.mrf.mxu3 }
 0x390   : > { %v4298_v12 = vrot.slane %v4037_v31, 1  ;;  %v4896_v51 = vrot.slane %v4635_v59, 2  ;;  %v7629_v63 = vpop.f32.mrf.mxu0  ;;  %v7631_v6 = vpop.f32.mrf.mxu1  ;;  %v3705_v31 = vsel %vm1187_vm2, %v3702_v24, %v3704_v47 }
 0x391   : > { %vm5264_vm14 = vcmp.ge.f32.partialorder %v5189_v50, 0.0  ;;  %v5339_v33 = vmul.f32 0.2, %v5189_v50 }
 0x392   : > { %v4299_v21 = vsel %vm1187_vm2, %v4296_v42, %v4298_v12  ;;  %v4897_v32 = vsel %vm2384_vm3, %v4894_v18, %v4896_v51  ;;  %v3916_v18 = vadd.f32 %v3703_v7, %v3318_v52 }
 0x393   : > { %v5414_v44 = vsel %vm5264_vm14, %v5189_v50, %v5339_v33  ;;  %v4513_v0 = vadd.f32 %v4299_v21, %v3915_v34 }
 0x394   : > { %v5489_v49 = vpack.c.bf16 %v5414_v44, %v5414_v44 }
 0x395   : > { %v5111_v62 = vadd.f32 %v4897_v32, %v4513_v0  ;;  %v3917_v0 = vadd.f32 %v3705_v31, %v3319_v13 }
 0x396   : > { %5565 = vst.msk [vmem:[%s7492_s23 + $0x24] sm:$0xf] %vm5555_vm5, %v5489_v49  ;;  %v3706_v49 = vrot.slane %v7614_v56, 1  ;;  %v6557_v56 = vld [vmem:[%s6769_s28 + $0x1c4] sm:$0xff] }
 0x397   : > { %v5190_v11 = vadd.f32 %v7476_v28, %v5111_v62  ;;  %v4039_v57 = vpop.f32.mrf.mxu2  ;;  %v4637_v17 = vpop.f32.mrf.mxu3 }
 0x398   : > { %v4300_v29 = vrot.slane %v4039_v57, 1  ;;  %v4898_v42 = vrot.slane %v4637_v17, 2  ;;  %v7643_v8 = vpop.f32.mrf.mxu0  ;;  %v7645_v5 = vpop.f32.mrf.mxu1  ;;  %v3320_v57 = vadd.f32 %v7598_v14, %v6944_v30 }
 0x399   : > { %vm5265_vm15 = vcmp.ge.f32.partialorder %v5190_v11, 0.0  ;;  %v5340_v16 = vmul.f32 0.2, %v5190_v11 }
 0x39a   : > { %v4301_v36 = vsel %vm1187_vm2, %v4298_v12, %v4300_v29  ;;  %v4899_v55 = vsel %vm2384_vm3, %v4896_v51, %v4898_v42 }
 0x39b   : > { %v5415_v60 = vsel %vm5265_vm15, %v5190_v11, %v5340_v16  ;;  %v4514_v23 = vadd.f32 %v4301_v36, %v3916_v18  ;;  %6329 = vmatmul.msk.bf16.gmra.mxu0 %vm486_vm1, %v6556_v3  ;;  %6376 = vmatmul.msk.bf16.gmra.mxu1 %vm486_vm1, %v6556_v3  ;;  %v3707_v11 = vsel %vm1187_vm2, %v3704_v47, %v3706_v49 }
 0x39c   : > { %v5490_v39 = vpack.c.bf16 %v5415_v60, %v5415_v60  ;;  %6423 = vmatmul.msk.bf16.gmra.mxu2 %vm486_vm1, %v6556_v3  ;;  %6470 = vmatmul.msk.bf16.gmra.mxu3 %vm486_vm1, %v6556_v3 }
 0x39d   : > { %v5112_v50 = vadd.f32 %v4899_v55, %v4514_v23  ;;  %v3708_v23 = vrot.slane %v7631_v6, 1  ;;  %v3321_v6 = vadd.f32 %v7612_v9, %v6951_v45 }
 0x39e   : > { %5566 = vst.msk [vmem:[%s7492_s23 + $0x28] sm:$0xf] %vm5555_vm5, %v5490_v39 }
 0x39f   : > { %v5191_v59 = vadd.f32 %v7476_v28, %v5112_v50  ;;  %v4042_v12 = vpop.f32.mrf.mxu2  ;;  %v4640_v34 = vpop.f32.mrf.mxu3  ;;  %v3709_v13 = vsel %vm1187_vm2, %v3706_v49, %v3708_v23 }
 0x3a0   : > { %v4302_v33 = vrot.slane %v4042_v12, 1  ;;  %v4900_v21 = vrot.slane %v4640_v34, 2  ;;  %v7660_v51 = vpop.f32.mrf.mxu0  ;;  %v7662_v44 = vpop.f32.mrf.mxu1 }
 0x3a1   : > { %vm5266_vm0 = vcmp.ge.f32.partialorder %v5191_v59, 0.0  ;;  %v5341_v24 = vmul.f32 0.2, %v5191_v59 }
 0x3a2   : > { %v4303_v32 = vsel %vm1187_vm2, %v4300_v29, %v4302_v33  ;;  %v4901_v7 = vsel %vm2384_vm3, %v4898_v42, %v4900_v21  ;;  %v3918_v42 = vadd.f32 %v3707_v11, %v3320_v57  ;;  %v3322_v57 = vadd.f32 %v7629_v63, %v6969_v2 }
 0x3a3   : > { %v5416_v10 = vsel %vm5266_vm0, %v5191_v59, %v5341_v24  ;;  %v4515_v40 = vadd.f32 %v4303_v32, %v3917_v0  ;;  %v3919_v32 = vadd.f32 %v3709_v13, %v3321_v6 }
 0x3a4   : > { %v5491_v62 = vpack.c.bf16 %v5416_v10, %v5416_v10  ;;  %v3710_v10 = vrot.slane %v7645_v5, 1  ;;  %v6558_v5 = vld [vmem:[%s6769_s28 + $0x1cc] sm:$0xff] }
 0x3a5   : > { %v5113_v52 = vadd.f32 %v4901_v7, %v4515_v40 }
 0x3a6   : > { %5567 = vst.msk [vmem:[%s7492_s23 + $0x2c] sm:$0xf] %vm5555_vm5, %v5491_v62  ;;  %v3711_v11 = vsel %vm1187_vm2, %v3708_v23, %v3710_v10 }
 0x3a7   : > { %v5192_v17 = vadd.f32 %v7476_v28, %v5113_v52  ;;  %v4044_v3 = vpop.f32.mrf.mxu2  ;;  %v4642_v18 = vpop.f32.mrf.mxu3 }
 0x3a8   : > { %v4304_v16 = vrot.slane %v4044_v3, 1  ;;  %v4902_v29 = vrot.slane %v4642_v18, 2  ;;  %v7674_v36 = vpop.f32.mrf.mxu0  ;;  %v7676_v60 = vpop.f32.mrf.mxu1 }
 0x3a9   : > { %vm5267_vm4 = vcmp.ge.f32.partialorder %v5192_v17, 0.0  ;;  %v5342_v47 = vmul.f32 0.2, %v5192_v17 }
 0x3aa   : > { %v4305_v39 = vsel %vm1187_vm2, %v4302_v33, %v4304_v16  ;;  %v4903_v50 = vsel %vm2384_vm3, %v4900_v21, %v4902_v29 }
 0x3ab   : > { %v5417_v30 = vsel %vm5267_vm4, %v5192_v17, %v5342_v47  ;;  %v4516_v14 = vadd.f32 %v4305_v39, %v3918_v42  ;;  %6330 = vmatmul.msk.bf16.gmra.mxu0 %vm486_vm1, %v6557_v56  ;;  %6377 = vmatmul.msk.bf16.gmra.mxu1 %vm486_vm1, %v6557_v56  ;;  %v3712_v39 = vrot.slane %v7662_v44, 1  ;;  %v3323_v44 = vadd.f32 %v7643_v8, %v6977_v20 }
 0x3ac   : > { %v5492_v55 = vpack.c.bf16 %v5417_v30, %v5417_v30  ;;  %6424 = vmatmul.msk.bf16.gmra.mxu2 %vm486_vm1, %v6557_v56  ;;  %6471 = vmatmul.msk.bf16.gmra.mxu3 %vm486_vm1, %v6557_v56 }
 0x3ad   : > { %v5114_v31 = vadd.f32 %v4903_v50, %v4516_v14 }
 0x3ae   : > { %5568 = vst.msk [vmem:[%s7492_s23 + $0x30] sm:$0xf] %vm5555_vm5, %v5492_v55 }
 0x3af   : > { %v5193_v59 = vadd.f32 %v7476_v28, %v5114_v31  ;;  %v4047_v12 = vpop.f32.mrf.mxu2  ;;  %v4645_v34 = vpop.f32.mrf.mxu3  ;;  %v3713_v31 = vsel %vm1187_vm2, %v3710_v10, %v3712_v39  ;;  %v3714_v10 = vrot.slane %v7676_v60, 1  ;;  %v6559_v60 = vld [vmem:[%s6769_s28 + $0x1d4] sm:$0xff] }
 0x3b0   : > { %v4306_v33 = vrot.slane %v4047_v12, 1  ;;  %v4904_v0 = vrot.slane %v4645_v34, 2  ;;  %v7691_v21 = vpop.f32.mrf.mxu0  ;;  %v7693_v24 = vpop.f32.mrf.mxu1 }
 0x3b1   : > { %vm5268_vm6 = vcmp.ge.f32.partialorder %v5193_v59, 0.0  ;;  %v5343_v49 = vmul.f32 0.2, %v5193_v59 }
 0x3b2   : > { %v4307_v40 = vsel %vm1187_vm2, %v4304_v16, %v4306_v33  ;;  %v4905_v7 = vsel %vm2384_vm3, %v4902_v29, %v4904_v0  ;;  %v3920_v29 = vadd.f32 %v3711_v11, %v3322_v57 }
 0x3b3   : > { %v5418_v45 = vsel %vm5268_vm6, %v5193_v59, %v5343_v49  ;;  %v4517_v9 = vadd.f32 %v4307_v40, %v3919_v32  ;;  %v3921_v32 = vadd.f32 %v3713_v31, %v3323_v44 }
 0x3b4   : > { %v5493_v62 = vpack.c.bf16 %v5418_v45, %v5418_v45 }
 0x3b5   : > { %v5115_v52 = vadd.f32 %v4905_v7, %v4517_v9  ;;  %v3715_v7 = vsel %vm1187_vm2, %v3712_v39, %v3714_v10 }
 0x3b6   : > { %5569 = vst.msk [vmem:[%s7492_s23 + $0x34] sm:$0xf] %vm5555_vm5, %v5493_v62 }
 0x3b7   : > { %v5194_v17 = vadd.f32 %v7476_v28, %v5115_v52  ;;  %v4049_v3 = vpop.f32.mrf.mxu2  ;;  %v4647_v18 = vpop.f32.mrf.mxu3  ;;  %v3324_v52 = vadd.f32 %v7660_v51, %v6996_v26 }
 0x3b8   : > { %v4308_v56 = vrot.slane %v4049_v3, 1  ;;  %v4906_v16 = vrot.slane %v4647_v18, 2  ;;  %v7705_v42 = vpop.f32.mrf.mxu0  ;;  %v7707_v47 = vpop.f32.mrf.mxu1 }
 0x3b9   : > { %vm5269_vm7 = vcmp.ge.f32.partialorder %v5194_v17, 0.0  ;;  %v5344_v23 = vmul.f32 0.2, %v5194_v17 }
 0x3ba   : > { %v4309_v30 = vsel %vm1187_vm2, %v4306_v33, %v4308_v56  ;;  %v4907_v55 = vsel %vm2384_vm3, %v4904_v0, %v4906_v16 }
 0x3bb   : > { %v5419_v2 = vsel %vm5269_vm7, %v5194_v17, %v5344_v23  ;;  %v4518_v63 = vadd.f32 %v4309_v30, %v3920_v29  ;;  %6331 = vmatmul.msk.bf16.gmra.mxu0 %vm486_vm1, %v6558_v5  ;;  %6378 = vmatmul.msk.bf16.gmra.mxu1 %vm486_vm1, %v6558_v5  ;;  %v3716_v23 = vrot.slane %v7693_v24, 1  ;;  %v3325_v24 = vadd.f32 %v7674_v36, %v7002_v46 }
 0x3bc   : > { %v5494_v14 = vpack.c.bf16 %v5419_v2, %v5419_v2  ;;  %6425 = vmatmul.msk.bf16.gmra.mxu2 %vm486_vm1, %v6558_v5  ;;  %6472 = vmatmul.msk.bf16.gmra.mxu3 %vm486_vm1, %v6558_v5 }
 0x3bd   : > { %v5116_v50 = vadd.f32 %v4907_v55, %v4518_v63 }
 0x3be   : > { %5570 = vst.msk [vmem:[%s7492_s23 + $0x38] sm:$0xf] %vm5555_vm5, %v5494_v14  ;;  %v3717_v14 = vsel %vm1187_vm2, %v3714_v10, %v3716_v23 }
 0x3bf   : > { %v5195_v13 = vadd.f32 %v7476_v28, %v5116_v50  ;;  %v4052_v6 = vpop.f32.mrf.mxu2  ;;  %v4650_v59 = vpop.f32.mrf.mxu3 }
 0x3c0   : > { %v4310_v12 = vrot.slane %v4052_v6, 1  ;;  %v4908_v34 = vrot.slane %v4650_v59, 2  ;;  %v7722_v33 = vpop.f32.mrf.mxu0  ;;  %v7724_v0 = vpop.f32.mrf.mxu1 }
 0x3c1   : > { %vm5270_vm8 = vcmp.ge.f32.partialorder %v5195_v13, 0.0  ;;  %v5345_v49 = vmul.f32 0.2, %v5195_v13 }
 0x3c2   : > { %v4311_v40 = vsel %vm1187_vm2, %v4308_v56, %v4310_v12  ;;  %v4909_v9 = vsel %vm2384_vm3, %v4906_v16, %v4908_v34  ;;  %v3922_v16 = vadd.f32 %v3715_v7, %v3324_v52 }
 0x3c3   : > { %v5420_v20 = vsel %vm5270_vm8, %v5195_v13, %v5345_v49  ;;  %v4519_v8 = vadd.f32 %v4311_v40, %v3921_v32  ;;  %v3718_v32 = vrot.slane %v7707_v47, 1  ;;  %v6560_v47 = vld [vmem:[%s6769_s28 + $0x1dc] sm:$0xff] }
 0x3c4   : > { %v5495_v45 = vpack.c.bf16 %v5420_v20, %v5420_v20 }
 0x3c5   : > { %v5117_v62 = vadd.f32 %v4909_v9, %v4519_v8  ;;  %v3719_v8 = vsel %vm1187_vm2, %v3716_v23, %v3718_v32 }
 0x3c6   : > { %5571 = vst.msk [vmem:[%s7492_s23 + $0x3c] sm:$0xf] %vm5555_vm5, %v5495_v45  ;;  %v3326_v45 = vadd.f32 %v7691_v21, %v7013_v15 }
 0x3c7   : > { %v5196_v11 = vadd.f32 %v7476_v28, %v5117_v62  ;;  %v4054_v57 = vpop.f32.mrf.mxu2  ;;  %v4652_v17 = vpop.f32.mrf.mxu3 }
 0x3c8   : > { %v4312_v3 = vrot.slane %v4054_v57, 1  ;;  %v4910_v18 = vrot.slane %v4652_v17, 2  ;;  %v7736_v5 = vpop.f32.mrf.mxu0  ;;  %v7738_v56 = vpop.f32.mrf.mxu1 }
 0x3c9   : > { %vm5271_vm9 = vcmp.ge.f32.partialorder %v5196_v11, 0.0  ;;  %v5346_v29 = vmul.f32 0.2, %v5196_v11 }
 0x3ca   : > { %v4313_v39 = vsel %vm1187_vm2, %v4310_v12, %v4312_v3  ;;  %v4911_v2 = vsel %vm2384_vm3, %v4908_v34, %v4910_v18  ;;  %v3923_v12 = vadd.f32 %v3717_v14, %v3325_v24 }
 0x3cb   : > { %v5421_v26 = vsel %vm5271_vm9, %v5196_v11, %v5346_v29  ;;  %v4520_v51 = vadd.f32 %v4313_v39, %v3922_v16  ;;  %6332 = vmatmul.msk.bf16.gmra.mxu0 %vm486_vm1, %v6559_v60  ;;  %6379 = vmatmul.msk.bf16.gmra.mxu1 %vm486_vm1, %v6559_v60 }
 0x3cc   : > { %v5496_v30 = vpack.c.bf16 %v5421_v26, %v5421_v26  ;;  %6426 = vmatmul.msk.bf16.gmra.mxu2 %vm486_vm1, %v6559_v60  ;;  %6473 = vmatmul.msk.bf16.gmra.mxu3 %vm486_vm1, %v6559_v60  ;;  %v3924_v60 = vadd.f32 %v3719_v8, %v3326_v45 }
 0x3cd   : > { %v5118_v63 = vadd.f32 %v4911_v2, %v4520_v51 }
 0x3ce   : > { %5572 = vst.msk [vmem:[%s7492_s23 + $0x40] sm:$0xf] %vm5555_vm5, %v5496_v30 }
 0x3cf   : > { %v5197_v55 = vadd.f32 %v7476_v28, %v5118_v63  ;;  %v4057_v50 = vpop.f32.mrf.mxu2  ;;  %v4655_v31 = vpop.f32.mrf.mxu3 }
 0x3d0   : > { %v4314_v44 = vrot.slane %v4057_v50, 1  ;;  %v4912_v13 = vrot.slane %v4655_v31, 2  ;;  %v7753_v6 = vpop.f32.mrf.mxu0  ;;  %v7755_v59 = vpop.f32.mrf.mxu1 }
 0x3d1   : > { %vm5272_vm10 = vcmp.ge.f32.partialorder %v5197_v55, 0.0  ;;  %v5347_v34 = vmul.f32 0.2, %v5197_v55 }
 0x3d2   : > { %v4315_v49 = vsel %vm1187_vm2, %v4312_v3, %v4314_v44  ;;  %v4913_v40 = vsel %vm2384_vm3, %v4910_v18, %v4912_v13  ;;  %v3720_v18 = vrot.slane %v7724_v0, 1  ;;  %v3327_v0 = vadd.f32 %v7705_v42, %v7019_v35 }
 0x3d3   : > { %v5422_v46 = vsel %vm5272_vm10, %v5197_v55, %v5347_v34  ;;  %v4521_v36 = vadd.f32 %v4315_v49, %v3923_v12 }
 0x3d4   : > { %v5497_v10 = vpack.c.bf16 %v5422_v46, %v5422_v46  ;;  %v3721_v26 = vsel %vm1187_vm2, %v3718_v32, %v3720_v18  ;;  %v3328_v46 = vadd.f32 %v7722_v33, %v7030_v53 }
 0x3d5   : > { %v5119_v20 = vadd.f32 %v4913_v40, %v4521_v36  ;;  %v3925_v50 = vadd.f32 %v3721_v26, %v3327_v0 }
 0x3d6   : > { %5573 = vst.msk [vmem:[%s7492_s23 + $0x44] sm:$0xf] %vm5555_vm5, %v5497_v10 }
 0x3d7   : > { %v5198_v9 = vadd.f32 %v7476_v28, %v5119_v20  ;;  %v4059_v62 = vpop.f32.mrf.mxu2  ;;  %v4657_v7 = vpop.f32.mrf.mxu3 }
 0x3d8   : > { %v4316_v52 = vrot.slane %v4059_v62, 1  ;;  %v4914_v11 = vrot.slane %v4657_v7, 2  ;;  %v7767_v57 = vpop.f32.mrf.mxu0  ;;  %v7769_v17 = vpop.f32.mrf.mxu1 }
 0x3d9   : > { %vm5273_vm11 = vcmp.ge.f32.partialorder %v5198_v9, 0.0  ;;  %v5348_v3 = vmul.f32 0.2, %v5198_v9 }
 0x3da   : > { %v4317_v16 = vsel %vm1187_vm2, %v4314_v44, %v4316_v52  ;;  %v4915_v23 = vsel %vm2384_vm3, %v4912_v13, %v4914_v11  ;;  %v3722_v44 = vrot.slane %v7738_v56, 1  ;;  %v6561_v56 = vld [vmem:[%s6769_s28 + $0x1e4] sm:$0xff] }
 0x3db   : > { %v5423_v15 = vsel %vm5273_vm11, %v5198_v9, %v5348_v3  ;;  %v4522_v21 = vadd.f32 %v4317_v16, %v3924_v60  ;;  %6333 = vmatmul.msk.bf16.gmra.mxu0 %vm486_vm1, %v6560_v47  ;;  %6380 = vmatmul.msk.bf16.gmra.mxu1 %vm486_vm1, %v6560_v47 }
 0x3dc   : > { %v5498_v29 = vpack.c.bf16 %v5423_v15, %v5423_v15  ;;  %6427 = vmatmul.msk.bf16.gmra.mxu2 %vm486_vm1, %v6560_v47  ;;  %6474 = vmatmul.msk.bf16.gmra.mxu3 %vm486_vm1, %v6560_v47  ;;  %v3723_v49 = vsel %vm1187_vm2, %v3720_v18, %v3722_v44  ;;  %v3724_v47 = vrot.slane %v7755_v59, 1  ;;  %v3329_v59 = vadd.f32 %v7736_v5, %v7035_v61 }
 0x3dd   : > { %v5120_v39 = vadd.f32 %v4915_v23, %v4522_v21  ;;  %v3926_v62 = vadd.f32 %v3723_v49, %v3328_v46 }
 0x3de   : > { %5574 = vst.msk [vmem:[%s7492_s23 + $0x48] sm:$0xf] %vm5555_vm5, %v5498_v29  ;;  %v3725_v18 = vsel %vm1187_vm2, %v3722_v44, %v3724_v47  ;;  %v3330_v44 = vadd.f32 %v7753_v6, %v7045_v27 }
 0x3df   : > { %v5199_v51 = vadd.f32 %v7476_v28, %v5120_v39  ;;  %v4062_v30 = vpop.f32.mrf.mxu2  ;;  %v4660_v2 = vpop.f32.mrf.mxu3  ;;  %v3927_v0 = vadd.f32 %v3725_v18, %v3329_v59 }
 0x3e0   : > { %v4318_v63 = vrot.slane %v4062_v30, 1  ;;  %v4916_v14 = vrot.slane %v4660_v2, 2  ;;  %v7784_v24 = vpop.f32.mrf.mxu0  ;;  %v7786_v55 = vpop.f32.mrf.mxu1  ;;  %v3726_v30 = vrot.slane %v7769_v17, 1  ;;  %v6562_v17 = vld [vmem:[%s6769_s28 + $0x1ec] sm:$0xff] }
 0x3e1   : > { %vm5274_vm12 = vcmp.ge.f32.partialorder %v5199_v51, 0.0  ;;  %v5349_v31 = vmul.f32 0.2, %v5199_v51 }
 0x3e2   : > { %v4319_v13 = vsel %vm1187_vm2, %v4316_v52, %v4318_v63  ;;  %v4917_v34 = vsel %vm2384_vm3, %v4914_v11, %v4916_v14 }
 0x3e3   : > { %v5424_v35 = vsel %vm5274_vm12, %v5199_v51, %v5349_v31  ;;  %v4523_v42 = vadd.f32 %v4319_v13, %v3925_v50  ;;  %v3727_v31 = vsel %vm1187_vm2, %v3724_v47, %v3726_v30 }
 0x3e4   : > { %v5499_v12 = vpack.c.bf16 %v5424_v35, %v5424_v35  ;;  %v3928_v46 = vadd.f32 %v3727_v31, %v3330_v44 }
 0x3e5   : > { %v5121_v32 = vadd.f32 %v4917_v34, %v4523_v42 }
 0x3e6   : > { %5575 = vst.msk [vmem:[%s7492_s23 + $0x4c] sm:$0xf] %vm5555_vm5, %v5499_v12 }
 0x3e7   : > { %v5200_v36 = vadd.f32 %v7476_v28, %v5121_v32  ;;  %v4064_v10 = vpop.f32.mrf.mxu2  ;;  %v4662_v40 = vpop.f32.mrf.mxu3 }
 0x3e8   : > { %v4320_v20 = vrot.slane %v4064_v10, 1  ;;  %v4918_v8 = vrot.slane %v4662_v40, 2  ;;  %v7798_v45 = vpop.f32.mrf.mxu0  ;;  %v7800_v9 = vpop.f32.mrf.mxu1  ;;  %v3728_v10 = vrot.slane %v7786_v55, 1  ;;  %v3331_v55 = vadd.f32 %v7767_v57, %v7050_v19 }
 0x3e9   : > { %vm5275_vm13 = vcmp.ge.f32.partialorder %v5200_v36, 0.0  ;;  %v5350_v7 = vmul.f32 0.2, %v5200_v36  ;;  %v3730_v57 = vrot.slane %v7800_v9, 1  ;;  %v6563_v9 = vld [vmem:[%s6769_s28 + $0x1f4] sm:$0xff] }
 0x3ea   : > { %v4321_v52 = vsel %vm1187_vm2, %v4318_v63, %v4320_v20  ;;  %v4919_v60 = vsel %vm2384_vm3, %v4916_v14, %v4918_v8 }
 0x3eb   : > { %v5425_v53 = vsel %vm5275_vm13, %v5200_v36, %v5350_v7  ;;  %v4524_v33 = vadd.f32 %v4321_v52, %v3926_v62  ;;  %6334 = vmatmul.msk.bf16.gmra.mxu0 %vm486_vm1, %v6561_v56  ;;  %6381 = vmatmul.msk.bf16.gmra.mxu1 %vm486_vm1, %v6561_v56  ;;  %v7848_v62 = vld [vmem:[%s8606_s2] ss:$0 sm:$0xff] }
 0x3ec   : > { %v5500_v11 = vpack.c.bf16 %v5425_v53, %v5425_v53  ;;  %6428 = vmatmul.msk.bf16.gmra.mxu2 %vm486_vm1, %v6561_v56  ;;  %6475 = vmatmul.msk.bf16.gmra.mxu3 %vm486_vm1, %v6561_v56 }
 0x3ed   : > { %v5122_v3 = vadd.f32 %v4919_v60, %v4524_v33 }
 0x3ee   : > { %5576 = vst.msk [vmem:[%s7492_s23 + $0x50] sm:$0xf] %vm5555_vm5, %v5500_v11 }
 0x3ef   : > { %v5201_v16 = vadd.f32 %v7476_v28, %v5122_v3  ;;  %v4067_v15 = vpop.f32.mrf.mxu2  ;;  %v4665_v21 = vpop.f32.mrf.mxu3 }
 0x3f0   : > { %v4322_v29 = vrot.slane %v4067_v15, 1  ;;  %v4920_v23 = vrot.slane %v4665_v21, 2  ;;  %v7815_v39 = vpop.f32.mrf.mxu0  ;;  %v7817_v26 = vpop.f32.mrf.mxu1 }
 0x3f1   : > { %vm5276_vm14 = vcmp.ge.f32.partialorder %v5201_v16, 0.0  ;;  %v5351_v51 = vmul.f32 0.2, %v5201_v16  ;;  %v3732_v44 = vrot.slane %v7817_v26, 1  ;;  %v3333_v26 = vadd.f32 %v7798_v45, %v7065_v4 }
 0x3f2   : > { %v4323_v2 = vsel %vm1187_vm2, %v4320_v20, %v4322_v29  ;;  %v4921_v14 = vsel %vm2384_vm3, %v4918_v8, %v4920_v23  ;;  %v3729_v8 = vsel %vm1187_vm2, %v3726_v30, %v3728_v10 }
 0x3f3   : > { %v5426_v61 = vsel %vm5276_vm14, %v5201_v16, %v5351_v51  ;;  %v4525_v5 = vadd.f32 %v4323_v2, %v3927_v0  ;;  %v3929_v3 = vadd.f32 %v3729_v8, %v3331_v55  ;;  %v3332_v0 = vadd.f32 %v7784_v24, %v7060_v41 }
 0x3f4   : > { %v5501_v63 = vpack.c.bf16 %v5426_v61, %v5426_v61 }
 0x3f5   : > { %v5123_v50 = vadd.f32 %v4921_v14, %v4525_v5 }
 0x3f6   : > { %5577 = vst.msk [vmem:[%s7492_s23 + $0x54] sm:$0xf] %vm5555_vm5, %v5501_v63 }
 0x3f7   : > { %v5202_v13 = vadd.f32 %v7476_v28, %v5123_v50  ;;  %v4069_v35 = vpop.f32.mrf.mxu2  ;;  %v4667_v42 = vpop.f32.mrf.mxu3 }
 0x3f8   : > { %v4324_v12 = vrot.slane %v4069_v35, 1  ;;  %v4922_v34 = vrot.slane %v4667_v42, 2  ;;  %v7829_v32 = vpop.f32.mrf.mxu0  ;;  %v7831_v49 = vpop.f32.mrf.mxu1 }
 0x3f9   : > { %vm5277_vm15 = vcmp.ge.f32.partialorder %v5202_v13, 0.0  ;;  %v5352_v36 = vmul.f32 0.2, %v5202_v13 }
 0x3fa   : > { %v4325_v40 = vsel %vm1187_vm2, %v4322_v29, %v4324_v12  ;;  %v4923_v56 = vsel %vm2384_vm3, %v4920_v23, %v4922_v34  ;;  %v3731_v23 = vsel %vm1187_vm2, %v3728_v10, %v3730_v57 }
 0x3fb   : > { %v5427_v27 = vsel %vm5277_vm15, %v5202_v13, %v5352_v36  ;;  %v4526_v6 = vadd.f32 %v4325_v40, %v3928_v46  ;;  %6335 = vmatmul.msk.bf16.gmra.mxu0 %vm486_vm1, %v6562_v17  ;;  %6382 = vmatmul.msk.bf16.gmra.mxu1 %vm486_vm1, %v6562_v17  ;;  %v3930_v50 = vadd.f32 %v3731_v23, %v3332_v0 }
 0x3fc   : > { %v5502_v28 = vpack.c.bf16 %v5427_v27, %v5427_v27  ;;  %6429 = vmatmul.msk.bf16.gmra.mxu2 %vm486_vm1, %v6562_v17  ;;  %6476 = vmatmul.msk.bf16.gmra.mxu3 %vm486_vm1, %v6562_v17 }
 0x3fd   : > { %v5124_v20 = vadd.f32 %v4923_v56, %v4526_v6 }
 0x3fe   : > { %5578 = vst.msk [vmem:[%s7492_s23 + $0x58] sm:$0xf] %vm5555_vm5, %v5502_v28 }
 0x3ff   : > { %v5203_v7 = vadd.f32 %v7848_v62, %v5124_v20  ;;  %v4072_v47 = vpop.f32.mrf.mxu2  ;;  %v4670_v52 = vpop.f32.mrf.mxu3  ;;  %v3734_v20 = vrot.slane %v7831_v49, 1  ;;  %v6564_v49 = vld [vmem:[%s6769_s28 + $0x1fc] sm:$0xff] }
 0x400   : > { %v4326_v53 = vrot.slane %v4072_v47, 1  ;;  %v4924_v33 = vrot.slane %v4670_v52, 2  ;;  %v7851_v11 = vpop.f32.mrf.mxu0  ;;  %v7853_v60 = vpop.f32.mrf.mxu1 }
 0x401   : > { %vm5278_vm0 = vcmp.ge.f32.partialorder %v5203_v7, 0.0  ;;  %v5353_v19 = vmul.f32 0.2, %v5203_v7  ;;  %v3735_v52 = vsel %vm1187_vm2, %v3732_v44, %v3734_v20 }
 0x402   : > { %v4327_v18 = vsel %vm1187_vm2, %v4324_v12, %v4326_v53  ;;  %v4925_v21 = vsel %vm2384_vm3, %v4922_v34, %v4924_v33  ;;  %v3733_v12 = vsel %vm1187_vm2, %v3730_v57, %v3732_v44 }
 0x403   : > { %v5428_v59 = vsel %vm5278_vm0, %v5203_v7, %v5353_v19  ;;  %v4527_v16 = vadd.f32 %v4327_v18, %v3929_v3  ;;  %v3931_v28 = vadd.f32 %v3733_v12, %v3333_v26 }
 0x404   : > { %v5503_v15 = vpack.c.bf16 %v5428_v59, %v5428_v59 }
 0x405   : > { %v5125_v29 = vadd.f32 %v4925_v21, %v4527_v16 }
 0x406   : > { %5579 = vst.msk [vmem:[%s7492_s23 + $0x5c] sm:$0xf] %vm5555_vm5, %v5503_v15 }
 0x407   : > { %v5204_v51 = vadd.f32 %v7848_v62, %v5125_v29  ;;  %v4074_v30 = vpop.f32.mrf.mxu2  ;;  %v4672_v2 = vpop.f32.mrf.mxu3  ;;  %v3736_v29 = vrot.slane %v7853_v60, 1  ;;  %v3335_v60 = vadd.f32 %v7829_v32, %v7080_v22 }
 0x408   : > { %v4328_v61 = vrot.slane %v4074_v30, 1  ;;  %v4926_v5 = vrot.slane %v4672_v2, 2  ;;  %v7865_v63 = vpop.f32.mrf.mxu0  ;;  %v7867_v14 = vpop.f32.mrf.mxu1 }
 0x409   : > { %vm5279_vm4 = vcmp.ge.f32.partialorder %v5204_v51, 0.0  ;;  %v5354_v31 = vmul.f32 0.2, %v5204_v51  ;;  %v3737_v2 = vsel %vm1187_vm2, %v3734_v20, %v3736_v29 }
 0x40a   : > { %v4329_v13 = vsel %vm1187_vm2, %v4326_v53, %v4328_v61  ;;  %v4927_v42 = vsel %vm2384_vm3, %v4924_v33, %v4926_v5  ;;  %v3334_v53 = vadd.f32 %v7815_v39, %v7075_v43 }
 0x40b   : > { %v5429_v41 = vsel %vm5279_vm4, %v5204_v51, %v5354_v31  ;;  %v4528_v24 = vadd.f32 %v4329_v13, %v3930_v50  ;;  %6336 = vmatmul.msk.bf16.gmra.mxu0 %vm486_vm1, %v6563_v9  ;;  %6383 = vmatmul.msk.bf16.gmra.mxu1 %vm486_vm1, %v6563_v9 }
 0x40c   : > { %v5504_v35 = vpack.c.bf16 %v5429_v41, %v5429_v41  ;;  %6430 = vmatmul.msk.bf16.gmra.mxu2 %vm486_vm1, %v6563_v9  ;;  %6477 = vmatmul.msk.bf16.gmra.mxu3 %vm486_vm1, %v6563_v9  ;;  %v3932_v15 = vadd.f32 %v3735_v52, %v3334_v53  ;;  %v3933_v41 = vadd.f32 %v3737_v2, %v3335_v60 }
 0x40d   : > { %v5126_v17 = vadd.f32 %v4927_v42, %v4528_v24 }
 0x40e   : > { %5580 = vst.msk [vmem:[%s7492_s23 + $0x60] sm:$0xf] %vm5555_vm5, %v5504_v35  ;;  %v3738_v35 = vrot.slane %v7867_v14, 1  ;;  %v6565_v14 = vld [vmem:[%s6769_s28 + $0x204] sm:$0xff] }
 0x40f   : > { %v5205_v34 = vadd.f32 %v7848_v62, %v5126_v17  ;;  %v4077_v46 = vpop.f32.mrf.mxu2  ;;  %v4675_v36 = vpop.f32.mrf.mxu3 }
 0x410   : > { %v4330_v10 = vrot.slane %v4077_v46, 1  ;;  %v4928_v40 = vrot.slane %v4675_v36, 2  ;;  %v7882_v27 = vpop.f32.mrf.mxu0  ;;  %v7884_v6 = vpop.f32.mrf.mxu1  ;;  %v3336_v46 = vadd.f32 %v7851_v11, %v7090_v48 }
 0x411   : > { %vm5280_vm6 = vcmp.ge.f32.partialorder %v5205_v34, 0.0  ;;  %v5355_v56 = vmul.f32 0.2, %v5205_v34  ;;  %v3338_v60 = vadd.f32 %v7882_v27, %v7105_v38 }
 0x412   : > { %v4331_v8 = vsel %vm1187_vm2, %v4328_v61, %v4330_v10  ;;  %v4929_v7 = vsel %vm2384_vm3, %v4926_v5, %v4928_v40 }
 0x413   : > { %v5430_v4 = vsel %vm5280_vm6, %v5205_v34, %v5355_v56  ;;  %v4529_v45 = vadd.f32 %v4331_v8, %v3931_v28  ;;  %v3739_v34 = vsel %vm1187_vm2, %v3736_v29, %v3738_v35 }
 0x414   : > { %v5505_v55 = vpack.c.bf16 %v5430_v4, %v5430_v4  ;;  %v3934_v4 = vadd.f32 %v3739_v34, %v3336_v46 }
 0x415   : > { %v5127_v47 = vadd.f32 %v4929_v7, %v4529_v45 }
 0x416   : > { %5581 = vst.msk [vmem:[%s7492_s23 + $0x64] sm:$0xf] %vm5555_vm5, %v5505_v55  ;;  %v3740_v55 = vrot.slane %v7884_v6, 1  ;;  %v3337_v6 = vadd.f32 %v7865_v63, %v7095_v37 }
 0x417   : > { %v5206_v33 = vadd.f32 %v7848_v62, %v5127_v47  ;;  %v4079_v3 = vpop.f32.mrf.mxu2  ;;  %v4677_v19 = vpop.f32.mrf.mxu3 }
 0x418   : > { %v4332_v57 = vrot.slane %v4079_v3, 1  ;;  %v4930_v18 = vrot.slane %v4677_v19, 2  ;;  %v7896_v59 = vpop.f32.mrf.mxu0  ;;  %v7898_v16 = vpop.f32.mrf.mxu1 }
 0x419   : > { %vm5281_vm7 = vcmp.ge.f32.partialorder %v5206_v33, 0.0  ;;  %v5356_v21 = vmul.f32 0.2, %v5206_v33 }
 0x41a   : > { %v4333_v23 = vsel %vm1187_vm2, %v4330_v10, %v4332_v57  ;;  %v4931_v51 = vsel %vm2384_vm3, %v4928_v40, %v4930_v18 }
 0x41b   : > { %v5431_v43 = vsel %vm5281_vm7, %v5206_v33, %v5356_v21  ;;  %v4530_v39 = vadd.f32 %v4333_v23, %v3932_v15  ;;  %6337 = vmatmul.msk.bf16.gmra.mxu0 %vm486_vm1, %v6564_v49  ;;  %6384 = vmatmul.msk.bf16.gmra.mxu1 %vm486_vm1, %v6564_v49  ;;  %v3741_v33 = vsel %vm1187_vm2, %v3738_v35, %v3740_v55 }
 0x41c   : > { %v5506_v0 = vpack.c.bf16 %v5431_v43, %v5431_v43  ;;  %6431 = vmatmul.msk.bf16.gmra.mxu2 %vm486_vm1, %v6564_v49  ;;  %6478 = vmatmul.msk.bf16.gmra.mxu3 %vm486_vm1, %v6564_v49  ;;  %v3935_v29 = vadd.f32 %v3741_v33, %v3337_v6  ;;  %v3742_v43 = vrot.slane %v7898_v16, 1  ;;  %v6566_v16 = vld [vmem:[%s6769_s28 + $0x20c] sm:$0xff] }
 0x41d   : > { %v5128_v30 = vadd.f32 %v4931_v51, %v4530_v39 }
 0x41e   : > { %5582 = vst.msk [vmem:[%s7492_s23 + $0x68] sm:$0xf] %vm5555_vm5, %v5506_v0  ;;  %v3743_v2 = vsel %vm1187_vm2, %v3740_v55, %v3742_v43 }
 0x41f   : > { %v5207_v9 = vadd.f32 %v7848_v62, %v5128_v30  ;;  %v4082_v61 = vpop.f32.mrf.mxu2  ;;  %v4680_v5 = vpop.f32.mrf.mxu3  ;;  %v3936_v35 = vadd.f32 %v3743_v2, %v3338_v60 }
 0x420   : > { %v4334_v50 = vrot.slane %v4082_v61, 1  ;;  %v4932_v31 = vrot.slane %v4680_v5, 2  ;;  %v7913_v44 = vpop.f32.mrf.mxu0  ;;  %v7915_v13 = vpop.f32.mrf.mxu1 }
 0x421   : > { %vm5282_vm8 = vcmp.ge.f32.partialorder %v5207_v9, 0.0  ;;  %v5357_v24 = vmul.f32 0.2, %v5207_v9 }
 0x422   : > { %v4335_v42 = vsel %vm1187_vm2, %v4332_v57, %v4334_v50  ;;  %v4933_v12 = vsel %vm2384_vm3, %v4930_v18, %v4932_v31 }
 0x423   : > { %v5432_v22 = vsel %vm5282_vm8, %v5207_v9, %v5357_v24  ;;  %v4531_v32 = vadd.f32 %v4335_v42, %v3933_v41 }
 0x424   : > { %v5507_v17 = vpack.c.bf16 %v5432_v22, %v5432_v22  ;;  %v3744_v22 = vrot.slane %v7915_v13, 1  ;;  %v3339_v13 = vadd.f32 %v7896_v59, %v7110_v1 }
 0x425   : > { %v5129_v26 = vadd.f32 %v4933_v12, %v4531_v32 }
 0x426   : > { %5583 = vst.msk [vmem:[%s7492_s23 + $0x6c] sm:$0xf] %vm5555_vm5, %v5507_v17  ;;  %v3745_v34 = vsel %vm1187_vm2, %v3742_v43, %v3744_v22 }
 0x427   : > { %v5208_v36 = vadd.f32 %v7848_v62, %v5129_v26  ;;  %v4084_v10 = vpop.f32.mrf.mxu2  ;;  %v4682_v40 = vpop.f32.mrf.mxu3 }
 0x428   : > { %v4336_v28 = vrot.slane %v4084_v10, 1  ;;  %v4934_v56 = vrot.slane %v4682_v40, 2  ;;  %v7927_v20 = vpop.f32.mrf.mxu0  ;;  %v7929_v8 = vpop.f32.mrf.mxu1 }
 0x429   : > { %vm5283_vm9 = vcmp.ge.f32.partialorder %v5208_v36, 0.0  ;;  %v5358_v45 = vmul.f32 0.2, %v5208_v36  ;;  %v3746_v55 = vrot.slane %v7929_v8, 1  ;;  %v6567_v8 = vld [vmem:[%s6769_s28 + $0x214] sm:$0xff] }
 0x42a   : > { %v4337_v7 = vsel %vm1187_vm2, %v4334_v50, %v4336_v28  ;;  %v4935_v52 = vsel %vm2384_vm3, %v4932_v31, %v4934_v56 }
 0x42b   : > { %v5433_v48 = vsel %vm5283_vm9, %v5208_v36, %v5358_v45  ;;  %v4532_v11 = vadd.f32 %v4337_v7, %v3934_v4  ;;  %6338 = vmatmul.msk.bf16.gmra.mxu0 %vm486_vm1, %v6565_v14  ;;  %6385 = vmatmul.msk.bf16.gmra.mxu1 %vm486_vm1, %v6565_v14  ;;  %v3937_v4 = vadd.f32 %v3745_v34, %v3339_v13 }
 0x42c   : > { %v5508_v47 = vpack.c.bf16 %v5433_v48, %v5433_v48  ;;  %6432 = vmatmul.msk.bf16.gmra.mxu2 %vm486_vm1, %v6565_v14  ;;  %6479 = vmatmul.msk.bf16.gmra.mxu3 %vm486_vm1, %v6565_v14 }
 0x42d   : > { %v5130_v53 = vadd.f32 %v4935_v52, %v4532_v11  ;;  %v3747_v52 = vsel %vm1187_vm2, %v3744_v22, %v3746_v55 }
 0x42e   : > { %5584 = vst.msk [vmem:[%s7492_s23 + $0x70] sm:$0xf] %vm5555_vm5, %v5508_v47 }
 0x42f   : > { %v5209_v3 = vadd.f32 %v7848_v62, %v5130_v53  ;;  %v4087_v19 = vpop.f32.mrf.mxu2  ;;  %v4685_v49 = vpop.f32.mrf.mxu3  ;;  %v3340_v53 = vadd.f32 %v7913_v44, %v7120_v25 }
 0x430   : > { %v4338_v57 = vrot.slane %v4087_v19, 1  ;;  %v4936_v18 = vrot.slane %v4685_v49, 2  ;;  %v7944_v15 = vpop.f32.mrf.mxu0  ;;  %v7946_v21 = vpop.f32.mrf.mxu1 }
 0x431   : > { %vm5284_vm10 = vcmp.ge.f32.partialorder %v5209_v3, 0.0  ;;  %v5359_v23 = vmul.f32 0.2, %v5209_v3  ;;  %v3748_v43 = vrot.slane %v7946_v21, 1  ;;  %v3341_v21 = vadd.f32 %v7927_v20, %v7125_v54 }
 0x432   : > { %v4339_v39 = vsel %vm1187_vm2, %v4336_v28, %v4338_v57  ;;  %v4937_v51 = vsel %vm2384_vm3, %v4934_v56, %v4936_v18 }
 0x433   : > { %v5434_v37 = vsel %vm5284_vm10, %v5209_v3, %v5359_v23  ;;  %v4533_v63 = vadd.f32 %v4339_v39, %v3935_v29  ;;  %v3938_v29 = vadd.f32 %v3747_v52, %v3340_v53 }
 0x434   : > { %v5509_v0 = vpack.c.bf16 %v5434_v37, %v5434_v37 }
 0x435   : > { %v5131_v30 = vadd.f32 %v4937_v51, %v4533_v63  ;;  %v3749_v51 = vsel %vm1187_vm2, %v3746_v55, %v3748_v43 }
 0x436   : > { %5585 = vst.msk [vmem:[%s7492_s23 + $0x74] sm:$0xf] %vm5555_vm5, %v5509_v0 }
 0x437   : > { %v5210_v9 = vadd.f32 %v7848_v62, %v5131_v30  ;;  %v4089_v61 = vpop.f32.mrf.mxu2  ;;  %v4687_v5 = vpop.f32.mrf.mxu3 }
 0x438   : > { %v4340_v50 = vrot.slane %v4089_v61, 1  ;;  %v4938_v31 = vrot.slane %v4687_v5, 2  ;;  %v7958_v41 = vpop.f32.mrf.mxu0  ;;  %v7960_v24 = vpop.f32.mrf.mxu1 }
 0x439   : > { %vm5285_vm11 = vcmp.ge.f32.partialorder %v5210_v9, 0.0  ;;  %v5360_v42 = vmul.f32 0.2, %v5210_v9 }
 0x43a   : > { %v4341_v32 = vsel %vm1187_vm2, %v4338_v57, %v4340_v50  ;;  %v4939_v12 = vsel %vm2384_vm3, %v4936_v18, %v4938_v31 }
 0x43b   : > { %v5435_v38 = vsel %vm5285_vm11, %v5210_v9, %v5360_v42  ;;  %v4534_v27 = vadd.f32 %v4341_v32, %v3936_v35  ;;  %6339 = vmatmul.msk.bf16.gmra.mxu0 %vm486_vm1, %v6566_v16  ;;  %6386 = vmatmul.msk.bf16.gmra.mxu1 %vm486_vm1, %v6566_v16  ;;  %v3750_v35 = vrot.slane %v7960_v24, 1  ;;  %v6568_v24 = vld [vmem:[%s6769_s28 + $0x21c] sm:$0xff] }
 0x43c   : > { %v5510_v17 = vpack.c.bf16 %v5435_v38, %v5435_v38  ;;  %6433 = vmatmul.msk.bf16.gmra.mxu2 %vm486_vm1, %v6566_v16  ;;  %6480 = vmatmul.msk.bf16.gmra.mxu3 %vm486_vm1, %v6566_v16 }
 0x43d   : > { %v5132_v26 = vadd.f32 %v4939_v12, %v4534_v27  ;;  %v3751_v27 = vsel %vm1187_vm2, %v3748_v43, %v3750_v35 }
 0x43e   : > { %5586 = vst.msk [vmem:[%s7492_s23 + $0x78] sm:$0xf] %vm5555_vm5, %v5510_v17  ;;  %v3342_v17 = vadd.f32 %v7944_v15, %v7135_v58 }
 0x43f   : > { %v5211_v46 = vadd.f32 %v7848_v62, %v5132_v26  ;;  %v4092_v36 = vpop.f32.mrf.mxu2  ;;  %v4690_v10 = vpop.f32.mrf.mxu3 }
 0x440   : > { %v4342_v40 = vrot.slane %v4092_v36, 1  ;;  %v4940_v14 = vrot.slane %v4690_v10, 2  ;;  %v7975_v28 = vpop.f32.mrf.mxu0  ;;  %v7977_v56 = vpop.f32.mrf.mxu1 }
 0x441   : > { %vm5286_vm12 = vcmp.ge.f32.partialorder %v5211_v46, 0.0  ;;  %v5361_v45 = vmul.f32 0.2, %v5211_v46 }
 0x442   : > { %v4343_v7 = vsel %vm1187_vm2, %v4340_v50, %v4342_v40  ;;  %v4941_v11 = vsel %vm2384_vm3, %v4938_v31, %v4940_v14  ;;  %v3939_v50 = vadd.f32 %v3749_v51, %v3341_v21 }
 0x443   : > { %v5436_v1 = vsel %vm5286_vm12, %v5211_v46, %v5361_v45  ;;  %v4535_v59 = vadd.f32 %v4343_v7, %v3937_v4  ;;  %v3752_v4 = vrot.slane %v7977_v56, 1  ;;  %v8647_v56 = vld [vmem:[#allocation2_spill] sm:$0xff] }
 0x444   : > { %v5511_v48 = vpack.c.bf16 %v5436_v1, %v5436_v1 }
 0x445   : > { %v5133_v47 = vadd.f32 %v4941_v11, %v4535_v59  ;;  %v3753_v59 = vsel %vm1187_vm2, %v3750_v35, %v3752_v4 }
 0x446   : > { %5587 = vst.msk [vmem:[%s7492_s23 + $0x7c] sm:$0xf] %vm5555_vm5, %v5511_v48  ;;  %v3343_v48 = vadd.f32 %v7958_v41, %v8647_v56 }
 0x447   : > { %v5212_v33 = vadd.f32 %v7848_v62, %v5133_v47  ;;  %v4094_v6 = vpop.f32.mrf.mxu2  ;;  %v4692_v3 = vpop.f32.mrf.mxu3 }
 0x448   : > { %v4344_v19 = vrot.slane %v4094_v6, 1  ;;  %v4942_v49 = vrot.slane %v4692_v3, 2  ;;  %v7989_v57 = vpop.f32.mrf.mxu0  ;;  %v7991_v18 = vpop.f32.mrf.mxu1 }
 0x449   : > { %vm5287_vm13 = vcmp.ge.f32.partialorder %v5212_v33, 0.0  ;;  %v5362_v23 = vmul.f32 0.2, %v5212_v33 }
 0x44a   : > { %v4345_v39 = vsel %vm1187_vm2, %v4342_v40, %v4344_v19  ;;  %v4943_v63 = vsel %vm2384_vm3, %v4940_v14, %v4942_v49  ;;  %v3940_v40 = vadd.f32 %v3751_v27, %v3342_v17 }
 0x44b   : > { %v5437_v25 = vsel %vm5287_vm13, %v5212_v33, %v5362_v23  ;;  %v4536_v44 = vadd.f32 %v4345_v39, %v3938_v29  ;;  %6340 = vmatmul.msk.bf16.gmra.mxu0 %vm486_vm1, %v6567_v8  ;;  %6387 = vmatmul.msk.bf16.gmra.mxu1 %vm486_vm1, %v6567_v8 }
 0x44c   : > { %v5512_v37 = vpack.c.bf16 %v5437_v25, %v5437_v25  ;;  %6434 = vmatmul.msk.bf16.gmra.mxu2 %vm486_vm1, %v6567_v8  ;;  %6481 = vmatmul.msk.bf16.gmra.mxu3 %vm486_vm1, %v6567_v8  ;;  %v3941_v8 = vadd.f32 %v3753_v59, %v3343_v48 }
 0x44d   : > { %v5134_v0 = vadd.f32 %v4943_v63, %v4536_v44 }
 0x44e   : > { %5588 = vst.msk [vmem:[%s7492_s23 + $0x80] sm:$0xf] %vm5555_vm5, %v5512_v37  ;;  %v8648_v37 = vld [vmem:[#allocation3_spill] sm:$0xff] }
 0x44f   : > { %v5213_v30 = vadd.f32 %v7848_v62, %v5134_v0  ;;  %v4097_v2 = vpop.f32.mrf.mxu2  ;;  %v4695_v60 = vpop.f32.mrf.mxu3  ;;  %v3344_v63 = vadd.f32 %v7975_v28, %v8648_v37 }
 0x450   : > { %v4346_v9 = vrot.slane %v4097_v2, 1  ;;  %v4944_v61 = vrot.slane %v4695_v60, 2  ;;  %v8006_v5 = vpop.f32.mrf.mxu0  ;;  %v8008_v16 = vpop.f32.mrf.mxu1 }
 0x451   : > { %vm5288_vm14 = vcmp.ge.f32.partialorder %v5213_v30, 0.0  ;;  %v5363_v31 = vmul.f32 0.2, %v5213_v30 }
 0x452   : > { %v4347_v42 = vsel %vm1187_vm2, %v4344_v19, %v4346_v9  ;;  %v4945_v32 = vsel %vm2384_vm3, %v4942_v49, %v4944_v61  ;;  %v3754_v49 = vrot.slane %v7991_v18, 1  ;;  %v6569_v18 = vld [vmem:[%s6769_s28 + $0x224] sm:$0xff] }
 0x453   : > { %v5438_v54 = vsel %vm5288_vm14, %v5213_v30, %v5363_v31  ;;  %v4537_v20 = vadd.f32 %v4347_v42, %v3939_v50  ;;  %v3756_v31 = vrot.slane %v8008_v16, 1  ;;  %v8649_v16 = vld [vmem:[#allocation4_spill] sm:$0xff] }
 0x454   : > { %v5513_v22 = vpack.c.bf16 %v5438_v54, %v5438_v54  ;;  %v3755_v44 = vsel %vm1187_vm2, %v3752_v4, %v3754_v49 }
 0x455   : > { %v5135_v38 = vadd.f32 %v4945_v32, %v4537_v20  ;;  %v3757_v32 = vsel %vm1187_vm2, %v3754_v49, %v3756_v31 }
 0x456   : > { %5589 = vst.msk [vmem:[%s7492_s23 + $0x84] sm:$0xf] %vm5555_vm5, %v5513_v22 }
 0x457   : > { %v5214_v12 = vadd.f32 %v7848_v62, %v5135_v38  ;;  %v4099_v26 = vpop.f32.mrf.mxu2  ;;  %v4697_v34 = vpop.f32.mrf.mxu3  ;;  %v3345_v38 = vadd.f32 %v7989_v57, %v8649_v16 }
 0x458   : > { %v4348_v13 = vrot.slane %v4099_v26, 1  ;;  %v4946_v46 = vrot.slane %v4697_v34, 2  ;;  %v8020_v36 = vpop.f32.mrf.mxu0  ;;  %v8022_v10 = vpop.f32.mrf.mxu1 }
 0x459   : > { %vm5289_vm15 = vcmp.ge.f32.partialorder %v5214_v12, 0.0  ;;  %v5364_v14 = vmul.f32 0.2, %v5214_v12 }
 0x45a   : > { %v4349_v45 = vsel %vm1187_vm2, %v4346_v9, %v4348_v13  ;;  %v4947_v7 = vsel %vm2384_vm3, %v4944_v61, %v4946_v46  ;;  %v3942_v61 = vadd.f32 %v3755_v44, %v3344_v63 }
 0x45b   : > { %v5439_v58 = vsel %vm5289_vm15, %v5214_v12, %v5364_v14  ;;  %v4538_v15 = vadd.f32 %v4349_v45, %v3940_v40  ;;  %6341 = vmatmul.msk.bf16.gmra.mxu0 %vm486_vm1, %v6568_v24  ;;  %6388 = vmatmul.msk.bf16.gmra.mxu1 %vm486_vm1, %v6568_v24  ;;  %v3758_v14 = vrot.slane %v8022_v10, 1  ;;  %v6570_v10 = vld [vmem:[%s6769_s28 + $0x22c] sm:$0xff] }
 0x45c   : > { %v5514_v55 = vpack.c.bf16 %v5439_v58, %v5439_v58  ;;  %6435 = vmatmul.msk.bf16.gmra.mxu2 %vm486_vm1, %v6568_v24  ;;  %6482 = vmatmul.msk.bf16.gmra.mxu3 %vm486_vm1, %v6568_v24 }
 0x45d   : > { %v5136_v1 = vadd.f32 %v4947_v7, %v4538_v15  ;;  %v3759_v7 = vsel %vm1187_vm2, %v3756_v31, %v3758_v14 }
 0x45e   : > { %5590 = vst.msk [vmem:[%s7492_s23 + $0x88] sm:$0xf] %vm5555_vm5, %v5514_v55 }
 0x45f   : > { %v5215_v11 = vadd.f32 %v7848_v62, %v5136_v1  ;;  %v4102_v47 = vpop.f32.mrf.mxu2  ;;  %v4700_v52 = vpop.f32.mrf.mxu3  ;;  %v8650_v1 = vld [vmem:[#allocation5_spill] sm:$0xff] }
 0x460   : > { %v4350_v53 = vrot.slane %v4102_v47, 1  ;;  %v4948_v33 = vrot.slane %v4700_v52, 2  ;;  %v8037_v6 = vpop.f32.mrf.mxu0  ;;  %v8039_v3 = vpop.f32.mrf.mxu1  ;;  %v3346_v59 = vadd.f32 %v8006_v5, %v8650_v1 }
 0x461   : > { %vm5290_vm0 = vcmp.ge.f32.partialorder %v5215_v11, 0.0  ;;  %v5365_v19 = vmul.f32 0.2, %v5215_v11  ;;  %v3760_v49 = vrot.slane %v8039_v3, 1  ;;  %v8651_v3 = vld [vmem:[#allocation6_spill] sm:$0xff] }
 0x462   : > { %v4351_v29 = vsel %vm1187_vm2, %v4348_v13, %v4350_v53  ;;  %v4949_v39 = vsel %vm2384_vm3, %v4946_v46, %v4948_v33  ;;  %v3943_v46 = vadd.f32 %v3757_v32, %v3345_v38  ;;  %v3347_v44 = vadd.f32 %v8020_v36, %v8651_v3 }
 0x463   : > { %v5440_v41 = vsel %vm5290_vm0, %v5215_v11, %v5365_v19  ;;  %v4539_v23 = vadd.f32 %v4351_v29, %v3941_v8  ;;  %v3944_v8 = vadd.f32 %v3759_v7, %v3346_v59 }
 0x464   : > { %v5515_v43 = vpack.c.bf16 %v5440_v41, %v5440_v41 }
 0x465   : > { %v5137_v25 = vadd.f32 %v4949_v39, %v4539_v23 }
 0x466   : > { %5591 = vst.msk [vmem:[%s7492_s23 + $0x8c] sm:$0xf] %vm5555_vm5, %v5515_v43 }
 0x467   : > { %v5216_v0 = vadd.f32 %v7848_v62, %v5137_v25  ;;  %v4104_v51 = vpop.f32.mrf.mxu2  ;;  %v4702_v21 = vpop.f32.mrf.mxu3  ;;  %v3761_v25 = vsel %vm1187_vm2, %v3758_v14, %v3760_v49 }
 0x468   : > { %v4352_v30 = vrot.slane %v4104_v51, 1  ;;  %v4950_v2 = vrot.slane %v4702_v21, 2  ;;  %v8051_v60 = vpop.f32.mrf.mxu0  ;;  %v8053_v9 = vpop.f32.mrf.mxu1 }
 0x469   : > { %vm5291_vm4 = vcmp.ge.f32.partialorder %v5216_v0, 0.0  ;;  %v5366_v50 = vmul.f32 0.2, %v5216_v0 }
 0x46a   : > { %v4353_v35 = vsel %vm1187_vm2, %v4350_v53, %v4352_v30  ;;  %v4951_v20 = vsel %vm2384_vm3, %v4948_v33, %v4950_v2 }
 0x46b   : > { %v5441_v28 = vsel %vm5291_vm4, %v5216_v0, %v5366_v50  ;;  %v4540_v42 = vadd.f32 %v4353_v35, %v3942_v61  ;;  %6342 = vmatmul.msk.bf16.gmra.mxu0 %vm486_vm1, %v6569_v18  ;;  %6389 = vmatmul.msk.bf16.gmra.mxu1 %vm486_vm1, %v6569_v18  ;;  %v3762_v50 = vrot.slane %v8053_v9, 1  ;;  %v6571_v9 = vld [vmem:[%s6769_s28 + $0x234] sm:$0xff] }
 0x46c   : > { %v5516_v54 = vpack.c.bf16 %v5441_v28, %v5441_v28  ;;  %6436 = vmatmul.msk.bf16.gmra.mxu2 %vm486_vm1, %v6569_v18  ;;  %6483 = vmatmul.msk.bf16.gmra.mxu3 %vm486_vm1, %v6569_v18 }
 0x46d   : > { %v5138_v22 = vadd.f32 %v4951_v20, %v4540_v42  ;;  %v3763_v20 = vsel %vm1187_vm2, %v3760_v49, %v3762_v50 }
 0x46e   : > { %5592 = vst.msk [vmem:[%s7492_s23 + $0x90] sm:$0xf] %vm5555_vm5, %v5516_v54 }
 0x46f   : > { %v5217_v27 = vadd.f32 %v7848_v62, %v5138_v22  ;;  %v4107_v17 = vpop.f32.mrf.mxu2  ;;  %v4705_v12 = vpop.f32.mrf.mxu3  ;;  %v8652_v22 = vld [vmem:[#allocation7_spill] sm:$0xff] }
 0x470   : > { %v4354_v26 = vrot.slane %v4107_v17, 1  ;;  %v4952_v34 = vrot.slane %v4705_v12, 2  ;;  %v8068_v24 = vpop.f32.mrf.mxu0  ;;  %v8070_v13 = vpop.f32.mrf.mxu1  ;;  %v3348_v32 = vadd.f32 %v8037_v6, %v8652_v22 }
 0x471   : > { %vm5292_vm6 = vcmp.ge.f32.partialorder %v5217_v27, 0.0  ;;  %v5367_v40 = vmul.f32 0.2, %v5217_v27  ;;  %v3764_v14 = vrot.slane %v8070_v13, 1  ;;  %v8653_v13 = vld [vmem:[#allocation8_spill] sm:$0xff] }
 0x472   : > { %v4355_v4 = vsel %vm1187_vm2, %v4352_v30, %v4354_v26  ;;  %v4953_v15 = vsel %vm2384_vm3, %v4950_v2, %v4952_v34  ;;  %v3945_v2 = vadd.f32 %v3761_v25, %v3347_v44  ;;  %v3349_v7 = vadd.f32 %v8051_v60, %v8653_v13 }
 0x473   : > { %v5442_v57 = vsel %vm5292_vm6, %v5217_v27, %v5367_v40  ;;  %v4541_v45 = vadd.f32 %v4355_v4, %v3943_v46  ;;  %v3946_v46 = vadd.f32 %v3763_v20, %v3348_v32 }
 0x474   : > { %v5517_v58 = vpack.c.bf16 %v5442_v57, %v5442_v57 }
 0x475   : > { %v5139_v55 = vadd.f32 %v4953_v15, %v4541_v45 }
 0x476   : > { %5593 = vst.msk [vmem:[%s7492_s23 + $0x94] sm:$0xf] %vm5555_vm5, %v5517_v58 }
 0x477   : > { %v5218_v56 = vadd.f32 %v7848_v62, %v5139_v55  ;;  %v4109_v48 = vpop.f32.mrf.mxu2  ;;  %v4707_v11 = vpop.f32.mrf.mxu3  ;;  %v3765_v55 = vsel %vm1187_vm2, %v3762_v50, %v3764_v14 }
 0x478   : > { %v4356_v47 = vrot.slane %v4109_v48, 1  ;;  %v4954_v52 = vrot.slane %v4707_v11, 2  ;;  %v8082_v53 = vpop.f32.mrf.mxu0  ;;  %v8084_v33 = vpop.f32.mrf.mxu1 }
 0x479   : > { %vm5293_vm7 = vcmp.ge.f32.partialorder %v5218_v56, 0.0  ;;  %v5368_v19 = vmul.f32 0.2, %v5218_v56 }
 0x47a   : > { %v4357_v29 = vsel %vm1187_vm2, %v4354_v26, %v4356_v47  ;;  %v4955_v43 = vsel %vm2384_vm3, %v4952_v34, %v4954_v52 }
 0x47b   : > { %v5443_v5 = vsel %vm5293_vm7, %v5218_v56, %v5368_v19  ;;  %v4542_v41 = vadd.f32 %v4357_v29, %v3944_v8  ;;  %6343 = vmatmul.msk.bf16.gmra.mxu0 %vm486_vm1, %v6570_v10  ;;  %6390 = vmatmul.msk.bf16.gmra.mxu1 %vm486_vm1, %v6570_v10  ;;  %v3766_v19 = vrot.slane %v8084_v33, 1  ;;  %v6572_v33 = vld [vmem:[%s6769_s28 + $0x23c] sm:$0xff] }
 0x47c   : > { %v5518_v23 = vpack.c.bf16 %v5443_v5, %v5443_v5  ;;  %6437 = vmatmul.msk.bf16.gmra.mxu2 %vm486_vm1, %v6570_v10  ;;  %6484 = vmatmul.msk.bf16.gmra.mxu3 %vm486_vm1, %v6570_v10 }
 0x47d   : > { %v5140_v39 = vadd.f32 %v4955_v43, %v4542_v41  ;;  %v3767_v43 = vsel %vm1187_vm2, %v3764_v14, %v3766_v19 }
 0x47e   : > { %5594 = vst.msk [vmem:[%s7492_s23 + $0x98] sm:$0xf] %vm5555_vm5, %v5518_v23 }
 0x47f   : > { %v5219_v37 = vadd.f32 %v7848_v62, %v5140_v39  ;;  %v4112_v63 = vpop.f32.mrf.mxu2  ;;  %v4710_v0 = vpop.f32.mrf.mxu3  ;;  %v8654_v39 = vld [vmem:[#allocation9_spill] sm:$0xff] }
 0x480   : > { %v4358_v51 = vrot.slane %v4112_v63, 1  ;;  %v4956_v21 = vrot.slane %v4710_v0, 2  ;;  %v8099_v18 = vpop.f32.mrf.mxu0  ;;  %v8101_v30 = vpop.f32.mrf.mxu1  ;;  %v3350_v25 = vadd.f32 %v8068_v24, %v8654_v39 }
 0x481   : > { %vm5294_vm8 = vcmp.ge.f32.partialorder %v5219_v37, 0.0  ;;  %v5369_v61 = vmul.f32 0.2, %v5219_v37  ;;  %v3768_v50 = vrot.slane %v8101_v30, 1  ;;  %v8655_v30 = vld [vmem:[#allocation10_spill] sm:$0xff] }
 0x482   : > { %v4359_v31 = vsel %vm1187_vm2, %v4356_v47, %v4358_v51  ;;  %v4957_v42 = vsel %vm2384_vm3, %v4954_v52, %v4956_v21  ;;  %v3947_v52 = vadd.f32 %v3765_v55, %v3349_v7  ;;  %v3351_v20 = vadd.f32 %v8082_v53, %v8655_v30 }
 0x483   : > { %v5444_v36 = vsel %vm5294_vm8, %v5219_v37, %v5369_v61  ;;  %v4543_v35 = vadd.f32 %v4359_v31, %v3945_v2  ;;  %v3948_v2 = vadd.f32 %v3767_v43, %v3350_v25 }
 0x484   : > { %v5519_v28 = vpack.c.bf16 %v5444_v36, %v5444_v36 }
 0x485   : > { %v5141_v54 = vadd.f32 %v4957_v42, %v4543_v35 }
 0x486   : > { %5595 = vst.msk [vmem:[%s7492_s23 + $0x9c] sm:$0xf] %vm5555_vm5, %v5519_v28 }
 0x487   : > { %v5220_v16 = vadd.f32 %v7848_v62, %v5141_v54  ;;  %v4114_v38 = vpop.f32.mrf.mxu2  ;;  %v4712_v27 = vpop.f32.mrf.mxu3  ;;  %v3769_v54 = vsel %vm1187_vm2, %v3766_v19, %v3768_v50 }
 0x488   : > { %v4360_v17 = vrot.slane %v4114_v38, 1  ;;  %v4958_v12 = vrot.slane %v4712_v27, 2  ;;  %v8113_v26 = vpop.f32.mrf.mxu0  ;;  %v8115_v34 = vpop.f32.mrf.mxu1 }
 0x489   : > { %vm5295_vm9 = vcmp.ge.f32.partialorder %v5220_v16, 0.0  ;;  %v5370_v40 = vmul.f32 0.2, %v5220_v16 }
 0x48a   : > { %v4361_v4 = vsel %vm1187_vm2, %v4358_v51, %v4360_v17  ;;  %v4959_v58 = vsel %vm2384_vm3, %v4956_v21, %v4958_v12 }
 0x48b   : > { %v5445_v6 = vsel %vm5295_vm9, %v5220_v16, %v5370_v40  ;;  %v4544_v57 = vadd.f32 %v4361_v4, %v3946_v46  ;;  %6344 = vmatmul.msk.bf16.gmra.mxu0 %vm486_vm1, %v6571_v9  ;;  %6391 = vmatmul.msk.bf16.gmra.mxu1 %vm486_vm1, %v6571_v9  ;;  %v3770_v40 = vrot.slane %v8115_v34, 1  ;;  %v6573_v34 = vld [vmem:[%s6769_s28 + $0x244] sm:$0xff] }
 0x48c   : > { %v5520_v45 = vpack.c.bf16 %v5445_v6, %v5445_v6  ;;  %6438 = vmatmul.msk.bf16.gmra.mxu2 %vm486_vm1, %v6571_v9  ;;  %6485 = vmatmul.msk.bf16.gmra.mxu3 %vm486_vm1, %v6571_v9 }
 0x48d   : > { %v5142_v15 = vadd.f32 %v4959_v58, %v4544_v57  ;;  %v3771_v58 = vsel %vm1187_vm2, %v3768_v50, %v3770_v40 }
 0x48e   : > { %5596 = vst.msk [vmem:[%s7492_s23 + $0xa0] sm:$0xf] %vm5555_vm5, %v5520_v45 }
 0x48f   : > { %v5221_v1 = vadd.f32 %v7848_v62, %v5142_v15  ;;  %v4117_v59 = vpop.f32.mrf.mxu2  ;;  %v4715_v56 = vpop.f32.mrf.mxu3  ;;  %v8656_v15 = vld [vmem:[#allocation11_spill] sm:$0xff] }
 0x490   : > { %v4362_v48 = vrot.slane %v4117_v59, 1  ;;  %v4960_v11 = vrot.slane %v4715_v56, 2  ;;  %v8130_v10 = vpop.f32.mrf.mxu0  ;;  %v8132_v47 = vpop.f32.mrf.mxu1  ;;  %v3352_v55 = vadd.f32 %v8099_v18, %v8656_v15 }
 0x491   : > { %vm5296_vm10 = vcmp.ge.f32.partialorder %v5221_v1, 0.0  ;;  %v5371_v8 = vmul.f32 0.2, %v5221_v1  ;;  %v3772_v19 = vrot.slane %v8132_v47, 1  ;;  %v8657_v47 = vld [vmem:[#allocation12_spill] sm:$0xff] }
 0x492   : > { %v4363_v49 = vsel %vm1187_vm2, %v4360_v17, %v4362_v48  ;;  %v4961_v41 = vsel %vm2384_vm3, %v4958_v12, %v4960_v11  ;;  %v3949_v12 = vadd.f32 %v3769_v54, %v3351_v20  ;;  %v3353_v43 = vadd.f32 %v8113_v26, %v8657_v47  ;;  %v8207_v54 = vld [vmem:[%s8606_s2] ss:$0 sm:$0xff] }
 0x493   : > { %v5446_v60 = vsel %vm5296_vm10, %v5221_v1, %v5371_v8  ;;  %v4545_v29 = vadd.f32 %v4363_v49, %v3947_v52  ;;  %v3950_v52 = vadd.f32 %v3771_v58, %v3352_v55 }
 0x494   : > { %v5521_v5 = vpack.c.bf16 %v5446_v60, %v5446_v60 }
 0x495   : > { %v5143_v23 = vadd.f32 %v4961_v41, %v4545_v29 }
 0x496   : > { %5597 = vst.msk [vmem:[%s7492_s23 + $0xa4] sm:$0xf] %vm5555_vm5, %v5521_v5 }
 0x497   : > { %v5222_v3 = vadd.f32 %v7848_v62, %v5143_v23  ;;  %v4119_v44 = vpop.f32.mrf.mxu2  ;;  %v4717_v37 = vpop.f32.mrf.mxu3  ;;  %v3773_v23 = vsel %vm1187_vm2, %v3770_v40, %v3772_v19 }
 0x498   : > { %v4364_v63 = vrot.slane %v4119_v44, 1  ;;  %v4962_v0 = vrot.slane %v4717_v37, 2  ;;  %v8144_v51 = vpop.f32.mrf.mxu0  ;;  %v8146_v21 = vpop.f32.mrf.mxu1 }
 0x499   : > { %vm5297_vm11 = vcmp.ge.f32.partialorder %v5222_v3, 0.0  ;;  %v5372_v61 = vmul.f32 0.2, %v5222_v3 }
 0x49a   : > { %v4365_v31 = vsel %vm1187_vm2, %v4362_v48, %v4364_v63  ;;  %v4963_v28 = vsel %vm2384_vm3, %v4960_v11, %v4962_v0 }
 0x49b   : > { %v5447_v24 = vsel %vm5297_vm11, %v5222_v3, %v5372_v61  ;;  %v4546_v36 = vadd.f32 %v4365_v31, %v3948_v2  ;;  %6345 = vmatmul.msk.bf16.gmra.mxu0 %vm486_vm1, %v6572_v33  ;;  %6392 = vmatmul.msk.bf16.gmra.mxu1 %vm486_vm1, %v6572_v33  ;;  %v3774_v61 = vrot.slane %v8146_v21, 1 }
 0x49c   : > { %v5522_v35 = vpack.c.bf16 %v5447_v24, %v5447_v24  ;;  %6439 = vmatmul.msk.bf16.gmra.mxu2 %vm486_vm1, %v6572_v33  ;;  %6486 = vmatmul.msk.bf16.gmra.mxu3 %vm486_vm1, %v6572_v33 }
 0x49d   : > { %v5144_v42 = vadd.f32 %v4963_v28, %v4546_v36  ;;  %v8658_v28 = vld [vmem:[#allocation13_spill] sm:$0xff] }
 0x49e   : > { %5598 = vst.msk [vmem:[%s7492_s23 + $0xa8] sm:$0xf] %vm5555_vm5, %v5522_v35  ;;  %v3775_v35 = vsel %vm1187_vm2, %v3772_v19, %v3774_v61 }
 0x49f   : > { %v5223_v22 = vadd.f32 %v7848_v62, %v5144_v42  ;;  %v4122_v32 = vpop.f32.mrf.mxu2  ;;  %v4720_v16 = vpop.f32.mrf.mxu3  ;;  %v3354_v42 = vadd.f32 %v8130_v10, %v8658_v28 }
 0x4a0   : > { %v4366_v38 = vrot.slane %v4122_v32, 1  ;;  %v4964_v27 = vrot.slane %v4720_v16, 2  ;;  %v8161_v9 = vpop.f32.mrf.mxu0  ;;  %v8163_v17 = vpop.f32.mrf.mxu1 }
 0x4a1   : > { %vm5298_vm12 = vcmp.ge.f32.partialorder %v5223_v22, 0.0  ;;  %v5373_v46 = vmul.f32 0.2, %v5223_v22 }
 0x4a2   : > { %v4367_v14 = vsel %vm1187_vm2, %v4364_v63, %v4366_v38  ;;  %v4965_v57 = vsel %vm2384_vm3, %v4962_v0, %v4964_v27  ;;  %v3951_v0 = vadd.f32 %v3773_v23, %v3353_v43 }
 0x4a3   : > { %v5448_v53 = vsel %vm5298_vm12, %v5223_v22, %v5373_v46  ;;  %v4547_v4 = vadd.f32 %v4367_v14, %v3949_v12  ;;  %v6574_v22 = vld [vmem:[%s6769_s28 + $0x24c] sm:$0xff]  ;;  %v3952_v12 = vadd.f32 %v3775_v35, %v3354_v42  ;;  %v3776_v46 = vrot.slane %v8163_v17, 1  ;;  %v8659_v17 = vld [vmem:[#allocation14_spill] sm:$0xff] }
 0x4a4   : > { %v5523_v6 = vpack.c.bf16 %v5448_v53, %v5448_v53  ;;  %v3355_v58 = vadd.f32 %v8144_v51, %v8659_v17 }
 0x4a5   : > { %v5145_v45 = vadd.f32 %v4965_v57, %v4547_v4 }
 0x4a6   : > { %5599 = vst.msk [vmem:[%s7492_s23 + $0xac] sm:$0xf] %vm5555_vm5, %v5523_v6 }
 0x4a7   : > { %v5224_v13 = vadd.f32 %v7848_v62, %v5145_v45  ;;  %v4124_v7 = vpop.f32.mrf.mxu2  ;;  %v4722_v1 = vpop.f32.mrf.mxu3  ;;  %v3777_v45 = vsel %vm1187_vm2, %v3774_v61, %v3776_v46 }
 0x4a8   : > { %v4368_v59 = vrot.slane %v4124_v7, 1  ;;  %v4966_v56 = vrot.slane %v4722_v1, 2  ;;  %v8175_v48 = vpop.f32.mrf.mxu0  ;;  %v8177_v11 = vpop.f32.mrf.mxu1 }
 0x4a9   : > { %vm5299_vm13 = vcmp.ge.f32.partialorder %v5224_v13, 0.0  ;;  %v5374_v8 = vmul.f32 0.2, %v5224_v13 }
 0x4aa   : > { %v4369_v49 = vsel %vm1187_vm2, %v4366_v38, %v4368_v59  ;;  %v4967_v5 = vsel %vm2384_vm3, %v4964_v27, %v4966_v56 }
 0x4ab   : > { %v5449_v18 = vsel %vm5299_vm13, %v5224_v13, %v5374_v8  ;;  %v4548_v60 = vadd.f32 %v4369_v49, %v3950_v52  ;;  %6346 = vmatmul.msk.bf16.gmra.mxu0 %vm486_vm1, %v6573_v34  ;;  %6393 = vmatmul.msk.bf16.gmra.mxu1 %vm486_vm1, %v6573_v34  ;;  %v3778_v8 = vrot.slane %v8177_v11, 1  ;;  %v6575_v11 = vld [vmem:[%s6769_s28 + $0x254] sm:$0xff] }
 0x4ac   : > { %v5524_v29 = vpack.c.bf16 %v5449_v18, %v5449_v18  ;;  %6440 = vmatmul.msk.bf16.gmra.mxu2 %vm486_vm1, %v6573_v34  ;;  %6487 = vmatmul.msk.bf16.gmra.mxu3 %vm486_vm1, %v6573_v34 }
 0x4ad   : > { %v5146_v41 = vadd.f32 %v4967_v5, %v4548_v60  ;;  %v3779_v5 = vsel %vm1187_vm2, %v3776_v46, %v3778_v8 }
 0x4ae   : > { %5600 = vst.msk [vmem:[%s7492_s23 + $0xb0] sm:$0xf] %vm5555_vm5, %v5524_v29 }
 0x4af   : > { %v5225_v39 = vadd.f32 %v7848_v62, %v5146_v41  ;;  %v4127_v25 = vpop.f32.mrf.mxu2  ;;  %v4725_v3 = vpop.f32.mrf.mxu3  ;;  %v8660_v41 = vld [vmem:[#allocation15_spill] sm:$0xff] }
 0x4b0   : > { %v4370_v44 = vrot.slane %v4127_v25, 1  ;;  %v4968_v37 = vrot.slane %v4725_v3, 2  ;;  %v8192_v33 = vpop.f32.mrf.mxu0  ;;  %v8194_v63 = vpop.f32.mrf.mxu1  ;;  %v3356_v23 = vadd.f32 %v8161_v9, %v8660_v41 }
 0x4b1   : > { %vm5300_vm14 = vcmp.ge.f32.partialorder %v5225_v39, 0.0  ;;  %v5375_v2 = vmul.f32 0.2, %v5225_v39  ;;  %v3780_v61 = vrot.slane %v8194_v63, 1  ;;  %v8661_v63 = vld [vmem:[#allocation16_spill] sm:$0xff] }
 0x4b2   : > { %v4371_v50 = vsel %vm1187_vm2, %v4368_v59, %v4370_v44  ;;  %v4969_v24 = vsel %vm2384_vm3, %v4966_v56, %v4968_v37  ;;  %v3953_v56 = vadd.f32 %v3777_v45, %v3355_v58  ;;  %v3357_v35 = vadd.f32 %v8175_v48, %v8661_v63 }
 0x4b3   : > { %v5450_v26 = vsel %vm5300_vm14, %v5225_v39, %v5375_v2  ;;  %v4549_v31 = vadd.f32 %v4371_v50, %v3951_v0  ;;  %v3954_v0 = vadd.f32 %v3779_v5, %v3356_v23 }
 0x4b4   : > { %v5525_v62 = vpack.c.bf16 %v5450_v26, %v5450_v26 }
 0x4b5   : > { %v5147_v36 = vadd.f32 %v4969_v24, %v4549_v31 }
 0x4b6   : > { %5601 = vst.msk [vmem:[%s7492_s23 + $0xb4] sm:$0xf] %vm5555_vm5, %v5525_v62 }
 0x4b7   : > { %v5226_v21 = vadd.f32 %v8207_v54, %v5147_v36  ;;  %v4129_v30 = vpop.f32.mrf.mxu2  ;;  %v4727_v20 = vpop.f32.mrf.mxu3  ;;  %v3781_v36 = vsel %vm1187_vm2, %v3778_v8, %v3780_v61 }
 0x4b8   : > { %v4372_v32 = vrot.slane %v4129_v30, 1  ;;  %v4970_v16 = vrot.slane %v4727_v20, 2  ;;  %v8211_v38 = vpop.f32.mrf.mxu0  ;;  %v8213_v27 = vpop.f32.mrf.mxu1 }
 0x4b9   : > { %vm5301_vm15 = vcmp.ge.f32.partialorder %v5226_v21, 0.0  ;;  %v5376_v10 = vmul.f32 0.2, %v5226_v21 }
 0x4ba   : > { %v4373_v40 = vsel %vm1187_vm2, %v4370_v44, %v4372_v32  ;;  %v4971_v6 = vsel %vm2384_vm3, %v4968_v37, %v4970_v16 }
 0x4bb   : > { %v5451_v14 = vsel %vm5301_vm15, %v5226_v21, %v5376_v10  ;;  %v4550_v53 = vadd.f32 %v4373_v40, %v3952_v12  ;;  %6347 = vmatmul.msk.bf16.gmra.mxu0 %vm486_vm1, %v6574_v22  ;;  %6394 = vmatmul.msk.bf16.gmra.mxu1 %vm486_vm1, %v6574_v22  ;;  %v3782_v10 = vrot.slane %v8213_v27, 1  ;;  %v6576_v27 = vld [vmem:[%s6769_s28 + $0x25c] sm:$0xff] }
 0x4bc   : > { %v5526_v4 = vpack.c.bf16 %v5451_v14, %v5451_v14  ;;  %6441 = vmatmul.msk.bf16.gmra.mxu2 %vm486_vm1, %v6574_v22  ;;  %6488 = vmatmul.msk.bf16.gmra.mxu3 %vm486_vm1, %v6574_v22 }
 0x4bd   : > { %v5148_v57 = vadd.f32 %v4971_v6, %v4550_v53  ;;  %v3783_v6 = vsel %vm1187_vm2, %v3780_v61, %v3782_v10 }
 0x4be   : > { %5602 = vst.msk [vmem:[%s7492_s23 + $0xb8] sm:$0xf] %vm5555_vm5, %v5526_v4 }
 0x4bf   : > { %v5227_v15 = vadd.f32 %v8207_v54, %v5148_v57  ;;  %v4132_v55 = vpop.f32.mrf.mxu2  ;;  %v4730_v13 = vpop.f32.mrf.mxu3  ;;  %v8662_v57 = vld [vmem:[#allocation17_spill] sm:$0xff] }
 0x4c0   : > { %v4374_v7 = vrot.slane %v4132_v55, 1  ;;  %v4972_v1 = vrot.slane %v4730_v13, 2  ;;  %v8228_v34 = vpop.f32.mrf.mxu0  ;;  %v8230_v59 = vpop.f32.mrf.mxu1  ;;  %v3358_v45 = vadd.f32 %v8192_v33, %v8662_v57 }
 0x4c1   : > { %vm5302_vm0 = vcmp.ge.f32.partialorder %v5227_v15, 0.0  ;;  %v5377_v52 = vmul.f32 0.2, %v5227_v15  ;;  %v3784_v8 = vrot.slane %v8230_v59, 1  ;;  %v8663_v59 = vld [vmem:[#allocation18_spill] sm:$0xff] }
 0x4c2   : > { %v4375_v19 = vsel %vm1187_vm2, %v4372_v32, %v4374_v7  ;;  %v4973_v60 = vsel %vm2384_vm3, %v4970_v16, %v4972_v1  ;;  %v3955_v16 = vadd.f32 %v3781_v36, %v3357_v35  ;;  %v3359_v5 = vadd.f32 %v8211_v38, %v8663_v59 }
 0x4c3   : > { %v5452_v51 = vsel %vm5302_vm0, %v5227_v15, %v5377_v52  ;;  %v4551_v49 = vadd.f32 %v4375_v19, %v3953_v56  ;;  %v3956_v56 = vadd.f32 %v3783_v6, %v3358_v45 }
 0x4c4   : > { %v5527_v18 = vpack.c.bf16 %v5452_v51, %v5452_v51 }
 0x4c5   : > { %v5149_v29 = vadd.f32 %v4973_v60, %v4551_v49 }
 0x4c6   : > { %5603 = vst.msk [vmem:[%s7492_s23 + $0xbc] sm:$0xf] %vm5555_vm5, %v5527_v18 }
 0x4c7   : > { %v5228_v47 = vadd.f32 %v8207_v54, %v5149_v29  ;;  %v4134_v43 = vpop.f32.mrf.mxu2  ;;  %v4732_v39 = vpop.f32.mrf.mxu3  ;;  %v3785_v29 = vsel %vm1187_vm2, %v3782_v10, %v3784_v8 }
 0x4c8   : > { %v4376_v25 = vrot.slane %v4134_v43, 1  ;;  %v4974_v3 = vrot.slane %v4732_v39, 2  ;;  %v8242_v44 = vpop.f32.mrf.mxu0  ;;  %v8244_v37 = vpop.f32.mrf.mxu1 }
 0x4c9   : > { %vm5303_vm4 = vcmp.ge.f32.partialorder %v5228_v47, 0.0  ;;  %v5378_v2 = vmul.f32 0.2, %v5228_v47 }
 0x4ca   : > { %v4377_v50 = vsel %vm1187_vm2, %v4374_v7, %v4376_v25  ;;  %v4975_v62 = vsel %vm2384_vm3, %v4972_v1, %v4974_v3 }
 0x4cb   : > { %v5453_v9 = vsel %vm5303_vm4, %v5228_v47, %v5378_v2  ;;  %v4552_v26 = vadd.f32 %v4377_v50, %v3954_v0  ;;  %6348 = vmatmul.msk.bf16.gmra.mxu0 %vm486_vm1, %v6575_v11  ;;  %6395 = vmatmul.msk.bf16.gmra.mxu1 %vm486_vm1, %v6575_v11  ;;  %v3786_v2 = vrot.slane %v8244_v37, 1  ;;  %v6577_v37 = vld [vmem:[%s6769_s28 + $0x264] sm:$0xff] }
 0x4cc   : > { %v5528_v31 = vpack.c.bf16 %v5453_v9, %v5453_v9  ;;  %6442 = vmatmul.msk.bf16.gmra.mxu2 %vm486_vm1, %v6575_v11  ;;  %6489 = vmatmul.msk.bf16.gmra.mxu3 %vm486_vm1, %v6575_v11 }
 0x4cd   : > { %v5150_v24 = vadd.f32 %v4975_v62, %v4552_v26  ;;  %v3787_v62 = vsel %vm1187_vm2, %v3784_v8, %v3786_v2 }
 0x4ce   : > { %5604 = vst.msk [vmem:[%s7492_s23 + $0xc0] sm:$0xf] %vm5555_vm5, %v5528_v31 }
 0x4cf   : > { %v5229_v28 = vadd.f32 %v8207_v54, %v5150_v24  ;;  %v4137_v42 = vpop.f32.mrf.mxu2  ;;  %v4735_v21 = vpop.f32.mrf.mxu3  ;;  %v8664_v24 = vld [vmem:[#allocation19_spill] sm:$0xff] }
 0x4d0   : > { %v4378_v30 = vrot.slane %v4137_v42, 1  ;;  %v4976_v20 = vrot.slane %v4735_v21, 2  ;;  %v8259_v22 = vpop.f32.mrf.mxu0  ;;  %v8261_v32 = vpop.f32.mrf.mxu1  ;;  %v3360_v36 = vadd.f32 %v8228_v34, %v8664_v24 }
 0x4d1   : > { %vm5304_vm6 = vcmp.ge.f32.partialorder %v5229_v28, 0.0  ;;  %v5379_v12 = vmul.f32 0.2, %v5229_v28  ;;  %v3788_v10 = vrot.slane %v8261_v32, 1  ;;  %v8665_v32 = vld [vmem:[#allocation20_spill] sm:$0xff] }
 0x4d2   : > { %v4379_v46 = vsel %vm1187_vm2, %v4376_v25, %v4378_v30  ;;  %v4977_v53 = vsel %vm2384_vm3, %v4974_v3, %v4976_v20  ;;  %v3957_v3 = vadd.f32 %v3785_v29, %v3359_v5  ;;  %v3361_v6 = vadd.f32 %v8242_v44, %v8665_v32  ;;  %v8668_v32 = vld [vmem:[#allocation23_spill] sm:$0xff] }
 0x4d3   : > { %v5454_v48 = vsel %vm5304_vm6, %v5229_v28, %v5379_v12  ;;  %v4553_v40 = vadd.f32 %v4379_v46, %v3955_v16  ;;  %v3958_v16 = vadd.f32 %v3787_v62, %v3360_v36 }
 0x4d4   : > { %v5529_v14 = vpack.c.bf16 %v5454_v48, %v5454_v48 }
 0x4d5   : > { %v5151_v4 = vadd.f32 %v4977_v53, %v4553_v40 }
 0x4d6   : > { %5605 = vst.msk [vmem:[%s7492_s23 + $0xc4] sm:$0xf] %vm5555_vm5, %v5529_v14 }
 0x4d7   : > { %v5230_v17 = vadd.f32 %v8207_v54, %v5151_v4  ;;  %v4139_v58 = vpop.f32.mrf.mxu2  ;;  %v4737_v15 = vpop.f32.mrf.mxu3  ;;  %v3789_v4 = vsel %vm1187_vm2, %v3786_v2, %v3788_v10 }
 0x4d8   : > { %v4380_v55 = vrot.slane %v4139_v58, 1  ;;  %v4978_v13 = vrot.slane %v4737_v15, 2  ;;  %v8273_v7 = vpop.f32.mrf.mxu0  ;;  %v8275_v1 = vpop.f32.mrf.mxu1 }
 0x4d9   : > { %vm5305_vm7 = vcmp.ge.f32.partialorder %v5230_v17, 0.0  ;;  %v5380_v52 = vmul.f32 0.2, %v5230_v17 }
 0x4da   : > { %v4381_v19 = vsel %vm1187_vm2, %v4378_v30, %v4380_v55  ;;  %v4979_v18 = vsel %vm2384_vm3, %v4976_v20, %v4978_v13 }
 0x4db   : > { %v5455_v33 = vsel %vm5305_vm7, %v5230_v17, %v5380_v52  ;;  %v4554_v51 = vadd.f32 %v4381_v19, %v3956_v56  ;;  %6349 = vmatmul.msk.bf16.gmra.mxu0 %vm486_vm1, %v6576_v27  ;;  %6396 = vmatmul.msk.bf16.gmra.mxu1 %vm486_vm1, %v6576_v27  ;;  %v3790_v52 = vrot.slane %v8275_v1, 1 }
 0x4dc   : > { %v5530_v49 = vpack.c.bf16 %v5455_v33, %v5455_v33  ;;  %6443 = vmatmul.msk.bf16.gmra.mxu2 %vm486_vm1, %v6576_v27  ;;  %6490 = vmatmul.msk.bf16.gmra.mxu3 %vm486_vm1, %v6576_v27 }
 0x4dd   : > { %v5152_v60 = vadd.f32 %v4979_v18, %v4554_v51  ;;  %v3791_v18 = vsel %vm1187_vm2, %v3788_v10, %v3790_v52 }
 0x4de   : > { %5606 = vst.msk [vmem:[%s7492_s23 + $0xc8] sm:$0xf] %vm5555_vm5, %v5530_v49 }
 0x4df   : > { %v5231_v41 = vadd.f32 %v8207_v54, %v5152_v60  ;;  %v4142_v23 = vpop.f32.mrf.mxu2  ;;  %v4740_v47 = vpop.f32.mrf.mxu3  ;;  %v8666_v60 = vld [vmem:[#allocation21_spill] sm:$0xff] }
 0x4e0   : > { %v4382_v43 = vrot.slane %v4142_v23, 1  ;;  %v4980_v39 = vrot.slane %v4740_v47, 2  ;;  %v8290_v11 = vpop.f32.mrf.mxu0  ;;  %v8292_v25 = vpop.f32.mrf.mxu1  ;;  %v3362_v29 = vadd.f32 %v8259_v22, %v8666_v60 }
 0x4e1   : > { %vm5306_vm8 = vcmp.ge.f32.partialorder %v5231_v41, 0.0  ;;  %v5381_v0 = vmul.f32 0.2, %v5231_v41  ;;  %v3792_v2 = vrot.slane %v8292_v25, 1  ;;  %v8667_v25 = vld [vmem:[#allocation22_spill] sm:$0xff] }
 0x4e2   : > { %v4383_v61 = vsel %vm1187_vm2, %v4380_v55, %v4382_v43  ;;  %v4981_v26 = vsel %vm2384_vm3, %v4978_v13, %v4980_v39  ;;  %v3959_v13 = vadd.f32 %v3789_v4, %v3361_v6  ;;  %v3363_v62 = vadd.f32 %v8273_v7, %v8667_v25  ;;  %v8670_v25 = vld [vmem:[#allocation25_spill] sm:$0xff] }
 0x4e3   : > { %v5456_v38 = vsel %vm5306_vm8, %v5231_v41, %v5381_v0  ;;  %v4555_v50 = vadd.f32 %v4383_v61, %v3957_v3  ;;  %v3960_v3 = vadd.f32 %v3791_v18, %v3362_v29  ;;  %v3364_v6 = vadd.f32 %v8290_v11, %v8668_v32 }
 0x4e4   : > { %v5531_v9 = vpack.c.bf16 %v5456_v38, %v5456_v38 }
 0x4e5   : > { %v5153_v31 = vadd.f32 %v4981_v26, %v4555_v50 }
 0x4e6   : > { %5607 = vst.msk [vmem:[%s7492_s23 + $0xcc] sm:$0xf] %vm5555_vm5, %v5531_v9 }
 0x4e7   : > { %v5232_v63 = vadd.f32 %v8207_v54, %v5153_v31  ;;  %v4144_v35 = vpop.f32.mrf.mxu2  ;;  %v4742_v28 = vpop.f32.mrf.mxu3  ;;  %v3793_v31 = vsel %vm1187_vm2, %v3790_v52, %v3792_v2 }
 0x4e8   : > { %v4384_v42 = vrot.slane %v4144_v35, 1  ;;  %v4982_v21 = vrot.slane %v4742_v28, 2  ;;  %v8304_v30 = vpop.f32.mrf.mxu0  ;;  %v8306_v20 = vpop.f32.mrf.mxu1 }
 0x4e9   : > { %vm5307_vm9 = vcmp.ge.f32.partialorder %v5232_v63, 0.0  ;;  %v5382_v12 = vmul.f32 0.2, %v5232_v63  ;;  %v3794_v10 = vrot.slane %v8306_v20, 1 }
 0x4ea   : > { %v4385_v46 = vsel %vm1187_vm2, %v4382_v43, %v4384_v42  ;;  %v4983_v14 = vsel %vm2384_vm3, %v4980_v39, %v4982_v21  ;;  %v6578_v39 = vld [vmem:[%s6769_s28 + $0x26c] sm:$0xff] }
 0x4eb   : > { %v5457_v34 = vsel %vm5307_vm9, %v5232_v63, %v5382_v12  ;;  %v4556_v48 = vadd.f32 %v4385_v46, %v3958_v16  ;;  %6350 = vmatmul.msk.bf16.gmra.mxu0 %vm486_vm1, %v6577_v37  ;;  %6397 = vmatmul.msk.bf16.gmra.mxu1 %vm486_vm1, %v6577_v37  ;;  %v6149_v12 = vld [vmem:[%s6769_s28 + $0x274] sm:$0x1]  ;;  %v3795_v4 = vsel %vm1187_vm2, %v3792_v2, %v3794_v10 }
 0x4ec   : > { %v5532_v40 = vpack.c.bf16 %v5457_v34, %v5457_v34  ;;  %6444 = vmatmul.msk.bf16.gmra.mxu2 %vm486_vm1, %v6577_v37  ;;  %6491 = vmatmul.msk.bf16.gmra.mxu3 %vm486_vm1, %v6577_v37  ;;  %v3962_v52 = vadd.f32 %v3795_v4, %v3364_v6 }
 0x4ed   : > { %v5154_v53 = vadd.f32 %v4983_v14, %v4556_v48  ;;  %v2930_v14 = vunpack.c.l.b16 %v6149_v12 }
 0x4ee   : > { %5608 = vst.msk [vmem:[%s7492_s23 + $0xd0] sm:$0xf] %vm5555_vm5, %v5532_v40 }
 0x4ef   : > { %v5233_v57 = vadd.f32 %v8207_v54, %v5154_v53  ;;  %v4147_v45 = vpop.f32.mrf.mxu2  ;;  %v4745_v17 = vpop.f32.mrf.mxu3 }
 0x4f0   : > { %v4386_v58 = vrot.slane %v4147_v45, 1  ;;  %v4984_v15 = vrot.slane %v4745_v17, 2  ;;  %v8321_v27 = vpop.f32.mrf.mxu0  ;;  %v8323_v55 = vpop.f32.mrf.mxu1 }
 0x4f1   : > { %vm5308_vm10 = vcmp.ge.f32.partialorder %v5233_v57, 0.0  ;;  %v5383_v56 = vmul.f32 0.2, %v5233_v57 }
 0x4f2   : > { %v4387_v8 = vsel %vm1187_vm2, %v4384_v42, %v4386_v58  ;;  %v4985_v51 = vsel %vm2384_vm3, %v4982_v21, %v4984_v15  ;;  %v3961_v21 = vadd.f32 %v3793_v31, %v3363_v62  ;;  %v3366_v62 = vadd.f32 %v8321_v27, %v8670_v25 }
 0x4f3   : > { %v5458_v44 = vsel %vm5308_vm10, %v5233_v57, %v5383_v56  ;;  %v4557_v19 = vadd.f32 %v4387_v8, %v3959_v13  ;;  %v2970_v56 = vpack.c.b16 %v2930_v14, %v2930_v14 }
 0x4f4   : > { %v5533_v33 = vpack.c.bf16 %v5458_v44, %v5458_v44  ;;  %v3796_v44 = vrot.slane %v8323_v55, 1  ;;  %v8669_v55 = vld [vmem:[#allocation24_spill] sm:$0xff] }
 0x4f5   : > { %v5155_v49 = vadd.f32 %v4985_v51, %v4557_v19  ;;  %v3365_v29 = vadd.f32 %v8304_v30, %v8669_v55 }
 0x4f6   : > { %5609 = vst.msk [vmem:[%s7492_s23 + $0xd4] sm:$0xf] %vm5555_vm5, %v5533_v33  ;;  %v3797_v60 = vsel %vm1187_vm2, %v3794_v10, %v3796_v44 }
 0x4f7   : > { %v5234_v59 = vadd.f32 %v8207_v54, %v5155_v49  ;;  %v4149_v5 = vpop.f32.mrf.mxu2  ;;  %v4747_v1 = vpop.f32.mrf.mxu3 }
 0x4f8   : > { %v4388_v41 = vrot.slane %v4149_v5, 1  ;;  %v4986_v23 = vrot.slane %v4747_v1, 2  ;;  %v8334_v47 = vpop.f32.mrf.mxu0  ;;  %v8336_v43 = vpop.f32.mrf.mxu1 }
 0x4f9   : > { %vm5309_vm11 = vcmp.ge.f32.partialorder %v5234_v59, 0.0  ;;  %v5384_v0 = vmul.f32 0.2, %v5234_v59 }
 0x4fa   : > { %v4389_v61 = vsel %vm1187_vm2, %v4386_v58, %v4388_v41  ;;  %v4987_v9 = vsel %vm2384_vm3, %v4984_v15, %v4986_v23 }
 0x4fb   : > { %v5459_v22 = vsel %vm5309_vm11, %v5234_v59, %v5384_v0  ;;  %v4558_v38 = vadd.f32 %v4389_v61, %v3960_v3  ;;  %6351 = vmatmul.msk.bf16.gmra.mxu0 %vm486_vm1, %v6578_v39  ;;  %6398 = vmatmul.msk.bf16.gmra.mxu1 %vm486_vm1, %v6578_v39  ;;  %v3963_v0 = vadd.f32 %v3797_v60, %v3365_v29  ;;  %v3798_v61 = vrot.slane %v8336_v43, 1 }
 0x4fc   : > { %v5534_v50 = vpack.c.bf16 %v5459_v22, %v5459_v22  ;;  %6445 = vmatmul.msk.bf16.gmra.mxu2 %vm486_vm1, %v6578_v39  ;;  %6492 = vmatmul.msk.bf16.gmra.mxu3 %vm486_vm1, %v6578_v39 }
 0x4fd   : > { %v5156_v26 = vadd.f32 %v4987_v9, %v4558_v38  ;;  %v3799_v31 = vsel %vm1187_vm2, %v3796_v44, %v3798_v61 }
 0x4fe   : > { %5610 = vst.msk [vmem:[%s7492_s23 + $0xd8] sm:$0xf] %vm5555_vm5, %v5534_v50 }
 0x4ff   : > { %v5235_v24 = vadd.f32 %v8207_v54, %v5156_v26  ;;  %v4152_v36 = vpop.f32.mrf.mxu2  ;;  %v4750_v63 = vpop.f32.mrf.mxu3 }
 0x500   : > { %v4390_v35 = vrot.slane %v4152_v36, 1  ;;  %v4988_v28 = vrot.slane %v4750_v63, 2  ;;  %v8352_v37 = vpop.f32.mrf.mxu0  ;;  %v8354_v42 = vpop.f32.mrf.mxu1 }
 0x501   : > { %vm5310_vm12 = vcmp.ge.f32.partialorder %v5235_v24, 0.0  ;;  %v5385_v16 = vmul.f32 0.2, %v5235_v24  ;;  %v3800_v10 = vrot.slane %v8354_v42, 1 }
 0x502   : > { %v4391_v46 = vsel %vm1187_vm2, %v4388_v41, %v4390_v35  ;;  %v4989_v40 = vsel %vm2384_vm3, %v4986_v23, %v4988_v28 }
 0x503   : > { %v5460_v7 = vsel %vm5310_vm12, %v5235_v24, %v5385_v16  ;;  %v4559_v34 = vadd.f32 %v4391_v46, %v3961_v21  ;;  %v3964_v16 = vadd.f32 %v3799_v31, %v3366_v62  ;;  %v3801_v14 = vsel %vm1187_vm2, %v3798_v61, %v3800_v10 }
 0x504   : > { %v5535_v48 = vpack.c.bf16 %v5460_v7, %v5460_v7 }
 0x505   : > { %v5157_v53 = vadd.f32 %v4989_v40, %v4559_v34 }
 0x506   : > { %5611 = vst.msk [vmem:[%s7492_s23 + $0xdc] sm:$0xf] %vm5555_vm5, %v5535_v48 }
 0x507   : > { %v5236_v57 = vadd.f32 %v8207_v54, %v5157_v53  ;;  %v4154_v45 = vpop.f32.mrf.mxu2  ;;  %v4752_v20 = vpop.f32.mrf.mxu3  ;;  %v8671_v53 = vld [vmem:[#allocation26_spill] sm:$0xff] }
 0x508   : > { %v4392_v17 = vrot.slane %v4154_v45, 1  ;;  %v4990_v58 = vrot.slane %v4752_v20, 2  ;;  %v8366_v15 = vpop.f32.mrf.mxu0  ;;  %v8368_v13 = vpop.f32.mrf.mxu1  ;;  %v3367_v4 = vadd.f32 %v8334_v47, %v8671_v53 }
 0x509   : > { %vm5311_vm13 = vcmp.ge.f32.partialorder %v5236_v57, 0.0  ;;  %v5386_v8 = vmul.f32 0.2, %v5236_v57 }
 0x50a   : > { %v4393_v19 = vsel %vm1187_vm2, %v4390_v35, %v4392_v17  ;;  %v4991_v49 = vsel %vm2384_vm3, %v4988_v28, %v4990_v58 }
 0x50b   : > { %v5461_v11 = vsel %vm5311_vm13, %v5236_v57, %v5386_v8  ;;  %v4560_v33 = vadd.f32 %v4393_v19, %v3962_v52  ;;  %6352 = vmatmul.msk.bf16.gmra.mxu0 %vm486_vm1, %v2970_v56  ;;  %6399 = vmatmul.msk.bf16.gmra.mxu1 %vm486_vm1, %v2970_v56  ;;  %v3802_v52 = vrot.slane %v8368_v13, 1 }
 0x50c   : > { %v5536_v51 = vpack.c.bf16 %v5461_v11, %v5461_v11  ;;  %6446 = vmatmul.msk.bf16.gmra.mxu2 %vm486_vm1, %v2970_v56  ;;  %6493 = vmatmul.msk.bf16.gmra.mxu3 %vm486_vm1, %v2970_v56 }
 0x50d   : > { %v5158_v18 = vadd.f32 %v4991_v49, %v4560_v33  ;;  %v8672_v49 = vld [vmem:[#allocation27_spill] sm:$0xff] }
 0x50e   : > { %5612 = vst.msk [vmem:[%s7492_s23 + $0xe0] sm:$0xf] %vm5555_vm5, %v5536_v51  ;;  %v3803_v51 = vsel %vm1187_vm2, %v3800_v10, %v3802_v52 }
 0x50f   : > { %v5237_v59 = vadd.f32 %v8207_v54, %v5158_v18  ;;  %v4157_v5 = vpop.f32.mrf.mxu2  ;;  %v4755_v1 = vpop.f32.mrf.mxu3  ;;  %v3368_v18 = vadd.f32 %v8352_v37, %v8672_v49 }
 0x510   : > { %v4394_v41 = vrot.slane %v4157_v5, 1  ;;  %v4992_v23 = vrot.slane %v4755_v1, 2  ;;  %v8383_v39 = vpop.f32.mrf.mxu0  ;;  %v8385_v3 = vpop.f32.mrf.mxu1 }
 0x511   : > { %vm5312_vm1 = vcmp.ge.f32.partialorder %v5237_v59, 0.0  ;;  %v5387_v2 = vmul.f32 0.2, %v5237_v59 }
 0x512   : > { %v4395_v22 = vsel %vm1187_vm2, %v4392_v17, %v4394_v41  ;;  %v4993_v9 = vsel %vm2384_vm3, %v4990_v58, %v4992_v23  ;;  %v3965_v58 = vadd.f32 %v3801_v14, %v3367_v4 }
 0x513   : > { %v5462_v38 = vsel %vm5312_vm1, %v5237_v59, %v5387_v2  ;;  %v4561_v30 = vadd.f32 %v4395_v22, %v3963_v0  ;;  %v3804_v0 = vrot.slane %v8385_v3, 1 }
 0x514   : > { %v5537_v50 = vpack.c.bf16 %v5462_v38, %v5462_v38 }
 0x515   : > { %v5159_v26 = vadd.f32 %v4993_v9, %v4561_v30  ;;  %v8673_v9 = vld [vmem:[#allocation28_spill] sm:$0xff] }
 0x516   : > { %5613 = vst.msk [vmem:[%s7492_s23 + $0xe4] sm:$0xf] %vm5555_vm5, %v5537_v50  ;;  %v3805_v50 = vsel %vm1187_vm2, %v3802_v52, %v3804_v0 }
 0x517   : > { %v5238_v24 = vadd.f32 %v8207_v54, %v5159_v26  ;;  %v4159_v36 = vpop.f32.mrf.mxu2  ;;  %v4757_v63 = vpop.f32.mrf.mxu3  ;;  %v3369_v26 = vadd.f32 %v8366_v15, %v8673_v9 }
 0x518   : > { %v4396_v43 = vrot.slane %v4159_v36, 1  ;;  %v4994_v35 = vrot.slane %v4757_v63, 2  ;;  %v8396_v28 = vpop.f32.mrf.mxu0  ;;  %v8398_v21 = vpop.f32.mrf.mxu1 }
 0x519   : > { %vm5313_vm14 = vcmp.ge.f32.partialorder %v5238_v24, 0.0  ;;  %v5388_v12 = vmul.f32 0.2, %v5238_v24 }
 0x51a   : > { %v4397_v46 = vsel %vm1187_vm2, %v4394_v41, %v4396_v43  ;;  %v4995_v48 = vsel %vm2384_vm3, %v4992_v23, %v4994_v35  ;;  %v3966_v41 = vadd.f32 %v3803_v51, %v3368_v18 }
 0x51b   : > { %v5463_v7 = vsel %vm5313_vm14, %v5238_v24, %v5388_v12  ;;  %v4562_v27 = vadd.f32 %v4397_v46, %v3964_v16  ;;  %v3806_v16 = vrot.slane %v8398_v21, 1 }
 0x51c   : > { %v5538_v34 = vpack.c.bf16 %v5463_v7, %v5463_v7 }
 0x51d   : > { %v5160_v40 = vadd.f32 %v4995_v48, %v4562_v27  ;;  %v8674_v48 = vld [vmem:[#allocation29_spill] sm:$0xff] }
 0x51e   : > { %5614 = vst.msk [vmem:[%s7492_s23 + $0xe8] sm:$0xf] %vm5555_vm5, %v5538_v34  ;;  %v3807_v34 = vsel %vm1187_vm2, %v3804_v0, %v3806_v16 }
 0x51f   : > { %v5239_v32 = vadd.f32 %v8207_v54, %v5160_v40  ;;  %v4162_v6 = vpop.f32.mrf.mxu2  ;;  %v4760_v57 = vpop.f32.mrf.mxu3  ;;  %v3370_v40 = vadd.f32 %v8383_v39, %v8674_v48 }
 0x520   : > { %v4398_v42 = vrot.slane %v4162_v6, 1  ;;  %v4996_v45 = vrot.slane %v4760_v57, 2  ;;  %v8409_v20 = vpop.f32.mrf.mxu0  ;;  %v8411_v17 = vpop.f32.mrf.mxu1 }
 0x521   : > { %vm5314_vm15 = vcmp.ge.f32.partialorder %v5239_v32, 0.0  ;;  %v5389_v56 = vmul.f32 0.2, %v5239_v32 }
 0x522   : > { %v4399_v8 = vsel %vm1187_vm2, %v4396_v43, %v4398_v42  ;;  %v4997_v11 = vsel %vm2384_vm3, %v4994_v35, %v4996_v45  ;;  %v3967_v43 = vadd.f32 %v3805_v50, %v3369_v26 }
 0x523   : > { %v5464_v44 = vsel %vm5314_vm15, %v5239_v32, %v5389_v56  ;;  %v4563_v47 = vadd.f32 %v4399_v8, %v3965_v58  ;;  %v3808_v58 = vrot.slane %v8411_v17, 1 }
 0x524   : > { %v5539_v19 = vpack.c.bf16 %v5464_v44, %v5464_v44 }
 0x525   : > { %v5161_v33 = vadd.f32 %v4997_v11, %v4563_v47  ;;  %v8675_v11 = vld [vmem:[#allocation30_spill] sm:$0xff] }
 0x526   : > { %5615 = vst.msk [vmem:[%s7492_s23 + $0xec] sm:$0xf] %vm5555_vm5, %v5539_v19  ;;  %v3809_v19 = vsel %vm1187_vm2, %v3806_v16, %v3808_v58 }
 0x527   : > { %v5240_v60 = vadd.f32 %v8207_v54, %v5161_v33  ;;  %v4164_v55 = vpop.f32.mrf.mxu2  ;;  %v4762_v29 = vpop.f32.mrf.mxu3  ;;  %v3371_v33 = vadd.f32 %v8396_v28, %v8675_v11 }
 0x528   : > { %v4400_v13 = vrot.slane %v4164_v55, 1  ;;  %v4998_v59 = vrot.slane %v4762_v29, 2  ;;  %v8422_v5 = vpop.f32.mrf.mxu0  ;;  %v8424_v1 = vpop.f32.mrf.mxu1 }
 0x529   : > { %vm5315_vm0 = vcmp.ge.f32.partialorder %v5240_v60, 0.0  ;;  %v5390_v23 = vmul.f32 0.2, %v5240_v60 }
 0x52a   : > { %v4401_v2 = vsel %vm1187_vm2, %v4398_v42, %v4400_v13  ;;  %v4999_v38 = vsel %vm2384_vm3, %v4996_v45, %v4998_v59  ;;  %v3968_v42 = vadd.f32 %v3807_v34, %v3370_v40 }
 0x52b   : > { %v5465_v61 = vsel %vm5315_vm0, %v5240_v60, %v5390_v23  ;;  %v4564_v37 = vadd.f32 %v4401_v2, %v3966_v41  ;;  %v3810_v41 = vrot.slane %v8424_v1, 1 }
 0x52c   : > { %v5540_v22 = vpack.c.bf16 %v5465_v61, %v5465_v61 }
 0x52d   : > { %v5162_v30 = vadd.f32 %v4999_v38, %v4564_v37  ;;  %v8676_v38 = vld [vmem:[#allocation31_spill] sm:$0xff] }
 0x52e   : > { %5616 = vst.msk [vmem:[%s7492_s23 + $0xf0] sm:$0xf] %vm5555_vm5, %v5540_v22  ;;  %v3811_v22 = vsel %vm1187_vm2, %v3808_v58, %v3810_v41 }
 0x52f   : > { %v5241_v31 = vadd.f32 %v8207_v54, %v5162_v30  ;;  %v4167_v25 = vpop.f32.mrf.mxu2  ;;  %v4765_v62 = vpop.f32.mrf.mxu3  ;;  %v3372_v30 = vadd.f32 %v8409_v20, %v8676_v38 }
 0x530   : > { %v4402_v3 = vrot.slane %v4167_v25, 1  ;;  %v5000_v24 = vrot.slane %v4765_v62, 2  ;;  %v8435_v36 = vpop.f32.mrf.mxu0  ;;  %v8437_v63 = vpop.f32.mrf.mxu1 }
 0x531   : > { %vm5316_vm4 = vcmp.ge.f32.partialorder %v5241_v31, 0.0  ;;  %v5391_v35 = vmul.f32 0.2, %v5241_v31 }
 0x532   : > { %v4403_v12 = vsel %vm1187_vm2, %v4400_v13, %v4402_v3  ;;  %v5001_v7 = vsel %vm2384_vm3, %v4998_v59, %v5000_v24  ;;  %v3969_v13 = vadd.f32 %v3809_v19, %v3371_v33 }
 0x533   : > { %v5466_v10 = vsel %vm5316_vm4, %v5241_v31, %v5391_v35  ;;  %v4565_v15 = vadd.f32 %v4403_v12, %v3967_v43  ;;  %v3812_v43 = vrot.slane %v8437_v63, 1 }
 0x534   : > { %v5541_v46 = vpack.c.bf16 %v5466_v10, %v5466_v10 }
 0x535   : > { %v5163_v27 = vadd.f32 %v5001_v7, %v4565_v15  ;;  %v8677_v7 = vld [vmem:[#allocation32_spill] sm:$0xff] }
 0x536   : > { %5617 = vst.msk [vmem:[%s7492_s23 + $0xf4] sm:$0xf] %vm5555_vm5, %v5541_v46  ;;  %v3813_v46 = vsel %vm1187_vm2, %v3810_v41, %v3812_v43 }
 0x537   : > { %v5242_v14 = vadd.f32 %v8207_v54, %v5163_v27  ;;  %v4169_v53 = vpop.f32.mrf.mxu2  ;;  %v4767_v4 = vpop.f32.mrf.mxu3  ;;  %v3373_v27 = vadd.f32 %v8422_v5, %v8677_v7 }
 0x538   : > { %v4404_v21 = vrot.slane %v4169_v53, 1  ;;  %v5002_v32 = vrot.slane %v4767_v4, 2  ;;  %v8448_v6 = vpop.f32.mrf.mxu0  ;;  %v8450_v57 = vpop.f32.mrf.mxu1 }
 0x539   : > { %vm5317_vm6 = vcmp.ge.f32.partialorder %v5242_v14, 0.0  ;;  %v5392_v45 = vmul.f32 0.2, %v5242_v14 }
 0x53a   : > { %v4405_v56 = vsel %vm1187_vm2, %v4402_v3, %v4404_v21  ;;  %v5003_v44 = vsel %vm2384_vm3, %v5000_v24, %v5002_v32  ;;  %v3970_v3 = vadd.f32 %v3811_v22, %v3372_v30 }
 0x53b   : > { %v5467_v52 = vsel %vm5317_vm6, %v5242_v14, %v5392_v45  ;;  %v4566_v39 = vadd.f32 %v4405_v56, %v3968_v42  ;;  %v3814_v42 = vrot.slane %v8450_v57, 1 }
 0x53c   : > { %v5542_v8 = vpack.c.bf16 %v5467_v52, %v5467_v52 }
 0x53d   : > { %v5164_v47 = vadd.f32 %v5003_v44, %v4566_v39  ;;  %v8678_v44 = vld [vmem:[#allocation33_spill] sm:$0xff] }
 0x53e   : > { %5618 = vst.msk [vmem:[%s7492_s23 + $0xf8] sm:$0xf] %vm5555_vm5, %v5542_v8  ;;  %v3815_v8 = vsel %vm1187_vm2, %v3812_v43, %v3814_v42 }
 0x53f   : > { %v5243_v51 = vadd.f32 %v8207_v54, %v5164_v47  ;;  %v4172_v49 = vpop.f32.mrf.mxu2  ;;  %v4770_v18 = vpop.f32.mrf.mxu3  ;;  %v3374_v47 = vadd.f32 %v8435_v36, %v8678_v44 }
 0x540   : > { %v4406_v17 = vrot.slane %v4172_v49, 1  ;;  %v5004_v60 = vrot.slane %v4770_v18, 2  ;;  %v8461_v55 = vpop.f32.mrf.mxu0  ;;  %v8463_v29 = vpop.f32.mrf.mxu1 }
 0x541   : > { %vm5318_vm7 = vcmp.ge.f32.partialorder %v5243_v51, 0.0  ;;  %v5393_v59 = vmul.f32 0.2, %v5243_v51 }
 0x542   : > { %v4407_v23 = vsel %vm1187_vm2, %v4404_v21, %v4406_v17  ;;  %v5005_v61 = vsel %vm2384_vm3, %v5002_v32, %v5004_v60  ;;  %v3971_v21 = vadd.f32 %v3813_v46, %v3373_v27 }
 0x543   : > { %v5468_v0 = vsel %vm5318_vm7, %v5243_v51, %v5393_v59  ;;  %v4567_v28 = vadd.f32 %v4407_v23, %v3969_v13  ;;  %v3816_v13 = vrot.slane %v8463_v29, 1 }
 0x544   : > { %v5543_v2 = vpack.c.bf16 %v5468_v0, %v5468_v0 }
 0x545   : > { %v5165_v37 = vadd.f32 %v5005_v61, %v4567_v28  ;;  %v8679_v61 = vld [vmem:[#allocation34_spill] sm:$0xff] }
 0x546   : > { %5619 = vst.msk [vmem:[%s7492_s23 + $0xfc] sm:$0xf] %vm5555_vm5, %v5543_v2  ;;  %v3817_v2 = vsel %vm1187_vm2, %v3814_v42, %v3816_v13 }
 0x547   : > { %v5244_v50 = vadd.f32 %v8207_v54, %v5165_v37  ;;  %v4174_v9 = vpop.f32.mrf.mxu2  ;;  %v4772_v26 = vpop.f32.mrf.mxu3  ;;  %v3375_v37 = vadd.f32 %v8448_v6, %v8679_v61 }
 0x548   : > { %v4408_v1 = vrot.slane %v4174_v9, 1  ;;  %v5006_v31 = vrot.slane %v4772_v26, 2  ;;  %v8474_v25 = vpop.f32.mrf.mxu0  ;;  %v8476_v62 = vpop.f32.mrf.mxu1 }
 0x549   : > { %vm5319_vm8 = vcmp.ge.f32.partialorder %v5244_v50, 0.0  ;;  %v5394_v24 = vmul.f32 0.2, %v5244_v50 }
 0x54a   : > { %v4409_v35 = vsel %vm1187_vm2, %v4406_v17, %v4408_v1  ;;  %v5007_v10 = vsel %vm2384_vm3, %v5004_v60, %v5006_v31  ;;  %v3972_v17 = vadd.f32 %v3815_v8, %v3374_v47 }
 0x54b   : > { %v5469_v16 = vsel %vm5319_vm8, %v5244_v50, %v5394_v24  ;;  %v4568_v20 = vadd.f32 %v4409_v35, %v3970_v3  ;;  %v3818_v3 = vrot.slane %v8476_v62, 1 }
 0x54c   : > { %v5544_v12 = vpack.c.bf16 %v5469_v16, %v5469_v16 }
 0x54d   : > { %v5166_v15 = vadd.f32 %v5007_v10, %v4568_v20  ;;  %v8680_v10 = vld [vmem:[#allocation35_spill] sm:$0xff] }
 0x54e   : > { %5620 = vst.msk [vmem:[%s7492_s23 + $0x100] sm:$0xf] %vm5555_vm5, %v5544_v12  ;;  %v3819_v12 = vsel %vm1187_vm2, %v3816_v13, %v3818_v3 }
 0x54f   : > { %v5245_v34 = vadd.f32 %v8207_v54, %v5166_v15  ;;  %v4177_v48 = vpop.f32.mrf.mxu2  ;;  %v4775_v40 = vpop.f32.mrf.mxu3  ;;  %v3376_v15 = vadd.f32 %v8461_v55, %v8680_v10 }
 0x550   : > { %v4410_v63 = vrot.slane %v4177_v48, 1  ;;  %v5008_v14 = vrot.slane %v4775_v40, 2  ;;  %v8487_v53 = vpop.f32.mrf.mxu0  ;;  %v8489_v4 = vpop.f32.mrf.mxu1 }
 0x551   : > { %vm5320_vm9 = vcmp.ge.f32.partialorder %v5245_v34, 0.0  ;;  %v5395_v32 = vmul.f32 0.2, %v5245_v34 }
 0x552   : > { %v4411_v45 = vsel %vm1187_vm2, %v4408_v1, %v4410_v63  ;;  %v5009_v52 = vsel %vm2384_vm3, %v5006_v31, %v5008_v14  ;;  %v3973_v1 = vadd.f32 %v3817_v2, %v3375_v37 }
 0x553   : > { %v5470_v58 = vsel %vm5320_vm9, %v5245_v34, %v5395_v32  ;;  %v4569_v5 = vadd.f32 %v4411_v45, %v3971_v21  ;;  %v3820_v21 = vrot.slane %v8489_v4, 1 }
 0x554   : > { %v5545_v56 = vpack.c.bf16 %v5470_v58, %v5470_v58 }
 0x555   : > { %v5167_v39 = vadd.f32 %v5009_v52, %v4569_v5  ;;  %v8681_v52 = vld [vmem:[#allocation36_spill] sm:$0xff] }
 0x556   : > { %5621 = vst.msk [vmem:[%s7492_s23 + $0x104] sm:$0xf] %vm5555_vm5, %v5545_v56  ;;  %v3821_v56 = vsel %vm1187_vm2, %v3818_v3, %v3820_v21 }
 0x557   : > { %v5246_v19 = vadd.f32 %v8207_v54, %v5167_v39  ;;  %v4179_v11 = vpop.f32.mrf.mxu2  ;;  %v4777_v33 = vpop.f32.mrf.mxu3  ;;  %v3377_v39 = vadd.f32 %v8474_v25, %v8681_v52 }
 0x558   : > { %v4412_v57 = vrot.slane %v4179_v11, 1  ;;  %v5010_v51 = vrot.slane %v4777_v33, 2  ;;  %v8500_v49 = vpop.f32.mrf.mxu0  ;;  %v8502_v18 = vpop.f32.mrf.mxu1 }
 0x559   : > { %vm5321_vm10 = vcmp.ge.f32.partialorder %v5246_v19, 0.0  ;;  %v5396_v60 = vmul.f32 0.2, %v5246_v19 }
 0x55a   : > { %v4413_v59 = vsel %vm1187_vm2, %v4410_v63, %v4412_v57  ;;  %v5011_v0 = vsel %vm2384_vm3, %v5008_v14, %v5010_v51  ;;  %v3974_v63 = vadd.f32 %v3819_v12, %v3376_v15 }
 0x55b   : > { %v5471_v41 = vsel %vm5321_vm10, %v5246_v19, %v5396_v60  ;;  %v4570_v36 = vadd.f32 %v4413_v59, %v3972_v17  ;;  %v3822_v17 = vrot.slane %v8502_v18, 1 }
 0x55c   : > { %v5546_v23 = vpack.c.bf16 %v5471_v41, %v5471_v41 }
 0x55d   : > { %v5168_v28 = vadd.f32 %v5011_v0, %v4570_v36  ;;  %v3823_v36 = vsel %vm1187_vm2, %v3820_v21, %v3822_v17 }
 0x55e   : > { %5622 = vst.msk [vmem:[%s7492_s23 + $0x108] sm:$0xf] %vm5555_vm5, %v5546_v23  ;;  %v8682_v23 = vld [vmem:[#allocation37_spill] sm:$0xff] }
 0x55f   : > { %v5247_v22 = vadd.f32 %v8207_v54, %v5168_v28  ;;  %v4182_v38 = vpop.f32.mrf.mxu2  ;;  %v4780_v30 = vpop.f32.mrf.mxu3  ;;  %v3378_v0 = vadd.f32 %v8487_v53, %v8682_v23  ;;  %v8552_v28 = vld [vmem:[%s8606_s2] ss:$0 sm:$0xff] }
 0x560   : > { %v4414_v29 = vrot.slane %v4182_v38, 1  ;;  %v5012_v50 = vrot.slane %v4780_v30, 2  ;;  %v8513_v9 = vpop.f32.mrf.mxu0  ;;  %v8515_v26 = vpop.f32.mrf.mxu1 }
 0x561   : > { %vm5322_vm11 = vcmp.ge.f32.partialorder %v5247_v22, 0.0  ;;  %v5397_v31 = vmul.f32 0.2, %v5247_v22 }
 0x562   : > { %v4415_v24 = vsel %vm1187_vm2, %v4412_v57, %v4414_v29  ;;  %v5013_v16 = vsel %vm2384_vm3, %v5010_v51, %v5012_v50  ;;  %v3975_v57 = vadd.f32 %v3821_v56, %v3377_v39 }
 0x563   : > { %v5472_v43 = vsel %vm5322_vm11, %v5247_v22, %v5397_v31  ;;  %v4571_v6 = vadd.f32 %v4415_v24, %v3973_v1  ;;  %v3824_v1 = vrot.slane %v8515_v26, 1 }
 0x564   : > { %v5547_v35 = vpack.c.bf16 %v5472_v43, %v5472_v43 }
 0x565   : > { %v5169_v20 = vadd.f32 %v5013_v16, %v4571_v6  ;;  %v8683_v16 = vld [vmem:[#allocation38_spill] sm:$0xff] }
 0x566   : > { %5623 = vst.msk [vmem:[%s7492_s23 + $0x10c] sm:$0xf] %vm5555_vm5, %v5547_v35  ;;  %v3825_v35 = vsel %vm1187_vm2, %v3822_v17, %v3824_v1 }
 0x567   : > { %v5248_v46 = vadd.f32 %v8207_v54, %v5169_v20  ;;  %v4184_v7 = vpop.f32.mrf.mxu2  ;;  %v4782_v27 = vpop.f32.mrf.mxu3  ;;  %v3379_v20 = vadd.f32 %v8500_v49, %v8683_v16 }
 0x568   : > { %v4416_v62 = vrot.slane %v4184_v7, 1  ;;  %v5014_v34 = vrot.slane %v4782_v27, 2  ;;  %v8526_v48 = vpop.f32.mrf.mxu0  ;;  %v8528_v40 = vpop.f32.mrf.mxu1 }
 0x569   : > { %vm5323_vm12 = vcmp.ge.f32.partialorder %v5248_v46, 0.0  ;;  %v5398_v14 = vmul.f32 0.2, %v5248_v46 }
 0x56a   : > { %v4417_v32 = vsel %vm1187_vm2, %v4414_v29, %v4416_v62  ;;  %v5015_v58 = vsel %vm2384_vm3, %v5012_v50, %v5014_v34  ;;  %v3976_v29 = vadd.f32 %v3823_v36, %v3378_v0 }
 0x56b   : > { %v5473_v42 = vsel %vm5323_vm12, %v5248_v46, %v5398_v14  ;;  %v4572_v55 = vadd.f32 %v4417_v32, %v3974_v63  ;;  %v3826_v63 = vrot.slane %v8528_v40, 1 }
 0x56c   : > { %v5548_v45 = vpack.c.bf16 %v5473_v42, %v5473_v42 }
 0x56d   : > { %v5170_v5 = vadd.f32 %v5015_v58, %v4572_v55  ;;  %v8684_v58 = vld [vmem:[#allocation39_spill] sm:$0xff] }
 0x56e   : > { %5624 = vst.msk [vmem:[%s7492_s23 + $0x110] sm:$0xf] %vm5555_vm5, %v5548_v45  ;;  %v3827_v45 = vsel %vm1187_vm2, %v3824_v1, %v3826_v63 }
 0x56f   : > { %v5249_v8 = vadd.f32 %v8207_v54, %v5170_v5  ;;  %v4187_v44 = vpop.f32.mrf.mxu2  ;;  %v4785_v47 = vpop.f32.mrf.mxu3  ;;  %v3380_v5 = vadd.f32 %v8513_v9, %v8684_v58 }
 0x570   : > { %v4418_v4 = vrot.slane %v4187_v44, 1  ;;  %v5016_v19 = vrot.slane %v4785_v47, 2  ;;  %v8539_v11 = vpop.f32.mrf.mxu1  ;;  %v3299_v33 = vpop.f32.mrf.mxu0 }
 0x571   : > { %vm5324_vm13 = vcmp.ge.f32.partialorder %v5249_v8, 0.0  ;;  %v5399_v51 = vmul.f32 0.2, %v5249_v8  ;;  %v3828_v33 = vrot.slane %v8539_v11, 1 }
 0x572   : > { %v4419_v60 = vsel %vm1187_vm2, %v4416_v62, %v4418_v4  ;;  %v5017_v54 = vsel %vm2384_vm3, %v5014_v34, %v5016_v19  ;;  %v3977_v62 = vadd.f32 %v3825_v35, %v3379_v20 }
 0x573   : > { %v5474_v13 = vsel %vm5324_vm13, %v5249_v8, %v5399_v51  ;;  %v4573_v59 = vadd.f32 %v4419_v60, %v3975_v57 }
 0x574   : > { %v5549_v25 = vpack.c.bf16 %v5474_v13, %v5474_v13 }
 0x575   : > { %v5171_v41 = vadd.f32 %v5017_v54, %v4573_v59  ;;  %v3829_v59 = vsel %vm1187_vm2, %v3826_v63, %v3828_v33 }
 0x576   : > { %5625 = vst.msk [vmem:[%s7492_s23 + $0x114] sm:$0xf] %vm5555_vm5, %v5549_v25  ;;  %v8685_v25 = vld [vmem:[#allocation40_spill] sm:$0xff] }
 0x577   : > { %v5250_v18 = vadd.f32 %v8552_v28, %v5171_v41  ;;  %v4189_v2 = vpop.f32.mrf.mxu2  ;;  %v4787_v61 = vpop.f32.mrf.mxu3  ;;  %v3381_v54 = vadd.f32 %v8526_v48, %v8685_v25 }
 0x578   : > { %v4420_v37 = vrot.slane %v4189_v2, 1  ;;  %v5018_v22 = vrot.slane %v4787_v61, 2  ;;  %v3301_v38 = vpop.f32.mrf.mxu0  ;;  %v3597_v30 = vpop.f32.mrf.mxu1 }
 0x579   : > { %vm5325_vm1 = vcmp.ge.f32.partialorder %v5250_v18, 0.0  ;;  %v5400_v50 = vmul.f32 0.2, %v5250_v18  ;;  %v3979_v61 = vadd.f32 %v3829_v59, %v3381_v54 }
 0x57a   : > { %v4421_v53 = vsel %vm1187_vm2, %v4418_v4, %v4420_v37  ;;  %v5019_v43 = vsel %vm2384_vm3, %v5016_v19, %v5018_v22  ;;  %v3978_v4 = vadd.f32 %v3827_v45, %v3380_v5 }
 0x57b   : > { %v5475_v31 = vsel %vm5325_vm1, %v5250_v18, %v5400_v50  ;;  %v4574_v3 = vadd.f32 %v4421_v53, %v3976_v29 }
 0x57c   : > { %v5550_v24 = vpack.c.bf16 %v5475_v31, %v5475_v31 }
 0x57d   : > { %v5172_v6 = vadd.f32 %v5019_v43, %v4574_v3 }
 0x57e   : > { %5626 = vst.msk [vmem:[%s7492_s23 + $0x118] sm:$0xf] %vm5555_vm5, %v5550_v24 }
 0x57f   : > { %v5251_v12 = vadd.f32 %v8552_v28, %v5172_v6  ;;  %v4192_v10 = vpop.f32.mrf.mxu2  ;;  %v4790_v15 = vpop.f32.mrf.mxu3 }
 0x580   : > { %v4422_v26 = vrot.slane %v4192_v10, 1  ;;  %v5020_v46 = vrot.slane %v4790_v15, 2  ;;  %v3302_v7 = vpop.f32.mrf.mxu0  ;;  %v3598_v27 = vpop.f32.mrf.mxu1 }
 0x581   : > { %vm5326_vm14 = vcmp.ge.f32.partialorder %v5251_v12, 0.0  ;;  %v5401_v34 = vmul.f32 0.2, %v5251_v12 }
 0x582   : > { %v4423_v14 = vsel %vm1187_vm2, %v4420_v37, %v4422_v26  ;;  %v5021_v49 = vsel %vm2384_vm3, %v5018_v22, %v5020_v46 }
 0x583   : > { %v5476_v21 = vsel %vm5326_vm14, %v5251_v12, %v5401_v34  ;;  %v4575_v32 = vadd.f32 %v4423_v14, %v3977_v62 }
 0x584   : > { %v5551_v42 = vpack.c.bf16 %v5476_v21, %v5476_v21 }
 0x585   : > { %v5173_v55 = vadd.f32 %v5021_v49, %v4575_v32 }
 0x586   : > { %5627 = vst.msk [vmem:[%s7492_s23 + $0x11c] sm:$0xf] %vm5555_vm5, %v5551_v42 }
 0x587   : > { %v5252_v56 = vadd.f32 %v8552_v28, %v5173_v55  ;;  %v4194_v52 = vpop.f32.mrf.mxu2  ;;  %v4792_v39 = vpop.f32.mrf.mxu3 }
 0x588   : > { %v4424_v40 = vrot.slane %v4194_v52, 1  ;;  %v5022_v8 = vrot.slane %v4792_v39, 2  ;;  %v3304_v44 = vpop.f32.mrf.mxu0  ;;  %v3600_v47 = vpop.f32.mrf.mxu1 }
 0x589   : > { %vm5327_vm15 = vcmp.ge.f32.partialorder %v5252_v56, 0.0  ;;  %v5402_v19 = vmul.f32 0.2, %v5252_v56 }
 0x58a   : > { %v4425_v57 = vsel %vm1187_vm2, %v4422_v26, %v4424_v40  ;;  %v5023_v9 = vsel %vm2384_vm3, %v5020_v46, %v5022_v8 }
 0x58b   : > { %v5477_v51 = vsel %vm5327_vm15, %v5252_v56, %v5402_v19  ;;  %v4576_v17 = vadd.f32 %v4425_v57, %v3978_v4 }
 0x58c   : > { %v5552_v60 = vpack.c.bf16 %v5477_v51, %v5477_v51 }
 0x58d   : > { %v5174_v13 = vadd.f32 %v5023_v9, %v4576_v17 }
 0x58e   : > { %5628 = vst.msk [vmem:[%s7492_s23 + $0x120] sm:$0xf] %vm5555_vm5, %v5552_v60 }
 0x58f   : > { %v5253_v41 = vadd.f32 %v8552_v28, %v5174_v13  ;;  %v4197_v36 = vpop.f32.mrf.mxu2  ;;  %v4795_v11 = vpop.f32.mrf.mxu3 }
 0x590   : > { %v4426_v23 = vrot.slane %v4197_v36, 1  ;;  %v5024_v0 = vrot.slane %v4795_v11, 2  ;;  %v3305_v18 = vpop.f32.mrf.mxu0  ;;  %v3601_v2 = vpop.f32.mrf.mxu1 }
 0x591   : > { %vm5328_vm0 = vcmp.ge.f32.partialorder %v5253_v41, 0.0  ;;  %v5403_v37 = vmul.f32 0.2, %v5253_v41 }
 0x592   : > { %v4427_v22 = vsel %vm1187_vm2, %v4424_v40, %v4426_v23  ;;  %v5025_v48 = vsel %vm2384_vm3, %v5022_v8, %v5024_v0 }
 0x593   : > { %v5478_v38 = vsel %vm5328_vm0, %v5253_v41, %v5403_v37  ;;  %v4577_v30 = vadd.f32 %v4427_v22, %v3979_v61 }
 0x594   : > { %v5553_v29 = vpack.c.bf16 %v5478_v38, %v5478_v38 }
 0x595   : > { %v5175_v50 = vadd.f32 %v5025_v48, %v4577_v30 }
 0x596   : > { %5629 = vst.msk [vmem:[%s7492_s23 + $0x124] sm:$0xf] %vm5555_vm5, %v5553_v29 }
 0x597   : > { %v5254_v1 = vadd.f32 %v8552_v28, %v5175_v50  ;;  %v4199_v53 = vpop.f32.mrf.mxu2  ;;  %v4797_v31 = vpop.f32.mrf.mxu3 }
 0x599   : > { %vm5329_vm4 = vcmp.ge.f32.partialorder %v5254_v1, 0.0  ;;  %v5404_v3 = vmul.f32 0.2, %v5254_v1 }
 0x59b   : > { %v5479_v24 = vsel %vm5329_vm4, %v5254_v1, %v5404_v3 }
 0x59c   : > { %v5554_v43 = vpack.c.bf16 %v5479_v24, %v5479_v24 }
 0x59e   : > { %5630 = vst.msk [vmem:[%s7492_s23 + $0x128] sm:$0xf] %vm5555_vm5, %v5554_v43 }
 0x59f PF: > { %s13_s16 = sadd.s32 1, %s6668_s16   ;;  %s8686_s12 = smov %s6660_s14 }
 0x5a0   : > { %p10_p7 = scmp.ge.s32.totalorder %s13_s16, 18   ;;  %s8687_s13 = smov %s6664_s15 }
 0x5a1   : > { %s8688_s14 = smov %s8691_s17  ;;  %s8689_s15 = smov %s8695_s18 }
 0x5a2   :  { %12 = sbr.rel (!%p10_p7) target bundleno = 3 (0x3), region = 71 }

// kernel: video_discrim_forward.6
= control target key start
LH: loop header
LB: loop body
LE: loop exit
PB: predicated region body
PF: predicated region fallthrough
CT: control target
= control target key end

     0   :  { %s2602_s12 = smov 0   ;;  %s2604_s13 = smov 0   ;;  %s3122_s0 = inlined_call_operand.vmem [shape: bf16[2,5,170,64], index: 0, kind: input, shape index: {}]   ;;  %s3123_s1 = inlined_call_operand.vmem [shape: bf16[8,64,16], index: 1, kind: input, shape index: {}]   ;;  %s3124_s2 = inlined_call_operand.vmem [shape: f32[1,16], index: 2, kind: input, shape index: {}]   ;;  %s3125_s3 = inlined_call_operand.vmem [shape: bf16[2,4,156,16], index: 3, kind: output, shape index: {}]  }
   0x1   :  { %s2606_s14 = smov 0   ;;  %s2608_s15 = smov 0  }
   0x2   :  { %s2610_s16 = smov 0  }
   0x3 LB: > { %s22_s17 = sadd.s32 1, %s2572_s14  ;;  %s25_s18 = sadd.s32 1, %s2576_s15  ;;  %s2580_s16 = sphi %s2610_s16, %s13_s16   ;;  %s2576_s15 = sphi %s2608_s15, %s3129_s15   ;;  %s2572_s14 = sphi %s2606_s14, %s3128_s14   ;;  %s2568_s13 = sphi %s2604_s13, %s3127_s13   ;;  %s2564_s12 = sphi %s2602_s12, %s3126_s12  }
   0x4   : > { %p23_p0 = scmp.ge.s32.totalorder %s22_s17, 4  ;;  %p2055_p1 = scmp.ge.s32.totalorder %s2580_s16, 1 }
   0x5   : > { %p151_p2 = scmp.lt.s32.totalorder %s2580_s16, 9 }
   0x6   : > { %s3131_s17 = smov (%p23_p0, %s22_s17), 0  ;;  %s3133_s18 = smov (!%p23_p0, %s25_s18), %s2576_s15 }
   0x7   : > { %p152_p3 = pnand %p2055_p1, %p151_p2  ;;  %p27_p4 = scmp.ge.s32.totalorder %s3133_s18, 2 }
   0x8   : > { %p179_p5 = scmp.lt.s32.totalorder (!%p152_p3), %s2568_s13, 1  ;;  %s2443_s20 = smul.u32 (!%p152_p3), 88, %s2564_s12 }
   0x9   : > { %s3135_s18 = smov (%p27_p4, %s3133_s18), 0  ;;  %155 = sbr.rel (%p152_p3) target bundleno = 523 (0x20b), region = 32 }
   0xa   : > { %p186_p6 = scmp.lt.s32.totalorder (!%p152_p3), %s2564_s12, 3 }
   0xe   : > { %v2458_v0 = vld [vmem:[%s3123_s1 + $0x18] sm:$0xff]  ;;  %v2457_v4 = vld [vmem:[%s3123_s1 + $0x10] sm:$0xff]  ;;  %s3137_s13 = smov (!%p179_p5, %s2568_s13), 1  ;;  %v2456_v8 = vld [vmem:[%s3123_s1 + $0x8] sm:$0xff]  ;;  %vm306_vm0 = vcmask 523264   ;;  %vm537_vm1 = vcmask 1046528  }
   0xf   : > { %v2462_v1 = vld [vmem:[%s3123_s1 + $0x38] sm:$0xff]  ;;  %344 = vmatpush.bf16.msra.mxu0 %v2458_v0  ;;  %v2461_v5 = vld [vmem:[%s3123_s1 + $0x30] sm:$0xff]  ;;  %s2498_s8 = smul.u32 440, %s3137_s13  ;;  %v2460_v9 = vld [vmem:[%s3123_s1 + $0x28] sm:$0xff]  ;;  %vm734_vm2 = vcmask 1042432   ;;  %vm933_vm3 = vcmask 1041408  }
  0x10   : > { %v2466_v2 = vld [vmem:[%s3123_s1 + $0x58] sm:$0xff]  ;;  %459 = vmatpush.bf16.msra.mxu1 %v2462_v1  ;;  %v2465_v6 = vld [vmem:[%s3123_s1 + $0x50] sm:$0xff]  ;;  %v2464_v10 = vld [vmem:[%s3123_s1 + $0x48] sm:$0xff]  ;;  %s3139_s12 = smov (!%p186_p6, %s2564_s12), 3  ;;  %s2500_s30 = smul.u32 80, %s3137_s13  ;;  %vm1938_vm5 = vcmask 125952  }
  0x11   : > { %v2470_v3 = vld [vmem:[%s3123_s1 + $0x78] sm:$0xff]  ;;  %654 = vmatpush.bf16.msra.mxu2 %v2466_v2  ;;  %v2469_v7 = vld [vmem:[%s3123_s1 + $0x70] sm:$0xff]  ;;  %v2468_v11 = vld [vmem:[%s3123_s1 + $0x68] sm:$0xff]  ;;  %s183_s27 = scalar_lea.vmem %s3122_s0, %s2498_s8  ;;  %s2499_s4 = smul.u32 20, %s3139_s12 }
  0x12   : > { %853 = vmatpush.bf16.msra.mxu3 %v2470_v3  ;;  %v2455_v12 = vld [vmem:[%s3123_s1] sm:$0xff]  ;;  %s2683_s5 = scalar_lea.vmem %s183_s27, %s2443_s20  ;;  %v2493_v16 = vld [vmem:[%s3123_s1 + $0xd8] sm:$0xff]  ;;  %v2492_v21 = vld [vmem:[%s3123_s1 + $0xd0] sm:$0xff] }
  0x13   : > { %345 = vmatpush.bf16.msra.mxu0 %v2457_v4  ;;  %v2459_v13 = vld [vmem:[%s3123_s1 + $0x20] sm:$0xff]  ;;  %v2497_v17 = vld [vmem:[%s3123_s1 + $0xf8] sm:$0xff]  ;;  %v2496_v22 = vld [vmem:[%s3123_s1 + $0xf0] sm:$0xff]  ;;  %s190_s13 = sadd.s32 %s2500_s30, %s2499_s4 }
  0x14   : > { %460 = vmatpush.bf16.msra.mxu1 %v2461_v5  ;;  %v2463_v14 = vld [vmem:[%s3123_s1 + $0x40] sm:$0xff]  ;;  %v2489_v19 = vld [vmem:[%s3123_s1 + $0xb8] sm:$0xff]  ;;  %v2445_v23 = vld [vmem:[%s2683_s5 + $0x8] sm:$0xff]  ;;  %s2057_s12 = sshll.u32 %s190_s13, 2 }
  0x15   : > { %655 = vmatpush.bf16.msra.mxu2 %v2465_v6  ;;  %v2467_v15 = vld [vmem:[%s3123_s1 + $0x60] sm:$0xff]  ;;  %v2485_v20 = vld [vmem:[%s3123_s1 + $0x98] sm:$0xff]  ;;  %v2446_v24 = vld [vmem:[%s2683_s5 + $0x10] sm:$0xff]  ;;  %s2970_s9 = scalar_lea.vmem %s3125_s3, %s2057_s12 }
  0x16   : > { %854 = vmatpush.bf16.msra.mxu3 %v2469_v7  ;;  %v2444_v18 = vld [vmem:[%s2683_s5] sm:$0xff]  ;;  %v2488_v25 = vld [vmem:[%s3123_s1 + $0xb0] sm:$0xff]  ;;  %v2447_v27 = vld [vmem:[%s2683_s5 + $0x18] sm:$0xff] }
  0x17   : > { %346 = vmatpush.bf16.msra.mxu0 %v2456_v8  ;;  %v2484_v26 = vld [vmem:[%s3123_s1 + $0x90] sm:$0xff]  ;;  %v2491_v28 = vld [vmem:[%s3123_s1 + $0xc8] sm:$0xff]  ;;  %v2448_v30 = vld [vmem:[%s2683_s5 + $0x20] sm:$0xff] }
  0x18   : > { %461 = vmatpush.bf16.msra.mxu1 %v2460_v9  ;;  %v2495_v29 = vld [vmem:[%s3123_s1 + $0xe8] sm:$0xff]  ;;  %v2450_v34 = vld [vmem:[%s2683_s5 + $0x30] sm:$0xff]  ;;  %v2490_v35 = vld [vmem:[%s3123_s1 + $0xc0] sm:$0xff] }
  0x19   : > { %656 = vmatpush.bf16.msra.mxu2 %v2464_v10  ;;  %v2487_v31 = vld [vmem:[%s3123_s1 + $0xa8] sm:$0xff]  ;;  %v2494_v36 = vld [vmem:[%s3123_s1 + $0xe0] sm:$0xff]  ;;  %v2451_v37 = vld [vmem:[%s2683_s5 + $0x38] sm:$0xff] }
  0x1a   : > { %855 = vmatpush.bf16.msra.mxu3 %v2468_v11  ;;  %v2483_v32 = vld [vmem:[%s3123_s1 + $0x88] sm:$0xff]  ;;  %v2486_v38 = vld [vmem:[%s3123_s1 + $0xa0] sm:$0xff]  ;;  %v2101_v8 = vld [vmem:[%s2683_s5 + $0x50] sm:$0xf] }
  0x1b   : > { %347 = vmatpush.bf16.msra.mxu0 %v2455_v12  ;;  %v2449_v33 = vld [vmem:[%s2683_s5 + $0x28] sm:$0xff]  ;;  %v2482_v39 = vld [vmem:[%s3123_s1 + $0x80] sm:$0xff]  ;;  %v2454_v9 = vld [vmem:[%s2683_s5 + $0x50] sm:$0x10] }
  0x1c   : > { %462 = vmatpush.bf16.msra.mxu1 %v2459_v13  ;;  %v2452_v40 = vld [vmem:[%s2683_s5 + $0x40] sm:$0xff]  ;;  %v2453_v53 = vld [vmem:[%s2683_s5 + $0x48] sm:$0xff] }
  0x1d   : > { %657 = vmatpush.bf16.msra.mxu2 %v2463_v14  ;;  %v2102_v14 = vor.u32 %v2454_v9, %v2101_v8 }
  0x1e   : > { %856 = vmatpush.bf16.msra.mxu3 %v2467_v15  ;;  %2119 = vmatmul.msk.bf16.vlgmr.msra.gmra.mxu0 %vm306_vm0, %v2444_v18 }
  0x1f   : > { %2154 = vmatmul.msk.bf16.vlgmr.msra.gmra.mxu1 %vm306_vm0, %v2444_v18  ;;  %1166 = vmatpush.bf16.msrb.mxu0 %v2485_v20 }
  0x20   : > { %2189 = vmatmul.msk.bf16.vlgmr.msra.gmra.mxu2 %vm306_vm0, %v2444_v18  ;;  %1281 = vmatpush.bf16.msrb.mxu1 %v2489_v19 }
  0x21   : > { %1475 = vmatpush.bf16.msrb.mxu2 %v2493_v16  ;;  %2224 = vmatmul.msk.bf16.vlgmr.msra.gmra.mxu3 %vm306_vm0, %v2444_v18 }
  0x22   : > { %1673 = vmatpush.bf16.msrb.mxu3 %v2497_v17 }
  0x23   : > { %1167 = vmatpush.bf16.msrb.mxu0 %v2484_v26 }
  0x24   : > { %1282 = vmatpush.bf16.msrb.mxu1 %v2488_v25 }
  0x25   : > { %1476 = vmatpush.bf16.msrb.mxu2 %v2492_v21 }
  0x26   : > { %1674 = vmatpush.bf16.msrb.mxu3 %v2496_v22 }
  0x27   : > { %1168 = vmatpush.bf16.msrb.mxu0 %v2483_v32 }
  0x28   : > { %1283 = vmatpush.bf16.msrb.mxu1 %v2487_v31 }
  0x29   : > { %1477 = vmatpush.bf16.msrb.mxu2 %v2491_v28 }
  0x2a   : > { %1675 = vmatpush.bf16.msrb.mxu3 %v2495_v29 }
  0x2b   : > { %1169 = vmatpush.bf16.msrb.mxu0 %v2482_v39 }
  0x2c   : > { %1284 = vmatpush.bf16.msrb.mxu1 %v2486_v38 }
  0x2d   : > { %1478 = vmatpush.bf16.msrb.mxu2 %v2490_v35 }
  0x2e   : > { %2120 = vmatmul.msk.bf16.gmra.mxu0 %vm306_vm0, %v2445_v23  ;;  %1676 = vmatpush.bf16.msrb.mxu3 %v2494_v36 }
  0x2f   : > { %2155 = vmatmul.msk.bf16.gmra.mxu1 %vm306_vm0, %v2445_v23 }
  0x30   : > { %2190 = vmatmul.msk.bf16.gmra.mxu2 %vm306_vm0, %v2445_v23 }
  0x31   : > { %2225 = vmatmul.msk.bf16.gmra.mxu3 %vm306_vm0, %v2445_v23 }
  0x3e   : > { %2121 = vmatmul.msk.bf16.gmra.mxu0 %vm306_vm0, %v2446_v24 }
  0x3f   : > { %2156 = vmatmul.msk.bf16.gmra.mxu1 %vm306_vm0, %v2446_v24 }
  0x40   : > { %2191 = vmatmul.msk.bf16.gmra.mxu2 %vm306_vm0, %v2446_v24 }
  0x41   : > { %2226 = vmatmul.msk.bf16.gmra.mxu3 %vm306_vm0, %v2446_v24 }
  0x4e   : > { %2122 = vmatmul.msk.bf16.gmra.mxu0 %vm306_vm0, %v2447_v27 }
  0x4f   : > { %2157 = vmatmul.msk.bf16.gmra.mxu1 %vm306_vm0, %v2447_v27 }
  0x50   : > { %2192 = vmatmul.msk.bf16.gmra.mxu2 %vm306_vm0, %v2447_v27 }
  0x51   : > { %2227 = vmatmul.msk.bf16.gmra.mxu3 %vm306_vm0, %v2447_v27 }
  0x5e   : > { %2123 = vmatmul.msk.bf16.gmra.mxu0 %vm306_vm0, %v2448_v30 }
  0x5f   : > { %2158 = vmatmul.msk.bf16.gmra.mxu1 %vm306_vm0, %v2448_v30 }
  0x60   : > { %2193 = vmatmul.msk.bf16.gmra.mxu2 %vm306_vm0, %v2448_v30 }
  0x61   : > { %2228 = vmatmul.msk.bf16.gmra.mxu3 %vm306_vm0, %v2448_v30 }
  0x6e   : > { %2124 = vmatmul.msk.bf16.gmra.mxu0 %vm306_vm0, %v2449_v33 }
  0x6f   : > { %2159 = vmatmul.msk.bf16.gmra.mxu1 %vm306_vm0, %v2449_v33 }
  0x70   : > { %2194 = vmatmul.msk.bf16.gmra.mxu2 %vm306_vm0, %v2449_v33 }
  0x71   : > { %2229 = vmatmul.msk.bf16.gmra.mxu3 %vm306_vm0, %v2449_v33 }
  0x7e   : > { %2125 = vmatmul.msk.bf16.gmra.mxu0 %vm306_vm0, %v2450_v34 }
  0x7f   : > { %2160 = vmatmul.msk.bf16.gmra.mxu1 %vm306_vm0, %v2450_v34 }
  0x80   : > { %2195 = vmatmul.msk.bf16.gmra.mxu2 %vm306_vm0, %v2450_v34 }
  0x81   : > { %2230 = vmatmul.msk.bf16.gmra.mxu3 %vm306_vm0, %v2450_v34 }
  0x8e   : > { %2126 = vmatmul.msk.bf16.gmra.mxu0 %vm306_vm0, %v2451_v37 }
  0x8f   : > { %2161 = vmatmul.msk.bf16.gmra.mxu1 %vm306_vm0, %v2451_v37 }
  0x90   : > { %2196 = vmatmul.msk.bf16.gmra.mxu2 %vm306_vm0, %v2451_v37 }
  0x91   : > { %2231 = vmatmul.msk.bf16.gmra.mxu3 %vm306_vm0, %v2451_v37 }
  0x9b   : > { %v349_v41 = vpop.f32.mrf.mxu0 }
  0x9c   : > { %v464_v42 = vpop.f32.mrf.mxu1 }
  0x9d   : > { %v538_v43 = vrot.slane %v464_v42, 1 }
  0x9e   : > { %2127 = vmatmul.msk.bf16.gmra.mxu0 %vm306_vm0, %v2452_v40 }
  0x9f   : > { %2162 = vmatmul.msk.bf16.gmra.mxu1 %vm306_vm0, %v2452_v40 }
  0xa0   : > { %2197 = vmatmul.msk.bf16.gmra.mxu2 %vm306_vm0, %v2452_v40 }
  0xa1   : > { %2232 = vmatmul.msk.bf16.gmra.mxu3 %vm306_vm0, %v2452_v40 }
  0xa3   : > { %v659_v44 = vpop.f32.mrf.mxu2  ;;  %v351_v46 = vpop.f32.mrf.mxu0 }
  0xa4   : > { %v858_v45 = vpop.f32.mrf.mxu3  ;;  %v466_v47 = vpop.f32.mrf.mxu1 }
  0xa5   : > { %v539_v48 = vrot.slane %v466_v47, 1 }
  0xa7   : > { %v540_v49 = vsel %vm537_vm1, %v538_v43, %v539_v48 }
  0xa8   : > { %v597_v50 = vadd.f32 %v540_v49, %v349_v41  ;;  %v2471_v41 = vld [vmem:[%s2683_s5 + $0x58] sm:$0xff] }
  0xab   : > { %v660_v51 = vpop.f32.mrf.mxu2  ;;  %v354_v54 = vpop.f32.mrf.mxu0 }
  0xac   : > { %v859_v52 = vpop.f32.mrf.mxu3  ;;  %v469_v55 = vpop.f32.mrf.mxu1  ;;  %v735_v61 = vrot.slane %v660_v51, 5 }
  0xad   : > { %v541_v56 = vrot.slane %v469_v55, 1  ;;  %v934_v62 = vrot.slane %v859_v52, 6 }
  0xae   : > { %2128 = vmatmul.msk.bf16.gmra.mxu0 %vm306_vm0, %v2453_v53 }
  0xaf   : > { %v542_v57 = vsel %vm537_vm1, %v539_v48, %v541_v56  ;;  %2163 = vmatmul.msk.bf16.gmra.mxu1 %vm306_vm0, %v2453_v53 }
  0xb0   : > { %v598_v58 = vadd.f32 %v542_v57, %v351_v46  ;;  %2198 = vmatmul.msk.bf16.gmra.mxu2 %vm306_vm0, %v2453_v53 }
  0xb1   : > { %2233 = vmatmul.msk.bf16.gmra.mxu3 %vm306_vm0, %v2453_v53 }
  0xb3   : > { %v663_v59 = vpop.f32.mrf.mxu2  ;;  %v356_v1 = vpop.f32.mrf.mxu0 }
  0xb4   : > { %v862_v60 = vpop.f32.mrf.mxu3  ;;  %v736_v63 = vrot.slane %v663_v59, 5  ;;  %v471_v2 = vpop.f32.mrf.mxu1 }
  0xb5   : > { %v935_v0 = vrot.slane %v862_v60, 6  ;;  %v543_v3 = vrot.slane %v471_v2, 1 }
  0xb6   : > { %v737_v4 = vsel %vm734_vm2, %v735_v61, %v736_v63 }
  0xb7   : > { %v936_v5 = vsel %vm933_vm3, %v934_v62, %v935_v0  ;;  %v544_v6 = vsel %vm537_vm1, %v541_v56, %v543_v3  ;;  %v796_v7 = vadd.f32 %v737_v4, %v597_v50  ;;  %v2472_v4 = vld [vmem:[%s2683_s5 + $0x60] sm:$0xff] }
  0xb8   : > { %v599_v10 = vadd.f32 %v544_v6, %v354_v54 }
  0xb9   : > { %v2796_v11 = vadd.f32 %v936_v5, %v796_v7 }
  0xbb   : > { %v665_v12 = vpop.f32.mrf.mxu2  ;;  %v359_v17 = vpop.f32.mrf.mxu0 }
  0xbc   : > { %v864_v13 = vpop.f32.mrf.mxu3  ;;  %v738_v15 = vrot.slane %v665_v12, 5  ;;  %v474_v18 = vpop.f32.mrf.mxu1 }
  0xbd   : > { %v937_v16 = vrot.slane %v864_v13, 6  ;;  %v545_v19 = vrot.slane %v474_v18, 1 }
  0xbe   : > { %v739_v20 = vsel %vm734_vm2, %v736_v63, %v738_v15  ;;  %2129 = vmatmul.msk.bf16.gmra.mxu0 %vm306_vm0, %v2102_v14 }
  0xbf   : > { %v938_v21 = vsel %vm933_vm3, %v935_v0, %v937_v16  ;;  %v546_v22 = vsel %vm537_vm1, %v543_v3, %v545_v19  ;;  %2164 = vmatmul.msk.bf16.gmra.mxu1 %vm306_vm0, %v2102_v14  ;;  %v797_v23 = vadd.f32 %v739_v20, %v598_v58 }
  0xc0   : > { %v600_v24 = vadd.f32 %v546_v22, %v356_v1  ;;  %2199 = vmatmul.msk.bf16.gmra.mxu2 %vm306_vm0, %v2102_v14 }
  0xc1   : > { %2234 = vmatmul.msk.bf16.gmra.mxu3 %vm306_vm0, %v2102_v14  ;;  %v2805_v25 = vadd.f32 %v938_v21, %v797_v23 }
  0xc3   : > { %v668_v26 = vpop.f32.mrf.mxu2  ;;  %v361_v30 = vpop.f32.mrf.mxu0 }
  0xc4   : > { %v867_v27 = vpop.f32.mrf.mxu3  ;;  %v740_v28 = vrot.slane %v668_v26, 5  ;;  %v476_v31 = vpop.f32.mrf.mxu1 }
  0xc5   : > { %v939_v29 = vrot.slane %v867_v27, 6  ;;  %v547_v32 = vrot.slane %v476_v31, 1 }
  0xc6   : > { %v741_v33 = vsel %vm734_vm2, %v738_v15, %v740_v28 }
  0xc7   : > { %v940_v34 = vsel %vm933_vm3, %v937_v16, %v939_v29  ;;  %v548_v35 = vsel %vm537_vm1, %v545_v19, %v547_v32  ;;  %v798_v36 = vadd.f32 %v741_v33, %v599_v10  ;;  %v2473_v33 = vld [vmem:[%s2683_s5 + $0x68] sm:$0xff] }
  0xc8   : > { %v601_v37 = vadd.f32 %v548_v35, %v359_v17 }
  0xc9   : > { %v2810_v38 = vadd.f32 %v940_v34, %v798_v36 }
  0xcb   : > { %v670_v39 = vpop.f32.mrf.mxu2  ;;  %v364_v44 = vpop.f32.mrf.mxu0 }
  0xcc   : > { %v869_v40 = vpop.f32.mrf.mxu3  ;;  %v742_v42 = vrot.slane %v670_v39, 5  ;;  %v479_v45 = vpop.f32.mrf.mxu1 }
  0xcd   : > { %v941_v43 = vrot.slane %v869_v40, 6  ;;  %v549_v46 = vrot.slane %v479_v45, 1 }
  0xce   : > { %v743_v47 = vsel %vm734_vm2, %v740_v28, %v742_v42  ;;  %2325 = vmatmul.msk.bf16.vlgmr.msrb.gmra.mxu0 %vm306_vm0, %v2471_v41 }
  0xcf   : > { %v942_v48 = vsel %vm933_vm3, %v939_v29, %v941_v43  ;;  %v550_v49 = vsel %vm537_vm1, %v547_v32, %v549_v46  ;;  %2360 = vmatmul.msk.bf16.vlgmr.msrb.gmra.mxu1 %vm306_vm0, %v2471_v41  ;;  %v799_v50 = vadd.f32 %v743_v47, %v600_v24 }
  0xd0   : > { %v602_v51 = vadd.f32 %v550_v49, %v361_v30  ;;  %2395 = vmatmul.msk.bf16.vlgmr.msrb.gmra.mxu2 %vm306_vm0, %v2471_v41 }
  0xd1   : > { %2430 = vmatmul.msk.bf16.vlgmr.msrb.gmra.mxu3 %vm306_vm0, %v2471_v41  ;;  %v2820_v52 = vadd.f32 %v942_v48, %v799_v50 }
  0xd3   : > { %v673_v53 = vpop.f32.mrf.mxu2  ;;  %v366_v57 = vpop.f32.mrf.mxu0 }
  0xd4   : > { %v872_v54 = vpop.f32.mrf.mxu3  ;;  %v744_v55 = vrot.slane %v673_v53, 5  ;;  %v481_v58 = vpop.f32.mrf.mxu1 }
  0xd5   : > { %v943_v56 = vrot.slane %v872_v54, 6  ;;  %v551_v59 = vrot.slane %v481_v58, 1 }
  0xd6   : > { %v745_v60 = vsel %vm734_vm2, %v742_v42, %v744_v55 }
  0xd7   : > { %v944_v61 = vsel %vm933_vm3, %v941_v43, %v943_v56  ;;  %v552_v62 = vsel %vm537_vm1, %v549_v46, %v551_v59  ;;  %v800_v63 = vadd.f32 %v745_v60, %v601_v37 }
  0xd8   : > { %v603_v0 = vadd.f32 %v552_v62, %v364_v44  ;;  %v2474_v62 = vld [vmem:[%s2683_s5 + $0x70] sm:$0xff] }
  0xd9   : > { %v2825_v1 = vadd.f32 %v944_v61, %v800_v63 }
  0xdb   : > { %v675_v2 = vpop.f32.mrf.mxu2  ;;  %v369_v7 = vpop.f32.mrf.mxu0 }
  0xdc   : > { %v874_v3 = vpop.f32.mrf.mxu3  ;;  %v746_v5 = vrot.slane %v675_v2, 5  ;;  %v484_v8 = vpop.f32.mrf.mxu1 }
  0xdd   : > { %v945_v6 = vrot.slane %v874_v3, 6  ;;  %v553_v9 = vrot.slane %v484_v8, 1 }
  0xde   : > { %v747_v10 = vsel %vm734_vm2, %v744_v55, %v746_v5  ;;  %2326 = vmatmul.msk.bf16.gmra.mxu0 %vm306_vm0, %v2472_v4 }
  0xdf   : > { %v946_v12 = vsel %vm933_vm3, %v943_v56, %v945_v6  ;;  %v554_v13 = vsel %vm537_vm1, %v551_v59, %v553_v9  ;;  %2361 = vmatmul.msk.bf16.gmra.mxu1 %vm306_vm0, %v2472_v4  ;;  %v801_v14 = vadd.f32 %v747_v10, %v602_v51 }
  0xe0   : > { %v604_v15 = vadd.f32 %v554_v13, %v366_v57  ;;  %2396 = vmatmul.msk.bf16.gmra.mxu2 %vm306_vm0, %v2472_v4 }
  0xe1   : > { %2431 = vmatmul.msk.bf16.gmra.mxu3 %vm306_vm0, %v2472_v4  ;;  %v2835_v16 = vadd.f32 %v946_v12, %v801_v14 }
  0xe3   : > { %v678_v17 = vpop.f32.mrf.mxu2  ;;  %v371_v21 = vpop.f32.mrf.mxu0 }
  0xe4   : > { %v877_v18 = vpop.f32.mrf.mxu3  ;;  %v748_v19 = vrot.slane %v678_v17, 5  ;;  %v486_v22 = vpop.f32.mrf.mxu1 }
  0xe5   : > { %v947_v20 = vrot.slane %v877_v18, 6  ;;  %v555_v23 = vrot.slane %v486_v22, 1 }
  0xe6   : > { %v749_v24 = vsel %vm734_vm2, %v746_v5, %v748_v19 }
  0xe7   : > { %v948_v26 = vsel %vm933_vm3, %v945_v6, %v947_v20  ;;  %v556_v27 = vsel %vm537_vm1, %v553_v9, %v555_v23  ;;  %v802_v28 = vadd.f32 %v749_v24, %v603_v0 }
  0xe8   : > { %v605_v29 = vadd.f32 %v556_v27, %v369_v7 }
  0xe9   : > { %v2840_v30 = vadd.f32 %v948_v26, %v802_v28 }
  0xeb   : > { %v680_v31 = vpop.f32.mrf.mxu2  ;;  %v374_v36 = vpop.f32.mrf.mxu0 }
  0xec   : > { %v879_v32 = vpop.f32.mrf.mxu3  ;;  %v750_v34 = vrot.slane %v680_v31, 5  ;;  %v489_v37 = vpop.f32.mrf.mxu1 }
  0xed   : > { %v949_v35 = vrot.slane %v879_v32, 6  ;;  %v557_v39 = vrot.slane %v489_v37, 1 }
  0xee   : > { %v751_v40 = vsel %vm734_vm2, %v748_v19, %v750_v34  ;;  %2327 = vmatmul.msk.bf16.gmra.mxu0 %vm306_vm0, %v2473_v33 }
  0xef   : > { %v950_v41 = vsel %vm933_vm3, %v947_v20, %v949_v35  ;;  %v558_v42 = vsel %vm537_vm1, %v555_v23, %v557_v39  ;;  %2362 = vmatmul.msk.bf16.gmra.mxu1 %vm306_vm0, %v2473_v33  ;;  %v803_v43 = vadd.f32 %v751_v40, %v604_v15 }
  0xf0   : > { %v606_v44 = vadd.f32 %v558_v42, %v371_v21  ;;  %2397 = vmatmul.msk.bf16.gmra.mxu2 %vm306_vm0, %v2473_v33 }
  0xf1   : > { %2432 = vmatmul.msk.bf16.gmra.mxu3 %vm306_vm0, %v2473_v33  ;;  %v2850_v45 = vadd.f32 %v950_v41, %v803_v43 }
  0xf3   : > { %v683_v46 = vpop.f32.mrf.mxu2  ;;  %v376_v50 = vpop.f32.mrf.mxu0 }
  0xf4   : > { %v882_v47 = vpop.f32.mrf.mxu3  ;;  %v752_v48 = vrot.slane %v683_v46, 5  ;;  %v491_v51 = vpop.f32.mrf.mxu1 }
  0xf5   : > { %v951_v49 = vrot.slane %v882_v47, 6  ;;  %v559_v53 = vrot.slane %v491_v51, 1 }
  0xf6   : > { %v753_v54 = vsel %vm734_vm2, %v750_v34, %v752_v48 }
  0xf7   : > { %v952_v55 = vsel %vm933_vm3, %v949_v35, %v951_v49  ;;  %v560_v56 = vsel %vm537_vm1, %v557_v39, %v559_v53  ;;  %v804_v57 = vadd.f32 %v753_v54, %v605_v29  ;;  %v2475_v29 = vld [vmem:[%s2683_s5 + $0x78] sm:$0xff] }
  0xf8   : > { %v607_v58 = vadd.f32 %v560_v56, %v374_v36 }
  0xf9   : > { %v2855_v59 = vadd.f32 %v952_v55, %v804_v57 }
  0xfb   : > { %v685_v60 = vpop.f32.mrf.mxu2  ;;  %v379_v2 = vpop.f32.mrf.mxu0 }
  0xfc   : > { %v884_v61 = vpop.f32.mrf.mxu3  ;;  %v754_v63 = vrot.slane %v685_v60, 5  ;;  %v494_v3 = vpop.f32.mrf.mxu1 }
  0xfd   : > { %v953_v0 = vrot.slane %v884_v61, 6  ;;  %v561_v4 = vrot.slane %v494_v3, 1  ;;  %v2476_v61 = vld [vmem:[%s2683_s5 + $0x80] sm:$0xff] }
  0xfe   : > { %v755_v5 = vsel %vm734_vm2, %v752_v48, %v754_v63  ;;  %2328 = vmatmul.msk.bf16.gmra.mxu0 %vm306_vm0, %v2474_v62 }
  0xff   : > { %v954_v6 = vsel %vm933_vm3, %v951_v49, %v953_v0  ;;  %v562_v7 = vsel %vm537_vm1, %v559_v53, %v561_v4  ;;  %2363 = vmatmul.msk.bf16.gmra.mxu1 %vm306_vm0, %v2474_v62  ;;  %v805_v8 = vadd.f32 %v755_v5, %v606_v44 }
 0x100   : > { %v608_v9 = vadd.f32 %v562_v7, %v376_v50  ;;  %2398 = vmatmul.msk.bf16.gmra.mxu2 %vm306_vm0, %v2474_v62 }
 0x101   : > { %2433 = vmatmul.msk.bf16.gmra.mxu3 %vm306_vm0, %v2474_v62  ;;  %v2865_v10 = vadd.f32 %v954_v6, %v805_v8 }
 0x103   : > { %v688_v12 = vpop.f32.mrf.mxu2  ;;  %v381_v17 = vpop.f32.mrf.mxu0 }
 0x104   : > { %v887_v13 = vpop.f32.mrf.mxu3  ;;  %v756_v14 = vrot.slane %v688_v12, 5  ;;  %v496_v18 = vpop.f32.mrf.mxu1 }
 0x105   : > { %v955_v15 = vrot.slane %v887_v13, 6  ;;  %v563_v19 = vrot.slane %v496_v18, 1 }
 0x106   : > { %v757_v20 = vsel %vm734_vm2, %v754_v63, %v756_v14 }
 0x107   : > { %v956_v21 = vsel %vm933_vm3, %v953_v0, %v955_v15  ;;  %v564_v22 = vsel %vm537_vm1, %v561_v4, %v563_v19  ;;  %v806_v23 = vadd.f32 %v757_v20, %v607_v58 }
 0x108   : > { %v609_v24 = vadd.f32 %v564_v22, %v379_v2 }
 0x109   : > { %v2870_v26 = vadd.f32 %v956_v21, %v806_v23 }
 0x10b   : > { %v690_v27 = vpop.f32.mrf.mxu2  ;;  %v384_v33 = vpop.f32.mrf.mxu0 }
 0x10c   : > { %v889_v28 = vpop.f32.mrf.mxu3  ;;  %v758_v31 = vrot.slane %v690_v27, 5  ;;  %v499_v34 = vpop.f32.mrf.mxu1 }
 0x10d   : > { %v957_v32 = vrot.slane %v889_v28, 6  ;;  %v565_v35 = vrot.slane %v499_v34, 1 }
 0x10e   : > { %v759_v36 = vsel %vm734_vm2, %v756_v14, %v758_v31  ;;  %2329 = vmatmul.msk.bf16.gmra.mxu0 %vm306_vm0, %v2475_v29 }
 0x10f   : > { %v958_v37 = vsel %vm933_vm3, %v955_v15, %v957_v32  ;;  %v566_v39 = vsel %vm537_vm1, %v563_v19, %v565_v35  ;;  %2364 = vmatmul.msk.bf16.gmra.mxu1 %vm306_vm0, %v2475_v29  ;;  %v807_v40 = vadd.f32 %v759_v36, %v608_v9 }
 0x110   : > { %v610_v41 = vadd.f32 %v566_v39, %v381_v17  ;;  %2399 = vmatmul.msk.bf16.gmra.mxu2 %vm306_vm0, %v2475_v29 }
 0x111   : > { %2434 = vmatmul.msk.bf16.gmra.mxu3 %vm306_vm0, %v2475_v29  ;;  %v2880_v42 = vadd.f32 %v958_v37, %v807_v40 }
 0x113   : > { %v693_v43 = vpop.f32.mrf.mxu2  ;;  %v386_v48 = vpop.f32.mrf.mxu0 }
 0x114   : > { %v892_v44 = vpop.f32.mrf.mxu3  ;;  %v760_v46 = vrot.slane %v693_v43, 5  ;;  %v501_v49 = vpop.f32.mrf.mxu1 }
 0x115   : > { %v959_v47 = vrot.slane %v892_v44, 6  ;;  %v567_v50 = vrot.slane %v501_v49, 1 }
 0x116   : > { %v761_v51 = vsel %vm734_vm2, %v758_v31, %v760_v46  ;;  %v2477_v31 = vld [vmem:[%s2683_s5 + $0x88] sm:$0xff] }
 0x117   : > { %v960_v53 = vsel %vm933_vm3, %v957_v32, %v959_v47  ;;  %v568_v54 = vsel %vm537_vm1, %v565_v35, %v567_v50  ;;  %v808_v55 = vadd.f32 %v761_v51, %v609_v24 }
 0x118   : > { %v611_v56 = vadd.f32 %v568_v54, %v384_v33 }
 0x119   : > { %v2885_v57 = vadd.f32 %v960_v53, %v808_v55 }
 0x11b   : > { %v695_v58 = vpop.f32.mrf.mxu2  ;;  %v389_v0 = vpop.f32.mrf.mxu0 }
 0x11c   : > { %v894_v60 = vpop.f32.mrf.mxu3  ;;  %v762_v62 = vrot.slane %v695_v58, 5  ;;  %v504_v2 = vpop.f32.mrf.mxu1 }
 0x11d   : > { %v961_v63 = vrot.slane %v894_v60, 6  ;;  %v569_v3 = vrot.slane %v504_v2, 1  ;;  %v2478_v2 = vld [vmem:[%s2683_s5 + $0x90] sm:$0xff] }
 0x11e   : > { %v763_v4 = vsel %vm734_vm2, %v760_v46, %v762_v62  ;;  %2330 = vmatmul.msk.bf16.gmra.mxu0 %vm306_vm0, %v2476_v61 }
 0x11f   : > { %v962_v5 = vsel %vm933_vm3, %v959_v47, %v961_v63  ;;  %v570_v6 = vsel %vm537_vm1, %v567_v50, %v569_v3  ;;  %2365 = vmatmul.msk.bf16.gmra.mxu1 %vm306_vm0, %v2476_v61  ;;  %v809_v7 = vadd.f32 %v763_v4, %v610_v41 }
 0x120   : > { %v612_v8 = vadd.f32 %v570_v6, %v386_v48  ;;  %2400 = vmatmul.msk.bf16.gmra.mxu2 %vm306_vm0, %v2476_v61 }
 0x121   : > { %2435 = vmatmul.msk.bf16.gmra.mxu3 %vm306_vm0, %v2476_v61  ;;  %v2895_v9 = vadd.f32 %v962_v5, %v809_v7 }
 0x123   : > { %v698_v12 = vpop.f32.mrf.mxu2  ;;  %v391_v17 = vpop.f32.mrf.mxu0 }
 0x124   : > { %v897_v13 = vpop.f32.mrf.mxu3  ;;  %v764_v14 = vrot.slane %v698_v12, 5  ;;  %v506_v18 = vpop.f32.mrf.mxu1 }
 0x125   : > { %v963_v15 = vrot.slane %v897_v13, 6  ;;  %v571_v19 = vrot.slane %v506_v18, 1 }
 0x126   : > { %v765_v20 = vsel %vm734_vm2, %v762_v62, %v764_v14 }
 0x127   : > { %v964_v21 = vsel %vm933_vm3, %v961_v63, %v963_v15  ;;  %v572_v22 = vsel %vm537_vm1, %v569_v3, %v571_v19  ;;  %v810_v23 = vadd.f32 %v765_v20, %v611_v56 }
 0x128   : > { %v613_v24 = vadd.f32 %v572_v22, %v389_v0 }
 0x129   : > { %v2900_v27 = vadd.f32 %v964_v21, %v810_v23 }
 0x12b   : > { %v700_v28 = vpop.f32.mrf.mxu2  ;;  %v394_v34 = vpop.f32.mrf.mxu0 }
 0x12c   : > { %v899_v29 = vpop.f32.mrf.mxu3  ;;  %v766_v32 = vrot.slane %v700_v28, 5  ;;  %v509_v35 = vpop.f32.mrf.mxu1 }
 0x12d   : > { %v965_v33 = vrot.slane %v899_v29, 6  ;;  %v573_v36 = vrot.slane %v509_v35, 1 }
 0x12e   : > { %v767_v37 = vsel %vm734_vm2, %v764_v14, %v766_v32  ;;  %2331 = vmatmul.msk.bf16.gmra.mxu0 %vm306_vm0, %v2477_v31 }
 0x12f   : > { %v966_v39 = vsel %vm933_vm3, %v963_v15, %v965_v33  ;;  %v574_v40 = vsel %vm537_vm1, %v571_v19, %v573_v36  ;;  %2366 = vmatmul.msk.bf16.gmra.mxu1 %vm306_vm0, %v2477_v31  ;;  %v811_v41 = vadd.f32 %v767_v37, %v612_v8 }
 0x130   : > { %v614_v43 = vadd.f32 %v574_v40, %v391_v17  ;;  %2401 = vmatmul.msk.bf16.gmra.mxu2 %vm306_vm0, %v2477_v31 }
 0x131   : > { %2436 = vmatmul.msk.bf16.gmra.mxu3 %vm306_vm0, %v2477_v31  ;;  %v2910_v44 = vadd.f32 %v966_v39, %v811_v41  ;;  %v2479_v31 = vld [vmem:[%s2683_s5 + $0x98] sm:$0xff] }
 0x133   : > { %v703_v46 = vpop.f32.mrf.mxu2  ;;  %v396_v50 = vpop.f32.mrf.mxu0 }
 0x134   : > { %v902_v47 = vpop.f32.mrf.mxu3  ;;  %v768_v48 = vrot.slane %v703_v46, 5  ;;  %v511_v51 = vpop.f32.mrf.mxu1 }
 0x135   : > { %v967_v49 = vrot.slane %v902_v47, 6  ;;  %v575_v53 = vrot.slane %v511_v51, 1 }
 0x136   : > { %v769_v54 = vsel %vm734_vm2, %v766_v32, %v768_v48 }
 0x137   : > { %v968_v55 = vsel %vm933_vm3, %v965_v33, %v967_v49  ;;  %v576_v56 = vsel %vm537_vm1, %v573_v36, %v575_v53  ;;  %v616_v58 = vadd.f32 %v575_v53, %v396_v50  ;;  %v812_v60 = vadd.f32 %v769_v54, %v613_v24  ;;  %v2480_v50 = vld [vmem:[%s2683_s5 + $0xa0] sm:$0xff] }
 0x138   : > { %v615_v61 = vadd.f32 %v576_v56, %v394_v34 }
 0x139   : > { %v2915_v62 = vadd.f32 %v968_v55, %v812_v60 }
 0x13b   : > { %v705_v63 = vpop.f32.mrf.mxu2  ;;  %v399_v5 = vpop.f32.mrf.mxu0 }
 0x13c   : > { %v904_v0 = vpop.f32.mrf.mxu3  ;;  %v770_v3 = vrot.slane %v705_v63, 5  ;;  %v514_v6 = vpop.f32.mrf.mxu1 }
 0x13d   : > { %v969_v4 = vrot.slane %v904_v0, 6 }
 0x13e   : > { %v771_v7 = vsel %vm734_vm2, %v768_v48, %v770_v3  ;;  %2332 = vmatmul.msk.bf16.gmra.mxu0 %vm306_vm0, %v2478_v2 }
 0x13f   : > { %v970_v8 = vsel %vm933_vm3, %v967_v49, %v969_v4  ;;  %2367 = vmatmul.msk.bf16.gmra.mxu1 %vm306_vm0, %v2478_v2  ;;  %v813_v12 = vadd.f32 %v771_v7, %v614_v43 }
 0x140   : > { %2402 = vmatmul.msk.bf16.gmra.mxu2 %vm306_vm0, %v2478_v2 }
 0x141   : > { %2437 = vmatmul.msk.bf16.gmra.mxu3 %vm306_vm0, %v2478_v2  ;;  %v2924_v13 = vadd.f32 %v970_v8, %v813_v12 }
 0x143   : > { %v708_v14 = vpop.f32.mrf.mxu2  ;;  %v400_v19 = vpop.f32.mrf.mxu0 }
 0x144   : > { %v907_v15 = vpop.f32.mrf.mxu3  ;;  %v772_v17 = vrot.slane %v708_v14, 5  ;;  %v515_v20 = vpop.f32.mrf.mxu1 }
 0x145   : > { %v971_v18 = vrot.slane %v907_v15, 6 }
 0x146   : > { %v773_v21 = vsel %vm734_vm2, %v770_v3, %v772_v17 }
 0x147   : > { %v972_v22 = vsel %vm933_vm3, %v969_v4, %v971_v18  ;;  %v814_v23 = vadd.f32 %v773_v21, %v615_v61 }
 0x149   : > { %v2928_v24 = vadd.f32 %v972_v22, %v814_v23 }
 0x14b   : > { %v710_v28 = vpop.f32.mrf.mxu2  ;;  %v1171_v34 = vpop.f32.mrf.mxu0 }
 0x14c   : > { %v909_v29 = vpop.f32.mrf.mxu3  ;;  %v774_v32 = vrot.slane %v710_v28, 5  ;;  %v1286_v35 = vpop.f32.mrf.mxu1 }
 0x14d   : > { %v973_v33 = vrot.slane %v909_v29, 6  ;;  %v1359_v54 = vrot.slane %v1286_v35, 1 }
 0x14e   : > { %v775_v36 = vsel %vm734_vm2, %v772_v17, %v774_v32  ;;  %2333 = vmatmul.msk.bf16.gmra.mxu0 %vm306_vm0, %v2479_v31  ;;  %v2307_v17 = vld [vmem:[%s2683_s5 + $0xa8] sm:$0xf] }
 0x14f   : > { %v974_v37 = vsel %vm933_vm3, %v971_v18, %v973_v33  ;;  %2368 = vmatmul.msk.bf16.gmra.mxu1 %vm306_vm0, %v2479_v31  ;;  %v815_v39 = vadd.f32 %v775_v36, %v616_v58  ;;  %v1224_v58 = vadd.f32 %v1171_v34, %v2796_v11  ;;  %v2957_v11 = vld [vmem:[%s3124_s2] ss:$0 sm:$0xff]  ;;  %v2481_v18 = vld [vmem:[%s2683_s5 + $0xa8] sm:$0x10] }
 0x150   : > { %2403 = vmatmul.msk.bf16.gmra.mxu2 %vm306_vm0, %v2479_v31  ;;  %v2308_v33 = vor.u32 %v2481_v18, %v2307_v17 }
 0x151   : > { %2438 = vmatmul.msk.bf16.gmra.mxu3 %vm306_vm0, %v2479_v31  ;;  %v2937_v40 = vadd.f32 %v974_v37, %v815_v39 }
 0x153   : > { %v1480_v41 = vpop.f32.mrf.mxu2  ;;  %v1173_v46 = vpop.f32.mrf.mxu0 }
 0x154   : > { %v1678_v43 = vpop.f32.mrf.mxu3  ;;  %v1288_v47 = vpop.f32.mrf.mxu1  ;;  %v1225_v20 = vadd.f32 %v1173_v46, %v2805_v25 }
 0x155   : > { %v1360_v55 = vrot.slane %v1288_v47, 1 }
 0x157   : > { %v1361_v56 = vsel %vm537_vm1, %v1359_v54, %v1360_v55 }
 0x158   : > { %v1418_v5 = vadd.f32 %v1361_v56, %v1224_v58 }
 0x15b   : > { %v1481_v48 = vpop.f32.mrf.mxu2  ;;  %v1176_v51 = vpop.f32.mrf.mxu0 }
 0x15c   : > { %v1679_v49 = vpop.f32.mrf.mxu3  ;;  %v1291_v53 = vpop.f32.mrf.mxu1  ;;  %v1555_v63 = vrot.slane %v1481_v48, 5  ;;  %v1226_v48 = vadd.f32 %v1176_v51, %v2810_v38 }
 0x15d   : > { %v1753_v6 = vrot.slane %v1679_v49, 6  ;;  %v1362_v7 = vrot.slane %v1291_v53, 1 }
 0x15e   : > { %2334 = vmatmul.msk.bf16.gmra.mxu0 %vm306_vm0, %v2480_v50 }
 0x15f   : > { %2369 = vmatmul.msk.bf16.gmra.mxu1 %vm306_vm0, %v2480_v50  ;;  %v1363_v19 = vsel %vm537_vm1, %v1360_v55, %v1362_v7 }
 0x160   : > { %2404 = vmatmul.msk.bf16.gmra.mxu2 %vm306_vm0, %v2480_v50  ;;  %v1419_v34 = vadd.f32 %v1363_v19, %v1225_v20 }
 0x161   : > { %2439 = vmatmul.msk.bf16.gmra.mxu3 %vm306_vm0, %v2480_v50 }
 0x163   : > { %v1484_v60 = vpop.f32.mrf.mxu2  ;;  %v2949_v3 = vpop.f32.mrf.mxu0 }
 0x164   : > { %v1682_v61 = vpop.f32.mrf.mxu3  ;;  %v1556_v0 = vrot.slane %v1484_v60, 5  ;;  %v2951_v4 = vpop.f32.mrf.mxu1 }
 0x165   : > { %v1754_v2 = vrot.slane %v1682_v61, 6  ;;  %v1364_v36 = vrot.slane %v2951_v4, 1 }
 0x166   : > { %v1557_v8 = vsel %vm734_vm2, %v1555_v63, %v1556_v0 }
 0x167   : > { %v1616_v12 = vadd.f32 %v1557_v8, %v1418_v5  ;;  %v1755_v14 = vsel %vm933_vm3, %v1753_v6, %v1754_v2  ;;  %v1365_v47 = vsel %vm537_vm1, %v1362_v7, %v1364_v36  ;;  %v1227_v7 = vadd.f32 %v2949_v3, %v2820_v52 }
 0x168   : > { %v1420_v60 = vadd.f32 %v1365_v47, %v1226_v48 }
 0x169   : > { %v1814_v15 = vadd.f32 %v1755_v14, %v1616_v12 }
 0x16b   : > { %v1838_v21 = vadd.f32 %v2957_v11, %v1814_v15  ;;  %v1486_v22 = vpop.f32.mrf.mxu2  ;;  %v1181_v31 = vpop.f32.mrf.mxu0 }
 0x16c   : > { %v1684_v23 = vpop.f32.mrf.mxu3  ;;  %v1558_v28 = vrot.slane %v1486_v22, 5  ;;  %v1296_v32 = vpop.f32.mrf.mxu1 }
 0x16d   : > { %v1756_v29 = vrot.slane %v1684_v23, 6  ;;  %vm1858_vm4 = vcmp.ge.f32.partialorder %v1838_v21, 0.0  ;;  %v1878_v35 = vmul.f32 0.2, %v1838_v21  ;;  %v1366_v63 = vrot.slane %v1296_v32, 1 }
 0x16e   : > { %v1559_v37 = vsel %vm734_vm2, %v1556_v0, %v1558_v28  ;;  %2335 = vmatmul.msk.bf16.gmra.mxu0 %vm306_vm0, %v2308_v33 }
 0x16f   : > { %v1898_v25 = vsel %vm1858_vm4, %v1838_v21, %v1878_v35  ;;  %v1617_v39 = vadd.f32 %v1559_v37, %v1419_v34  ;;  %2370 = vmatmul.msk.bf16.gmra.mxu1 %vm306_vm0, %v2308_v33  ;;  %v1757_v43 = vsel %vm933_vm3, %v1754_v2, %v1756_v29  ;;  %v1367_v6 = vsel %vm537_vm1, %v1364_v36, %v1366_v63 }
 0x170   : > { %v1918_v41 = vpack.c.bf16 %v1898_v25, %v1898_v25  ;;  %2405 = vmatmul.msk.bf16.gmra.mxu2 %vm306_vm0, %v2308_v33  ;;  %v1421_v20 = vadd.f32 %v1367_v6, %v1227_v7  ;;  %v1228_v34 = vadd.f32 %v1181_v31, %v2825_v1 }
 0x171   : > { %2440 = vmatmul.msk.bf16.gmra.mxu3 %vm306_vm0, %v2308_v33  ;;  %v1815_v46 = vadd.f32 %v1757_v43, %v1617_v39 }
 0x172   : > { %1939 = vst.msk [vmem:[%s2970_s9] sm:$0xf] %vm1938_vm5, %v1918_v41 }
 0x173   : > { %v1839_v49 = vadd.f32 %v2957_v11, %v1815_v46  ;;  %v1489_v50 = vpop.f32.mrf.mxu2  ;;  %v1183_v56 = vpop.f32.mrf.mxu0 }
 0x174   : > { %v1687_v53 = vpop.f32.mrf.mxu3  ;;  %v1560_v54 = vrot.slane %v1489_v50, 5  ;;  %v1298_v58 = vpop.f32.mrf.mxu1 }
 0x175   : > { %v1758_v55 = vrot.slane %v1687_v53, 6  ;;  %vm1859_vm6 = vcmp.ge.f32.partialorder %v1839_v49, 0.0  ;;  %v1879_v61 = vmul.f32 0.2, %v1839_v49  ;;  %v1368_v22 = vrot.slane %v1298_v58, 1 }
 0x176   : > { %v1561_v0 = vsel %vm734_vm2, %v1558_v28, %v1560_v54  ;;  %v1229_v58 = vadd.f32 %v1183_v56, %v2835_v16 }
 0x177   : > { %v1899_v2 = vsel %vm1859_vm6, %v1839_v49, %v1879_v61  ;;  %v1618_v4 = vadd.f32 %v1561_v0, %v1420_v60  ;;  %v1759_v38 = vsel %vm933_vm3, %v1756_v29, %v1758_v55  ;;  %v1369_v33 = vsel %vm537_vm1, %v1366_v63, %v1368_v22 }
 0x178   : > { %v1919_v5 = vpack.c.bf16 %v1899_v2, %v1899_v2  ;;  %v1422_v46 = vadd.f32 %v1369_v33, %v1228_v34 }
 0x179   : > { %v1816_v51 = vadd.f32 %v1759_v38, %v1618_v4 }
 0x17a   : > { %1940 = vst.msk [vmem:[%s2970_s9 + $0x4] sm:$0xf] %vm1938_vm5, %v1919_v5 }
 0x17b   : > { %v1840_v8 = vadd.f32 %v2957_v11, %v1816_v51  ;;  %v1491_v12 = vpop.f32.mrf.mxu2  ;;  %v1186_v18 = vpop.f32.mrf.mxu0 }
 0x17c   : > { %v1689_v14 = vpop.f32.mrf.mxu3  ;;  %v1562_v15 = vrot.slane %v1491_v12, 5  ;;  %v1301_v19 = vpop.f32.mrf.mxu1 }
 0x17d   : > { %v1760_v17 = vrot.slane %v1689_v14, 6  ;;  %vm1860_vm7 = vcmp.ge.f32.partialorder %v1840_v8, 0.0  ;;  %v1880_v21 = vmul.f32 0.2, %v1840_v8  ;;  %v1370_v48 = vrot.slane %v1301_v19, 1 }
 0x17e   : > { %v1563_v23 = vsel %vm734_vm2, %v1560_v54, %v1562_v15 }
 0x17f   : > { %v1900_v28 = vsel %vm1860_vm7, %v1840_v8, %v1880_v21  ;;  %v1619_v29 = vadd.f32 %v1563_v23, %v1421_v20  ;;  %v1761_v52 = vsel %vm933_vm3, %v1758_v55, %v1760_v17  ;;  %v1371_v55 = vsel %vm537_vm1, %v1368_v22, %v1370_v48 }
 0x180   : > { %v1920_v32 = vpack.c.bf16 %v1900_v28, %v1900_v28  ;;  %v1423_v38 = vadd.f32 %v1371_v55, %v1229_v58 }
 0x181   : > { %v1817_v3 = vadd.f32 %v1761_v52, %v1619_v29 }
 0x182   : > { %1941 = vst.msk [vmem:[%s2970_s9 + $0x8] sm:$0xf] %vm1938_vm5, %v1920_v32 }
 0x183   : > { %v1841_v35 = vadd.f32 %v2957_v11, %v1817_v3  ;;  %v1494_v36 = vpop.f32.mrf.mxu2  ;;  %v1188_v41 = vpop.f32.mrf.mxu0 }
 0x184   : > { %v1692_v37 = vpop.f32.mrf.mxu3  ;;  %v1564_v25 = vrot.slane %v1494_v36, 5  ;;  %v1303_v43 = vpop.f32.mrf.mxu1 }
 0x185   : > { %v1762_v39 = vrot.slane %v1692_v37, 6  ;;  %vm1861_vm8 = vcmp.ge.f32.partialorder %v1841_v35, 0.0  ;;  %v1881_v47 = vmul.f32 0.2, %v1841_v35  ;;  %v1372_v6 = vrot.slane %v1303_v43, 1 }
 0x186   : > { %v1565_v49 = vsel %vm734_vm2, %v1562_v15, %v1564_v25 }
 0x187   : > { %v1901_v50 = vsel %vm1861_vm8, %v1841_v35, %v1881_v47  ;;  %v1620_v53 = vadd.f32 %v1565_v49, %v1422_v46  ;;  %v1763_v1 = vsel %vm933_vm3, %v1760_v17, %v1762_v39  ;;  %v1373_v15 = vsel %vm537_vm1, %v1370_v48, %v1372_v6 }
 0x188   : > { %v1921_v54 = vpack.c.bf16 %v1901_v50, %v1901_v50  ;;  %v1230_v17 = vadd.f32 %v1186_v18, %v2840_v30 }
 0x189   : > { %v1818_v31 = vadd.f32 %v1763_v1, %v1620_v53 }
 0x18a   : > { %1942 = vst.msk [vmem:[%s2970_s9 + $0xc] sm:$0xf] %vm1938_vm5, %v1921_v54  ;;  %v1424_v32 = vadd.f32 %v1373_v15, %v1230_v17 }
 0x18b   : > { %v1842_v60 = vadd.f32 %v2957_v11, %v1818_v31  ;;  %v1496_v61 = vpop.f32.mrf.mxu2  ;;  %v1191_v4 = vpop.f32.mrf.mxu0 }
 0x18c   : > { %v1694_v63 = vpop.f32.mrf.mxu3  ;;  %v1566_v0 = vrot.slane %v1496_v61, 5  ;;  %v1306_v5 = vpop.f32.mrf.mxu1 }
 0x18d   : > { %v1764_v2 = vrot.slane %v1694_v63, 6  ;;  %vm1862_vm9 = vcmp.ge.f32.partialorder %v1842_v60, 0.0  ;;  %v1882_v51 = vmul.f32 0.2, %v1842_v60  ;;  %v1374_v3 = vrot.slane %v1306_v5, 1 }
 0x18e   : > { %v1567_v7 = vsel %vm734_vm2, %v1564_v25, %v1566_v0  ;;  %v1231_v25 = vadd.f32 %v1188_v41, %v2850_v45  ;;  %v1232_v63 = vadd.f32 %v1191_v4, %v2855_v59 }
 0x18f   : > { %v1902_v8 = vsel %vm1862_vm9, %v1842_v60, %v1882_v51  ;;  %v1621_v12 = vadd.f32 %v1567_v7, %v1423_v38  ;;  %v1765_v16 = vsel %vm933_vm3, %v1762_v39, %v1764_v2  ;;  %v1375_v37 = vsel %vm537_vm1, %v1372_v6, %v1374_v3 }
 0x190   : > { %v1922_v14 = vpack.c.bf16 %v1902_v8, %v1902_v8  ;;  %v1425_v53 = vadd.f32 %v1375_v37, %v1231_v25 }
 0x191   : > { %v1819_v56 = vadd.f32 %v1765_v16, %v1621_v12 }
 0x192   : > { %1943 = vst.msk [vmem:[%s2970_s9 + $0x10] sm:$0xf] %vm1938_vm5, %v1922_v14 }
 0x193   : > { %v1843_v19 = vadd.f32 %v2957_v11, %v1819_v56  ;;  %v1499_v20 = vpop.f32.mrf.mxu2  ;;  %v1193_v28 = vpop.f32.mrf.mxu0 }
 0x194   : > { %v1697_v21 = vpop.f32.mrf.mxu3  ;;  %v1568_v22 = vrot.slane %v1499_v20, 5  ;;  %v1308_v29 = vpop.f32.mrf.mxu1  ;;  %v1233_v20 = vadd.f32 %v1193_v28, %v2865_v10 }
 0x195   : > { %v1766_v23 = vrot.slane %v1697_v21, 6  ;;  %vm1863_vm10 = vcmp.ge.f32.partialorder %v1843_v19, 0.0  ;;  %v1883_v52 = vmul.f32 0.2, %v1843_v19  ;;  %v1376_v1 = vrot.slane %v1308_v29, 1 }
 0x196   : > { %v1569_v33 = vsel %vm734_vm2, %v1566_v0, %v1568_v22 }
 0x197   : > { %v1903_v34 = vsel %vm1863_vm10, %v1843_v19, %v1883_v52  ;;  %v1622_v35 = vadd.f32 %v1569_v33, %v1424_v32  ;;  %v1767_v30 = vsel %vm933_vm3, %v1764_v2, %v1766_v23  ;;  %v1377_v61 = vsel %vm537_vm1, %v1374_v3, %v1376_v1 }
 0x198   : > { %v1923_v36 = vpack.c.bf16 %v1903_v34, %v1903_v34  ;;  %v1426_v8 = vadd.f32 %v1377_v61, %v1232_v63 }
 0x199   : > { %v1820_v18 = vadd.f32 %v1767_v30, %v1622_v35 }
 0x19a   : > { %1944 = vst.msk [vmem:[%s2970_s9 + $0x14] sm:$0xf] %vm1938_vm5, %v1923_v36 }
 0x19b   : > { %v1844_v39 = vadd.f32 %v2957_v11, %v1820_v18  ;;  %v1501_v43 = vpop.f32.mrf.mxu2  ;;  %v1196_v49 = vpop.f32.mrf.mxu0 }
 0x19c   : > { %v1699_v46 = vpop.f32.mrf.mxu3  ;;  %v1570_v47 = vrot.slane %v1501_v43, 5  ;;  %v1311_v50 = vpop.f32.mrf.mxu1 }
 0x19d   : > { %v1768_v48 = vrot.slane %v1699_v46, 6  ;;  %vm1864_vm11 = vcmp.ge.f32.partialorder %v1844_v39, 0.0  ;;  %v1884_v54 = vmul.f32 0.2, %v1844_v39  ;;  %v1378_v14 = vrot.slane %v1311_v50, 1 }
 0x19e   : > { %v1571_v31 = vsel %vm734_vm2, %v1568_v22, %v1570_v47 }
 0x19f   : > { %v1904_v55 = vsel %vm1864_vm11, %v1844_v39, %v1884_v54  ;;  %v1623_v58 = vadd.f32 %v1571_v31, %v1425_v53  ;;  %v1769_v45 = vsel %vm933_vm3, %v1766_v23, %v1768_v48  ;;  %v1379_v19 = vsel %vm537_vm1, %v1376_v1, %v1378_v14 }
 0x1a0   : > { %v1924_v60 = vpack.c.bf16 %v1904_v55, %v1904_v55  ;;  %v1427_v33 = vadd.f32 %v1379_v19, %v1233_v20  ;;  %v1234_v39 = vadd.f32 %v1196_v49, %v2870_v26 }
 0x1a1   : > { %v1821_v41 = vadd.f32 %v1769_v45, %v1623_v58 }
 0x1a2   : > { %1945 = vst.msk [vmem:[%s2970_s9 + $0x18] sm:$0xf] %vm1938_vm5, %v1924_v60 }
 0x1a3   : > { %v1845_v0 = vadd.f32 %v2957_v11, %v1821_v41  ;;  %v1504_v2 = vpop.f32.mrf.mxu2  ;;  %v1198_v6 = vpop.f32.mrf.mxu0 }
 0x1a4   : > { %v1702_v5 = vpop.f32.mrf.mxu3  ;;  %v1572_v38 = vrot.slane %v1504_v2, 5  ;;  %v1313_v7 = vpop.f32.mrf.mxu1  ;;  %v1235_v63 = vadd.f32 %v1198_v6, %v2880_v42 }
 0x1a5   : > { %v1770_v51 = vrot.slane %v1702_v5, 6  ;;  %vm1865_vm12 = vcmp.ge.f32.partialorder %v1845_v0, 0.0  ;;  %v1885_v12 = vmul.f32 0.2, %v1845_v0  ;;  %v1380_v35 = vrot.slane %v1313_v7, 1 }
 0x1a6   : > { %v1573_v16 = vsel %vm734_vm2, %v1570_v47, %v1572_v38 }
 0x1a7   : > { %v1905_v56 = vsel %vm1865_vm12, %v1845_v0, %v1885_v12  ;;  %v1624_v15 = vadd.f32 %v1573_v16, %v1426_v8  ;;  %v1771_v59 = vsel %vm933_vm3, %v1768_v48, %v1770_v51  ;;  %v1381_v25 = vsel %vm537_vm1, %v1378_v14, %v1380_v35 }
 0x1a8   : > { %v1925_v17 = vpack.c.bf16 %v1905_v56, %v1905_v56  ;;  %v1428_v1 = vadd.f32 %v1381_v25, %v1234_v39  ;;  %vm1958_vm12 = vcmask 123904  }
 0x1a9   : > { %v1822_v4 = vadd.f32 %v1771_v59, %v1624_v15 }
 0x1aa   : > { %1946 = vst.msk [vmem:[%s2970_s9 + $0x1c] sm:$0xf] %vm1938_vm5, %v1925_v17 }
 0x1ab   : > { %v1846_v21 = vadd.f32 %v2957_v11, %v1822_v4  ;;  %v1506_v22 = vpop.f32.mrf.mxu2  ;;  %v1201_v52 = vpop.f32.mrf.mxu0 }
 0x1ac   : > { %v1704_v23 = vpop.f32.mrf.mxu3  ;;  %v1574_v29 = vrot.slane %v1506_v22, 5  ;;  %v1316_v3 = vpop.f32.mrf.mxu1  ;;  %v1236_v19 = vadd.f32 %v1201_v52, %v2885_v57 }
 0x1ad   : > { %v1772_v32 = vrot.slane %v1704_v23, 6  ;;  %vm1866_vm13 = vcmp.ge.f32.partialorder %v1846_v21, 0.0  ;;  %v1886_v34 = vmul.f32 0.2, %v1846_v21  ;;  %v1382_v55 = vrot.slane %v1316_v3, 1 }
 0x1ae   : > { %v1575_v36 = vsel %vm734_vm2, %v1572_v38, %v1574_v29 }
 0x1af   : > { %v1906_v30 = vsel %vm1866_vm13, %v1846_v21, %v1886_v34  ;;  %v1625_v18 = vadd.f32 %v1575_v36, %v1427_v33  ;;  %v1773_v10 = vsel %vm933_vm3, %v1770_v51, %v1772_v32  ;;  %v1383_v61 = vsel %vm537_vm1, %v1380_v35, %v1382_v55 }
 0x1b0   : > { %v1926_v37 = vpack.c.bf16 %v1906_v30, %v1906_v30  ;;  %v1429_v12 = vadd.f32 %v1383_v61, %v1235_v63 }
 0x1b1   : > { %v1823_v28 = vadd.f32 %v1773_v10, %v1625_v18 }
 0x1b2   : > { %1947 = vst.msk [vmem:[%s2970_s9 + $0x20] sm:$0xf] %vm1938_vm5, %v1926_v37 }
 0x1b3   : > { %v1847_v43 = vadd.f32 %v2957_v11, %v1823_v28  ;;  %v1509_v46 = vpop.f32.mrf.mxu2  ;;  %v1203_v53 = vpop.f32.mrf.mxu0 }
 0x1b4   : > { %v1707_v47 = vpop.f32.mrf.mxu3  ;;  %v1576_v48 = vrot.slane %v1509_v46, 5  ;;  %v1318_v54 = vpop.f32.mrf.mxu1  ;;  %v1237_v28 = vadd.f32 %v1203_v53, %v2895_v9 }
 0x1b5   : > { %v1774_v50 = vrot.slane %v1707_v47, 6  ;;  %vm1867_vm14 = vcmp.ge.f32.partialorder %v1847_v43, 0.0  ;;  %v1887_v31 = vmul.f32 0.2, %v1847_v43  ;;  %v1384_v16 = vrot.slane %v1318_v54, 1 }
 0x1b6   : > { %v1577_v58 = vsel %vm734_vm2, %v1574_v29, %v1576_v48 }
 0x1b7   : > { %v1907_v60 = vsel %vm1867_vm14, %v1847_v43, %v1887_v31  ;;  %v1626_v45 = vadd.f32 %v1577_v58, %v1428_v1  ;;  %v1775_v26 = vsel %vm933_vm3, %v1772_v32, %v1774_v50  ;;  %v1385_v4 = vsel %vm537_vm1, %v1382_v55, %v1384_v16 }
 0x1b8   : > { %v1927_v41 = vpack.c.bf16 %v1907_v60, %v1907_v60  ;;  %v1430_v33 = vadd.f32 %v1385_v4, %v1236_v19 }
 0x1b9   : > { %v1824_v49 = vadd.f32 %v1775_v26, %v1626_v45 }
 0x1ba   : > { %1948 = vst.msk [vmem:[%s2970_s9 + $0x24] sm:$0xf] %vm1938_vm5, %v1927_v41 }
 0x1bb   : > { %v1848_v0 = vadd.f32 %v2957_v11, %v1824_v49  ;;  %v1511_v2 = vpop.f32.mrf.mxu2  ;;  %v1206_v7 = vpop.f32.mrf.mxu0 }
 0x1bc   : > { %v1709_v5 = vpop.f32.mrf.mxu3  ;;  %v1578_v38 = vrot.slane %v1511_v2, 5  ;;  %v1321_v8 = vpop.f32.mrf.mxu1  ;;  %v1238_v26 = vadd.f32 %v1206_v7, %v2900_v27 }
 0x1bd   : > { %v1776_v51 = vrot.slane %v1709_v5, 6  ;;  %vm1868_vm15 = vcmp.ge.f32.partialorder %v1848_v0, 0.0  ;;  %v1888_v14 = vmul.f32 0.2, %v1848_v0  ;;  %v1386_v35 = vrot.slane %v1321_v8, 1 }
 0x1be   : > { %v1579_v56 = vsel %vm734_vm2, %v1576_v48, %v1578_v38 }
 0x1bf   : > { %v1908_v15 = vsel %vm1868_vm15, %v1848_v0, %v1888_v14  ;;  %v1627_v17 = vadd.f32 %v1579_v56, %v1429_v12  ;;  %v1777_v42 = vsel %vm933_vm3, %v1774_v50, %v1776_v51  ;;  %v1387_v10 = vsel %vm537_vm1, %v1384_v16, %v1386_v35 }
 0x1c0   : > { %v1928_v59 = vpack.c.bf16 %v1908_v15, %v1908_v15  ;;  %v1431_v54 = vadd.f32 %v1387_v10, %v1237_v28 }
 0x1c1   : > { %v1825_v6 = vadd.f32 %v1777_v42, %v1627_v17 }
 0x1c2   : > { %1949 = vst.msk [vmem:[%s2970_s9 + $0x28] sm:$0xf] %vm1938_vm5, %v1928_v59 }
 0x1c3   : > { %v1849_v20 = vadd.f32 %v2957_v11, %v1825_v6  ;;  %v1514_v21 = vpop.f32.mrf.mxu2  ;;  %v1208_v32 = vpop.f32.mrf.mxu0 }
 0x1c4   : > { %v1712_v22 = vpop.f32.mrf.mxu3  ;;  %v1580_v23 = vrot.slane %v1514_v21, 5  ;;  %v1323_v3 = vpop.f32.mrf.mxu1  ;;  %v1239_v59 = vadd.f32 %v1208_v32, %v2910_v44 }
 0x1c5   : > { %v1778_v29 = vrot.slane %v1712_v22, 6  ;;  %vm1869_vm0 = vcmp.ge.f32.partialorder %v1849_v20, 0.0  ;;  %v1889_v34 = vmul.f32 0.2, %v1849_v20  ;;  %v1388_v31 = vrot.slane %v1323_v3, 1 }
 0x1c6   : > { %v1581_v36 = vsel %vm734_vm2, %v1578_v38, %v1580_v23 }
 0x1c7   : > { %v1909_v30 = vsel %vm1869_vm0, %v1849_v20, %v1889_v34  ;;  %v1628_v18 = vadd.f32 %v1581_v36, %v1430_v33  ;;  %v1779_v57 = vsel %vm933_vm3, %v1776_v51, %v1778_v29  ;;  %v1389_v41 = vsel %vm537_vm1, %v1386_v35, %v1388_v31 }
 0x1c8   : > { %v1929_v37 = vpack.c.bf16 %v1909_v30, %v1909_v30  ;;  %v1432_v51 = vadd.f32 %v1389_v41, %v1238_v26 }
 0x1c9   : > { %v1826_v52 = vadd.f32 %v1779_v57, %v1628_v18 }
 0x1ca   : > { %1950 = vst.msk [vmem:[%s2970_s9 + $0x2c] sm:$0xf] %vm1938_vm5, %v1929_v37 }
 0x1cb   : > { %v1850_v25 = vadd.f32 %v2957_v11, %v1826_v52  ;;  %v1516_v39 = vpop.f32.mrf.mxu2  ;;  %v1211_v48 = vpop.f32.mrf.mxu0 }
 0x1cc   : > { %v1714_v43 = vpop.f32.mrf.mxu3  ;;  %v1582_v46 = vrot.slane %v1516_v39, 5  ;;  %v1326_v50 = vpop.f32.mrf.mxu1  ;;  %v1240_v18 = vadd.f32 %v1211_v48, %v2915_v62 }
 0x1cd   : > { %v1780_v47 = vrot.slane %v1714_v43, 6  ;;  %vm1870_vm4 = vcmp.ge.f32.partialorder %v1850_v25, 0.0  ;;  %v1890_v1 = vmul.f32 0.2, %v1850_v25  ;;  %v1390_v12 = vrot.slane %v1326_v50, 1 }
 0x1ce   : > { %v1583_v55 = vsel %vm734_vm2, %v1580_v23, %v1582_v46 }
 0x1cf   : > { %v1910_v58 = vsel %vm1870_vm4, %v1850_v25, %v1890_v1  ;;  %v1629_v60 = vadd.f32 %v1583_v55, %v1431_v54  ;;  %v1781_v9 = vsel %vm933_vm3, %v1778_v29, %v1780_v47  ;;  %v1391_v17 = vsel %vm537_vm1, %v1388_v31, %v1390_v12 }
 0x1d0   : > { %v1930_v45 = vpack.c.bf16 %v1910_v58, %v1910_v58  ;;  %v1433_v23 = vadd.f32 %v1391_v17, %v1239_v59 }
 0x1d1   : > { %v1827_v53 = vadd.f32 %v1781_v9, %v1629_v60 }
 0x1d2   : > { %1951 = vst.msk [vmem:[%s2970_s9 + $0x30] sm:$0xf] %vm1938_vm5, %v1930_v45 }
 0x1d3   : > { %v1851_v49 = vadd.f32 %v2957_v11, %v1827_v53  ;;  %v1519_v61 = vpop.f32.mrf.mxu2  ;;  %v1213_v5 = vpop.f32.mrf.mxu0 }
 0x1d4   : > { %v1717_v63 = vpop.f32.mrf.mxu3  ;;  %v1584_v0 = vrot.slane %v1519_v61, 5  ;;  %v1328_v38 = vpop.f32.mrf.mxu1  ;;  %v1241_v58 = vadd.f32 %v1213_v5, %v2924_v13 }
 0x1d5   : > { %v1782_v2 = vrot.slane %v1717_v63, 6  ;;  %vm1871_vm6 = vcmp.ge.f32.partialorder %v1851_v49, 0.0  ;;  %v1891_v8 = vmul.f32 0.2, %v1851_v49  ;;  %v1392_v3 = vrot.slane %v1328_v38, 1 }
 0x1d6   : > { %v1585_v14 = vsel %vm734_vm2, %v1582_v46, %v1584_v0 }
 0x1d7   : > { %v1911_v16 = vsel %vm1871_vm6, %v1851_v49, %v1891_v8  ;;  %v1630_v56 = vadd.f32 %v1585_v14, %v1432_v51  ;;  %v1783_v27 = vsel %vm933_vm3, %v1780_v47, %v1782_v2  ;;  %v1393_v30 = vsel %vm537_vm1, %v1390_v12, %v1392_v3 }
 0x1d8   : > { %v1931_v15 = vpack.c.bf16 %v1911_v16, %v1911_v16  ;;  %v1434_v43 = vadd.f32 %v1393_v30, %v1240_v18 }
 0x1d9   : > { %v1828_v7 = vadd.f32 %v1783_v27, %v1630_v56 }
 0x1da   : > { %1952 = vst.msk [vmem:[%s2970_s9 + $0x34] sm:$0xf] %vm1938_vm5, %v1931_v15 }
 0x1db   : > { %v1852_v42 = vadd.f32 %v2957_v11, %v1828_v7  ;;  %v1521_v6 = vpop.f32.mrf.mxu2  ;;  %v1216_v21 = vpop.f32.mrf.mxu0 }
 0x1dc   : > { %v1719_v4 = vpop.f32.mrf.mxu3  ;;  %v1586_v19 = vrot.slane %v1521_v6, 5  ;;  %v1331_v22 = vpop.f32.mrf.mxu1  ;;  %v1242_v14 = vadd.f32 %v1216_v21, %v2928_v24 }
 0x1dd   : > { %v1784_v20 = vrot.slane %v1719_v4, 6  ;;  %vm1872_vm7 = vcmp.ge.f32.partialorder %v1852_v42, 0.0  ;;  %v1892_v29 = vmul.f32 0.2, %v1852_v42  ;;  %v1394_v47 = vrot.slane %v1331_v22, 1 }
 0x1de   : > { %v1587_v33 = vsel %vm734_vm2, %v1584_v0, %v1586_v19 }
 0x1df   : > { %v1912_v34 = vsel %vm1872_vm7, %v1852_v42, %v1892_v29  ;;  %v1631_v35 = vadd.f32 %v1587_v33, %v1433_v23  ;;  %v1785_v44 = vsel %vm933_vm3, %v1782_v2, %v1784_v20  ;;  %v1395_v55 = vsel %vm537_vm1, %v1392_v3, %v1394_v47 }
 0x1e0   : > { %v1932_v36 = vpack.c.bf16 %v1912_v34, %v1912_v34  ;;  %v1435_v61 = vadd.f32 %v1395_v55, %v1241_v58 }
 0x1e1   : > { %v1829_v32 = vadd.f32 %v1785_v44, %v1631_v35 }
 0x1e2   : > { %1953 = vst.msk [vmem:[%s2970_s9 + $0x38] sm:$0xf] %vm1938_vm5, %v1932_v36 }
 0x1e3   : > { %v1853_v37 = vadd.f32 %v2957_v11, %v1829_v32  ;;  %v1524_v57 = vpop.f32.mrf.mxu2  ;;  %v1218_v25 = vpop.f32.mrf.mxu0 }
 0x1e4   : > { %v1722_v52 = vpop.f32.mrf.mxu3  ;;  %v1588_v10 = vrot.slane %v1524_v57, 5  ;;  %v1333_v39 = vpop.f32.mrf.mxu1  ;;  %v1243_v24 = vadd.f32 %v1218_v25, %v2937_v40 }
 0x1e5   : > { %v1786_v28 = vrot.slane %v1722_v52, 6  ;;  %vm1873_vm8 = vcmp.ge.f32.partialorder %v1853_v37, 0.0  ;;  %v1893_v46 = vmul.f32 0.2, %v1853_v37  ;;  %v1396_v0 = vrot.slane %v1333_v39, 1 }
 0x1e6   : > { %v1589_v50 = vsel %vm734_vm2, %v1586_v19, %v1588_v10 }
 0x1e7   : > { %v1913_v54 = vsel %vm1873_vm8, %v1853_v37, %v1893_v46  ;;  %v1632_v1 = vadd.f32 %v1589_v50, %v1434_v43  ;;  %v1787_v62 = vsel %vm933_vm3, %v1784_v20, %v1786_v28  ;;  %v1397_v12 = vsel %vm537_vm1, %v1394_v47, %v1396_v0 }
 0x1e8   : > { %v1933_v31 = vpack.c.bf16 %v1913_v54, %v1913_v54  ;;  %v1436_v42 = vadd.f32 %v1397_v12, %v1242_v14  ;;  %v1437_v36 = vadd.f32 %v1396_v0, %v1243_v24 }
 0x1e9   : > { %v1830_v48 = vadd.f32 %v1787_v62, %v1632_v1 }
 0x1ea   : > { %1954 = vst.msk [vmem:[%s2970_s9 + $0x3c] sm:$0xf] %vm1938_vm5, %v1933_v31 }
 0x1eb   : > { %v1854_v60 = vadd.f32 %v2957_v11, %v1830_v48  ;;  %v1526_v45 = vpop.f32.mrf.mxu2  ;;  %v1221_v26 = vpop.f32.mrf.mxu0 }
 0x1ec   : > { %v1724_v9 = vpop.f32.mrf.mxu3  ;;  %v1590_v53 = vrot.slane %v1526_v45, 5  ;;  %v1336_v49 = vpop.f32.mrf.mxu1 }
 0x1ed   : > { %v1788_v41 = vrot.slane %v1724_v9, 6  ;;  %vm1874_vm9 = vcmp.ge.f32.partialorder %v1854_v60, 0.0  ;;  %v1894_v63 = vmul.f32 0.2, %v1854_v60 }
 0x1ee   : > { %v1591_v2 = vsel %vm734_vm2, %v1588_v10, %v1590_v53 }
 0x1ef   : > { %v1914_v38 = vsel %vm1874_vm9, %v1854_v60, %v1894_v63  ;;  %v1633_v51 = vadd.f32 %v1591_v2, %v1435_v61  ;;  %v1789_v13 = vsel %vm933_vm3, %v1786_v28, %v1788_v41 }
 0x1f0   : > { %v1934_v8 = vpack.c.bf16 %v1914_v38, %v1914_v38 }
 0x1f1   : > { %v1831_v5 = vadd.f32 %v1789_v13, %v1633_v51 }
 0x1f2   : > { %1955 = vst.msk [vmem:[%s2970_s9 + $0x40] sm:$0xf] %vm1938_vm5, %v1934_v8 }
 0x1f3   : > { %v1855_v16 = vadd.f32 %v2957_v11, %v1831_v5  ;;  %v1529_v56 = vpop.f32.mrf.mxu2  ;;  %v1222_v17 = vpop.f32.mrf.mxu0 }
 0x1f4   : > { %v1727_v15 = vpop.f32.mrf.mxu3  ;;  %v1592_v27 = vrot.slane %v1529_v56, 5  ;;  %v1337_v59 = vpop.f32.mrf.mxu1 }
 0x1f5   : > { %v1790_v7 = vrot.slane %v1727_v15, 6  ;;  %vm1875_vm10 = vcmp.ge.f32.partialorder %v1855_v16, 0.0  ;;  %v1895_v6 = vmul.f32 0.2, %v1855_v16 }
 0x1f6   : > { %v1593_v4 = vsel %vm734_vm2, %v1590_v53, %v1592_v27 }
 0x1f7   : > { %v1915_v19 = vsel %vm1875_vm10, %v1855_v16, %v1895_v6  ;;  %v1634_v20 = vadd.f32 %v1593_v4, %v1436_v42  ;;  %v1791_v23 = vsel %vm933_vm3, %v1788_v41, %v1790_v7 }
 0x1f8   : > { %v1935_v22 = vpack.c.bf16 %v1915_v19, %v1915_v19 }
 0x1f9   : > { %v1832_v21 = vadd.f32 %v1791_v23, %v1634_v20 }
 0x1fa   : > { %1956 = vst.msk [vmem:[%s2970_s9 + $0x44] sm:$0xf] %vm1938_vm5, %v1935_v22 }
 0x1fb   : > { %v1856_v29 = vadd.f32 %v2957_v11, %v1832_v21  ;;  %v1531_v3 = vpop.f32.mrf.mxu2 }
 0x1fc   : > { %v1729_v33 = vpop.f32.mrf.mxu3  ;;  %v1594_v34 = vrot.slane %v1531_v3, 5 }
 0x1fd   : > { %v1792_v35 = vrot.slane %v1729_v33, 6  ;;  %vm1876_vm1 = vcmp.ge.f32.partialorder %v1856_v29, 0.0  ;;  %v1896_v44 = vmul.f32 0.2, %v1856_v29 }
 0x1fe   : > { %v1595_v32 = vsel %vm734_vm2, %v1592_v27, %v1594_v34 }
 0x1ff   : > { %v1916_v30 = vsel %vm1876_vm1, %v1856_v29, %v1896_v44  ;;  %v1635_v18 = vadd.f32 %v1595_v32, %v1437_v36  ;;  %v1793_v40 = vsel %vm933_vm3, %v1790_v7, %v1792_v35 }
 0x200   : > { %v1936_v37 = vpack.c.bf16 %v1916_v30, %v1916_v30 }
 0x201   : > { %v1833_v57 = vadd.f32 %v1793_v40, %v1635_v18 }
 0x202   : > { %1957 = vst.msk [vmem:[%s2970_s9 + $0x48] sm:$0xf] %vm1938_vm5, %v1936_v37 }
 0x203   : > { %v1857_v52 = vadd.f32 %v2957_v11, %v1833_v57 }
 0x205   : > { %vm1877_vm11 = vcmp.ge.f32.partialorder %v1857_v52, 0.0  ;;  %v1897_v10 = vmul.f32 0.2, %v1857_v52 }
 0x207   : > { %v1917_v28 = vsel %vm1877_vm11, %v1857_v52, %v1897_v10 }
 0x208   : > { %v1937_v25 = vpack.c.bf16 %v1917_v28, %v1917_v28 }
 0x20a   : > { %1959 = vst.msk [vmem:[%s2970_s9 + $0x4c] sm:$0x3] %vm1958_vm12, %v1937_v25 }
 0x20b PF: > { %s13_s16 = sadd.s32 1, %s2580_s16   ;;  %s3126_s12 = smov %s2572_s14 }
 0x20c   : > { %p10_p7 = scmp.ge.s32.totalorder %s13_s16, 10   ;;  %s3127_s13 = smov %s2576_s15 }
 0x20d   : > { %s3128_s14 = smov %s3131_s17  ;;  %s3129_s15 = smov %s3135_s18 }
 0x20e   :  { %12 = sbr.rel (!%p10_p7) target bundleno = 3 (0x3), region = 71 }

// kernel: video_discrim_forward.7
= control target key start
LH: loop header
LB: loop body
LE: loop exit
PB: predicated region body
PF: predicated region fallthrough
CT: control target
= control target key end

     0   :  { %s1860_s12 = smov 0   ;;  %s1862_s13 = smov 0   ;;  %s2217_s0 = inlined_call_operand.vmem [shape: bf16[2,3,50,128], index: 0, kind: input, shape index: {}]   ;;  %s2218_s1 = inlined_call_operand.vmem [shape: bf16[8,128,32], index: 1, kind: input, shape index: {}]   ;;  %s2219_s2 = inlined_call_operand.vmem [shape: f32[1,32], index: 2, kind: input, shape index: {}]   ;;  %s2220_s3 = inlined_call_operand.vmem [shape: bf16[2,2,42,32], index: 3, kind: output, shape index: {}]  }
   0x1   :  { %s1864_s14 = smov 0   ;;  %s1866_s15 = smov 0  }
   0x2   :  { %s1868_s16 = smov 0  }
   0x3 LB: > { %s22_s17 = sadd.s32 1, %s1830_s14  ;;  %s25_s18 = sadd.s32 1, %s1834_s15  ;;  %s1838_s16 = sphi %s1868_s16, %s13_s16   ;;  %s1834_s15 = sphi %s1866_s15, %s2224_s15   ;;  %s1830_s14 = sphi %s1864_s14, %s2223_s14   ;;  %s1826_s13 = sphi %s1862_s13, %s2222_s13   ;;  %s1822_s12 = sphi %s1860_s12, %s2221_s12  }
   0x4   : > { %p23_p0 = scmp.ge.s32.totalorder %s22_s17, 2  ;;  %p1280_p1 = scmp.ge.s32.totalorder %s1838_s16, 1 }
   0x5   : > { %p151_p2 = scmp.lt.s32.totalorder %s1838_s16, 5 }
   0x6   : > { %s2226_s17 = smov (%p23_p0, %s22_s17), 0  ;;  %s2228_s18 = smov (!%p23_p0, %s25_s18), %s1834_s15 }
   0x7   : > { %p152_p3 = pnand %p1280_p1, %p151_p2  ;;  %p27_p4 = scmp.ge.s32.totalorder %s2228_s18, 2 }
   0x8   : > { %p179_p5 = scmp.lt.s32.totalorder (!%p152_p3), %s1826_s13, 1  ;;  %s1685_s5 = smul.u32 (!%p152_p3), 28, %s1822_s12 }
   0x9   : > { %s2230_s18 = smov (%p27_p4, %s2228_s18), 0  ;;  %155 = sbr.rel (%p152_p3) target bundleno = 307 (0x133), region = 32 }
   0xa   : > { %p186_p6 = scmp.lt.s32.totalorder (!%p152_p3), %s1822_s12, 1 }
   0xe   : > { %v1696_v0 = vld [vmem:[%s2218_s1 + $0x38] sm:$0xff]  ;;  %v1695_v4 = vld [vmem:[%s2218_s1 + $0x30] sm:$0xff]  ;;  %v1694_v8 = vld [vmem:[%s2218_s1 + $0x28] sm:$0xff]  ;;  %s2232_s13 = smov (!%p179_p5, %s1826_s13), 1  ;;  %vm420_vm0 = vcmask 1046528   ;;  %vm544_vm1 = vcmask 1040384  }
   0xf   : > { %v1704_v1 = vld [vmem:[%s2218_s1 + $0x78] sm:$0xff]  ;;  %289 = vmatpush.bf16.msra.mxu0 %v1696_v0  ;;  %v1703_v5 = vld [vmem:[%s2218_s1 + $0x70] sm:$0xff]  ;;  %v1702_v9 = vld [vmem:[%s2218_s1 + $0x68] sm:$0xff]  ;;  %s1756_s27 = smul.u32 84, %s2232_s13  ;;  %s2234_s12 = smov (!%p186_p6, %s1822_s12), 1  ;;  %vm1177_vm3 = vcmask 257024  }
  0x10   : > { %v1712_v2 = vld [vmem:[%s2218_s1 + $0xb8] sm:$0xff]  ;;  %387 = vmatpush.bf16.msra.mxu1 %v1704_v1  ;;  %v1711_v6 = vld [vmem:[%s2218_s1 + $0xb0] sm:$0xff]  ;;  %v1710_v10 = vld [vmem:[%s2218_s1 + $0xa8] sm:$0xff]  ;;  %s1757_s9 = smul.u32 6, %s2234_s12  ;;  %vm1183_vm9 = vcmask 253952  }
  0x11   : > { %v1720_v3 = vld [vmem:[%s2218_s1 + $0xf8] sm:$0xff]  ;;  %509 = vmatpush.bf16.msra.mxu2 %v1712_v2  ;;  %v1719_v7 = vld [vmem:[%s2218_s1 + $0xf0] sm:$0xff]  ;;  %v1718_v11 = vld [vmem:[%s2218_s1 + $0xe8] sm:$0xff]  ;;  %s183_s19 = scalar_lea.vmem %s2217_s0, %s1756_s27 }
  0x12   : > { %635 = vmatpush.bf16.msra.mxu3 %v1720_v3  ;;  %v1693_v12 = vld [vmem:[%s2218_s1 + $0x20] sm:$0xff]  ;;  %v1692_v16 = vld [vmem:[%s2218_s1 + $0x18] sm:$0xff]  ;;  %v1691_v20 = vld [vmem:[%s2218_s1 + $0x10] sm:$0xff]  ;;  %s1993_s24 = scalar_lea.vmem %s183_s19, %s1685_s5 }
  0x13   : > { %290 = vmatpush.bf16.msra.mxu0 %v1695_v4  ;;  %v1701_v13 = vld [vmem:[%s2218_s1 + $0x60] sm:$0xff]  ;;  %v1700_v17 = vld [vmem:[%s2218_s1 + $0x58] sm:$0xff]  ;;  %v1699_v21 = vld [vmem:[%s2218_s1 + $0x50] sm:$0xff] }
  0x14   : > { %388 = vmatpush.bf16.msra.mxu1 %v1703_v5  ;;  %v1709_v14 = vld [vmem:[%s2218_s1 + $0xa0] sm:$0xff]  ;;  %v1708_v18 = vld [vmem:[%s2218_s1 + $0x98] sm:$0xff]  ;;  %v1707_v22 = vld [vmem:[%s2218_s1 + $0x90] sm:$0xff] }
  0x15   : > { %510 = vmatpush.bf16.msra.mxu2 %v1711_v6  ;;  %v1717_v15 = vld [vmem:[%s2218_s1 + $0xe0] sm:$0xff]  ;;  %v1716_v19 = vld [vmem:[%s2218_s1 + $0xd8] sm:$0xff]  ;;  %v1715_v23 = vld [vmem:[%s2218_s1 + $0xd0] sm:$0xff] }
  0x16   : > { %636 = vmatpush.bf16.msra.mxu3 %v1719_v7  ;;  %v1690_v24 = vld [vmem:[%s2218_s1 + $0x8] sm:$0xff]  ;;  %v1689_v28 = vld [vmem:[%s2218_s1] sm:$0xff]  ;;  %v1747_v32 = vld [vmem:[%s2218_s1 + $0x1b8] sm:$0xff] }
  0x17   : > { %291 = vmatpush.bf16.msra.mxu0 %v1694_v8  ;;  %v1698_v25 = vld [vmem:[%s2218_s1 + $0x48] sm:$0xff]  ;;  %v1697_v29 = vld [vmem:[%s2218_s1 + $0x40] sm:$0xff]  ;;  %v1755_v33 = vld [vmem:[%s2218_s1 + $0x1f8] sm:$0xff] }
  0x18   : > { %389 = vmatpush.bf16.msra.mxu1 %v1702_v9  ;;  %v1706_v26 = vld [vmem:[%s2218_s1 + $0x88] sm:$0xff]  ;;  %v1705_v30 = vld [vmem:[%s2218_s1 + $0x80] sm:$0xff]  ;;  %v1739_v35 = vld [vmem:[%s2218_s1 + $0x178] sm:$0xff] }
  0x19   : > { %511 = vmatpush.bf16.msra.mxu2 %v1710_v10  ;;  %v1714_v27 = vld [vmem:[%s2218_s1 + $0xc8] sm:$0xff]  ;;  %v1713_v31 = vld [vmem:[%s2218_s1 + $0xc0] sm:$0xff]  ;;  %v1731_v36 = vld [vmem:[%s2218_s1 + $0x138] sm:$0xff] }
  0x1a   : > { %637 = vmatpush.bf16.msra.mxu3 %v1718_v11  ;;  %v1686_v34 = vld [vmem:[%s1993_s24] sm:$0xff]  ;;  %v1746_v37 = vld [vmem:[%s2218_s1 + $0x1b0] sm:$0xff]  ;;  %v1745_v41 = vld [vmem:[%s2218_s1 + $0x1a8] sm:$0xff] }
  0x1b   : > { %292 = vmatpush.bf16.msra.mxu0 %v1693_v12  ;;  %v1754_v38 = vld [vmem:[%s2218_s1 + $0x1f0] sm:$0xff]  ;;  %v1753_v42 = vld [vmem:[%s2218_s1 + $0x1e8] sm:$0xff]  ;;  %v1744_v45 = vld [vmem:[%s2218_s1 + $0x1a0] sm:$0xff] }
  0x1c   : > { %390 = vmatpush.bf16.msra.mxu1 %v1701_v13  ;;  %v1738_v39 = vld [vmem:[%s2218_s1 + $0x170] sm:$0xff]  ;;  %v1737_v43 = vld [vmem:[%s2218_s1 + $0x168] sm:$0xff]  ;;  %v1752_v46 = vld [vmem:[%s2218_s1 + $0x1e0] sm:$0xff] }
  0x1d   : > { %512 = vmatpush.bf16.msra.mxu2 %v1709_v14  ;;  %v1730_v40 = vld [vmem:[%s2218_s1 + $0x130] sm:$0xff]  ;;  %v1729_v44 = vld [vmem:[%s2218_s1 + $0x128] sm:$0xff]  ;;  %v1736_v47 = vld [vmem:[%s2218_s1 + $0x160] sm:$0xff] }
  0x1e   : > { %638 = vmatpush.bf16.msra.mxu3 %v1717_v15  ;;  %v1728_v48 = vld [vmem:[%s2218_s1 + $0x120] sm:$0xff]  ;;  %v1743_v49 = vld [vmem:[%s2218_s1 + $0x198] sm:$0xff]  ;;  %v1687_v51 = vld [vmem:[%s1993_s24 + $0x8] sm:$0xff] }
  0x1f   : > { %293 = vmatpush.bf16.msra.mxu0 %v1692_v16  ;;  %v1751_v50 = vld [vmem:[%s2218_s1 + $0x1d8] sm:$0xff]  ;;  %v1742_v54 = vld [vmem:[%s2218_s1 + $0x190] sm:$0xff]  ;;  %v1741_v58 = vld [vmem:[%s2218_s1 + $0x188] sm:$0xff] }
  0x20   : > { %391 = vmatpush.bf16.msra.mxu1 %v1700_v17  ;;  %v1735_v52 = vld [vmem:[%s2218_s1 + $0x158] sm:$0xff]  ;;  %v1750_v55 = vld [vmem:[%s2218_s1 + $0x1d0] sm:$0xff]  ;;  %v1749_v59 = vld [vmem:[%s2218_s1 + $0x1c8] sm:$0xff] }
  0x21   : > { %513 = vmatpush.bf16.msra.mxu2 %v1708_v18  ;;  %v1727_v53 = vld [vmem:[%s2218_s1 + $0x118] sm:$0xff]  ;;  %v1734_v56 = vld [vmem:[%s2218_s1 + $0x150] sm:$0xff]  ;;  %v1725_v60 = vld [vmem:[%s2218_s1 + $0x108] sm:$0xff] }
  0x22   : > { %639 = vmatpush.bf16.msra.mxu3 %v1716_v19  ;;  %v1726_v57 = vld [vmem:[%s2218_s1 + $0x110] sm:$0xff]  ;;  %v1733_v61 = vld [vmem:[%s2218_s1 + $0x148] sm:$0xff]  ;;  %v1740_v62 = vld [vmem:[%s2218_s1 + $0x180] sm:$0xff] }
  0x23   : > { %294 = vmatpush.bf16.msra.mxu0 %v1691_v20  ;;  %v1748_v63 = vld [vmem:[%s2218_s1 + $0x1c0] sm:$0xff]  ;;  %v1688_v2 = vld [vmem:[%s1993_s24 + $0x10] sm:$0xff]  ;;  %v202_v3 = vld [vmem:[%s1993_s24 + $0x18] sm:$0x1] }
  0x24   : > { %392 = vmatpush.bf16.msra.mxu1 %v1699_v21  ;;  %v1724_v0 = vld [vmem:[%s2218_s1 + $0x100] sm:$0xff]  ;;  %v232_v4 = vunpack.c.l.b16 %v202_v3  ;;  %v1723_v8 = vld [vmem:[%s1993_s24 + $0x2c] sm:$0xff]  ;;  %v1478_v9 = vld [vmem:[%s1993_s24 + $0x34] sm:$0x1] }
  0x25   : > { %514 = vmatpush.bf16.msra.mxu2 %v1707_v22  ;;  %v1732_v1 = vld [vmem:[%s2218_s1 + $0x140] sm:$0xff]  ;;  %v709_v10 = vunpack.c.l.b16 %v1478_v9 }
  0x26   : > { %640 = vmatpush.bf16.msra.mxu3 %v1715_v23  ;;  %v236_v5 = vpack.c.b16 %v232_v4, %v232_v4  ;;  %v1721_v6 = vld [vmem:[%s1993_s24 + $0x1c] sm:$0xff]  ;;  %v1722_v7 = vld [vmem:[%s1993_s24 + $0x24] sm:$0xff]  ;;  %s1758_s24 = smul.u32 12, %s2232_s13 }
  0x27   : > { %295 = vmatpush.bf16.msra.mxu0 %v1690_v24  ;;  %v713_v11 = vpack.c.b16 %v709_v10, %v709_v10 }
  0x28   : > { %393 = vmatpush.bf16.msra.mxu1 %v1698_v25  ;;  %s190_s13 = sadd.s32 %s1758_s24, %s1757_s9 }
  0x29   : > { %515 = vmatpush.bf16.msra.mxu2 %v1706_v26  ;;  %s1282_s12 = sshll.u32 %s190_s13, 2 }
  0x2a   : > { %641 = vmatpush.bf16.msra.mxu3 %v1714_v27  ;;  %s2162_s21 = scalar_lea.vmem %s2220_s3, %s1282_s12 }
  0x2b   : > { %296 = vmatpush.bf16.msra.mxu0 %v1689_v28 }
  0x2c   : > { %394 = vmatpush.bf16.msra.mxu1 %v1697_v29 }
  0x2d   : > { %516 = vmatpush.bf16.msra.mxu2 %v1705_v30 }
  0x2e   : > { %642 = vmatpush.bf16.msra.mxu3 %v1713_v31  ;;  %297 = vmatmul.bf16.vlgmr.msra.gmra.mxu0 %v1686_v34 }
  0x2f   : > { %395 = vmatmul.bf16.vlgmr.msra.gmra.mxu1 %v1686_v34  ;;  %766 = vmatpush.bf16.msrb.mxu0 %v1731_v36 }
  0x30   : > { %517 = vmatmul.bf16.vlgmr.msra.gmra.mxu2 %v1686_v34  ;;  %864 = vmatpush.bf16.msrb.mxu1 %v1739_v35 }
  0x31   : > { %985 = vmatpush.bf16.msrb.mxu2 %v1747_v32  ;;  %643 = vmatmul.bf16.vlgmr.msra.gmra.mxu3 %v1686_v34 }
  0x32   : > { %1110 = vmatpush.bf16.msrb.mxu3 %v1755_v33 }
  0x33   : > { %767 = vmatpush.bf16.msrb.mxu0 %v1730_v40 }
  0x34   : > { %865 = vmatpush.bf16.msrb.mxu1 %v1738_v39 }
  0x35   : > { %986 = vmatpush.bf16.msrb.mxu2 %v1746_v37 }
  0x36   : > { %1111 = vmatpush.bf16.msrb.mxu3 %v1754_v38 }
  0x37   : > { %768 = vmatpush.bf16.msrb.mxu0 %v1729_v44 }
  0x38   : > { %866 = vmatpush.bf16.msrb.mxu1 %v1737_v43 }
  0x39   : > { %987 = vmatpush.bf16.msrb.mxu2 %v1745_v41 }
  0x3a   : > { %1112 = vmatpush.bf16.msrb.mxu3 %v1753_v42 }
  0x3b   : > { %769 = vmatpush.bf16.msrb.mxu0 %v1728_v48 }
  0x3c   : > { %867 = vmatpush.bf16.msrb.mxu1 %v1736_v47 }
  0x3d   : > { %988 = vmatpush.bf16.msrb.mxu2 %v1744_v45 }
  0x3e   : > { %1113 = vmatpush.bf16.msrb.mxu3 %v1752_v46  ;;  %302 = vmatmul.bf16.gmra.mxu0 %v1687_v51 }
  0x3f   : > { %400 = vmatmul.bf16.gmra.mxu1 %v1687_v51  ;;  %770 = vmatpush.bf16.msrb.mxu0 %v1727_v53 }
  0x40   : > { %522 = vmatmul.bf16.gmra.mxu2 %v1687_v51  ;;  %868 = vmatpush.bf16.msrb.mxu1 %v1735_v52 }
  0x41   : > { %989 = vmatpush.bf16.msrb.mxu2 %v1743_v49  ;;  %647 = vmatmul.bf16.gmra.mxu3 %v1687_v51 }
  0x42   : > { %1114 = vmatpush.bf16.msrb.mxu3 %v1751_v50 }
  0x43   : > { %771 = vmatpush.bf16.msrb.mxu0 %v1726_v57 }
  0x44   : > { %869 = vmatpush.bf16.msrb.mxu1 %v1734_v56 }
  0x45   : > { %990 = vmatpush.bf16.msrb.mxu2 %v1742_v54 }
  0x46   : > { %1115 = vmatpush.bf16.msrb.mxu3 %v1750_v55 }
  0x47   : > { %772 = vmatpush.bf16.msrb.mxu0 %v1725_v60 }
  0x48   : > { %870 = vmatpush.bf16.msrb.mxu1 %v1733_v61 }
  0x49   : > { %991 = vmatpush.bf16.msrb.mxu2 %v1741_v58 }
  0x4a   : > { %1116 = vmatpush.bf16.msrb.mxu3 %v1749_v59 }
  0x4b   : > { %773 = vmatpush.bf16.msrb.mxu0 %v1724_v0 }
  0x4c   : > { %871 = vmatpush.bf16.msrb.mxu1 %v1732_v1 }
  0x4d   : > { %992 = vmatpush.bf16.msrb.mxu2 %v1740_v62 }
  0x4e   : > { %1117 = vmatpush.bf16.msrb.mxu3 %v1748_v63  ;;  %307 = vmatmul.bf16.gmra.mxu0 %v1688_v2 }
  0x4f   : > { %405 = vmatmul.bf16.gmra.mxu1 %v1688_v2 }
  0x50   : > { %527 = vmatmul.bf16.gmra.mxu2 %v1688_v2 }
  0x51   : > { %652 = vmatmul.bf16.gmra.mxu3 %v1688_v2 }
  0x5e   : > { %312 = vmatmul.bf16.gmra.mxu0 %v236_v5 }
  0x5f   : > { %410 = vmatmul.bf16.gmra.mxu1 %v236_v5 }
  0x60   : > { %532 = vmatmul.bf16.gmra.mxu2 %v236_v5 }
  0x61   : > { %657 = vmatmul.bf16.gmra.mxu3 %v236_v5 }
  0x6e   : > { %774 = vmatmul.bf16.vlgmr.msrb.gmra.mxu0 %v1721_v6 }
  0x6f   : > { %872 = vmatmul.bf16.vlgmr.msrb.gmra.mxu1 %v1721_v6 }
  0x70   : > { %993 = vmatmul.bf16.vlgmr.msrb.gmra.mxu2 %v1721_v6 }
  0x71   : > { %1118 = vmatmul.bf16.vlgmr.msrb.gmra.mxu3 %v1721_v6 }
  0x7e   : > { %779 = vmatmul.bf16.gmra.mxu0 %v1722_v7 }
  0x7f   : > { %877 = vmatmul.bf16.gmra.mxu1 %v1722_v7 }
  0x80   : > { %998 = vmatmul.bf16.gmra.mxu2 %v1722_v7 }
  0x81   : > { %1122 = vmatmul.bf16.gmra.mxu3 %v1722_v7 }
  0x8e   : > { %784 = vmatmul.bf16.gmra.mxu0 %v1723_v8 }
  0x8f   : > { %882 = vmatmul.bf16.gmra.mxu1 %v1723_v8 }
  0x90   : > { %1003 = vmatmul.bf16.gmra.mxu2 %v1723_v8 }
  0x91   : > { %1127 = vmatmul.bf16.gmra.mxu3 %v1723_v8 }
  0x9e   : > { %789 = vmatmul.bf16.gmra.mxu0 %v713_v11 }
  0x9f   : > { %887 = vmatmul.bf16.gmra.mxu1 %v713_v11 }
  0xa0   : > { %1008 = vmatmul.bf16.gmra.mxu2 %v713_v11 }
  0xa1   : > { %1132 = vmatmul.bf16.gmra.mxu3 %v713_v11 }
  0xab   : > { %v298_v12 = vpop.f32.mrf.mxu0 }
  0xac   : > { %v396_v13 = vpop.f32.mrf.mxu1 }
  0xad   : > { %v421_v14 = vrot.slane %v396_v13, 1 }
  0xb3   : > { %v518_v15 = vpop.f32.mrf.mxu2  ;;  %v300_v17 = vpop.f32.mrf.mxu0 }
  0xb4   : > { %v644_v16 = vpop.f32.mrf.mxu3  ;;  %v398_v18 = vpop.f32.mrf.mxu1  ;;  %v545_v24 = vrot.slane %v518_v15, 7 }
  0xb5   : > { %v422_v19 = vrot.slane %v398_v18, 1 }
  0xb7   : > { %v423_v20 = vsel %vm420_vm0, %v421_v14, %v422_v19 }
  0xb8   : > { %v438_v21 = vadd.f32 %v423_v20, %v298_v12 }
  0xbb   : > { %v520_v22 = vpop.f32.mrf.mxu2  ;;  %v2106_v26 = vpop.f32.mrf.mxu0 }
  0xbc   : > { %v645_v23 = vpop.f32.mrf.mxu3  ;;  %v546_v25 = vrot.slane %v520_v22, 7  ;;  %v401_v27 = vpop.f32.mrf.mxu1 }
  0xbd   : > { %v424_v56 = vrot.slane %v401_v27, 1 }
  0xbe   : > { %v547_v28 = vsel %vm544_vm1, %v545_v24, %v546_v25 }
  0xbf   : > { %v564_v29 = vadd.f32 %v547_v28, %v438_v21  ;;  %v425_v62 = vsel %vm420_vm0, %v422_v19, %v424_v56 }
  0xc0   : > { %v439_v2 = vadd.f32 %v425_v62, %v300_v17  ;;  %v2149_v17 = vld [vmem:[%s2219_s2] ss:$0 sm:$0xff] }
  0xc1   : > { %v662_v63 = vadd.f32 %v645_v23, %v564_v29 }
  0xc3   : > { %v523_v30 = vpop.f32.mrf.mxu2  ;;  %v2109_v32 = vpop.f32.mrf.mxu0 }
  0xc4   : > { %v648_v31 = vpop.f32.mrf.mxu3  ;;  %v2111_v33 = vpop.f32.mrf.mxu1  ;;  %v548_v59 = vrot.slane %v523_v30, 7 }
  0xc5   : > { %v426_v6 = vrot.slane %v2111_v33, 1 }
  0xc6   : > { %v549_v0 = vsel %vm544_vm1, %v546_v25, %v548_v59 }
  0xc7   : > { %v565_v11 = vadd.f32 %v549_v0, %v439_v2  ;;  %v427_v18 = vsel %vm420_vm0, %v424_v56, %v426_v6 }
  0xc8   : > { %v440_v23 = vadd.f32 %v427_v18, %v2106_v26 }
  0xc9   : > { %v663_v19 = vadd.f32 %v648_v31, %v565_v11 }
  0xcb   : > { %v2113_v34 = vpop.f32.mrf.mxu2  ;;  %v2117_v36 = vpop.f32.mrf.mxu0 }
  0xcc   : > { %v2115_v35 = vpop.f32.mrf.mxu3  ;;  %v2119_v37 = vpop.f32.mrf.mxu1  ;;  %v550_v13 = vrot.slane %v2113_v34, 7 }
  0xcd   : > { %v428_v29 = vrot.slane %v2119_v37, 1 }
  0xce   : > { %v551_v21 = vsel %vm544_vm1, %v548_v59, %v550_v13 }
  0xcf   : > { %v566_v31 = vadd.f32 %v551_v21, %v440_v23 }
  0xd3   : > { %v2121_v38 = vpop.f32.mrf.mxu2  ;;  %v2125_v40 = vpop.f32.mrf.mxu0 }
  0xd4   : > { %v2123_v39 = vpop.f32.mrf.mxu3  ;;  %v2127_v41 = vpop.f32.mrf.mxu1 }
  0xdb   : > { %v2129_v42 = vpop.f32.mrf.mxu2  ;;  %v313_v44 = vpop.f32.mrf.mxu0 }
  0xdc   : > { %v2131_v43 = vpop.f32.mrf.mxu3  ;;  %v411_v45 = vpop.f32.mrf.mxu1 }
  0xe3   : > { %v2133_v46 = vpop.f32.mrf.mxu2  ;;  %v314_v48 = vpop.f32.mrf.mxu0 }
  0xe4   : > { %v2135_v47 = vpop.f32.mrf.mxu3  ;;  %v412_v49 = vpop.f32.mrf.mxu1  ;;  %v552_v48 = vrot.slane %v2121_v38, 7 }
  0xe6   : > { %v553_v38 = vsel %vm544_vm1, %v550_v13, %v552_v48 }
  0xeb   : > { %v535_v50 = vpop.f32.mrf.mxu2  ;;  %v775_v52 = vpop.f32.mrf.mxu0 }
  0xec   : > { %v660_v51 = vpop.f32.mrf.mxu3  ;;  %v873_v53 = vpop.f32.mrf.mxu1  ;;  %v793_v3 = vadd.f32 %v775_v52, %v662_v63 }
  0xed   : > { %v897_v60 = vrot.slane %v873_v53, 1  ;;  %v429_v51 = vsel %vm420_vm0, %v426_v6, %v428_v29  ;;  %v664_v53 = vadd.f32 %v2115_v35, %v566_v31 }
  0xee   : > { %v441_v56 = vadd.f32 %v429_v51, %v2109_v32 }
  0xf0   : > { %v567_v0 = vadd.f32 %v553_v38, %v441_v56 }
  0xf3   : > { %v994_v54 = vpop.f32.mrf.mxu2  ;;  %v777_v57 = vpop.f32.mrf.mxu0 }
  0xf4   : > { %v1119_v55 = vpop.f32.mrf.mxu3  ;;  %v875_v58 = vpop.f32.mrf.mxu1  ;;  %v1020_v7 = vrot.slane %v994_v54, 7  ;;  %v794_v24 = vadd.f32 %v777_v57, %v663_v19 }
  0xf5   : > { %v898_v61 = vrot.slane %v875_v58, 1 }
  0xf7   : > { %v899_v1 = vsel %vm420_vm0, %v897_v60, %v898_v61 }
  0xf8   : > { %v914_v12 = vadd.f32 %v899_v1, %v793_v3  ;;  %v554_v3 = vrot.slane %v2129_v42, 7 }
  0xfb   : > { %v996_v4 = vpop.f32.mrf.mxu2  ;;  %v780_v9 = vpop.f32.mrf.mxu0 }
  0xfc   : > { %v1120_v5 = vpop.f32.mrf.mxu3  ;;  %v1021_v8 = vrot.slane %v996_v4, 7  ;;  %v878_v10 = vpop.f32.mrf.mxu1  ;;  %v795_v57 = vadd.f32 %v780_v9, %v664_v53 }
  0xfd   : > { %v900_v15 = vrot.slane %v878_v10, 1  ;;  %v555_v10 = vsel %vm544_vm1, %v552_v48, %v554_v3 }
  0xfe   : > { %v1022_v14 = vsel %vm544_vm1, %v1020_v7, %v1021_v8 }
  0xff   : > { %v1039_v16 = vadd.f32 %v1022_v14, %v914_v12  ;;  %v901_v22 = vsel %vm420_vm0, %v898_v61, %v900_v15  ;;  %v430_v61 = vrot.slane %v2127_v41, 1  ;;  %v665_v41 = vadd.f32 %v2123_v39, %v567_v0 }
 0x100   : > { %v915_v45 = vadd.f32 %v901_v22, %v794_v24 }
 0x101   : > { %v1137_v20 = vadd.f32 %v1120_v5, %v1039_v16  ;;  %v431_v7 = vsel %vm420_vm0, %v428_v29, %v430_v61  ;;  %v556_v16 = vrot.slane %v2133_v46, 7  ;;  %v443_v29 = vadd.f32 %v430_v61, %v2125_v40 }
 0x102   : > { %v442_v12 = vadd.f32 %v431_v7, %v2117_v36 }
 0x103   : > { %v1147_v25 = vadd.f32 %v2149_v17, %v1137_v20  ;;  %v999_v27 = vpop.f32.mrf.mxu2  ;;  %v782_v33 = vpop.f32.mrf.mxu0 }
 0x104   : > { %v1123_v28 = vpop.f32.mrf.mxu3  ;;  %v1023_v30 = vrot.slane %v999_v27, 7  ;;  %v880_v34 = vpop.f32.mrf.mxu1  ;;  %v796_v42 = vadd.f32 %v782_v33, %v665_v41  ;;  %v568_v20 = vadd.f32 %v555_v10, %v442_v12  ;;  %v557_v27 = vsel %vm544_vm1, %v554_v3, %v556_v16 }
 0x105   : > { %vm1153_vm2 = vcmp.ge.f32.partialorder %v1147_v25, 0.0  ;;  %v1159_v44 = vmul.f32 0.2, %v1147_v25  ;;  %v902_v26 = vrot.slane %v880_v34, 1  ;;  %v569_v34 = vadd.f32 %v557_v27, %v443_v29 }
 0x106   : > { %v1024_v49 = vsel %vm544_vm1, %v1021_v8, %v1023_v30  ;;  %v666_v46 = vadd.f32 %v2131_v43, %v568_v20 }
 0x107   : > { %v1165_v37 = vsel %vm1153_vm2, %v1147_v25, %v1159_v44  ;;  %v1040_v50 = vadd.f32 %v1024_v49, %v915_v45  ;;  %v903_v55 = vsel %vm420_vm0, %v900_v15, %v902_v26  ;;  %v667_v51 = vadd.f32 %v2135_v47, %v569_v34 }
 0x108   : > { %v1171_v52 = vpack.c.bf16 %v1165_v37, %v1165_v37  ;;  %v916_v2 = vadd.f32 %v903_v55, %v795_v57 }
 0x109   : > { %v1138_v54 = vadd.f32 %v1123_v28, %v1040_v50 }
 0x10a   : > { %1178 = vst.msk [vmem:[%s2162_s21] sm:$0xf] %vm1177_vm3, %v1171_v52 }
 0x10b   : > { %v1148_v58 = vadd.f32 %v2149_v17, %v1138_v54  ;;  %v1001_v59 = vpop.f32.mrf.mxu2  ;;  %v785_v63 = vpop.f32.mrf.mxu0 }
 0x10c   : > { %v1125_v60 = vpop.f32.mrf.mxu3  ;;  %v1025_v62 = vrot.slane %v1001_v59, 7  ;;  %v883_v35 = vpop.f32.mrf.mxu1  ;;  %v797_v31 = vadd.f32 %v785_v63, %v666_v46 }
 0x10d   : > { %vm1154_vm4 = vcmp.ge.f32.partialorder %v1148_v58, 0.0  ;;  %v1160_v1 = vmul.f32 0.2, %v1148_v58  ;;  %v904_v32 = vrot.slane %v883_v35, 1 }
 0x10e   : > { %v1026_v4 = vsel %vm544_vm1, %v1023_v30, %v1025_v62 }
 0x10f   : > { %v1166_v5 = vsel %vm1154_vm4, %v1148_v58, %v1160_v1  ;;  %v1041_v6 = vadd.f32 %v1026_v4, %v916_v2  ;;  %v905_v11 = vsel %vm420_vm0, %v902_v26, %v904_v32 }
 0x110   : > { %v1172_v8 = vpack.c.bf16 %v1166_v5, %v1166_v5  ;;  %v917_v22 = vadd.f32 %v905_v11, %v796_v42 }
 0x111   : > { %v1139_v9 = vadd.f32 %v1125_v60, %v1041_v6 }
 0x112   : > { %1179 = vst.msk [vmem:[%s2162_s21 + $0x4] sm:$0xf] %vm1177_vm3, %v1172_v8 }
 0x113   : > { %v1149_v13 = vadd.f32 %v2149_v17, %v1139_v9  ;;  %v1004_v14 = vpop.f32.mrf.mxu2  ;;  %v787_v19 = vpop.f32.mrf.mxu0 }
 0x114   : > { %v1128_v15 = vpop.f32.mrf.mxu3  ;;  %v1027_v18 = vrot.slane %v1004_v14, 7  ;;  %v885_v39 = vpop.f32.mrf.mxu1  ;;  %v798_v38 = vadd.f32 %v787_v19, %v667_v51 }
 0x115   : > { %vm1155_vm5 = vcmp.ge.f32.partialorder %v1149_v13, 0.0  ;;  %v1161_v21 = vmul.f32 0.2, %v1149_v13  ;;  %v906_v24 = vrot.slane %v885_v39, 1 }
 0x116   : > { %v1028_v23 = vsel %vm544_vm1, %v1025_v62, %v1027_v18 }
 0x117   : > { %v1167_v25 = vsel %vm1155_vm5, %v1149_v13, %v1161_v21  ;;  %v1042_v36 = vadd.f32 %v1028_v23, %v917_v22  ;;  %v907_v33 = vsel %vm420_vm0, %v904_v32, %v906_v24  ;;  %v919_v62 = vadd.f32 %v906_v24, %v798_v38 }
 0x118   : > { %v1173_v28 = vpack.c.bf16 %v1167_v25, %v1167_v25  ;;  %v918_v40 = vadd.f32 %v907_v33, %v797_v31 }
 0x119   : > { %v1140_v30 = vadd.f32 %v1128_v15, %v1042_v36 }
 0x11a   : > { %1180 = vst.msk [vmem:[%s2162_s21 + $0x8] sm:$0xf] %vm1177_vm3, %v1173_v28 }
 0x11b   : > { %v1150_v44 = vadd.f32 %v2149_v17, %v1140_v30  ;;  %v1006_v45 = vpop.f32.mrf.mxu2  ;;  %v790_v26 = vpop.f32.mrf.mxu0 }
 0x11c   : > { %v1130_v48 = vpop.f32.mrf.mxu3  ;;  %v1029_v49 = vrot.slane %v1006_v45, 7  ;;  %v888_v37 = vpop.f32.mrf.mxu1 }
 0x11d   : > { %vm1156_vm6 = vcmp.ge.f32.partialorder %v1150_v44, 0.0  ;;  %v1162_v50 = vmul.f32 0.2, %v1150_v44 }
 0x11e   : > { %v1030_v43 = vsel %vm544_vm1, %v1027_v18, %v1029_v49 }
 0x11f   : > { %v1168_v52 = vsel %vm1156_vm6, %v1150_v44, %v1162_v50  ;;  %v1043_v53 = vadd.f32 %v1030_v43, %v918_v40 }
 0x120   : > { %v1174_v54 = vpack.c.bf16 %v1168_v52, %v1168_v52 }
 0x121   : > { %v1141_v55 = vadd.f32 %v1130_v48, %v1043_v53 }
 0x122   : > { %1181 = vst.msk [vmem:[%s2162_s21 + $0xc] sm:$0xf] %vm1177_vm3, %v1174_v54 }
 0x123   : > { %v1151_v56 = vadd.f32 %v2149_v17, %v1141_v55  ;;  %v1009_v57 = vpop.f32.mrf.mxu2  ;;  %v791_v60 = vpop.f32.mrf.mxu0 }
 0x124   : > { %v1133_v58 = vpop.f32.mrf.mxu3  ;;  %v1031_v59 = vrot.slane %v1009_v57, 7  ;;  %v889_v61 = vpop.f32.mrf.mxu1 }
 0x125   : > { %vm1157_vm7 = vcmp.ge.f32.partialorder %v1151_v56, 0.0  ;;  %v1163_v63 = vmul.f32 0.2, %v1151_v56 }
 0x126   : > { %v1032_v47 = vsel %vm544_vm1, %v1029_v49, %v1031_v59 }
 0x127   : > { %v1169_v35 = vsel %vm1157_vm7, %v1151_v56, %v1163_v63  ;;  %v1044_v0 = vadd.f32 %v1032_v47, %v919_v62 }
 0x128   : > { %v1175_v1 = vpack.c.bf16 %v1169_v35, %v1169_v35 }
 0x129   : > { %v1142_v2 = vadd.f32 %v1133_v58, %v1044_v0 }
 0x12a   : > { %1182 = vst.msk [vmem:[%s2162_s21 + $0x10] sm:$0xf] %vm1177_vm3, %v1175_v1 }
 0x12b   : > { %v1152_v3 = vadd.f32 %v2149_v17, %v1142_v2  ;;  %v1011_v4 = vpop.f32.mrf.mxu2 }
 0x12c   : > { %v1135_v32 = vpop.f32.mrf.mxu3 }
 0x12d   : > { %vm1158_vm8 = vcmp.ge.f32.partialorder %v1152_v3, 0.0  ;;  %v1164_v5 = vmul.f32 0.2, %v1152_v3 }
 0x12f   : > { %v1170_v6 = vsel %vm1158_vm8, %v1152_v3, %v1164_v5 }
 0x130   : > { %v1176_v7 = vpack.c.bf16 %v1170_v6, %v1170_v6 }
 0x132   : > { %1184 = vst.msk [vmem:[%s2162_s21 + $0x14] sm:$0x1] %vm1183_vm9, %v1176_v7 }
 0x133 PF: > { %s13_s16 = sadd.s32 1, %s1838_s16   ;;  %s2221_s12 = smov %s1830_s14 }
 0x134   : > { %p10_p7 = scmp.ge.s32.totalorder %s13_s16, 6   ;;  %s2222_s13 = smov %s1834_s15 }
 0x135   : > { %s2223_s14 = smov %s2226_s17  ;;  %s2224_s15 = smov %s2230_s18 }
 0x136   :  { %12 = sbr.rel (!%p10_p7) target bundleno = 3 (0x3), region = 71 }

// kernel: video_discrim_forward.8
= control target key start
LH: loop header
LB: loop body
LE: loop exit
PB: predicated region body
PF: predicated region fallthrough
CT: control target
= control target key end

     0   :  { %s2688_s12 = smov 0   ;;  %s2690_s13 = smov 0   ;;  %s3182_s0 = inlined_call_operand.vmem [shape: bf16[2,2,17,256], index: 0, kind: input, shape index: {}]   ;;  %s3183_s1 = inlined_call_operand.vmem [shape: bf16[8,256,64], index: 1, kind: input, shape index: {}]   ;;  %s3184_s2 = inlined_call_operand.vmem [shape: f32[1,64], index: 2, kind: input, shape index: {}]   ;;  %s3185_s3 = inlined_call_operand.vmem [shape: bf16[2,1,12,64], index: 3, kind: output, shape index: {}]  }
   0x1   :  { %s2692_s14 = smov 0  }
   0x2 LB: > { %s25_s15 = sadd.s32 1, %s2662_s13  ;;  %p1724_p0 = scmp.ge.s32.totalorder %s2666_s14, 1  ;;  %s2666_s14 = sphi %s2692_s14, %s13_s14   ;;  %s2662_s13 = sphi %s2690_s13, %s3187_s13   ;;  %s2658_s12 = sphi %s2688_s12, %s3186_s12  }
   0x3   : > { %p27_p1 = scmp.ge.s32.totalorder %s25_s15, 2  ;;  %p151_p2 = scmp.lt.s32.totalorder %s2666_s14, 3 }
   0x5   : > { %s3189_s15 = smov (%p27_p1, %s25_s15), 0  ;;  %p152_p3 = pnand %p1724_p0, %p151_p2 }
   0x6   : > { %p179_p4 = scmp.lt.s32.totalorder (!%p152_p3), %s2658_s12, 1 }
   0x7   : > { %155 = sbr.rel (%p152_p3) target bundleno = 306 (0x132), region = 32 }
   0xc   : > { %v2495_v0 = vld [vmem:[%s3183_s1 + $0x38] sm:$0xff]  ;;  %v2494_v4 = vld [vmem:[%s3183_s1 + $0x30] sm:$0xff]  ;;  %v2493_v8 = vld [vmem:[%s3183_s1 + $0x28] sm:$0xff]  ;;  %s3191_s12 = smov (!%p179_p4, %s2658_s12), 1  ;;  %vm545_vm0 = vcmask 1046528   ;;  %vm718_vm1 = vcmask 1043456  }
   0xd   : > { %v2503_v1 = vld [vmem:[%s3183_s1 + $0x78] sm:$0xff]  ;;  %344 = vmatpush.bf16.msra.mxu0 %v2495_v0  ;;  %v2502_v5 = vld [vmem:[%s3183_s1 + $0x70] sm:$0xff]  ;;  %v2501_v9 = vld [vmem:[%s3183_s1 + $0x68] sm:$0xff]  ;;  %s2618_s10 = smul.u32 48, %s3191_s12  ;;  %vm894_vm2 = vcmask 1042432   ;;  %s2485_s5 = sshll.u32 %s3191_s12, 3 }
   0xe   : > { %v2511_v2 = vld [vmem:[%s3183_s1 + $0xb8] sm:$0xff]  ;;  %361 = vmatpush.bf16.msra.mxu1 %v2503_v1  ;;  %v2510_v6 = vld [vmem:[%s3183_s1 + $0xb0] sm:$0xff]  ;;  %v2509_v10 = vld [vmem:[%s3183_s1 + $0xa8] sm:$0xff]  ;;  %s192_s8 = scalar_lea.vmem %s3185_s3, %s2485_s5  ;;  %vm1628_vm4 = vcmask 519168   ;;  %vm1630_vm6 = vcmask 517120  }
   0xf   : > { %v2519_v3 = vld [vmem:[%s3183_s1 + $0xf8] sm:$0xff]  ;;  %509 = vmatpush.bf16.msra.mxu2 %v2511_v2  ;;  %v2518_v7 = vld [vmem:[%s3183_s1 + $0xf0] sm:$0xff]  ;;  %v2517_v11 = vld [vmem:[%s3183_s1 + $0xe8] sm:$0xff]  ;;  %s2794_s25 = scalar_lea.vmem %s3182_s0, %s2618_s10 }
  0x10   : > { %526 = vmatpush.bf16.msra.mxu3 %v2519_v3  ;;  %v2492_v12 = vld [vmem:[%s3183_s1 + $0x20] sm:$0xff]  ;;  %v2491_v16 = vld [vmem:[%s3183_s1 + $0x18] sm:$0xff]  ;;  %v2490_v20 = vld [vmem:[%s3183_s1 + $0x10] sm:$0xff] }
  0x11   : > { %345 = vmatpush.bf16.msra.mxu0 %v2494_v4  ;;  %v2500_v13 = vld [vmem:[%s3183_s1 + $0x60] sm:$0xff]  ;;  %v2499_v17 = vld [vmem:[%s3183_s1 + $0x58] sm:$0xff]  ;;  %v2498_v21 = vld [vmem:[%s3183_s1 + $0x50] sm:$0xff] }
  0x12   : > { %362 = vmatpush.bf16.msra.mxu1 %v2502_v5  ;;  %v2508_v14 = vld [vmem:[%s3183_s1 + $0xa0] sm:$0xff]  ;;  %v2507_v18 = vld [vmem:[%s3183_s1 + $0x98] sm:$0xff]  ;;  %v2506_v22 = vld [vmem:[%s3183_s1 + $0x90] sm:$0xff] }
  0x13   : > { %510 = vmatpush.bf16.msra.mxu2 %v2510_v6  ;;  %v2516_v15 = vld [vmem:[%s3183_s1 + $0xe0] sm:$0xff]  ;;  %v2515_v19 = vld [vmem:[%s3183_s1 + $0xd8] sm:$0xff]  ;;  %v2514_v23 = vld [vmem:[%s3183_s1 + $0xd0] sm:$0xff] }
  0x14   : > { %527 = vmatpush.bf16.msra.mxu3 %v2518_v7  ;;  %v2489_v24 = vld [vmem:[%s3183_s1 + $0x8] sm:$0xff]  ;;  %v2488_v28 = vld [vmem:[%s3183_s1] sm:$0xff]  ;;  %v2543_v36 = vld [vmem:[%s3183_s1 + $0x1b8] sm:$0xff] }
  0x15   : > { %346 = vmatpush.bf16.msra.mxu0 %v2493_v8  ;;  %v2497_v25 = vld [vmem:[%s3183_s1 + $0x48] sm:$0xff]  ;;  %v2496_v29 = vld [vmem:[%s3183_s1 + $0x40] sm:$0xff]  ;;  %v2551_v37 = vld [vmem:[%s3183_s1 + $0x1f8] sm:$0xff] }
  0x16   : > { %363 = vmatpush.bf16.msra.mxu1 %v2501_v9  ;;  %v2505_v26 = vld [vmem:[%s3183_s1 + $0x88] sm:$0xff]  ;;  %v1730_v30 = vld [vmem:[%s2794_s25] sm:$0xf]  ;;  %v2486_v32 = vld [vmem:[%s2794_s25 + $0x4] sm:$0xf] }
  0x17   : > { %511 = vmatpush.bf16.msra.mxu2 %v2509_v10  ;;  %v2513_v27 = vld [vmem:[%s3183_s1 + $0xc8] sm:$0xff]  ;;  %v2504_v34 = vld [vmem:[%s3183_s1 + $0x80] sm:$0xff]  ;;  %v2527_v40 = vld [vmem:[%s3183_s1 + $0x138] sm:$0xff] }
  0x18   : > { %528 = vmatpush.bf16.msra.mxu3 %v2517_v11  ;;  %v2487_v31 = vld [vmem:[%s2794_s25 + $0x4] sm:$0xf0]  ;;  %v1732_v33 = vld [vmem:[%s2794_s25 + $0x8] sm:$0xf0]  ;;  %v2512_v35 = vld [vmem:[%s3183_s1 + $0xc0] sm:$0xff] }
  0x19   : > { %347 = vmatpush.bf16.msra.mxu0 %v2492_v12  ;;  %v2824_v38 = vor.u32 %v2487_v31, %v1730_v30  ;;  %v2826_v39 = vor.u32 %v2486_v32, %v1732_v33  ;;  %v2535_v41 = vld [vmem:[%s3183_s1 + $0x178] sm:$0xff]  ;;  %v2542_v42 = vld [vmem:[%s3183_s1 + $0x1b0] sm:$0xff]  ;;  %v2541_v46 = vld [vmem:[%s3183_s1 + $0x1a8] sm:$0xff] }
  0x1a   : > { %364 = vmatpush.bf16.msra.mxu1 %v2500_v13  ;;  %v2550_v43 = vld [vmem:[%s3183_s1 + $0x1f0] sm:$0xff]  ;;  %v2549_v47 = vld [vmem:[%s3183_s1 + $0x1e8] sm:$0xff]  ;;  %v2540_v51 = vld [vmem:[%s3183_s1 + $0x1a0] sm:$0xff] }
  0x1b   : > { %512 = vmatpush.bf16.msra.mxu2 %v2508_v14  ;;  %v2526_v44 = vld [vmem:[%s3183_s1 + $0x130] sm:$0xff]  ;;  %v2525_v49 = vld [vmem:[%s3183_s1 + $0x128] sm:$0xff]  ;;  %v2548_v52 = vld [vmem:[%s3183_s1 + $0x1e0] sm:$0xff] }
  0x1c   : > { %529 = vmatpush.bf16.msra.mxu3 %v2516_v15  ;;  %v2534_v45 = vld [vmem:[%s3183_s1 + $0x170] sm:$0xff]  ;;  %v2533_v50 = vld [vmem:[%s3183_s1 + $0x168] sm:$0xff]  ;;  %v2524_v55 = vld [vmem:[%s3183_s1 + $0x120] sm:$0xff] }
  0x1d   : > { %348 = vmatpush.bf16.msra.mxu0 %v2491_v16  ;;  %v198_v48 = vld [vmem:[%s2794_s25 + $0x10] sm:$0x11]  ;;  %v2532_v56 = vld [vmem:[%s3183_s1 + $0x160] sm:$0xff]  ;;  %v2539_v57 = vld [vmem:[%s3183_s1 + $0x198] sm:$0xff] }
  0x1e   : > { %365 = vmatpush.bf16.msra.mxu1 %v2499_v17  ;;  %v238_v53 = vunpack.c.l.b16 %v198_v48  ;;  %v239_v54 = vunpack.c.h.b16 %v198_v48  ;;  %v2547_v58 = vld [vmem:[%s3183_s1 + $0x1d8] sm:$0xff]  ;;  %v2538_v63 = vld [vmem:[%s3183_s1 + $0x190] sm:$0xff]  ;;  %v2537_v3 = vld [vmem:[%s3183_s1 + $0x188] sm:$0xff] }
  0x1f   : > { %513 = vmatpush.bf16.msra.mxu2 %v2507_v18  ;;  %v2523_v61 = vld [vmem:[%s3183_s1 + $0x118] sm:$0xff]  ;;  %v2546_v0 = vld [vmem:[%s3183_s1 + $0x1d0] sm:$0xff]  ;;  %v2545_v4 = vld [vmem:[%s3183_s1 + $0x1c8] sm:$0xff] }
  0x20   : > { %530 = vmatpush.bf16.msra.mxu3 %v2515_v19  ;;  %v2881_v59 = vpack.c.b16 %v238_v53, %v238_v53  ;;  %v2883_v60 = vpack.c.b16 %v239_v54, %v239_v54  ;;  %v2531_v62 = vld [vmem:[%s3183_s1 + $0x158] sm:$0xff]  ;;  %v2522_v1 = vld [vmem:[%s3183_s1 + $0x110] sm:$0xff]  ;;  %v2521_v5 = vld [vmem:[%s3183_s1 + $0x108] sm:$0xff] }
  0x21   : > { %349 = vmatpush.bf16.msra.mxu0 %v2490_v20  ;;  %v2530_v2 = vld [vmem:[%s3183_s1 + $0x150] sm:$0xff]  ;;  %v2529_v6 = vld [vmem:[%s3183_s1 + $0x148] sm:$0xff]  ;;  %v2536_v7 = vld [vmem:[%s3183_s1 + $0x180] sm:$0xff] }
  0x22   : > { %366 = vmatpush.bf16.msra.mxu1 %v2498_v21  ;;  %v2544_v8 = vld [vmem:[%s3183_s1 + $0x1c0] sm:$0xff]  ;;  %v2577_v9 = vld [vmem:[%s3183_s1 + $0x2b8] sm:$0xff]  ;;  %v2576_v15 = vld [vmem:[%s3183_s1 + $0x2b0] sm:$0xff] }
  0x23   : > { %514 = vmatpush.bf16.msra.mxu2 %v2506_v22  ;;  %v2585_v10 = vld [vmem:[%s3183_s1 + $0x2f8] sm:$0xff]  ;;  %v2520_v11 = vld [vmem:[%s3183_s1 + $0x100] sm:$0xff]  ;;  %v2584_v16 = vld [vmem:[%s3183_s1 + $0x2f0] sm:$0xff] }
  0x24   : > { %531 = vmatpush.bf16.msra.mxu3 %v2514_v23  ;;  %v2528_v12 = vld [vmem:[%s3183_s1 + $0x140] sm:$0xff]  ;;  %v2561_v13 = vld [vmem:[%s3183_s1 + $0x238] sm:$0xff]  ;;  %v2560_v17 = vld [vmem:[%s3183_s1 + $0x230] sm:$0xff] }
  0x25   : > { %350 = vmatpush.bf16.msra.mxu0 %v2489_v24  ;;  %v2569_v14 = vld [vmem:[%s3183_s1 + $0x278] sm:$0xff]  ;;  %v2568_v18 = vld [vmem:[%s3183_s1 + $0x270] sm:$0xff]  ;;  %v2575_v19 = vld [vmem:[%s3183_s1 + $0x2a8] sm:$0xff] }
  0x26   : > { %367 = vmatpush.bf16.msra.mxu1 %v2497_v25  ;;  %v2583_v20 = vld [vmem:[%s3183_s1 + $0x2e8] sm:$0xff]  ;;  %v2574_v23 = vld [vmem:[%s3183_s1 + $0x2a0] sm:$0xff]  ;;  %v2565_v30 = vld [vmem:[%s3183_s1 + $0x258] sm:$0xff] }
  0x27   : > { %515 = vmatpush.bf16.msra.mxu2 %v2505_v26  ;;  %v2559_v21 = vld [vmem:[%s3183_s1 + $0x228] sm:$0xff]  ;;  %v2582_v24 = vld [vmem:[%s3183_s1 + $0x2e0] sm:$0xff]  ;;  %v2572_v31 = vld [vmem:[%s3183_s1 + $0x290] sm:$0xff] }
  0x28   : > { %532 = vmatpush.bf16.msra.mxu3 %v2513_v27  ;;  %v2567_v22 = vld [vmem:[%s3183_s1 + $0x268] sm:$0xff]  ;;  %v2558_v25 = vld [vmem:[%s3183_s1 + $0x220] sm:$0xff]  ;;  %v2573_v27 = vld [vmem:[%s3183_s1 + $0x298] sm:$0xff] }
  0x29   : > { %351 = vmatpush.bf16.msra.mxu0 %v2488_v28  ;;  %v2566_v26 = vld [vmem:[%s3183_s1 + $0x260] sm:$0xff]  ;;  %v2581_v28 = vld [vmem:[%s3183_s1 + $0x2d8] sm:$0xff]  ;;  %v2580_v32 = vld [vmem:[%s3183_s1 + $0x2d0] sm:$0xff] }
  0x2a   : > { %368 = vmatpush.bf16.msra.mxu1 %v2496_v29  ;;  %v2557_v29 = vld [vmem:[%s3183_s1 + $0x218] sm:$0xff]  ;;  %v2556_v33 = vld [vmem:[%s3183_s1 + $0x210] sm:$0xff] }
  0x2b   : > { %516 = vmatpush.bf16.msra.mxu2 %v2504_v34  ;;  %v2564_v34 = vld [vmem:[%s3183_s1 + $0x250] sm:$0xff] }
  0x2c   : > { %533 = vmatpush.bf16.msra.mxu3 %v2512_v35  ;;  %352 = vmatmul.bf16.vlgmr.msra.gmra.mxu0 %v2824_v38  ;;  %v2571_v35 = vld [vmem:[%s3183_s1 + $0x288] sm:$0xff]  ;;  %v2608_v48 = vld [vmem:[%s3183_s1 + $0x3b0] sm:$0xff] }
  0x2d   : > { %369 = vmatmul.bf16.vlgmr.msra.gmra.mxu1 %v2826_v39  ;;  %682 = vmatpush.bf16.msrb.mxu0 %v2527_v40  ;;  %v2578_v40 = vld [vmem:[%s3183_s1 + $0x2c0] sm:$0xff]  ;;  %v2592_v53 = vld [vmem:[%s3183_s1 + $0x330] sm:$0xff] }
  0x2e   : > { %517 = vmatmul.bf16.vlgmr.msra.gmra.mxu2 %v2824_v38  ;;  %699 = vmatpush.bf16.msrb.mxu1 %v2535_v41  ;;  %v2609_v41 = vld [vmem:[%s3183_s1 + $0x3b8] sm:$0xff]  ;;  %v2600_v54 = vld [vmem:[%s3183_s1 + $0x370] sm:$0xff] }
  0x2f   : > { %855 = vmatpush.bf16.msrb.mxu2 %v2543_v36  ;;  %534 = vmatmul.bf16.vlgmr.msra.gmra.mxu3 %v2826_v39  ;;  %v2579_v36 = vld [vmem:[%s3183_s1 + $0x2c8] sm:$0xff] }
  0x30   : > { %873 = vmatpush.bf16.msrb.mxu3 %v2551_v37  ;;  %v2555_v37 = vld [vmem:[%s3183_s1 + $0x208] sm:$0xff] }
  0x31   : > { %683 = vmatpush.bf16.msrb.mxu0 %v2526_v44  ;;  %v2562_v44 = vld [vmem:[%s3183_s1 + $0x240] sm:$0xff] }
  0x32   : > { %700 = vmatpush.bf16.msrb.mxu1 %v2534_v45  ;;  %v2593_v45 = vld [vmem:[%s3183_s1 + $0x338] sm:$0xff] }
  0x33   : > { %856 = vmatpush.bf16.msrb.mxu2 %v2542_v42  ;;  %v2617_v42 = vld [vmem:[%s3183_s1 + $0x3f8] sm:$0xff] }
  0x34   : > { %874 = vmatpush.bf16.msrb.mxu3 %v2550_v43  ;;  %v2554_v43 = vld [vmem:[%s3183_s1 + $0x200] sm:$0xff] }
  0x35   : > { %684 = vmatpush.bf16.msrb.mxu0 %v2525_v49  ;;  %v2616_v49 = vld [vmem:[%s3183_s1 + $0x3f0] sm:$0xff] }
  0x36   : > { %701 = vmatpush.bf16.msrb.mxu1 %v2533_v50  ;;  %v2553_v50 = vld [vmem:[%s2794_s25 + $0x1c] sm:$0xf0] }
  0x37   : > { %857 = vmatpush.bf16.msrb.mxu2 %v2541_v46  ;;  %v2601_v46 = vld [vmem:[%s3183_s1 + $0x378] sm:$0xff] }
  0x38   : > { %875 = vmatpush.bf16.msrb.mxu3 %v2549_v47  ;;  %v2125_v47 = vld [vmem:[%s2794_s25 + $0x18] sm:$0xf] }
  0x39   : > { %685 = vmatpush.bf16.msrb.mxu0 %v2524_v55  ;;  %v3063_v55 = vor.u32 %v2553_v50, %v2125_v47 }
  0x3a   : > { %702 = vmatpush.bf16.msrb.mxu1 %v2532_v56 }
  0x3b   : > { %858 = vmatpush.bf16.msrb.mxu2 %v2540_v51  ;;  %v2552_v51 = vld [vmem:[%s2794_s25 + $0x1c] sm:$0xf] }
  0x3c   : > { %876 = vmatpush.bf16.msrb.mxu3 %v2548_v52  ;;  %357 = vmatmul.bf16.gmra.mxu0 %v2881_v59  ;;  %v2127_v52 = vld [vmem:[%s2794_s25 + $0x20] sm:$0xf0] }
  0x3d   : > { %374 = vmatmul.bf16.gmra.mxu1 %v2883_v60  ;;  %686 = vmatpush.bf16.msrb.mxu0 %v2523_v61  ;;  %v3065_v56 = vor.u32 %v2552_v51, %v2127_v52  ;;  %v2606_v61 = vld [vmem:[%s3183_s1 + $0x3a0] sm:$0xff] }
  0x3e   : > { %522 = vmatmul.bf16.gmra.mxu2 %v2881_v59  ;;  %703 = vmatpush.bf16.msrb.mxu1 %v2531_v62  ;;  %v2614_v62 = vld [vmem:[%s3183_s1 + $0x3e0] sm:$0xff] }
  0x3f   : > { %859 = vmatpush.bf16.msrb.mxu2 %v2539_v57  ;;  %539 = vmatmul.bf16.gmra.mxu3 %v2883_v60  ;;  %v2607_v57 = vld [vmem:[%s3183_s1 + $0x3a8] sm:$0xff] }
  0x40   : > { %877 = vmatpush.bf16.msrb.mxu3 %v2547_v58  ;;  %v2615_v58 = vld [vmem:[%s3183_s1 + $0x3e8] sm:$0xff] }
  0x41   : > { %687 = vmatpush.bf16.msrb.mxu0 %v2522_v1  ;;  %v2090_v1 = vld [vmem:[%s2794_s25 + $0x28] sm:$0x11] }
  0x42   : > { %704 = vmatpush.bf16.msrb.mxu1 %v2530_v2  ;;  %v2605_v2 = vld [vmem:[%s3183_s1 + $0x398] sm:$0xff] }
  0x43   : > { %860 = vmatpush.bf16.msrb.mxu2 %v2538_v63  ;;  %v2590_v63 = vld [vmem:[%s3183_s1 + $0x320] sm:$0xff] }
  0x44   : > { %878 = vmatpush.bf16.msrb.mxu3 %v2546_v0  ;;  %v2598_v0 = vld [vmem:[%s3183_s1 + $0x360] sm:$0xff] }
  0x45   : > { %688 = vmatpush.bf16.msrb.mxu0 %v2521_v5  ;;  %v2597_v5 = vld [vmem:[%s3183_s1 + $0x358] sm:$0xff] }
  0x46   : > { %705 = vmatpush.bf16.msrb.mxu1 %v2529_v6  ;;  %v951_v6 = vunpack.c.l.b16 %v2090_v1 }
  0x47   : > { %861 = vmatpush.bf16.msrb.mxu2 %v2537_v3  ;;  %v2613_v3 = vld [vmem:[%s3183_s1 + $0x3d8] sm:$0xff] }
  0x48   : > { %879 = vmatpush.bf16.msrb.mxu3 %v2545_v4  ;;  %v2589_v4 = vld [vmem:[%s3183_s1 + $0x318] sm:$0xff] }
  0x49   : > { %689 = vmatpush.bf16.msrb.mxu0 %v2520_v11  ;;  %v2596_v11 = vld [vmem:[%s3183_s1 + $0x350] sm:$0xff] }
  0x4a   : > { %706 = vmatpush.bf16.msrb.mxu1 %v2528_v12  ;;  %v955_v12 = vpack.c.b16 %v951_v6, %v951_v6 }
  0x4b   : > { %862 = vmatpush.bf16.msrb.mxu2 %v2536_v7  ;;  %v952_v7 = vunpack.c.h.b16 %v2090_v1 }
  0x4c   : > { %880 = vmatpush.bf16.msrb.mxu3 %v2544_v8  ;;  %690 = vmatmul.bf16.vlgmr.msrb.gmra.mxu0 %v2824_v38  ;;  %v2604_v8 = vld [vmem:[%s3183_s1 + $0x390] sm:$0xff] }
  0x4d   : > { %1057 = vmatpush.bf16.msra.mxu0 %v2561_v13  ;;  %707 = vmatmul.bf16.vlgmr.msrb.gmra.mxu1 %v2826_v39  ;;  %v956_v13 = vpack.c.b16 %v952_v7, %v952_v7 }
  0x4e   : > { %1074 = vmatpush.bf16.msra.mxu1 %v2569_v14  ;;  %863 = vmatmul.bf16.vlgmr.msrb.gmra.mxu2 %v2824_v38  ;;  %v2563_v38 = vld [vmem:[%s3183_s1 + $0x248] sm:$0xff] }
  0x4f   : > { %1222 = vmatpush.bf16.msra.mxu2 %v2577_v9  ;;  %881 = vmatmul.bf16.vlgmr.msrb.gmra.mxu3 %v2826_v39  ;;  %v2570_v39 = vld [vmem:[%s3183_s1 + $0x280] sm:$0xff]  ;;  %v2612_v9 = vld [vmem:[%s3183_s1 + $0x3d0] sm:$0xff]  ;;  %v2603_v14 = vld [vmem:[%s3183_s1 + $0x388] sm:$0xff] }
  0x50   : > { %1239 = vmatpush.bf16.msra.mxu3 %v2585_v10  ;;  %v2588_v10 = vld [vmem:[%s3183_s1 + $0x310] sm:$0xff] }
  0x51   : > { %1058 = vmatpush.bf16.msra.mxu0 %v2560_v17  ;;  %v2595_v17 = vld [vmem:[%s3183_s1 + $0x348] sm:$0xff] }
  0x52   : > { %1075 = vmatpush.bf16.msra.mxu1 %v2568_v18  ;;  %v2602_v18 = vld [vmem:[%s3183_s1 + $0x380] sm:$0xff] }
  0x53   : > { %1223 = vmatpush.bf16.msra.mxu2 %v2576_v15  ;;  %v2611_v15 = vld [vmem:[%s3183_s1 + $0x3c8] sm:$0xff] }
  0x54   : > { %1240 = vmatpush.bf16.msra.mxu3 %v2584_v16  ;;  %v2587_v16 = vld [vmem:[%s3183_s1 + $0x308] sm:$0xff] }
  0x55   : > { %1059 = vmatpush.bf16.msra.mxu0 %v2559_v21  ;;  %v2594_v21 = vld [vmem:[%s3183_s1 + $0x340] sm:$0xff] }
  0x56   : > { %1076 = vmatpush.bf16.msra.mxu1 %v2567_v22 }
  0x57   : > { %1224 = vmatpush.bf16.msra.mxu2 %v2575_v19  ;;  %v2610_v19 = vld [vmem:[%s3183_s1 + $0x3c0] sm:$0xff] }
  0x58   : > { %1241 = vmatpush.bf16.msra.mxu3 %v2583_v20  ;;  %v2586_v20 = vld [vmem:[%s3183_s1 + $0x300] sm:$0xff] }
  0x59   : > { %1060 = vmatpush.bf16.msra.mxu0 %v2558_v25 }
  0x5a   : > { %1077 = vmatpush.bf16.msra.mxu1 %v2566_v26 }
  0x5b   : > { %1225 = vmatpush.bf16.msra.mxu2 %v2574_v23 }
  0x5c   : > { %1242 = vmatpush.bf16.msra.mxu3 %v2582_v24  ;;  %695 = vmatmul.bf16.gmra.mxu0 %v2881_v59 }
  0x5d   : > { %1061 = vmatpush.bf16.msra.mxu0 %v2557_v29  ;;  %712 = vmatmul.bf16.gmra.mxu1 %v2883_v60 }
  0x5e   : > { %1078 = vmatpush.bf16.msra.mxu1 %v2565_v30  ;;  %868 = vmatmul.bf16.gmra.mxu2 %v2881_v59  ;;  %v2591_v59 = vld [vmem:[%s3183_s1 + $0x328] sm:$0xff] }
  0x5f   : > { %1226 = vmatpush.bf16.msra.mxu2 %v2573_v27  ;;  %886 = vmatmul.bf16.gmra.mxu3 %v2883_v60  ;;  %v2599_v60 = vld [vmem:[%s3183_s1 + $0x368] sm:$0xff] }
  0x60   : > { %1243 = vmatpush.bf16.msra.mxu3 %v2581_v28 }
  0x61   : > { %1062 = vmatpush.bf16.msra.mxu0 %v2556_v33 }
  0x62   : > { %1079 = vmatpush.bf16.msra.mxu1 %v2564_v34 }
  0x63   : > { %1227 = vmatpush.bf16.msra.mxu2 %v2572_v31 }
  0x64   : > { %1244 = vmatpush.bf16.msra.mxu3 %v2580_v32 }
  0x65   : > { %1063 = vmatpush.bf16.msra.mxu0 %v2555_v37 }
  0x66   : > { %1080 = vmatpush.bf16.msra.mxu1 %v2563_v38 }
  0x67   : > { %1228 = vmatpush.bf16.msra.mxu2 %v2571_v35 }
  0x68   : > { %1245 = vmatpush.bf16.msra.mxu3 %v2579_v36 }
  0x69   : > { %1064 = vmatpush.bf16.msra.mxu0 %v2554_v43 }
  0x6a   : > { %1081 = vmatpush.bf16.msra.mxu1 %v2562_v44 }
  0x6b   : > { %1229 = vmatpush.bf16.msra.mxu2 %v2570_v39 }
  0x6c   : > { %1246 = vmatpush.bf16.msra.mxu3 %v2578_v40  ;;  %1065 = vmatmul.bf16.vlgmr.msra.gmra.mxu0 %v3063_v55 }
  0x6d   : > { %1394 = vmatpush.bf16.msrb.mxu0 %v2593_v45  ;;  %1082 = vmatmul.bf16.vlgmr.msra.gmra.mxu1 %v3065_v56 }
  0x6e   : > { %1411 = vmatpush.bf16.msrb.mxu1 %v2601_v46  ;;  %1230 = vmatmul.bf16.vlgmr.msra.gmra.mxu2 %v3063_v55 }
  0x6f   : > { %1566 = vmatpush.bf16.msrb.mxu2 %v2609_v41  ;;  %1247 = vmatmul.bf16.vlgmr.msra.gmra.mxu3 %v3065_v56 }
  0x70   : > { %1584 = vmatpush.bf16.msrb.mxu3 %v2617_v42 }
  0x71   : > { %1395 = vmatpush.bf16.msrb.mxu0 %v2592_v53 }
  0x72   : > { %1412 = vmatpush.bf16.msrb.mxu1 %v2600_v54 }
  0x73   : > { %1567 = vmatpush.bf16.msrb.mxu2 %v2608_v48 }
  0x74   : > { %1585 = vmatpush.bf16.msrb.mxu3 %v2616_v49 }
  0x75   : > { %1396 = vmatpush.bf16.msrb.mxu0 %v2591_v59 }
  0x76   : > { %1413 = vmatpush.bf16.msrb.mxu1 %v2599_v60 }
  0x77   : > { %1568 = vmatpush.bf16.msrb.mxu2 %v2607_v57 }
  0x78   : > { %1586 = vmatpush.bf16.msrb.mxu3 %v2615_v58 }
  0x79   : > { %1397 = vmatpush.bf16.msrb.mxu0 %v2590_v63 }
  0x7a   : > { %1414 = vmatpush.bf16.msrb.mxu1 %v2598_v0 }
  0x7b   : > { %1569 = vmatpush.bf16.msrb.mxu2 %v2606_v61 }
  0x7c   : > { %1587 = vmatpush.bf16.msrb.mxu3 %v2614_v62  ;;  %1070 = vmatmul.bf16.gmra.mxu0 %v955_v12 }
  0x7d   : > { %1398 = vmatpush.bf16.msrb.mxu0 %v2589_v4  ;;  %1087 = vmatmul.bf16.gmra.mxu1 %v956_v13 }
  0x7e   : > { %1415 = vmatpush.bf16.msrb.mxu1 %v2597_v5  ;;  %1235 = vmatmul.bf16.gmra.mxu2 %v955_v12 }
  0x7f   : > { %1570 = vmatpush.bf16.msrb.mxu2 %v2605_v2  ;;  %1252 = vmatmul.bf16.gmra.mxu3 %v956_v13 }
  0x80   : > { %1588 = vmatpush.bf16.msrb.mxu3 %v2613_v3 }
  0x81   : > { %1399 = vmatpush.bf16.msrb.mxu0 %v2588_v10 }
  0x82   : > { %1416 = vmatpush.bf16.msrb.mxu1 %v2596_v11 }
  0x83   : > { %1571 = vmatpush.bf16.msrb.mxu2 %v2604_v8 }
  0x84   : > { %1589 = vmatpush.bf16.msrb.mxu3 %v2612_v9 }
  0x85   : > { %1400 = vmatpush.bf16.msrb.mxu0 %v2587_v16 }
  0x86   : > { %1417 = vmatpush.bf16.msrb.mxu1 %v2595_v17 }
  0x87   : > { %1572 = vmatpush.bf16.msrb.mxu2 %v2603_v14 }
  0x88   : > { %1590 = vmatpush.bf16.msrb.mxu3 %v2611_v15 }
  0x89   : > { %1401 = vmatpush.bf16.msrb.mxu0 %v2586_v20 }
  0x8a   : > { %1418 = vmatpush.bf16.msrb.mxu1 %v2594_v21 }
  0x8b   : > { %1573 = vmatpush.bf16.msrb.mxu2 %v2602_v18 }
  0x8c   : > { %1591 = vmatpush.bf16.msrb.mxu3 %v2610_v19  ;;  %1402 = vmatmul.bf16.vlgmr.msrb.gmra.mxu0 %v3063_v55 }
  0x8d   : > { %1419 = vmatmul.bf16.vlgmr.msrb.gmra.mxu1 %v3065_v56 }
  0x8e   : > { %1574 = vmatmul.bf16.vlgmr.msrb.gmra.mxu2 %v3063_v55 }
  0x8f   : > { %1592 = vmatmul.bf16.vlgmr.msrb.gmra.mxu3 %v3065_v56 }
  0x9c   : > { %1407 = vmatmul.bf16.gmra.mxu0 %v955_v12 }
  0x9d   : > { %1424 = vmatmul.bf16.gmra.mxu1 %v956_v13 }
  0x9e   : > { %1579 = vmatmul.bf16.gmra.mxu2 %v955_v12 }
  0x9f   : > { %1597 = vmatmul.bf16.gmra.mxu3 %v956_v13 }
  0xa9   : > { %v353_v22 = vpop.f32.mrf.mxu0 }
  0xaa   : > { %v370_v23 = vpop.f32.mrf.mxu1 }
  0xab   : > { %v371_v24 = vadd.f32 %v370_v23, %v353_v22 }
  0xb1   : > { %v518_v25 = vpop.f32.mrf.mxu2  ;;  %v355_v28 = vpop.f32.mrf.mxu0 }
  0xb2   : > { %v535_v26 = vpop.f32.mrf.mxu3  ;;  %v372_v29 = vpop.f32.mrf.mxu1 }
  0xb3   : > { %v536_v27 = vadd.f32 %v535_v26, %v518_v25  ;;  %v373_v30 = vadd.f32 %v372_v29, %v355_v28 }
  0xb5   : > { %v546_v36 = vrot.slane %v536_v27, 1 }
  0xb9   : > { %v520_v31 = vpop.f32.mrf.mxu2  ;;  %v358_v34 = vpop.f32.mrf.mxu0 }
  0xba   : > { %v537_v32 = vpop.f32.mrf.mxu3  ;;  %v375_v35 = vpop.f32.mrf.mxu1 }
  0xbb   : > { %v538_v33 = vadd.f32 %v537_v32, %v520_v31 }
  0xbd   : > { %v547_v37 = vrot.slane %v538_v33, 1 }
  0xbf   : > { %v548_v38 = vsel %vm545_vm0, %v546_v36, %v547_v37  ;;  %v3149_v39 = vadd.f32 %v547_v37, %v373_v30 }
  0xc0   : > { %v551_v40 = vadd.f32 %v548_v38, %v371_v24 }
  0xc1   : > { %v523_v41 = vpop.f32.mrf.mxu2  ;;  %v359_v43 = vpop.f32.mrf.mxu0 }
  0xc2   : > { %v540_v42 = vpop.f32.mrf.mxu3  ;;  %v376_v44 = vpop.f32.mrf.mxu1 }
  0xc9   : > { %v524_v45 = vpop.f32.mrf.mxu2  ;;  %v691_v47 = vpop.f32.mrf.mxu0 }
  0xca   : > { %v541_v46 = vpop.f32.mrf.mxu3  ;;  %v708_v48 = vpop.f32.mrf.mxu1 }
  0xcb   : > { %v709_v49 = vadd.f32 %v708_v48, %v691_v47 }
  0xcd   : > { %v719_v55 = vrot.slane %v709_v49, 4 }
  0xd1   : > { %v864_v50 = vpop.f32.mrf.mxu2  ;;  %v693_v53 = vpop.f32.mrf.mxu0 }
  0xd2   : > { %v882_v51 = vpop.f32.mrf.mxu3  ;;  %v710_v54 = vpop.f32.mrf.mxu1 }
  0xd3   : > { %v883_v52 = vadd.f32 %v882_v51, %v864_v50  ;;  %v3151_v56 = vadd.f32 %v710_v54, %v693_v53 }
  0xd5   : > { %v720_v57 = vrot.slane %v3151_v56, 4  ;;  %v895_v1 = vrot.slane %v883_v52, 5 }
  0xd7   : > { %v721_v58 = vsel %vm718_vm1, %v719_v55, %v720_v57 }
  0xd8   : > { %v724_v59 = vadd.f32 %v721_v58, %v551_v40 }
  0xd9   : > { %v866_v60 = vpop.f32.mrf.mxu2  ;;  %v696_v63 = vpop.f32.mrf.mxu0 }
  0xda   : > { %v884_v61 = vpop.f32.mrf.mxu3  ;;  %v713_v0 = vpop.f32.mrf.mxu1  ;;  %v2643_v63 = vld [vmem:[%s3184_s2] ss:$0 sm:$0xff] }
  0xdb   : > { %v885_v62 = vadd.f32 %v884_v61, %v866_v60  ;;  %v725_v60 = vadd.f32 %v720_v57, %v3149_v39 }
  0xdd   : > { %v896_v2 = vrot.slane %v885_v62, 5 }
  0xdf   : > { %v897_v3 = vsel %vm894_vm2, %v895_v1, %v896_v2 }
  0xe0   : > { %v902_v4 = vadd.f32 %v897_v3, %v724_v59 }
  0xe1   : > { %v869_v5 = vpop.f32.mrf.mxu2  ;;  %v697_v7 = vpop.f32.mrf.mxu0 }
  0xe2   : > { %v887_v6 = vpop.f32.mrf.mxu3  ;;  %v714_v8 = vpop.f32.mrf.mxu1 }
  0xe3   : > { %v888_v37 = vadd.f32 %v887_v6, %v869_v5 }
  0xe5   : > { %v898_v44 = vrot.slane %v888_v37, 5 }
  0xe7   : > { %v899_v55 = vsel %vm894_vm2, %v896_v2, %v898_v44 }
  0xe8   : > { %v903_v1 = vadd.f32 %v899_v55, %v725_v60 }
  0xe9   : > { %v871_v9 = vpop.f32.mrf.mxu2  ;;  %v1066_v11 = vpop.f32.mrf.mxu0 }
  0xea   : > { %v889_v10 = vpop.f32.mrf.mxu3  ;;  %v1083_v12 = vpop.f32.mrf.mxu1 }
  0xeb   : > { %v1084_v40 = vadd.f32 %v1083_v12, %v1066_v11 }
  0xed   : > { %v1091_v47 = vadd.f32 %v1084_v40, %v902_v4 }
  0xf1   : > { %v1231_v13 = vpop.f32.mrf.mxu2  ;;  %v1068_v15 = vpop.f32.mrf.mxu0 }
  0xf2   : > { %v1248_v14 = vpop.f32.mrf.mxu3  ;;  %v1085_v16 = vpop.f32.mrf.mxu1 }
  0xf3   : > { %v1249_v32 = vadd.f32 %v1248_v14, %v1231_v13  ;;  %v1086_v61 = vadd.f32 %v1085_v16, %v1068_v15 }
  0xf5   : > { %v1258_v41 = vrot.slane %v1249_v32, 1  ;;  %v1092_v4 = vadd.f32 %v1086_v61, %v903_v1 }
  0xf9   : > { %v1233_v17 = vpop.f32.mrf.mxu2  ;;  %v1071_v19 = vpop.f32.mrf.mxu0 }
  0xfa   : > { %v1250_v18 = vpop.f32.mrf.mxu3  ;;  %v1088_v20 = vpop.f32.mrf.mxu1 }
  0xfb   : > { %v1251_v29 = vadd.f32 %v1250_v18, %v1233_v17 }
  0xfd   : > { %v1259_v38 = vrot.slane %v1251_v29, 1 }
  0xff   : > { %v1260_v45 = vsel %vm545_vm0, %v1258_v41, %v1259_v38  ;;  %v1264_v56 = vadd.f32 %v1259_v38, %v1092_v4 }
 0x100   : > { %v1263_v54 = vadd.f32 %v1260_v45, %v1091_v47 }
 0x101   : > { %v1236_v21 = vpop.f32.mrf.mxu2  ;;  %v1072_v23 = vpop.f32.mrf.mxu0 }
 0x102   : > { %v1253_v22 = vpop.f32.mrf.mxu3  ;;  %v1089_v24 = vpop.f32.mrf.mxu1 }
 0x109   : > { %v1237_v25 = vpop.f32.mrf.mxu2  ;;  %v1403_v27 = vpop.f32.mrf.mxu0 }
 0x10a   : > { %v1254_v26 = vpop.f32.mrf.mxu3  ;;  %v1420_v28 = vpop.f32.mrf.mxu1 }
 0x10b   : > { %v1421_v33 = vadd.f32 %v1420_v28, %v1403_v27 }
 0x10d   : > { %v1430_v42 = vrot.slane %v1421_v33, 4 }
 0x111   : > { %v1575_v30 = vpop.f32.mrf.mxu2  ;;  %v1405_v34 = vpop.f32.mrf.mxu0 }
 0x112   : > { %v1593_v31 = vpop.f32.mrf.mxu3  ;;  %v1422_v35 = vpop.f32.mrf.mxu1 }
 0x113   : > { %v1423_v36 = vadd.f32 %v1422_v35, %v1405_v34  ;;  %v1594_v46 = vadd.f32 %v1593_v31, %v1575_v30 }
 0x115   : > { %v1431_v43 = vrot.slane %v1423_v36, 4  ;;  %v1605_v58 = vrot.slane %v1594_v46, 5 }
 0x117   : > { %v1432_v50 = vsel %vm718_vm1, %v1430_v42, %v1431_v43  ;;  %v1436_v10 = vadd.f32 %v1431_v43, %v1264_v56 }
 0x118   : > { %v1435_v62 = vadd.f32 %v1432_v50, %v1263_v54 }
 0x119   : > { %v1577_v48 = vpop.f32.mrf.mxu2  ;;  %v1408_v52 = vpop.f32.mrf.mxu0 }
 0x11a   : > { %v1595_v49 = vpop.f32.mrf.mxu3  ;;  %v1425_v53 = vpop.f32.mrf.mxu1 }
 0x11b   : > { %v1596_v51 = vadd.f32 %v1595_v49, %v1577_v48 }
 0x11d   : > { %v1606_v59 = vrot.slane %v1596_v51, 5 }
 0x11f   : > { %v1607_v0 = vsel %vm894_vm2, %v1605_v58, %v1606_v59 }
 0x120   : > { %v1612_v3 = vadd.f32 %v1607_v0, %v1435_v62 }
 0x121   : > { %v1580_v6 = vpop.f32.mrf.mxu2  ;;  %v1409_v8 = vpop.f32.mrf.mxu0 }
 0x122   : > { %v1618_v5 = vadd.f32 %v2643_v63, %v1612_v3  ;;  %v1598_v2 = vpop.f32.mrf.mxu3  ;;  %v1426_v9 = vpop.f32.mrf.mxu1 }
 0x123   : > { %v1599_v7 = vadd.f32 %v1598_v2, %v1580_v6 }
 0x124   : > { %vm1620_vm3 = vcmp.ge.f32.partialorder %v1618_v5, 0.0  ;;  %v1622_v39 = vmul.f32 0.2, %v1618_v5 }
 0x125   : > { %v1608_v57 = vrot.slane %v1599_v7, 5 }
 0x126   : > { %v1624_v11 = vsel %vm1620_vm3, %v1618_v5, %v1622_v39 }
 0x127   : > { %v1626_v12 = vpack.c.bf16 %v1624_v11, %v1624_v11  ;;  %v1609_v13 = vsel %vm894_vm2, %v1606_v59, %v1608_v57 }
 0x128   : > { %v1613_v14 = vadd.f32 %v1609_v13, %v1436_v10 }
 0x129   : > { %1629 = vst.msk [vmem:[%s192_s8] sm:$0xf] %vm1628_vm4, %v1626_v12  ;;  %v1582_v16 = vpop.f32.mrf.mxu2 }
 0x12a   : > { %v1619_v15 = vadd.f32 %v2643_v63, %v1613_v14  ;;  %v1600_v17 = vpop.f32.mrf.mxu3 }
 0x12c   : > { %vm1621_vm5 = vcmp.ge.f32.partialorder %v1619_v15, 0.0  ;;  %v1623_v18 = vmul.f32 0.2, %v1619_v15 }
 0x12e   : > { %v1625_v19 = vsel %vm1621_vm5, %v1619_v15, %v1623_v18 }
 0x12f   : > { %v1627_v20 = vpack.c.bf16 %v1625_v19, %v1625_v19 }
 0x131   : > { %1631 = vst.msk [vmem:[%s192_s8 + $0x4] sm:$0x3] %vm1630_vm6, %v1627_v20 }
 0x132 PF: > { %s13_s14 = sadd.s32 1, %s2666_s14   ;;  %s3186_s12 = smov %s2662_s13 }
 0x133   : > { %p10_p5 = scmp.ge.s32.totalorder %s13_s14, 4   ;;  %s3187_s13 = smov %s3189_s15 }
 0x135   :  { %12 = sbr.rel (!%p10_p5) target bundleno = 2 (0x2), region = 71 }

// kernel: video_discrim_forward.9
= control target key start
LH: loop header
LB: loop body
LE: loop exit
PB: predicated region body
PF: predicated region fallthrough
CT: control target
= control target key end

     0   :  { %vm37_vm0 = vcmask 130048   ;;  %s448_s0 = inlined_call_operand.vmem [shape: bf16[2,9,64], index: 0, kind: input, shape index: {}]   ;;  %s449_s1 = inlined_call_operand.vmem [shape: f32[2,16], index: 1, kind: input, shape index: {}]   ;;  %s450_s2 = inlined_call_operand.vmem [shape: f32[16,16], index: 2, kind: input, shape index: {}]   ;;  %s451_s3 = inlined_call_operand.vmem [shape: f32[1,16], index: 3, kind: input, shape index: {}]   ;;  %s452_s4 = inlined_call_operand.vmem [shape: f32[64,64], index: 4, kind: input, shape index: {}]   ;;  %s453_s5 = inlined_call_operand.vmem [shape: f32[16,64], index: 5, kind: input, shape index: {}]   ;;  %s454_s6 = inlined_call_operand.vmem [shape: f32[1,64], index: 6, kind: input, shape index: {}]   ;;  %s455_s7 = inlined_call_operand.vmem [shape: f32[9,64], index: 7, kind: input, shape index: {}]   ;;  %s456_s8 = inlined_call_operand.hbm [shape: f32[1,1], index: 8, kind: output, shape index: {}]  }
   0x1   :  { %v32_v0 = vld [vmem:[%s450_s2 + $0x8] sm:$0xff]  ;;  %v31_v1 = vld [vmem:[%s450_s2] sm:$0xff]  ;;  %v71_v3 = vld [vmem:[%s452_s4 + $0x38] sm:$0xff] }
   0x2   :  { %55 = vmatpush.msra.mxu0 %v32_v0  ;;  %v30_v2 = vld [vmem:[%s449_s1] sm:$0x3]  ;;  %v70_v4 = vld [vmem:[%s452_s4 + $0x30] sm:$0xff]  ;;  %120 = vmatpush.msra.mxu2 %v71_v3  ;;  %v69_v5 = vld [vmem:[%s452_s4 + $0x28] sm:$0xff] }
   0x3   :  { %v73_v6 = vld [vmem:[%s453_s5 + $0x8] sm:$0xff]  ;;  %v68_v7 = vld [vmem:[%s452_s4 + $0x20] sm:$0xff] }
   0x4   :  { %56 = vmatpush.msra.mxu0 %v31_v1  ;;  %121 = vmatpush.msra.mxu2 %v70_v4 }
   0x5   :  { %271 = vmatmul.msk.f32.vlgmr.msra.gmra.mxu0 %vm37_vm0, %v30_v2  ;;  %98 = vmatpush.msra.mxu1 %v73_v6 }
   0x6   :  { %206 = vmatpush.msrb.mxu0 %v71_v3 }
   0x7   :  { %13 = vsyncpa [#allocation3], 0  ;;  %122 = vmatpush.msra.mxu2 %v69_v5  ;;  %185 = vmatpush.msra.mxu3 %v73_v6  ;;  %v67_v8 = vld [vmem:[%s452_s4 + $0x18] sm:$0xff]  ;;  %v66_v9 = vld [vmem:[%s452_s4 + $0x10] sm:$0xff]  ;;  %vm105_vm1 = vcmask 523264   ;;  %vm149_vm5 = vcmask 516096  }
   0x8   :  { %207 = vmatpush.msrb.mxu0 %v70_v4  ;;  %v77_v10 = vld [vmem:[%s448_s0] sm:$0xf]  ;;  %v65_v11 = vld [vmem:[%s452_s4 + $0x8] sm:$0xff]  ;;  %v78_v15 = vld [vmem:[%s448_s0 + $0x4] sm:$0x1]  ;;  %s325_s17 = smov [#allocation2]  }
   0x9   :  { %123 = vmatpush.msra.mxu2 %v68_v7  ;;  %v64_v12 = vld [vmem:[%s452_s4] sm:$0xff]  ;;  %v79_v13 = vunpack.c.l.bf16 %v77_v10  ;;  %v80_v16 = vunpack.c.l.bf16 %v78_v15  ;;  %v275_v17 = vld [vmem:[%s448_s0 + $0x8] sm:$0xf]  ;;  %v276_v25 = vld [vmem:[%s448_s0 + $0xc] sm:$0x1]  ;;  %s260_s18 = sshll.u32 %s325_s17, 4  ;;  %s261_s18 = int_to_ptr.vmem [resolvable:$true] %s260_s18 }
   0xa   :  { %208 = vmatpush.msrb.mxu0 %v69_v5  ;;  %v72_v14 = vld [vmem:[%s453_s5] sm:$0xff]  ;;  %v166_v18 = vunpack.c.l.bf16 %v275_v17  ;;  %v167_v26 = vunpack.c.l.bf16 %v276_v25  ;;  %v76_v37 = vld [vmem:[%s455_s7 + $0x8] sm:$0x1]  ;;  %s262_s21 = sshll.u32 %s456_s8, 4  ;;  %vm253_vm9 = vcmask 0   ;;  %s263_s21 = int_to_ptr.hbm [resolvable:$true] %s262_s21 }
   0xb   :  { %124 = vmatpush.msra.mxu2 %v67_v8  ;;  %99 = vmatpush.msra.mxu1 %v72_v14  ;;  %v294_v19 = vld [vmem:[%s451_s3] ss:$0 sm:$0xff] }
   0xc   :  { %209 = vmatpush.msrb.mxu0 %v68_v7  ;;  %186 = vmatpush.msra.mxu3 %v72_v14  ;;  %v295_v31 = vld [vmem:[%s454_s6] ss:$0 sm:$0xff]  ;;  %v324_v14 = vmov 2.0  }
   0xd   :  { %125 = vmatpush.msra.mxu2 %v66_v9  ;;  %280 = vmatpush.msrb.mxu1 %v71_v3  ;;  %v75_v36 = vld [vmem:[%s455_s7] sm:$0xff]  ;;  %296 = vrcp.f32 %v324_v14 }
   0xe   :  { %210 = vmatpush.msrb.mxu0 %v67_v8 }
   0xf   :  { %126 = vmatpush.msra.mxu2 %v65_v11  ;;  %281 = vmatpush.msrb.mxu1 %v70_v4 }
  0x10   :  { %211 = vmatpush.msrb.mxu0 %v66_v9 }
  0x11   :  { %127 = vmatpush.msra.mxu2 %v64_v12  ;;  %282 = vmatpush.msrb.mxu1 %v69_v5 }
  0x12   :  { %273 = vmatmul.msk.f32.vlgmr.msra.gmra.mxu2 %vm105_vm1, %v79_v13  ;;  %212 = vmatpush.msrb.mxu0 %v65_v11 }
  0x13   :  { %283 = vmatpush.msrb.mxu1 %v68_v7  ;;  %v297_v15 = vpop.eup %296 }
  0x14   :  { %213 = vmatpush.msrb.mxu0 %v64_v12  ;;  %vm250_vm8 = vweird.f32 %v297_v15 }
  0x15   :  { %284 = vmatpush.msrb.mxu1 %v67_v8  ;;  %278 = vmatmul.msk.f32.vlgmr.msrb.gmra.mxu0 %vm105_vm1, %v166_v18 }
  0x17   :  { %285 = vmatpush.msrb.mxu1 %v66_v9 }
  0x19   :  { %286 = vmatpush.msrb.mxu1 %v65_v11 }
  0x1a   :  { %274 = vmatmul.msk.f32.gmra.mxu2 %vm105_vm1, %v80_v16  ;;  %v246_v16 = vmul.f32 2.0, %v297_v15 }
  0x1b   :  { %287 = vmatpush.msrb.mxu1 %v64_v12 }
  0x1c   :  { %v247_v17 = vsub.f32 1.0, %v246_v16 }
  0x1e   :  { %v248_v18 = vmul.f32 %v297_v15, %v247_v17 }
  0x82   :  { %v58_v20 = vpop.f32.mrf.mxu0 }
  0x83   :  { %v59_v21 = vadd.f32 %v294_v19, %v58_v20  ;;  %v249_v19 = vadd.f32 %v297_v15, %v248_v18 }
  0x85   :  { %v62_v22 = vmul.f32 0.2, %v59_v21  ;;  %vm61_vm2 = vcmp.ge.f32.partialorder %v59_v21, 0.0 }
  0x87   :  { %v63_v23 = vsel %vm61_vm2, %v59_v21, %v62_v22  ;;  %v251_v22 = vsel %vm250_vm8, %v297_v15, %v249_v19 }
  0x88   :  { %272 = vmatmul.msk.f32.vlgmr.msra.gmra.mxu1 %vm37_vm0, %v63_v23  ;;  %v168_v24 = vrot.slane %v63_v23, 1 }
  0x8a   :  { %277 = vmatmul.msk.f32.vlgmr.msra.gmra.mxu3 %vm37_vm0, %v168_v24 }
  0x90   :  { %279 = vmatmul.msk.f32.vlgmr.msrb.gmra.mxu1 %vm105_vm1, %v167_v26 }
  0x92   :  { %v215_v39 = vpop.f32.mrf.mxu0 }
  0x95   :  { %v129_v27 = vpop.f32.mrf.mxu2 }
  0x9d   :  { %v132_v29 = vpop.f32.mrf.mxu2 }
 0x105   :  { %v101_v28 = vpop.f32.mrf.mxu1 }
 0x106   :  { %v104_v30 = vperm.slane %v101_v28, 0 }
 0x108   :  { %v130_v32 = vadd.f32 %v129_v27, %v104_v30  ;;  %v133_v33 = vadd.f32 %v132_v29, %v104_v30 }
 0x10a   :  { %v138_v34 = vadd.f32 %v295_v31, %v130_v32  ;;  %v139_v35 = vadd.f32 %v295_v31, %v133_v33 }
 0x10c   :  { %v143_v38 = vmul.f32 0.2, %v139_v35  ;;  %vm140_vm3 = vcmp.ge.f32.partialorder %v138_v34, 0.0  ;;  %vm141_vm4 = vcmp.ge.f32.partialorder %v139_v35, 0.0  ;;  %v142_v40 = vmul.f32 0.2, %v138_v34 }
 0x10d   :  { %v188_v41 = vpop.f32.mrf.mxu3  ;;  %v218_v42 = vpop.f32.mrf.mxu1 }
 0x10e   :  { %v191_v43 = vperm.slane %v188_v41, 0  ;;  %v144_v44 = vsel %vm140_vm3, %v138_v34, %v142_v40  ;;  %v145_v45 = vsel %vm141_vm4, %v139_v35, %v143_v38 }
 0x10f   :  { %v146_v46 = vmul.f32 %v144_v44, %v75_v36  ;;  %v147_v47 = vmul.f32 %v145_v45, %v76_v37 }
 0x110   :  { %v216_v48 = vadd.f32 %v215_v39, %v191_v43  ;;  %v219_v49 = vadd.f32 %v218_v42, %v191_v43 }
 0x111   :  { %v148_v50 = vsel %vm105_vm1, %v146_v46, 0.0  ;;  %v150_v51 = vsel %vm149_vm5, %v147_v47, 0.0 }
 0x112   :  { %v221_v52 = vadd.f32 %v295_v31, %v216_v48  ;;  %v222_v53 = vadd.f32 %v295_v31, %v219_v49  ;;  %v151_v54 = vadd.f32 %v150_v51, %v148_v50 }
 0x114   :  { %vm223_vm6 = vcmp.ge.f32.partialorder %v221_v52, 0.0  ;;  %v225_v55 = vmul.f32 0.2, %v221_v52  ;;  %vm224_vm7 = vcmp.ge.f32.partialorder %v222_v53, 0.0  ;;  %v226_v56 = vmul.f32 0.2, %v222_v53  ;;  %152 = vadd.xlane.f32.xlu0 %v151_v54 }
 0x116   :  { %v227_v57 = vsel %vm223_vm6, %v221_v52, %v225_v55  ;;  %v228_v58 = vsel %vm224_vm7, %v222_v53, %v226_v56 }
 0x117   :  { %v229_v59 = vmul.f32 %v227_v57, %v75_v36  ;;  %v230_v60 = vmul.f32 %v228_v58, %v76_v37 }
 0x119   :  { %v231_v61 = vsel %vm105_vm1, %v229_v59, 0.0  ;;  %v232_v62 = vsel %vm149_vm5, %v230_v60, 0.0 }
 0x11a   :  { %v233_v63 = vadd.f32 %v232_v62, %v231_v61 }
 0x11c   :  { %234 = vadd.xlane.f32.xlu0 %v233_v63 }
 0x187   :  { %v153_v0 = vpop.xlane.xlu0 %152 }
 0x188   :  { %v154_v1 = vrot.slane %v153_v0, 4 }
 0x18a   :  { %v155_v2 = vadd.f32 %v154_v1, %v153_v0 }
 0x18c   :  { %v156_v3 = vrot.slane %v155_v2, 2 }
 0x18e   :  { %v157_v4 = vadd.f32 %v156_v3, %v155_v2 }
 0x18f   :  { %v235_v5 = vpop.xlane.xlu0 %234 }
 0x190   :  { %v236_v6 = vrot.slane %v235_v5, 4  ;;  %v158_v7 = vrot.slane %v157_v4, 1 }
 0x192   :  { %v237_v8 = vadd.f32 %v236_v6, %v235_v5  ;;  %v159_v9 = vadd.f32 %v158_v7, %v157_v4 }
 0x194   :  { %v238_v10 = vrot.slane %v237_v8, 2  ;;  %288 = vpush %v159_v9 }
 0x196   :  { %v239_v11 = vadd.f32 %v238_v10, %v237_v8 }
 0x198   :  { %v240_v12 = vrot.slane %v239_v11, 1 }
 0x19a   :  { %v241_v13 = vadd.f32 %v240_v12, %v239_v11 }
 0x19c   :  { %290 = vpush %v241_v13 }
 0x1c5   :  { %s289_s6 = spop %288 }
 0x1c6   :  { %v161_v20 = vstv %s289_s6 }
 0x1cd   :  { %s291_s7 = spop %290 }
 0x1ce   :  { %v243_v21 = vstv %s291_s7 }
 0x1cf   :  { %v244_v23 = vadd.f32 %v243_v21, %v161_v20 }
 0x1d1   :  { %v252_v24 = vmul.f32 %v251_v22, %v244_v23 }
 0x1d3   :  { %254 = vst.msk [vmem:[#allocation2] sm:$0x1] %vm253_vm9, %v252_v24 }
 0x1d4   :  { %265 = dma.vmem_to_hbm [thread:$0]  %s261_s18, 16, %s263_s21, [#allocation3]  }
 0x1d5   :  { %322 = dma.done.wait [#allocation3], 16  }
 0x1d6   :  { %323 = vsyncadd [#allocation3], 4294967280 }
 0x1d7   :  { %270 = vsyncpa [#allocation3], 1 }

</bundles_post_ra>
